<compile_context>
chip_gen: v7x
topology: tpu7x:2x2x1
jax: 0.10.0
libtpu: 0.0.40
codegen_flags: <defaults>
</compile_context>

<pallas_src>
import functools

import jax
import jax.numpy as jnp
from jax import lax
from jax.experimental import pallas as pl
from jax.experimental.pallas import tpu as pltpu


def _round_up(a: int, b: int) -> int:
    return ((a + b - 1) // b) * b


def _device_kind() -> str:
    try:
        return jax.devices()[0].device_kind.lower()
    except Exception:
        return ""


_KIND = _device_kind()
# Dual-TensorCore devices (v4/v5p megacore, v7x): give the "parallel" M axis
# 2 balanced steps; single-TC v5e/v6e: 1 step (per-step overhead dominates).
_NUM_TC = 2 if any(s in _KIND for s in ("v4", "v5p", "v7", "7x")) else 1
# v6e / v7x have a bf16 VPU; v5e and older do not -> keep the one-hot in f32 there.
_ONEHOT_DTYPE = (jnp.bfloat16
                 if any(s in _KIND for s in ("v6", "v7", "7x"))
                 else jnp.float32)


# ----------------------------------------------------------------------------
# Pallas kernel 1: transposed conv matmul  W(OCp,Kp) @ P^T(Kp,Mtile) + bias
# (+ optional fused ReLU).  Used for ConvTranspose2d / Conv2d via im2col.
# ----------------------------------------------------------------------------
def _conv_matmul_kernel(w_ref, p_ref, bias_ref, o_ref, *, apply_relu):
    acc = jnp.dot(w_ref[...], p_ref[...], preferred_element_type=jnp.float32)
    acc = acc + bias_ref[...]                      # (OCp, 1) lane-broadcast
    if apply_relu:
        acc = jnp.maximum(acc, 0.0)
    o_ref[...] = acc.astype(o_ref.dtype)


def pallas_conv_matmul(wmat, pt, bias, *, apply_relu=False, out_dtype=jnp.float32):
    """wmat: [OC, K], pt: [K, M] (im2col^T), bias: [OC] -> [OC, M] (out_dtype)."""
    OC, K = wmat.shape
    M = pt.shape[1]
    OCp = _round_up(max(OC, 16), 16)           # 16: safe sublane multiple for bf16 out
    Kp = _round_up(max(K, 128), 128)
    Mp0 = _round_up(max(M, 128), 128)
    steps = max(1, min(_NUM_TC, Mp0 // 128))   # 1 on v5e/v6e, 2 on dual-TC chips
    tn = _round_up(-(-Mp0 // steps), 128)
    Mp = tn * steps

    w_p = jnp.pad(wmat.astype(jnp.bfloat16), ((0, OCp - OC), (0, Kp - K)))
    p_p = jnp.pad(pt.astype(jnp.bfloat16), ((0, Kp - K), (0, Mp - M)))
    bias_p = jnp.pad(bias.astype(jnp.float32), (0, OCp - OC)).reshape(OCp, 1)

    out = pl.pallas_call(
        functools.partial(_conv_matmul_kernel, apply_relu=apply_relu),
        out_shape=jax.ShapeDtypeStruct((OCp, Mp), out_dtype),
        grid=(Mp // tn,),
        in_specs=[
            pl.BlockSpec((OCp, Kp), lambda i: (0, 0)),
            pl.BlockSpec((Kp, tn), lambda i: (0, i)),
            pl.BlockSpec((OCp, 1), lambda i: (0, 0)),
        ],
        out_specs=pl.BlockSpec((OCp, tn), lambda i: (0, i)),
        compiler_params=pltpu.CompilerParams(dimension_semantics=("parallel",)),
    )(w_p, p_p, bias_p)
    # NOTE: padded rows/cols received bias (+ReLU); never consume without this slice.
    return out[:OC, :M]


# ----------------------------------------------------------------------------
# Pallas kernel 2: bilinear grid_sample (padding_mode='zeros',
# align_corners=False) as one MXU dot against a transposed sparse-weight
# (one-hot) matrix per tile.
# ----------------------------------------------------------------------------
def _grid_sample_kernel(coord_ref, xflat_ref, o_ref, *, H_in, W_in, onehot_dtype):
    c = coord_ref[0]                         # (2, TP) f32: row 0 = ix, row 1 = iy
    ix = c[0:1, :]                           # (1, TP) source x-coords (input pixels)
    iy = c[1:2, :]                           # (1, TP)
    xflat = xflat_ref[0]                     # (Cp, HWp) f32, channel-first

    hwp = xflat.shape[1]
    tp = ix.shape[1]

    x0 = jnp.floor(ix)
    y0 = jnp.floor(iy)
    wx1 = ix - x0
    wx0 = 1.0 - wx1
    wy1 = iy - y0
    wy0 = 1.0 - wy1
    x0i = x0.astype(jnp.int32)
    y0i = y0.astype(jnp.int32)
    x1i = x0i + 1
    y1i = y0i + 1

    def corner_idx(yi, xi):
        valid = (xi >= 0) & (xi < W_in) & (yi >= 0) & (yi < H_in)
        return jnp.where(valid, yi * W_in + xi, -1)       # (1, TP)

    idx00 = corner_idx(y0i, x0i)
    idx01 = corner_idx(y0i, x1i)
    idx10 = corner_idx(y1i, x0i)
    idx11 = corner_idx(y1i, x1i)
    w00 = (wy0 * wx0).astype(onehot_dtype)
    w01 = (wy0 * wx1).astype(onehot_dtype)
    w10 = (wy1 * wx0).astype(onehot_dtype)
    w11 = (wy1 * wx1).astype(onehot_dtype)

    # Transposed sparse bilinear weight matrix (HWp, TP).  The four corner
    # indices of one output pixel are always distinct (x1=x0+1, y1=y0+1, W>1),
    # and invalid corners carry idx=-1 which never matches a row id, so
    # chained selects are exact and need neither adds nor weight masking.
    row_ids = lax.broadcasted_iota(jnp.int32, (hwp, tp), 0)
    zero = jnp.zeros((), onehot_dtype)
    onehot = jnp.where(row_ids == idx00, w00,
             jnp.where(row_ids == idx01, w01,
             jnp.where(row_ids == idx10, w10,
             jnp.where(row_ids == idx11, w11, zero))))

    # One MXU dot per tile; bf16 operands, f32 accumulation; channel-first out.
    o_ref[0] = jnp.dot(xflat.astype(jnp.bfloat16), onehot.astype(jnp.bfloat16),
                       preferred_element_type=jnp.float32)


def pallas_grid_sample(x, ix, iy, tp=512):
    """x: [B, C, H_in, W_in]; ix, iy: [B, H_out, W_out] unnormalized coords."""
    B, C, H_in, W_in = x.shape
    H_out, W_out = ix.shape[1], ix.shape[2]
    P = H_out * W_out
    Pp = _round_up(max(P, tp), tp)
    HW = H_in * W_in
    HWp = _round_up(max(HW, 128), 128)
    Cp = _round_up(max(C, 8), 8)              # 8 sublanes, not 128 lanes

    xflat = x.astype(jnp.float32).reshape(B, C, HW)     # channel-first: no transpose
    xflat_p = jnp.pad(xflat, ((0, 0), (0, Cp - C), (0, HWp - HW)))

    # coords packed (B, 2, Pp): lane-dense blocks.  Pad with -2.0 so all four
    # corners of padded columns are invalid -> exact zero output columns.
    # (Do NOT change the pad value to anything in [-1, 0).)
    coords = jnp.stack([ix.reshape(B, P), iy.reshape(B, P)], axis=1).astype(jnp.float32)
    coords_p = jnp.pad(coords, ((0, 0), (0, 0), (0, Pp - P)), constant_values=-2.0)

    out = pl.pallas_call(
        functools.partial(_grid_sample_kernel, H_in=H_in, W_in=W_in,
                          onehot_dtype=_ONEHOT_DTYPE),
        out_shape=jax.ShapeDtypeStruct((B, Cp, Pp), jnp.float32),
        grid=(B, Pp // tp),   # B outer, P inner: xflat block DMA'd once per batch.
        in_specs=[
            pl.BlockSpec((1, 2, tp), lambda b, p: (b, 0, p)),
            pl.BlockSpec((1, Cp, HWp), lambda b, p: (b, 0, 0)),
        ],
        out_specs=pl.BlockSpec((1, Cp, tp), lambda b, p: (b, 0, p)),
        compiler_params=pltpu.CompilerParams(
            dimension_semantics=("parallel", "parallel")),
    )(coords_p, xflat_p)

    # Output is already channel-first: just slice padding and reshape.
    return out[:, :C, :P].reshape(B, C, H_out, W_out)


# ----------------------------------------------------------------------------
# Conv / ConvTranspose / pooling glue (im2col + transposed Pallas matmul).
# ----------------------------------------------------------------------------
def conv2d(x, w, b, *, apply_relu=False, out_dtype=jnp.float32):
    """x: [B,C,H,W]; w: [OC,C,kh,kw] (PyTorch layout); valid conv, stride 1."""
    B, C, H, W = x.shape
    OC, _, kh, kw = w.shape
    OH, OW = H - kh + 1, W - kw + 1
    x = x.astype(jnp.bfloat16)   # halve im2col materialization / DMA bytes
    # patch rows ordered (c, kh, kw) to match PyTorch weight.reshape(OC, -1)
    patches = jnp.stack(
        [x[:, :, i:i + OH, j:j + OW] for i in range(kh) for j in range(kw)],
        axis=2)                                            # [B, C, kh*kw, OH, OW]
    pt = patches.transpose(1, 2, 0, 3, 4).reshape(C * kh * kw, B * OH * OW)
    wmat = w.reshape(OC, C * kh * kw)
    out = pallas_conv_matmul(wmat, pt, b, apply_relu=apply_relu,
                             out_dtype=out_dtype)          # [OC, B*OH*OW]
    return out.reshape(OC, B, OH, OW).transpose(1, 0, 2, 3)


def conv_transpose2d(x, w, b, stride):
    """x: [B,IC,H,W]; w: [IC,OC,kh,kw] (PyTorch ConvTranspose2d layout)."""
    kh, kw = w.shape[2], w.shape[3]
    # interior padding = stride-1 (input dilation), edge padding = k-1
    pad_cfg = ((0, 0, 0), (0, 0, 0),
               (kh - 1, kh - 1, stride - 1), (kw - 1, kw - 1, stride - 1))
    xp = lax.pad(x, jnp.array(0.0, x.dtype), pad_cfg)
    w_conv = jnp.flip(w, axis=(2, 3)).transpose(1, 0, 2, 3)   # [OC, IC, kh, kw]
    return conv2d(xp, w_conv, b)


def max_pool2(x):
    """MaxPool2d(kernel=2, stride=2) with floor-mode cropping (PyTorch default)."""
    B, C, H, W = x.shape
    H2, W2 = H // 2, W // 2
    x = x[:, :, :2 * H2, :2 * W2].reshape(B, C, H2, 2, W2, 2)
    return x.max(axis=(3, 5))


# ----------------------------------------------------------------------------
# Parameters (deterministic synthetic init, shapes from the module __init__).
# ----------------------------------------------------------------------------
def init_params(key, input_features, output_features, kernel_size):
    ks = jax.random.split(key, 8)

    def u(k, shape, fan_in):
        bound = 1.0 / jnp.sqrt(jnp.float32(fan_in))
        return jax.random.uniform(k, shape, jnp.float32, -bound, bound)

    p = {}
    # ConvTranspose2d(in, out, k, stride): weight [in, out, k, k]
    p["up_w"] = u(ks[0], (input_features, output_features, kernel_size, kernel_size),
                  output_features * kernel_size * kernel_size)
    p["up_b"] = u(ks[1], (output_features,), output_features * kernel_size * kernel_size)
    # localization Conv2d(out_feat, 8, 7)
    p["c1_w"] = u(ks[2], (8, output_features, 7, 7), output_features * 49)
    p["c1_b"] = u(ks[3], (8,), output_features * 49)
    # localization Conv2d(8, 90, 5)
    p["c2_w"] = u(ks[4], (90, 8, 5, 5), 8 * 25)
    p["c2_b"] = u(ks[5], (90,), 8 * 25)
    # fc_loc Linear(90, 32)
    p["fc1_w"] = u(ks[6], (32, 90), 90)
    p["fc1_b"] = u(ks[7], (32,), 90)
    # fc_loc Linear(32, 6): zero weight, identity-affine bias (as in __init__)
    p["fc2_w"] = jnp.zeros((6, 32), jnp.float32)
    p["fc2_b"] = jnp.array([1, 0, 0, 0, 1, 0], jnp.float32)
    return p


# ----------------------------------------------------------------------------
# Forward pass (ScaleUpModule.forward), jit-compiled so wrapper glue
# (im2col, padding, transposes, affine_grid, fc_loc) fuses into one XLA program.
# ----------------------------------------------------------------------------
@functools.partial(jax.jit, static_argnums=(2, 3))
def scale_up_forward(params, x, output_shape, stride):
    # 1) transpose-convolution upscale (f32: it is the image that gets sampled)
    y = conv_transpose2d(x, params["up_w"], params["up_b"], stride)   # [B,OC,H',W']
    B, _, H_in, W_in = y.shape

    # 2) SpatialTransformer localization network.  ReLU fused into the conv
    #    epilogues (exact: ReLU commutes with max-pool); c1 output kept bf16
    #    since it is a purely intermediate activation.
    xs = conv2d(y, params["c1_w"], params["c1_b"], apply_relu=True,
                out_dtype=jnp.bfloat16)
    xs = max_pool2(xs)
    xs = conv2d(xs, params["c2_w"], params["c2_b"], apply_relu=True)
    xs = max_pool2(xs)
    xs = jnp.mean(xs.astype(jnp.float32), axis=(2, 3))                # AdaptiveAvgPool2d(1)
    xs = xs.reshape(-1, 90)

    # 3) fc_loc -> theta.  Tiny (M=2) matmuls: plain jnp, not worth a pallas_call.
    h = jnp.maximum(xs @ params["fc1_w"].T + params["fc1_b"], 0.0)
    theta = (h @ params["fc2_w"].T + params["fc2_b"]).reshape(-1, 2, 3)

    # 4) affine_grid (align_corners=False) — tiny, plain JAX glue
    _, H_out, W_out = output_shape
    bx = (2.0 * jnp.arange(W_out, dtype=jnp.float32) + 1.0) / W_out - 1.0
    by = (2.0 * jnp.arange(H_out, dtype=jnp.float32) + 1.0) / H_out - 1.0
    gx = (theta[:, 0, 0][:, None, None] * bx[None, None, :]
          + theta[:, 0, 1][:, None, None] * by[None, :, None]
          + theta[:, 0, 2][:, None, None])                            # [B,Ho,Wo]
    gy = (theta[:, 1, 0][:, None, None] * bx[None, None, :]
          + theta[:, 1, 1][:, None, None] * by[None, :, None]
          + theta[:, 1, 2][:, None, None])
    # unnormalize (align_corners=False)
    ix = ((gx + 1.0) * W_in - 1.0) / 2.0
    iy = ((gy + 1.0) * H_in - 1.0) / 2.0

    # 5) grid_sample (bilinear, zeros padding) in Pallas
    return pallas_grid_sample(y, ix, iy)


if __name__ == "__main__":
    key = jax.random.PRNGKey(0)
    k_param, k_x = jax.random.split(key)

    input_features, output_features, kernel_size, stride = 4, 4, 3, 2
    params = init_params(k_param, input_features, output_features, kernel_size)

    # x: [B=2, C=4, H=16, W=16] -> up_conv -> [2, 4, 33, 33]
    x = jax.random.normal(k_x, (2, 4, 16, 16), jnp.float32)
    output_shape = (output_features, 36, 36)   # (C, H_out, W_out) for affine_grid

    out = scale_up_forward(params, x, output_shape, stride)
    out = jax.block_until_ready(out)
    assert out.shape == (2, 4, 36, 36), out.shape
    assert bool(jnp.all(jnp.isfinite(out)))
    print("KERNEL_OK")
</pallas_src>

<mosaic_0001>
module attributes {stable_mosaic.version = 11 : i64} {
  func.func @_conv_matmul_kernel(%arg0: i32, %arg1: memref<16x128xbf16, #tpu.memory_space<vmem>>, %arg2: memref<128x2304xbf16, #tpu.memory_space<vmem>>, %arg3: memref<16x1xf32, #tpu.memory_space<vmem>>, %arg4: memref<16x2304xf32, #tpu.memory_space<vmem>>) attributes {dimension_semantics = [#tpu.dimension_semantics<parallel>], iteration_bounds = array<i64: 1>, scalar_prefetch = 0 : i64, scratch_operands = 0 : i64, tpu.core_type = #tpu.core_type<tc>, window_params = [{pipeline_mode = #tpu.pipeline_mode<synchronous>, transform_indices = @transform_0, window_bounds = array<i64: 16, 128>}, {transform_indices = @transform_1, window_bounds = array<i64: 128, 2304>}, {pipeline_mode = #tpu.pipeline_mode<synchronous>, transform_indices = @transform_2, window_bounds = array<i64: 16, 1>}, {transform_indices = @transform_3, window_bounds = array<i64: 16, 2304>}]} {
    %c0 = arith.constant 0 : index
    %c0_0 = arith.constant 0 : index
    %0 = vector.load %arg1[%c0, %c0_0] : memref<16x128xbf16, #tpu.memory_space<vmem>>, vector<16x128xbf16>
    %c0_1 = arith.constant 0 : index
    %c0_2 = arith.constant 0 : index
    %1 = vector.load %arg2[%c0_1, %c0_2] : memref<128x2304xbf16, #tpu.memory_space<vmem>>, vector<128x2304xbf16>
    %cst = arith.constant dense<0.000000e+00> : vector<16x2304xf32>
    %2 = tpu.matmul %0, %1, %cst {dimension_numbers = #tpu.dot_dimension_numbers<[1], [0], [0], [1], [0, 0, 1, 1], [], []>} : vector<16x128xbf16>, vector<128x2304xbf16>, vector<16x2304xf32> -> vector<16x2304xf32>
    %c0_3 = arith.constant 0 : index
    %c0_4 = arith.constant 0 : index
    %3 = vector.load %arg3[%c0_3, %c0_4] : memref<16x1xf32, #tpu.memory_space<vmem>>, vector<16x1xf32>
    %4 = vector.broadcast %3 : vector<16x1xf32> to vector<16x2304xf32>
    %5 = arith.addf %2, %4 : vector<16x2304xf32>
    %c0_5 = arith.constant 0 : index
    %c0_6 = arith.constant 0 : index
    %6 = vector.load %arg4[%c0_5, %c0_6] : memref<16x2304xf32, #tpu.memory_space<vmem>>, vector<16x2304xf32>
    tpu.vector_store %arg4[%c0_5, %c0_6], %5 {strides = array<i32>} : memref<16x2304xf32, #tpu.memory_space<vmem>>, vector<16x2304xf32>,
    return
  }
  func.func @transform_0(%arg0: i32) -> (i32, i32) {
    %c0_i32 = arith.constant 0 : i32
    %c0_i32_0 = arith.constant 0 : i32
    %c0_i32_1 = arith.constant 0 : i32
    return %c0_i32, %c0_i32_0 : i32, i32
  }
  func.func @transform_1(%arg0: i32) -> (i32, i32) {
    %c0_i32 = arith.constant 0 : i32
    %c0_i32_0 = arith.constant 0 : i32
    return %c0_i32, %arg0 : i32, i32
  }
  func.func @transform_2(%arg0: i32) -> (i32, i32) {
    %c0_i32 = arith.constant 0 : i32
    %c0_i32_0 = arith.constant 0 : i32
    %c0_i32_1 = arith.constant 0 : i32
    return %c0_i32, %c0_i32_0 : i32, i32
  }
  func.func @transform_3(%arg0: i32) -> (i32, i32) {
    %c0_i32 = arith.constant 0 : i32
    %c0_i32_0 = arith.constant 0 : i32
    return %c0_i32, %arg0 : i32, i32
  }
}

module attributes {stable_mosaic.version = 11 : i64} {
  func.func @_conv_matmul_kernel(%arg0: i32, %arg1: memref<16x256xbf16, #tpu.memory_space<vmem>>, %arg2: memref<256x1536xbf16, #tpu.memory_space<vmem>>, %arg3: memref<16x1xf32, #tpu.memory_space<vmem>>, %arg4: memref<16x1536xbf16, #tpu.memory_space<vmem>>) attributes {dimension_semantics = [#tpu.dimension_semantics<parallel>], iteration_bounds = array<i64: 1>, scalar_prefetch = 0 : i64, scratch_operands = 0 : i64, tpu.core_type = #tpu.core_type<tc>, window_params = [{pipeline_mode = #tpu.pipeline_mode<synchronous>, transform_indices = @transform_0, window_bounds = array<i64: 16, 256>}, {transform_indices = @transform_1, window_bounds = array<i64: 256, 1536>}, {pipeline_mode = #tpu.pipeline_mode<synchronous>, transform_indices = @transform_2, window_bounds = array<i64: 16, 1>}, {transform_indices = @transform_3, window_bounds = array<i64: 16, 1536>}]} {
    %c0 = arith.constant 0 : index
    %c0_0 = arith.constant 0 : index
    %0 = vector.load %arg1[%c0, %c0_0] : memref<16x256xbf16, #tpu.memory_space<vmem>>, vector<16x256xbf16>
    %c0_1 = arith.constant 0 : index
    %c0_2 = arith.constant 0 : index
    %1 = vector.load %arg2[%c0_1, %c0_2] : memref<256x1536xbf16, #tpu.memory_space<vmem>>, vector<256x1536xbf16>
    %cst = arith.constant dense<0.000000e+00> : vector<16x1536xf32>
    %2 = tpu.matmul %0, %1, %cst {dimension_numbers = #tpu.dot_dimension_numbers<[1], [0], [0], [1], [0, 0, 1, 1], [], []>} : vector<16x256xbf16>, vector<256x1536xbf16>, vector<16x1536xf32> -> vector<16x1536xf32>
    %c0_3 = arith.constant 0 : index
    %c0_4 = arith.constant 0 : index
    %3 = vector.load %arg3[%c0_3, %c0_4] : memref<16x1xf32, #tpu.memory_space<vmem>>, vector<16x1xf32>
    %4 = vector.broadcast %3 : vector<16x1xf32> to vector<16x1536xf32>
    %5 = arith.addf %2, %4 : vector<16x1536xf32>
    %cst_5 = arith.constant 0.000000e+00 : f32
    %6 = vector.broadcast %cst_5 : f32 to vector<16x1536xf32>
    %7 = arith.maximumf %5, %6 : vector<16x1536xf32>
    %8 = arith.truncf %7 : vector<16x1536xf32> to vector<16x1536xbf16>
    %c0_6 = arith.constant 0 : index
    %c0_7 = arith.constant 0 : index
    %9 = vector.load %arg4[%c0_6, %c0_7] : memref<16x1536xbf16, #tpu.memory_space<vmem>>, vector<16x1536xbf16>
    tpu.vector_store %arg4[%c0_6, %c0_7], %8 {strides = array<i32>} : memref<16x1536xbf16, #tpu.memory_space<vmem>>, vector<16x1536xbf16>,
    return
  }
  func.func @transform_0(%arg0: i32) -> (i32, i32) {
    %c0_i32 = arith.constant 0 : i32
    %c0_i32_0 = arith.constant 0 : i32
    %c0_i32_1 = arith.constant 0 : i32
    return %c0_i32, %c0_i32_0 : i32, i32
  }
  func.func @transform_1(%arg0: i32) -> (i32, i32) {
    %c0_i32 = arith.constant 0 : i32
    %c0_i32_0 = arith.constant 0 : i32
    return %c0_i32, %arg0 : i32, i32
  }
  func.func @transform_2(%arg0: i32) -> (i32, i32) {
    %c0_i32 = arith.constant 0 : i32
    %c0_i32_0 = arith.constant 0 : i32
    %c0_i32_1 = arith.constant 0 : i32
    return %c0_i32, %c0_i32_0 : i32, i32
  }
  func.func @transform_3(%arg0: i32) -> (i32, i32) {
    %c0_i32 = arith.constant 0 : i32
    %c0_i32_0 = arith.constant 0 : i32
    return %c0_i32, %arg0 : i32, i32
  }
}

module attributes {stable_mosaic.version = 11 : i64} {
  func.func @_conv_matmul_kernel(%arg0: i32, %arg1: memref<96x256xbf16, #tpu.memory_space<vmem>>, %arg2: memref<256x256xbf16, #tpu.memory_space<vmem>>, %arg3: memref<96x1xf32, #tpu.memory_space<vmem>>, %arg4: memref<96x256xf32, #tpu.memory_space<vmem>>) attributes {dimension_semantics = [#tpu.dimension_semantics<parallel>], iteration_bounds = array<i64: 1>, scalar_prefetch = 0 : i64, scratch_operands = 0 : i64, tpu.core_type = #tpu.core_type<tc>, window_params = [{pipeline_mode = #tpu.pipeline_mode<synchronous>, transform_indices = @transform_0, window_bounds = array<i64: 96, 256>}, {transform_indices = @transform_1, window_bounds = array<i64: 256, 256>}, {pipeline_mode = #tpu.pipeline_mode<synchronous>, transform_indices = @transform_2, window_bounds = array<i64: 96, 1>}, {transform_indices = @transform_3, window_bounds = array<i64: 96, 256>}]} {
    %c0 = arith.constant 0 : index
    %c0_0 = arith.constant 0 : index
    %0 = vector.load %arg1[%c0, %c0_0] : memref<96x256xbf16, #tpu.memory_space<vmem>>, vector<96x256xbf16>
    %c0_1 = arith.constant 0 : index
    %c0_2 = arith.constant 0 : index
    %1 = vector.load %arg2[%c0_1, %c0_2] : memref<256x256xbf16, #tpu.memory_space<vmem>>, vector<256x256xbf16>
    %cst = arith.constant dense<0.000000e+00> : vector<96x256xf32>
    %2 = tpu.matmul %0, %1, %cst {dimension_numbers = #tpu.dot_dimension_numbers<[1], [0], [0], [1], [0, 0, 1, 1], [], []>} : vector<96x256xbf16>, vector<256x256xbf16>, vector<96x256xf32> -> vector<96x256xf32>
    %c0_3 = arith.constant 0 : index
    %c0_4 = arith.constant 0 : index
    %3 = vector.load %arg3[%c0_3, %c0_4] : memref<96x1xf32, #tpu.memory_space<vmem>>, vector<96x1xf32>
    %4 = vector.broadcast %3 : vector<96x1xf32> to vector<96x256xf32>
    %5 = arith.addf %2, %4 : vector<96x256xf32>
    %cst_5 = arith.constant 0.000000e+00 : f32
    %6 = vector.broadcast %cst_5 : f32 to vector<96x256xf32>
    %7 = arith.maximumf %5, %6 : vector<96x256xf32>
    %c0_6 = arith.constant 0 : index
    %c0_7 = arith.constant 0 : index
    %8 = vector.load %arg4[%c0_6, %c0_7] : memref<96x256xf32, #tpu.memory_space<vmem>>, vector<96x256xf32>
    tpu.vector_store %arg4[%c0_6, %c0_7], %7 {strides = array<i32>} : memref<96x256xf32, #tpu.memory_space<vmem>>, vector<96x256xf32>,
    return
  }
  func.func @transform_0(%arg0: i32) -> (i32, i32) {
    %c0_i32 = arith.constant 0 : i32
    %c0_i32_0 = arith.constant 0 : i32
    %c0_i32_1 = arith.constant 0 : i32
    return %c0_i32, %c0_i32_0 : i32, i32
  }
  func.func @transform_1(%arg0: i32) -> (i32, i32) {
    %c0_i32 = arith.constant 0 : i32
    %c0_i32_0 = arith.constant 0 : i32
    return %c0_i32, %arg0 : i32, i32
  }
  func.func @transform_2(%arg0: i32) -> (i32, i32) {
    %c0_i32 = arith.constant 0 : i32
    %c0_i32_0 = arith.constant 0 : i32
    %c0_i32_1 = arith.constant 0 : i32
    return %c0_i32, %c0_i32_0 : i32, i32
  }
  func.func @transform_3(%arg0: i32) -> (i32, i32) {
    %c0_i32 = arith.constant 0 : i32
    %c0_i32_0 = arith.constant 0 : i32
    return %c0_i32, %arg0 : i32, i32
  }
}

module attributes {stable_mosaic.version = 11 : i64} {
  func.func @_grid_sample_kernel(%arg0: i32, %arg1: i32, %arg2: memref<1x2x512xf32, #tpu.memory_space<vmem>>, %arg3: memref<1x8x1152xf32, #tpu.memory_space<vmem>>, %arg4: memref<1x8x512xf32, #tpu.memory_space<vmem>>) attributes {dimension_semantics = [#tpu.dimension_semantics<parallel>, #tpu.dimension_semantics<parallel>], iteration_bounds = array<i64: 2, 3>, scalar_prefetch = 0 : i64, scratch_operands = 0 : i64, tpu.core_type = #tpu.core_type<tc>, window_params = [{transform_indices = @transform_0, window_bounds = array<i64: 1, 2, 512>}, {transform_indices = @transform_1, window_bounds = array<i64: 1, 8, 1152>}, {transform_indices = @transform_2, window_bounds = array<i64: 1, 8, 512>}]} {
    %c0 = arith.constant 0 : index
    %c0_0 = arith.constant 0 : index
    %c0_1 = arith.constant 0 : index
    %0 = vector.load %arg2[%c0, %c0_0, %c0_1] : memref<1x2x512xf32, #tpu.memory_space<vmem>>, vector<1x2x512xf32>
    %1 = vector.shape_cast %0 : vector<1x2x512xf32> to vector<2x512xf32>
    %2 = vector.extract_strided_slice %1 {offsets = [0, 0], sizes = [1, 512], strides = [1, 1]} : vector<2x512xf32> to vector<1x512xf32>
    %3 = vector.extract_strided_slice %1 {offsets = [1, 0], sizes = [1, 512], strides = [1, 1]} : vector<2x512xf32> to vector<1x512xf32>
    %c0_2 = arith.constant 0 : index
    %c0_3 = arith.constant 0 : index
    %c0_4 = arith.constant 0 : index
    %4 = vector.load %arg3[%c0_2, %c0_3, %c0_4] : memref<1x8x1152xf32, #tpu.memory_space<vmem>>, vector<1x8x1152xf32>
    %5 = vector.shape_cast %4 : vector<1x8x1152xf32> to vector<8x1152xf32>
    %6 = math.floor %2 : vector<1x512xf32>
    %7 = math.floor %3 : vector<1x512xf32>
    %8 = arith.subf %2, %6 : vector<1x512xf32>
    %cst = arith.constant 1.000000e+00 : f32
    %9 = vector.broadcast %cst : f32 to vector<1x512xf32>
    %10 = arith.subf %9, %8 : vector<1x512xf32>
    %11 = arith.subf %3, %7 : vector<1x512xf32>
    %cst_5 = arith.constant 1.000000e+00 : f32
    %12 = vector.broadcast %cst_5 : f32 to vector<1x512xf32>
    %13 = arith.subf %12, %11 : vector<1x512xf32>
    %14 = arith.fptosi %6 : vector<1x512xf32> to vector<1x512xi32>
    %15 = arith.fptosi %7 : vector<1x512xf32> to vector<1x512xi32>
    %c1_i32 = arith.constant 1 : i32
    %16 = vector.broadcast %c1_i32 : i32 to vector<1x512xi32>
    %17 = arith.addi %14, %16 : vector<1x512xi32>
    %c1_i32_6 = arith.constant 1 : i32
    %18 = vector.broadcast %c1_i32_6 : i32 to vector<1x512xi32>
    %19 = arith.addi %15, %18 : vector<1x512xi32>
    %c0_i32 = arith.constant 0 : i32
    %20 = vector.broadcast %c0_i32 : i32 to vector<1x512xi32>
    %21 = arith.cmpi sge, %14, %20 : vector<1x512xi32>
    %c33_i32 = arith.constant 33 : i32
    %22 = vector.broadcast %c33_i32 : i32 to vector<1x512xi32>
    %23 = arith.cmpi slt, %14, %22 : vector<1x512xi32>
    %24 = arith.andi %21, %23 : vector<1x512xi1>
    %c0_i32_7 = arith.constant 0 : i32
    %25 = vector.broadcast %c0_i32_7 : i32 to vector<1x512xi32>
    %26 = arith.cmpi sge, %15, %25 : vector<1x512xi32>
    %27 = arith.andi %24, %26 : vector<1x512xi1>
    %c33_i32_8 = arith.constant 33 : i32
    %28 = vector.broadcast %c33_i32_8 : i32 to vector<1x512xi32>
    %29 = arith.cmpi slt, %15, %28 : vector<1x512xi32>
    %30 = arith.andi %27, %29 : vector<1x512xi1>
    %c33_i32_9 = arith.constant 33 : i32
    %31 = vector.broadcast %c33_i32_9 : i32 to vector<1x512xi32>
    %32 = arith.muli %15, %31 : vector<1x512xi32>
    %33 = arith.addi %32, %14 : vector<1x512xi32>
    %c-1_i32 = arith.constant -1 : i32
    %34 = vector.broadcast %c-1_i32 : i32 to vector<1x512xi32>
    %35 = arith.select %30, %33, %34 : vector<1x512xi1>, vector<1x512xi32>
    %c0_i32_10 = arith.constant 0 : i32
    %36 = vector.broadcast %c0_i32_10 : i32 to vector<1x512xi32>
    %37 = arith.cmpi sge, %17, %36 : vector<1x512xi32>
    %c33_i32_11 = arith.constant 33 : i32
    %38 = vector.broadcast %c33_i32_11 : i32 to vector<1x512xi32>
    %39 = arith.cmpi slt, %17, %38 : vector<1x512xi32>
    %40 = arith.andi %37, %39 : vector<1x512xi1>
    %c0_i32_12 = arith.constant 0 : i32
    %41 = vector.broadcast %c0_i32_12 : i32 to vector<1x512xi32>
    %42 = arith.cmpi sge, %15, %41 : vector<1x512xi32>
    %43 = arith.andi %40, %42 : vector<1x512xi1>
    %c33_i32_13 = arith.constant 33 : i32
    %44 = vector.broadcast %c33_i32_13 : i32 to vector<1x512xi32>
    %45 = arith.cmpi slt, %15, %44 : vector<1x512xi32>
    %46 = arith.andi %43, %45 : vector<1x512xi1>
    %c33_i32_14 = arith.constant 33 : i32
    %47 = vector.broadcast %c33_i32_14 : i32 to vector<1x512xi32>
    %48 = arith.muli %15, %47 : vector<1x512xi32>
    %49 = arith.addi %48, %17 : vector<1x512xi32>
    %c-1_i32_15 = arith.constant -1 : i32
    %50 = vector.broadcast %c-1_i32_15 : i32 to vector<1x512xi32>
    %51 = arith.select %46, %49, %50 : vector<1x512xi1>, vector<1x512xi32>
    %c0_i32_16 = arith.constant 0 : i32
    %52 = vector.broadcast %c0_i32_16 : i32 to vector<1x512xi32>
    %53 = arith.cmpi sge, %14, %52 : vector<1x512xi32>
    %c33_i32_17 = arith.constant 33 : i32
    %54 = vector.broadcast %c33_i32_17 : i32 to vector<1x512xi32>
    %55 = arith.cmpi slt, %14, %54 : vector<1x512xi32>
    %56 = arith.andi %53, %55 : vector<1x512xi1>
    %c0_i32_18 = arith.constant 0 : i32
    %57 = vector.broadcast %c0_i32_18 : i32 to vector<1x512xi32>
    %58 = arith.cmpi sge, %19, %57 : vector<1x512xi32>
    %59 = arith.andi %56, %58 : vector<1x512xi1>
    %c33_i32_19 = arith.constant 33 : i32
    %60 = vector.broadcast %c33_i32_19 : i32 to vector<1x512xi32>
    %61 = arith.cmpi slt, %19, %60 : vector<1x512xi32>
    %62 = arith.andi %59, %61 : vector<1x512xi1>
    %c33_i32_20 = arith.constant 33 : i32
    %63 = vector.broadcast %c33_i32_20 : i32 to vector<1x512xi32>
    %64 = arith.muli %19, %63 : vector<1x512xi32>
    %65 = arith.addi %64, %14 : vector<1x512xi32>
    %c-1_i32_21 = arith.constant -1 : i32
    %66 = vector.broadcast %c-1_i32_21 : i32 to vector<1x512xi32>
    %67 = arith.select %62, %65, %66 : vector<1x512xi1>, vector<1x512xi32>
    %c0_i32_22 = arith.constant 0 : i32
    %68 = vector.broadcast %c0_i32_22 : i32 to vector<1x512xi32>
    %69 = arith.cmpi sge, %17, %68 : vector<1x512xi32>
    %c33_i32_23 = arith.constant 33 : i32
    %70 = vector.broadcast %c33_i32_23 : i32 to vector<1x512xi32>
    %71 = arith.cmpi slt, %17, %70 : vector<1x512xi32>
    %72 = arith.andi %69, %71 : vector<1x512xi1>
    %c0_i32_24 = arith.constant 0 : i32
    %73 = vector.broadcast %c0_i32_24 : i32 to vector<1x512xi32>
    %74 = arith.cmpi sge, %19, %73 : vector<1x512xi32>
    %75 = arith.andi %72, %74 : vector<1x512xi1>
    %c33_i32_25 = arith.constant 33 : i32
    %76 = vector.broadcast %c33_i32_25 : i32 to vector<1x512xi32>
    %77 = arith.cmpi slt, %19, %76 : vector<1x512xi32>
    %78 = arith.andi %75, %77 : vector<1x512xi1>
    %c33_i32_26 = arith.constant 33 : i32
    %79 = vector.broadcast %c33_i32_26 : i32 to vector<1x512xi32>
    %80 = arith.muli %19, %79 : vector<1x512xi32>
    %81 = arith.addi %80, %17 : vector<1x512xi32>
    %c-1_i32_27 = arith.constant -1 : i32
    %82 = vector.broadcast %c-1_i32_27 : i32 to vector<1x512xi32>
    %83 = arith.select %78, %81, %82 : vector<1x512xi1>, vector<1x512xi32>
    %84 = arith.mulf %13, %10 : vector<1x512xf32>
    %85 = arith.mulf %13, %8 : vector<1x512xf32>
    %86 = arith.mulf %11, %10 : vector<1x512xf32>
    %87 = arith.mulf %11, %8 : vector<1x512xf32>
    %88 = tpu.iota {dimensions = array<i32: 0>} : vector<1152x512xi32>
    %89 = vector.broadcast %35 : vector<1x512xi32> to vector<1152x512xi32>
    %90 = arith.cmpi eq, %88, %89 : vector<1152x512xi32>
    %91 = vector.broadcast %51 : vector<1x512xi32> to vector<1152x512xi32>
    %92 = arith.cmpi eq, %88, %91 : vector<1152x512xi32>
    %93 = vector.broadcast %67 : vector<1x512xi32> to vector<1152x512xi32>
    %94 = arith.cmpi eq, %88, %93 : vector<1152x512xi32>
    %95 = vector.broadcast %83 : vector<1x512xi32> to vector<1152x512xi32>
    %96 = arith.cmpi eq, %88, %95 : vector<1152x512xi32>
    %cst_28 = arith.constant 0.000000e+00 : f32
    %97 = vector.shape_cast %87 : vector<1x512xf32> to vector<1x512xf32>
    %98 = vector.broadcast %97 : vector<1x512xf32> to vector<1152x512xf32>
    %99 = vector.broadcast %cst_28 : f32 to vector<1152x512xf32>
    %100 = arith.select %96, %98, %99 : vector<1152x512xi1>, vector<1152x512xf32>
    %101 = vector.shape_cast %86 : vector<1x512xf32> to vector<1x512xf32>
    %102 = vector.broadcast %101 : vector<1x512xf32> to vector<1152x512xf32>
    %103 = arith.select %94, %102, %100 : vector<1152x512xi1>, vector<1152x512xf32>
    %104 = vector.shape_cast %85 : vector<1x512xf32> to vector<1x512xf32>
    %105 = vector.broadcast %104 : vector<1x512xf32> to vector<1152x512xf32>
    %106 = arith.select %92, %105, %103 : vector<1152x512xi1>, vector<1152x512xf32>
    %107 = vector.shape_cast %84 : vector<1x512xf32> to vector<1x512xf32>
    %108 = vector.broadcast %107 : vector<1x512xf32> to vector<1152x512xf32>
    %109 = arith.select %90, %108, %106 : vector<1152x512xi1>, vector<1152x512xf32>
    %110 = arith.truncf %5 : vector<8x1152xf32> to vector<8x1152xbf16>
    %111 = arith.truncf %109 : vector<1152x512xf32> to vector<1152x512xbf16>
    %cst_29 = arith.constant dense<0.000000e+00> : vector<8x512xf32>
    %112 = tpu.matmul %110, %111, %cst_29 {dimension_numbers = #tpu.dot_dimension_numbers<[1], [0], [0], [1], [0, 0, 1, 1], [], []>} : vector<8x1152xbf16>, vector<1152x512xbf16>, vector<8x512xf32> -> vector<8x512xf32>
    %c0_30 = arith.constant 0 : index
    %c0_31 = arith.constant 0 : index
    %c0_32 = arith.constant 0 : index
    %113 = vector.load %arg4[%c0_30, %c0_31, %c0_32] : memref<1x8x512xf32, #tpu.memory_space<vmem>>, vector<1x8x512xf32>
    %114 = vector.shape_cast %113 : vector<1x8x512xf32> to vector<8x512xf32>
    %115 = vector.shape_cast %112 : vector<8x512xf32> to vector<1x8x512xf32>
    tpu.vector_store %arg4[%c0_30, %c0_31, %c0_32], %115 {strides = array<i32>} : memref<1x8x512xf32, #tpu.memory_space<vmem>>, vector<1x8x512xf32>,
    return
  }
  func.func @transform_0(%arg0: i32, %arg1: i32) -> (i32, i32, i32) {
    %c0_i32 = arith.constant 0 : i32
    %c0_i32_0 = arith.constant 0 : i32
    return %arg0, %c0_i32, %arg1 : i32, i32, i32
  }
  func.func @transform_1(%arg0: i32, %arg1: i32) -> (i32, i32, i32) {
    %c0_i32 = arith.constant 0 : i32
    %c0_i32_0 = arith.constant 0 : i32
    %c0_i32_1 = arith.constant 0 : i32
    return %arg0, %c0_i32, %c0_i32_0 : i32, i32, i32
  }
  func.func @transform_2(%arg0: i32, %arg1: i32) -> (i32, i32, i32) {
    %c0_i32 = arith.constant 0 : i32
    %c0_i32_0 = arith.constant 0 : i32
    return %arg0, %c0_i32, %arg1 : i32, i32, i32
  }
}

</mosaic_0001>

<bundles_post_ra>
// kernel: scale_up_forward.4
= control target key start
LH: loop header
LB: loop body
LE: loop exit
PB: predicated region body
PF: predicated region fallthrough
CT: control target
= control target key end

     0   :  { %v1690_v1 = vmov 0   ;;  %s2321_s1 = inlined_call_operand.vmem [shape: bf16[128,2304], index: 1, kind: input, shape index: {}]   ;;  %s2322_s0 = inlined_call_operand.vmem [shape: bf16[16,128], index: 0, kind: input, shape index: {}]   ;;  %s2323_s2 = inlined_call_operand.vmem [shape: f32[16,1], index: 2, kind: input, shape index: {}]   ;;  %s2324_s3 = inlined_call_operand.vmem [shape: f32[16,2304], index: 3, kind: output, shape index: {}]  }
   0x1   :  { %v1473_v0 = vld [vmem:[%s2321_s1 + $0x4] ss:$72 sps:$4 sm:$0xff]   ;;  %931 = vmatprep.mubr.bf16.mxu0 %v1690_v1  ;;  %974 = vmatprep.mubr.bf16.mxu1 %v1690_v1  ;;  %v1475_v2 = vld [vmem:[%s2321_s1] ss:$72 sps:$4 sm:$0xff]   ;;  %v1476_v3 = vld [vmem:[%s2321_s1 + $0x94] ss:$72 sps:$4 sm:$0xff]  }
   0x2   :  { %1472 = vset.pattern.permute.xlu0 %v1690_v1  ;;  %899 = vmatprep.subr.bf16.mxu0 %v1473_v0  ;;  %v1478_v4 = vld [vmem:[%s2321_s1 + $0x90] ss:$72 sps:$4 sm:$0xff]   ;;  %v1479_v5 = vld [vmem:[%s2321_s1 + $0x124] ss:$72 sps:$4 sm:$0xff]   ;;  %v1481_v6 = vld [vmem:[%s2321_s1 + $0x120] ss:$72 sps:$4 sm:$0xff]  }
   0x3   :  { %900 = vmatpush1.bf16.msra.mxu0 %v1475_v2  ;;  %v1482_v7 = vld [vmem:[%s2321_s1 + $0x1b4] ss:$72 sps:$4 sm:$0xff]   ;;  %v1484_v8 = vld [vmem:[%s2321_s1 + $0x1b0] ss:$72 sps:$4 sm:$0xff]   ;;  %v1485_v11 = vld [vmem:[%s2321_s1 + $0x244] ss:$72 sps:$4 sm:$0xff]  }
   0x4   :  { %901 = vmatprep.subr.bf16.mxu0 %v1476_v3  ;;  %v1496_v9 = vld [vmem:[%s2321_s1 + $0xc] ss:$72 sps:$4 sm:$0xff]   ;;  %v1499_v10 = vld [vmem:[%s2321_s1 + $0x8] ss:$72 sps:$4 sm:$0xff]   ;;  %v1501_v12 = vld [vmem:[%s2321_s1 + $0x9c] ss:$72 sps:$4 sm:$0xff]  }
   0x5   :  { %942 = vmatprep.subr.bf16.mxu1 %v1496_v9  ;;  %v1487_v13 = vld [vmem:[%s2321_s1 + $0x240] ss:$72 sps:$4 sm:$0xff]   ;;  %v1488_v14 = vld [vmem:[%s2321_s1 + $0x2d4] ss:$72 sps:$4 sm:$0xff]   ;;  %v1490_v17 = vld [vmem:[%s2321_s1 + $0x2d0] ss:$72 sps:$4 sm:$0xff]  }
   0x6   :  { %943 = vmatpush1.bf16.msra.mxu1 %v1499_v10  ;;  %v1506_v15 = vld [vmem:[%s2321_s1 + $0x98] ss:$72 sps:$4 sm:$0xff]   ;;  %v1507_v16 = vld [vmem:[%s2321_s1 + $0x12c] ss:$72 sps:$4 sm:$0xff]   ;;  %v1512_v18 = vld [vmem:[%s2321_s1 + $0x128] ss:$72 sps:$4 sm:$0xff]  }
   0x7   :  { %902 = vmatpush1.bf16.msra.mxu0 %v1478_v4  ;;  %944 = vmatprep.subr.bf16.mxu1 %v1501_v12  ;;  %v1513_v19 = vld [vmem:[%s2321_s1 + $0x1bc] ss:$72 sps:$4 sm:$0xff]   ;;  %v1518_v21 = vld [vmem:[%s2321_s1 + $0x1b8] ss:$72 sps:$4 sm:$0xff]   ;;  %v1519_v23 = vld [vmem:[%s2321_s1 + $0x24c] ss:$72 sps:$4 sm:$0xff]  }
   0x8   :  { %903 = vmatprep.subr.bf16.mxu0 %v1479_v5  ;;  %v1491_v20 = vld [vmem:[%s2321_s1 + $0x364] ss:$72 sps:$4 sm:$0xff]   ;;  %v1493_v22 = vld [vmem:[%s2321_s1 + $0x360] ss:$72 sps:$4 sm:$0xff]   ;;  %v1494_v24 = vld [vmem:[%s2321_s1 + $0x3f4] ss:$72 sps:$4 sm:$0xff]  }
   0x9   :  { %v1498_v25 = vld [vmem:[%s2321_s1 + $0x3f0] ss:$72 sps:$4 sm:$0xff]   ;;  %v1525_v27 = vld [vmem:[%s2321_s1 + $0x2dc] ss:$72 sps:$4 sm:$0xff]   ;;  %v1531_v32 = vld [vmem:[%s2321_s1 + $0x36c] ss:$72 sps:$4 sm:$0xff]  }
   0xa   :  { %945 = vmatpush1.bf16.msra.mxu1 %v1506_v15  ;;  %v1524_v26 = vld [vmem:[%s2321_s1 + $0x248] ss:$72 sps:$4 sm:$0xff]   ;;  %v1505_v28 = vld [vmem:[%s2321_s1 + $0x14] ss:$72 sps:$4 sm:$0xff]   ;;  %v1801_v29 = vld [vmem:[%s2322_s0] sm:$0xff]  }
   0xb   :  { %904 = vmatpush1.bf16.msra.mxu0 %v1481_v6  ;;  %946 = vmatprep.subr.bf16.mxu1 %v1507_v16  ;;  %v1530_v30 = vld [vmem:[%s2321_s1 + $0x2d8] ss:$72 sps:$4 sm:$0xff]   ;;  %v1511_v33 = vld [vmem:[%s2321_s1 + $0xa4] ss:$72 sps:$4 sm:$0xff]   ;;  %v1536_v34 = vld [vmem:[%s2321_s1 + $0x368] ss:$72 sps:$4 sm:$0xff]  }
   0xc   :  { %905 = vmatprep.subr.bf16.mxu0 %v1482_v7  ;;  %v1503_v31 = vld [vmem:[%s2321_s1 + $0x10] ss:$72 sps:$4 sm:$0xff]   ;;  %v1509_v35 = vld [vmem:[%s2321_s1 + $0xa0] ss:$72 sps:$4 sm:$0xff]   ;;  %v1537_v36 = vld [vmem:[%s2321_s1 + $0x3fc] ss:$72 sps:$4 sm:$0xff]  }
   0xd   :  { %v1517_v37 = vld [vmem:[%s2321_s1 + $0x134] ss:$72 sps:$4 sm:$0xff]   ;;  %v1542_v38 = vld [vmem:[%s2321_s1 + $0x3f8] ss:$72 sps:$4 sm:$0xff]   ;;  %v1523_v41 = vld [vmem:[%s2321_s1 + $0x1c4] ss:$72 sps:$4 sm:$0xff]  }
   0xe   :  { %947 = vmatpush1.bf16.msra.mxu1 %v1512_v18  ;;  %v1515_v39 = vld [vmem:[%s2321_s1 + $0x130] ss:$72 sps:$4 sm:$0xff]   ;;  %v1548_v40 = vld [vmem:[%s2321_s1 + $0x1c] ss:$72 sps:$4 sm:$0xff]   ;;  %v1521_v43 = vld [vmem:[%s2321_s1 + $0x1c0] ss:$72 sps:$4 sm:$0xff]  }
   0xf   :  { %906 = vmatpush1.bf16.msra.mxu0 %v1484_v8  ;;  %948 = vmatprep.subr.bf16.mxu1 %v1513_v19  ;;  %v1546_v42 = vld [vmem:[%s2321_s1 + $0x18] ss:$72 sps:$4 sm:$0xff]   ;;  %v1551_v44 = vld [vmem:[%s2321_s1 + $0xac] ss:$72 sps:$4 sm:$0xff]   ;;  %v1549_v46 = vld [vmem:[%s2321_s1 + $0xa8] ss:$72 sps:$4 sm:$0xff]  }
  0x10   :  { %907 = vmatprep.subr.bf16.mxu0 %v1485_v11  ;;  %v1529_v45 = vld [vmem:[%s2321_s1 + $0x254] ss:$72 sps:$4 sm:$0xff]   ;;  %v1527_v47 = vld [vmem:[%s2321_s1 + $0x250] ss:$72 sps:$4 sm:$0xff]   ;;  %v1535_v49 = vld [vmem:[%s2321_s1 + $0x2e4] ss:$72 sps:$4 sm:$0xff]  }
  0x11   :  { %v1557_v48 = vld [vmem:[%s2321_s1 + $0x13c] ss:$72 sps:$4 sm:$0xff]   ;;  %v1555_v50 = vld [vmem:[%s2321_s1 + $0x138] ss:$72 sps:$4 sm:$0xff]   ;;  %v1563_v52 = vld [vmem:[%s2321_s1 + $0x1cc] ss:$72 sps:$4 sm:$0xff]  }
  0x12   :  { %949 = vmatpush1.bf16.msra.mxu1 %v1518_v21  ;;  %v1533_v51 = vld [vmem:[%s2321_s1 + $0x2e0] ss:$72 sps:$4 sm:$0xff]   ;;  %v1541_v53 = vld [vmem:[%s2321_s1 + $0x374] ss:$72 sps:$4 sm:$0xff]   ;;  %v1539_v55 = vld [vmem:[%s2321_s1 + $0x370] ss:$72 sps:$4 sm:$0xff]  }
  0x13   :  { %908 = vmatpush1.bf16.msra.mxu0 %v1487_v13  ;;  %950 = vmatprep.subr.bf16.mxu1 %v1519_v23  ;;  %v1561_v54 = vld [vmem:[%s2321_s1 + $0x1c8] ss:$72 sps:$4 sm:$0xff]   ;;  %v1569_v56 = vld [vmem:[%s2321_s1 + $0x25c] ss:$72 sps:$4 sm:$0xff]   ;;  %v1567_v58 = vld [vmem:[%s2321_s1 + $0x258] ss:$72 sps:$4 sm:$0xff]  }
  0x14   :  { %909 = vmatprep.subr.bf16.mxu0 %v1488_v14  ;;  %v1545_v57 = vld [vmem:[%s2321_s1 + $0x404] ss:$72 sps:$4 sm:$0xff]   ;;  %v1543_v59 = vld [vmem:[%s2321_s1 + $0x400] ss:$72 sps:$4 sm:$0xff]   ;;  %v1560_v2 = vld [vmem:[%s2321_s1 + $0xb4] ss:$72 sps:$4 sm:$0xff]  }
  0x15   :  { %v1575_v60 = vld [vmem:[%s2321_s1 + $0x2ec] ss:$72 sps:$4 sm:$0xff]   ;;  %v1573_v62 = vld [vmem:[%s2321_s1 + $0x2e8] ss:$72 sps:$4 sm:$0xff]   ;;  %v1581_v0 = vld [vmem:[%s2321_s1 + $0x37c] ss:$72 sps:$4 sm:$0xff]  }
  0x16   :  { %951 = vmatpush1.bf16.msra.mxu1 %v1524_v26  ;;  %v1554_v61 = vld [vmem:[%s2321_s1 + $0x24] ss:$72 sps:$4 sm:$0xff]   ;;  %v1552_v63 = vld [vmem:[%s2321_s1 + $0x20] ss:$72 sps:$4 sm:$0xff]   ;;  %v1558_v4 = vld [vmem:[%s2321_s1 + $0xb0] ss:$72 sps:$4 sm:$0xff]  }
  0x17   :  { %910 = vmatpush1.bf16.msra.mxu0 %v1490_v17  ;;  %952 = vmatprep.subr.bf16.mxu1 %v1525_v27  ;;  %v1579_v3 = vld [vmem:[%s2321_s1 + $0x378] ss:$72 sps:$4 sm:$0xff]   ;;  %v1587_v5 = vld [vmem:[%s2321_s1 + $0x40c] ss:$72 sps:$4 sm:$0xff]   ;;  %v1585_v9 = vld [vmem:[%s2321_s1 + $0x408] ss:$72 sps:$4 sm:$0xff]  }
  0x18   :  { %911 = vmatprep.subr.bf16.mxu0 %v1491_v20  ;;  %v1566_v6 = vld [vmem:[%s2321_s1 + $0x144] ss:$72 sps:$4 sm:$0xff]   ;;  %v1564_v8 = vld [vmem:[%s2321_s1 + $0x140] ss:$72 sps:$4 sm:$0xff]   ;;  %v1572_v10 = vld [vmem:[%s2321_s1 + $0x1d4] ss:$72 sps:$4 sm:$0xff]  }
  0x19   :  { %v161_v7 = vld [vmem:[%s2323_s2] sm:$0xff]  ;;  %v1596_v11 = vld [vmem:[%s2321_s1 + $0x2c] ss:$72 sps:$4 sm:$0xff]   ;;  %v1570_v13 = vld [vmem:[%s2321_s1 + $0x1d0] ss:$72 sps:$4 sm:$0xff]  }
  0x1a   :  { %953 = vmatpush1.bf16.msra.mxu1 %v1530_v30  ;;  %165 = vperm.xlu0 %1472, %v161_v7   ;;  %v162_v12 = vld [vmem:[%s2323_s2 + $0x8] sm:$0xff]  ;;  %v1599_v15 = vld [vmem:[%s2321_s1 + $0xbc] ss:$72 sps:$4 sm:$0xff]   ;;  %v1597_v18 = vld [vmem:[%s2321_s1 + $0xb8] ss:$72 sps:$4 sm:$0xff]  }
  0x1b   :  { %912 = vmatpush1.bf16.msra.mxu0 %v1493_v22  ;;  %954 = vmatprep.subr.bf16.mxu1 %v1531_v32  ;;  %v1594_v14 = vld [vmem:[%s2321_s1 + $0x28] ss:$72 sps:$4 sm:$0xff]   ;;  %v1578_v16 = vld [vmem:[%s2321_s1 + $0x264] ss:$72 sps:$4 sm:$0xff]   ;;  %v1584_v20 = vld [vmem:[%s2321_s1 + $0x2f4] ss:$72 sps:$4 sm:$0xff]  }
  0x1c   :  { %913 = vmatprep.subr.bf16.mxu0 %v1494_v24  ;;  %v1576_v17 = vld [vmem:[%s2321_s1 + $0x260] ss:$72 sps:$4 sm:$0xff]   ;;  %v1605_v19 = vld [vmem:[%s2321_s1 + $0x14c] ss:$72 sps:$4 sm:$0xff]   ;;  %v1582_v21 = vld [vmem:[%s2321_s1 + $0x2f0] ss:$72 sps:$4 sm:$0xff]  }
  0x1d   :  { %v1603_v22 = vld [vmem:[%s2321_s1 + $0x148] ss:$72 sps:$4 sm:$0xff]   ;;  %v1611_v23 = vld [vmem:[%s2321_s1 + $0x1dc] ss:$72 sps:$4 sm:$0xff]   ;;  %v1609_v26 = vld [vmem:[%s2321_s1 + $0x1d8] ss:$72 sps:$4 sm:$0xff]  }
  0x1e   :  { %955 = vmatpush1.bf16.msra.mxu1 %v1536_v34  ;;  %170 = vperm.xlu0 %1472, %v162_v12   ;;  %v1590_v24 = vld [vmem:[%s2321_s1 + $0x384] ss:$72 sps:$4 sm:$0xff]   ;;  %v1591_v30 = vld [vmem:[%s2321_s1 + $0x410] ss:$72 sps:$4 sm:$0xff]   ;;  %v1660_v12 = vld [vmem:[%s2321_s1 + $0x160] ss:$72 sps:$4 sm:$0xff]  }
  0x1f   :  { %914 = vmatpush1.bf16.msra.mxu0 %v1498_v25  ;;  %956 = vmatprep.subr.bf16.mxu1 %v1537_v36  ;;  %v1588_v25 = vld [vmem:[%s2321_s1 + $0x380] ss:$72 sps:$4 sm:$0xff]   ;;  %v1617_v27 = vld [vmem:[%s2321_s1 + $0x26c] ss:$72 sps:$4 sm:$0xff]   ;;  %v1623_v32 = vld [vmem:[%s2321_s1 + $0x2fc] ss:$72 sps:$4 sm:$0xff]  }
  0x20   :  { %985 = vmatprep.subr.bf16.mxu0 %v1505_v28  ;;  %v1593_v28 = vld [vmem:[%s2321_s1 + $0x414] ss:$72 sps:$4 sm:$0xff]   ;;  %v1600_v34 = vld [vmem:[%s2321_s1 + $0x30] ss:$72 sps:$4 sm:$0xff]  }
  0x21   :  { %v1629_v36 = vld [vmem:[%s2321_s1 + $0x38c] ss:$72 sps:$4 sm:$0xff]   ;;  %v1675_v7 = vld [vmem:[%s2321_s1 + $0x398] ss:$72 sps:$4 sm:$0xff]  }
  0x22   :  { %932 = vmatmul.mubr.bf16.vlgmr.msra.gmra.mrb[0].mxu0 %v1801_v29  ;;  %957 = vmatpush1.bf16.msra.mxu1 %v1542_v38  ;;  %v1627_v38 = vld [vmem:[%s2321_s1 + $0x388] ss:$72 sps:$4 sm:$0xff]  }
  0x23   :  { %986 = vmatpush1.bf16.msra.mxu0 %v1503_v31  ;;  %1017 = vmatprep.mubr.bf16.mxu0 %v1690_v1  ;;  %v1615_v31 = vld [vmem:[%s2321_s1 + $0x268] ss:$72 sps:$4 sm:$0xff]  }
  0x24   :  { %987 = vmatprep.subr.bf16.mxu0 %v1511_v33  ;;  %1028 = vmatprep.subr.bf16.mxu1 %v1548_v40  ;;  %v1602_v33 = vld [vmem:[%s2321_s1 + $0x34] ss:$72 sps:$4 sm:$0xff]  }
  0x25   :  { %975 = vmatmul.mubr.bf16.vlgmr.msra.gmra.mrb[0].mxu1 %v1801_v29  ;;  %v1635_v40 = vld [vmem:[%s2321_s1 + $0x41c] ss:$72 sps:$4 sm:$0xff]  }
  0x26   :  { %1029 = vmatpush1.bf16.msra.mxu1 %v1546_v42  ;;  %1060 = vmatprep.mubr.bf16.mxu1 %v1690_v1  ;;  %v1633_v42 = vld [vmem:[%s2321_s1 + $0x418] ss:$72 sps:$4 sm:$0xff]  }
  0x27   :  { %988 = vmatpush1.bf16.msra.mxu0 %v1509_v35  ;;  %1030 = vmatprep.subr.bf16.mxu1 %v1551_v44  ;;  %v1621_v35 = vld [vmem:[%s2321_s1 + $0x2f8] ss:$72 sps:$4 sm:$0xff]   ;;  %v1644_v44 = vld [vmem:[%s2321_s1 + $0x3c] ss:$72 sps:$4 sm:$0xff]  }
  0x28   :  { %989 = vmatprep.subr.bf16.mxu0 %v1517_v37  ;;  %v1608_v37 = vld [vmem:[%s2321_s1 + $0xc4] ss:$72 sps:$4 sm:$0xff]  }
  0x2a   :  { %1031 = vmatpush1.bf16.msra.mxu1 %v1549_v46  ;;  %v1642_v46 = vld [vmem:[%s2321_s1 + $0x38] ss:$72 sps:$4 sm:$0xff]  }
  0x2b   :  { %990 = vmatpush1.bf16.msra.mxu0 %v1515_v39  ;;  %1032 = vmatprep.subr.bf16.mxu1 %v1557_v48  ;;  %v1606_v39 = vld [vmem:[%s2321_s1 + $0xc0] ss:$72 sps:$4 sm:$0xff]   ;;  %v1647_v48 = vld [vmem:[%s2321_s1 + $0xcc] ss:$72 sps:$4 sm:$0xff]  }
  0x2c   :  { %991 = vmatprep.subr.bf16.mxu0 %v1523_v41  ;;  %v1614_v41 = vld [vmem:[%s2321_s1 + $0x154] ss:$72 sps:$4 sm:$0xff]  }
  0x2e   :  { %1033 = vmatpush1.bf16.msra.mxu1 %v1555_v50  ;;  %v1645_v50 = vld [vmem:[%s2321_s1 + $0xc8] ss:$72 sps:$4 sm:$0xff]  }
  0x2f   :  { %992 = vmatpush1.bf16.msra.mxu0 %v1521_v43  ;;  %1034 = vmatprep.subr.bf16.mxu1 %v1563_v52  ;;  %v1612_v43 = vld [vmem:[%s2321_s1 + $0x150] ss:$72 sps:$4 sm:$0xff]   ;;  %v1653_v52 = vld [vmem:[%s2321_s1 + $0x15c] ss:$72 sps:$4 sm:$0xff]  }
  0x30   :  { %993 = vmatprep.subr.bf16.mxu0 %v1529_v45  ;;  %v1620_v45 = vld [vmem:[%s2321_s1 + $0x1e4] ss:$72 sps:$4 sm:$0xff]  }
  0x32   :  { %1035 = vmatpush1.bf16.msra.mxu1 %v1561_v54  ;;  %v1651_v54 = vld [vmem:[%s2321_s1 + $0x158] ss:$72 sps:$4 sm:$0xff]  }
  0x33   :  { %994 = vmatpush1.bf16.msra.mxu0 %v1527_v47  ;;  %1036 = vmatprep.subr.bf16.mxu1 %v1569_v56  ;;  %v1618_v47 = vld [vmem:[%s2321_s1 + $0x1e0] ss:$72 sps:$4 sm:$0xff]   ;;  %v1659_v56 = vld [vmem:[%s2321_s1 + $0x1ec] ss:$72 sps:$4 sm:$0xff]  }
  0x34   :  { %995 = vmatprep.subr.bf16.mxu0 %v1535_v49  ;;  %v1626_v49 = vld [vmem:[%s2321_s1 + $0x274] ss:$72 sps:$4 sm:$0xff]  }
  0x36   :  { %1037 = vmatpush1.bf16.msra.mxu1 %v1567_v58  ;;  %v1657_v58 = vld [vmem:[%s2321_s1 + $0x1e8] ss:$72 sps:$4 sm:$0xff]  }
  0x37   :  { %996 = vmatpush1.bf16.msra.mxu0 %v1533_v51  ;;  %1038 = vmatprep.subr.bf16.mxu1 %v1575_v60  ;;  %v1624_v51 = vld [vmem:[%s2321_s1 + $0x270] ss:$72 sps:$4 sm:$0xff]   ;;  %v1665_v60 = vld [vmem:[%s2321_s1 + $0x27c] ss:$72 sps:$4 sm:$0xff]  }
  0x38   :  { %997 = vmatprep.subr.bf16.mxu0 %v1541_v53  ;;  %v1632_v53 = vld [vmem:[%s2321_s1 + $0x304] ss:$72 sps:$4 sm:$0xff]  }
  0x3a   :  { %1039 = vmatpush1.bf16.msra.mxu1 %v1573_v62  ;;  %v1663_v62 = vld [vmem:[%s2321_s1 + $0x278] ss:$72 sps:$4 sm:$0xff]  }
  0x3b   :  { %998 = vmatpush1.bf16.msra.mxu0 %v1539_v55  ;;  %1040 = vmatprep.subr.bf16.mxu1 %v1581_v0  ;;  %v1630_v55 = vld [vmem:[%s2321_s1 + $0x300] ss:$72 sps:$4 sm:$0xff]   ;;  %v1671_v0 = vld [vmem:[%s2321_s1 + $0x30c] ss:$72 sps:$4 sm:$0xff]  }
  0x3c   :  { %999 = vmatprep.subr.bf16.mxu0 %v1545_v57  ;;  %v1638_v57 = vld [vmem:[%s2321_s1 + $0x394] ss:$72 sps:$4 sm:$0xff]  }
  0x3e   :  { %1041 = vmatpush1.bf16.msra.mxu1 %v1579_v3  ;;  %v1669_v3 = vld [vmem:[%s2321_s1 + $0x308] ss:$72 sps:$4 sm:$0xff]  }
  0x3f   :  { %1000 = vmatpush1.bf16.msra.mxu0 %v1543_v59  ;;  %1042 = vmatprep.subr.bf16.mxu1 %v1587_v5  ;;  %v1636_v59 = vld [vmem:[%s2321_s1 + $0x390] ss:$72 sps:$4 sm:$0xff]   ;;  %v1677_v5 = vld [vmem:[%s2321_s1 + $0x39c] ss:$72 sps:$4 sm:$0xff]  }
  0x40   :  { %1071 = vmatprep.subr.bf16.mxu0 %v1554_v61  ;;  %v1641_v61 = vld [vmem:[%s2321_s1 + $0x424] ss:$72 sps:$4 sm:$0xff]  }
  0x42   :  { %1018 = vmatmul.mubr.bf16.vlgmr.msra.gmra.mrb[4].mxu0 %v1801_v29  ;;  %1043 = vmatpush1.bf16.msra.mxu1 %v1585_v9  ;;  %v1683_v9 = vld [vmem:[%s2321_s1 + $0x42c] ss:$72 sps:$4 sm:$0xff]  }
  0x43   :  { %1072 = vmatpush1.bf16.msra.mxu0 %v1552_v63  ;;  %1103 = vmatprep.mubr.bf16.mxu0 %v1690_v1  ;;  %v1639_v63 = vld [vmem:[%s2321_s1 + $0x420] ss:$72 sps:$4 sm:$0xff]  }
  0x44   :  { %1073 = vmatprep.subr.bf16.mxu0 %v1560_v2  ;;  %1114 = vmatprep.subr.bf16.mxu1 %v1596_v11  ;;  %v1650_v2 = vld [vmem:[%s2321_s1 + $0x44] ss:$72 sps:$4 sm:$0xff]   ;;  %v1681_v11 = vld [vmem:[%s2321_s1 + $0x428] ss:$72 sps:$4 sm:$0xff]  }
  0x45   :  { %1061 = vmatmul.mubr.bf16.vlgmr.msra.gmra.mrb[4].mxu1 %v1801_v29 }
  0x46   :  { %1115 = vmatpush1.bf16.msra.mxu1 %v1594_v14  ;;  %1146 = vmatprep.mubr.bf16.mxu1 %v1690_v1  ;;  %v1674_v14 = vld [vmem:[%s2321_s1 + $0x284] ss:$72 sps:$4 sm:$0xff]  }
  0x47   :  { %1074 = vmatpush1.bf16.msra.mxu0 %v1558_v4  ;;  %1116 = vmatprep.subr.bf16.mxu1 %v1599_v15  ;;  %v1648_v4 = vld [vmem:[%s2321_s1 + $0x40] ss:$72 sps:$4 sm:$0xff]  }
  0x48   :  { %1075 = vmatprep.subr.bf16.mxu0 %v1566_v6  ;;  %v1656_v6 = vld [vmem:[%s2321_s1 + $0xd4] ss:$72 sps:$4 sm:$0xff]   ;;  %v1672_v15 = vld [vmem:[%s2321_s1 + $0x280] ss:$72 sps:$4 sm:$0xff]  }
  0x4a   :  { %1117 = vmatpush1.bf16.msra.mxu1 %v1597_v18  ;;  %v1686_v18 = vld [vmem:[%s2321_s1 + $0x3a4] ss:$72 sps:$4 sm:$0xff]  }
  0x4b   :  { %1076 = vmatpush1.bf16.msra.mxu0 %v1564_v8  ;;  %1118 = vmatprep.subr.bf16.mxu1 %v1605_v19  ;;  %v1654_v8 = vld [vmem:[%s2321_s1 + $0xd0] ss:$72 sps:$4 sm:$0xff]   ;;  %v1684_v19 = vld [vmem:[%s2321_s1 + $0x3a0] ss:$72 sps:$4 sm:$0xff]  }
  0x4c   :  { %1077 = vmatprep.subr.bf16.mxu0 %v1572_v10  ;;  %v1662_v10 = vld [vmem:[%s2321_s1 + $0x164] ss:$72 sps:$4 sm:$0xff]  }
  0x4e   :  { %1119 = vmatpush1.bf16.msra.mxu1 %v1603_v22 }
  0x4f   :  { %1078 = vmatpush1.bf16.msra.mxu0 %v1570_v13  ;;  %1120 = vmatprep.subr.bf16.mxu1 %v1611_v23  ;;  %v1668_v13 = vld [vmem:[%s2321_s1 + $0x1f4] ss:$72 sps:$4 sm:$0xff]  }
  0x50   :  { %1079 = vmatprep.subr.bf16.mxu0 %v1578_v16  ;;  %v1680_v16 = vld [vmem:[%s2321_s1 + $0x314] ss:$72 sps:$4 sm:$0xff]  }
  0x52   :  { %1121 = vmatpush1.bf16.msra.mxu1 %v1609_v26 }
  0x53   :  { %1080 = vmatpush1.bf16.msra.mxu0 %v1576_v17  ;;  %1122 = vmatprep.subr.bf16.mxu1 %v1617_v27  ;;  %v1678_v17 = vld [vmem:[%s2321_s1 + $0x310] ss:$72 sps:$4 sm:$0xff]  }
  0x54   :  { %1081 = vmatprep.subr.bf16.mxu0 %v1584_v20  ;;  %v1689_v20 = vld [vmem:[%s2321_s1 + $0x434] ss:$72 sps:$4 sm:$0xff]  }
  0x56   :  { %1123 = vmatpush1.bf16.msra.mxu1 %v1615_v31 }
  0x57   :  { %1082 = vmatpush1.bf16.msra.mxu0 %v1582_v21  ;;  %1124 = vmatprep.subr.bf16.mxu1 %v1623_v32  ;;  %v1687_v21 = vld [vmem:[%s2321_s1 + $0x430] ss:$72 sps:$4 sm:$0xff]  }
  0x58   :  { %1083 = vmatprep.subr.bf16.mxu0 %v1590_v24 }
  0x5a   :  { %1125 = vmatpush1.bf16.msra.mxu1 %v1621_v35 }
  0x5b   :  { %1084 = vmatpush1.bf16.msra.mxu0 %v1588_v25  ;;  %1126 = vmatprep.subr.bf16.mxu1 %v1629_v36 }
  0x5c   :  { %1085 = vmatprep.subr.bf16.mxu0 %v1593_v28 }
  0x5e   :  { %1127 = vmatpush1.bf16.msra.mxu1 %v1627_v38 }
  0x5f   :  { %1086 = vmatpush1.bf16.msra.mxu0 %v1591_v30  ;;  %1128 = vmatprep.subr.bf16.mxu1 %v1635_v40 }
  0x60   :  { %1157 = vmatprep.subr.bf16.mxu0 %v1602_v33 }
  0x62   :  { %1104 = vmatmul.mubr.bf16.vlgmr.msra.gmra.mrb[8].mxu0 %v1801_v29  ;;  %1129 = vmatpush1.bf16.msra.mxu1 %v1633_v42 }
  0x63   :  { %1158 = vmatpush1.bf16.msra.mxu0 %v1600_v34  ;;  %1189 = vmatprep.mubr.bf16.mxu0 %v1690_v1 }
  0x64   :  { %1159 = vmatprep.subr.bf16.mxu0 %v1608_v37  ;;  %1200 = vmatprep.subr.bf16.mxu1 %v1644_v44 }
  0x65   :  { %1147 = vmatmul.mubr.bf16.vlgmr.msra.gmra.mrb[8].mxu1 %v1801_v29 }
  0x66   :  { %1201 = vmatpush1.bf16.msra.mxu1 %v1642_v46  ;;  %1232 = vmatprep.mubr.bf16.mxu1 %v1690_v1 }
  0x67   :  { %1160 = vmatpush1.bf16.msra.mxu0 %v1606_v39  ;;  %1202 = vmatprep.subr.bf16.mxu1 %v1647_v48 }
  0x68   :  { %1161 = vmatprep.subr.bf16.mxu0 %v1614_v41 }
  0x6a   :  { %1203 = vmatpush1.bf16.msra.mxu1 %v1645_v50 }
  0x6b   :  { %1162 = vmatpush1.bf16.msra.mxu0 %v1612_v43  ;;  %1204 = vmatprep.subr.bf16.mxu1 %v1653_v52 }
  0x6c   :  { %1163 = vmatprep.subr.bf16.mxu0 %v1620_v45 }
  0x6e   :  { %1205 = vmatpush1.bf16.msra.mxu1 %v1651_v54 }
  0x6f   :  { %1164 = vmatpush1.bf16.msra.mxu0 %v1618_v47  ;;  %1206 = vmatprep.subr.bf16.mxu1 %v1659_v56 }
  0x70   :  { %1165 = vmatprep.subr.bf16.mxu0 %v1626_v49 }
  0x72   :  { %1207 = vmatpush1.bf16.msra.mxu1 %v1657_v58 }
  0x73   :  { %1166 = vmatpush1.bf16.msra.mxu0 %v1624_v51  ;;  %1208 = vmatprep.subr.bf16.mxu1 %v1665_v60 }
  0x74   :  { %1167 = vmatprep.subr.bf16.mxu0 %v1632_v53 }
  0x76   :  { %1209 = vmatpush1.bf16.msra.mxu1 %v1663_v62 }
  0x77   :  { %1168 = vmatpush1.bf16.msra.mxu0 %v1630_v55  ;;  %1210 = vmatprep.subr.bf16.mxu1 %v1671_v0 }
  0x78   :  { %1169 = vmatprep.subr.bf16.mxu0 %v1638_v57 }
  0x7a   :  { %1211 = vmatpush1.bf16.msra.mxu1 %v1669_v3 }
  0x7b   :  { %1170 = vmatpush1.bf16.msra.mxu0 %v1636_v59  ;;  %1212 = vmatprep.subr.bf16.mxu1 %v1677_v5 }
  0x7c   :  { %1171 = vmatprep.subr.bf16.mxu0 %v1641_v61 }
  0x7e   :  { %1213 = vmatpush1.bf16.msra.mxu1 %v1675_v7 }
  0x7f   :  { %1172 = vmatpush1.bf16.msra.mxu0 %v1639_v63  ;;  %1214 = vmatprep.subr.bf16.mxu1 %v1683_v9 }
  0x80   :  { %1243 = vmatprep.subr.bf16.mxu0 %v1650_v2 }
  0x82   :  { %1190 = vmatmul.mubr.bf16.vlgmr.msra.gmra.mrb[12].mxu0 %v1801_v29  ;;  %1215 = vmatpush1.bf16.msra.mxu1 %v1681_v11 }
  0x83   :  { %1244 = vmatpush1.bf16.msra.mxu0 %v1648_v4  ;;  %1275 = vmatprep.mubr.bf16.mxu0 %v1690_v1  ;;  %v1666_v1 = vld [vmem:[%s2321_s1 + $0x1f0] ss:$72 sps:$4 sm:$0xff]  }
  0x84   :  { %1245 = vmatprep.subr.bf16.mxu0 %v1656_v6 }
  0x85   :  { %1233 = vmatmul.mubr.bf16.vlgmr.msra.gmra.mrb[12].mxu1 %v1801_v29 }
  0x87   :  { %1246 = vmatpush1.bf16.msra.mxu0 %v1654_v8 }
  0x88   :  { %1247 = vmatprep.subr.bf16.mxu0 %v1662_v10 }
  0x8b   :  { %1248 = vmatpush1.bf16.msra.mxu0 %v1660_v12 }
  0x8c   :  { %1249 = vmatprep.subr.bf16.mxu0 %v1668_v13 }
  0x8f   :  { %1250 = vmatpush1.bf16.msra.mxu0 %v1666_v1 }
  0x90   :  { %1251 = vmatprep.subr.bf16.mxu0 %v1674_v14 }
  0x93   :  { %1252 = vmatpush1.bf16.msra.mxu0 %v1672_v15 }
  0x94   :  { %1253 = vmatprep.subr.bf16.mxu0 %v1680_v16 }
  0x97   :  { %1254 = vmatpush1.bf16.msra.mxu0 %v1678_v17 }
  0x98   :  { %1255 = vmatprep.subr.bf16.mxu0 %v1686_v18 }
  0x99   :  { %v2173_v22 = vpop.permute.xlu0 %165 }
  0x9b   :  { %1256 = vmatpush1.bf16.msra.mxu0 %v1684_v19 }
  0x9c   :  { %1257 = vmatprep.subr.bf16.mxu0 %v1689_v20 }
  0x9d   :  { %v2175_v24 = vpop.permute.xlu0 %170 }
  0x9f   :  { %1258 = vmatpush1.bf16.msra.mxu0 %v1687_v21 }
  0xa2   :  { %1276 = vmatmul.mubr.bf16.vlgmr.msra.gmra.mrb[16].mxu0 %v1801_v29 }
  0xf5   :  { %v933_v23 = vpop.f32.mrb[0].mxu0 }
  0xf6   :  { %v934_v25 = vadd.f32 %v933_v23, %v2173_v22  ;;  %v935_v26 = vpop.f32.mrb[1].mxu0 }
  0xf7   :  { %v936_v27 = vadd.f32 %v935_v26, %v2173_v22  ;;  %v937_v28 = vpop.f32.mrb[2].mxu0 }
  0xf8   :  { %1286 = vst [vmem:[%s2324_s3] sm:$0xff] %v934_v25  ;;  %v938_v30 = vadd.f32 %v937_v28, %v2175_v24  ;;  %v939_v31 = vpop.f32.mrb[3].mxu0  ;;  %v976_v32 = vpop.f32.mrb[0].mxu1 }
  0xf9   :  { %1287 = vst [vmem:[%s2324_s3 + $0x8] sm:$0xff] %v936_v27  ;;  %v940_v29 = vadd.f32 %v939_v31, %v2175_v24  ;;  %v977_v33 = vadd.f32 %v976_v32, %v2173_v22  ;;  %v978_v34 = vpop.f32.mrb[1].mxu1 }
  0xfa   :  { %1304 = vst [vmem:[%s2324_s3 + $0x90] sm:$0xff] %v938_v30  ;;  %v979_v35 = vadd.f32 %v978_v34, %v2173_v22  ;;  %v980_v36 = vpop.f32.mrb[2].mxu1 }
  0xfb   :  { %1305 = vst [vmem:[%s2324_s3 + $0x98] sm:$0xff] %v940_v29  ;;  %1288 = vst [vmem:[%s2324_s3 + $0x10] sm:$0xff] %v977_v33  ;;  %v981_v37 = vadd.f32 %v980_v36, %v2175_v24  ;;  %v982_v38 = vpop.f32.mrb[3].mxu1 }
  0xfc   :  { %1289 = vst [vmem:[%s2324_s3 + $0x18] sm:$0xff] %v979_v35  ;;  %v983_v39 = vadd.f32 %v982_v38, %v2175_v24 }
  0xfd   :  { %1306 = vst [vmem:[%s2324_s3 + $0xa0] sm:$0xff] %v981_v37 }
  0xfe   :  { %1307 = vst [vmem:[%s2324_s3 + $0xa8] sm:$0xff] %v983_v39 }
 0x115   :  { %v1019_v40 = vpop.f32.mrb[4].mxu0 }
 0x116   :  { %v1020_v41 = vadd.f32 %v1019_v40, %v2173_v22  ;;  %v1021_v42 = vpop.f32.mrb[5].mxu0 }
 0x117   :  { %v1022_v43 = vadd.f32 %v1021_v42, %v2173_v22  ;;  %v1023_v44 = vpop.f32.mrb[6].mxu0 }
 0x118   :  { %1290 = vst [vmem:[%s2324_s3 + $0x20] sm:$0xff] %v1020_v41  ;;  %v1024_v45 = vadd.f32 %v1023_v44, %v2175_v24  ;;  %v1025_v46 = vpop.f32.mrb[7].mxu0  ;;  %v1062_v48 = vpop.f32.mrb[4].mxu1 }
 0x119   :  { %1291 = vst [vmem:[%s2324_s3 + $0x28] sm:$0xff] %v1022_v43  ;;  %v1026_v47 = vadd.f32 %v1025_v46, %v2175_v24  ;;  %v1063_v49 = vadd.f32 %v1062_v48, %v2173_v22  ;;  %v1064_v50 = vpop.f32.mrb[5].mxu1 }
 0x11a   :  { %1308 = vst [vmem:[%s2324_s3 + $0xb0] sm:$0xff] %v1024_v45  ;;  %v1065_v51 = vadd.f32 %v1064_v50, %v2173_v22  ;;  %v1066_v52 = vpop.f32.mrb[6].mxu1 }
 0x11b   :  { %1309 = vst [vmem:[%s2324_s3 + $0xb8] sm:$0xff] %v1026_v47  ;;  %1292 = vst [vmem:[%s2324_s3 + $0x30] sm:$0xff] %v1063_v49  ;;  %v1067_v53 = vadd.f32 %v1066_v52, %v2175_v24  ;;  %v1068_v54 = vpop.f32.mrb[7].mxu1 }
 0x11c   :  { %1293 = vst [vmem:[%s2324_s3 + $0x38] sm:$0xff] %v1065_v51  ;;  %v1069_v55 = vadd.f32 %v1068_v54, %v2175_v24 }
 0x11d   :  { %1310 = vst [vmem:[%s2324_s3 + $0xc0] sm:$0xff] %v1067_v53 }
 0x11e   :  { %1311 = vst [vmem:[%s2324_s3 + $0xc8] sm:$0xff] %v1069_v55 }
 0x135   :  { %v1105_v56 = vpop.f32.mrb[8].mxu0 }
 0x136   :  { %v1106_v57 = vadd.f32 %v1105_v56, %v2173_v22  ;;  %v1107_v58 = vpop.f32.mrb[9].mxu0 }
 0x137   :  { %v1108_v59 = vadd.f32 %v1107_v58, %v2173_v22  ;;  %v1109_v60 = vpop.f32.mrb[10].mxu0 }
 0x138   :  { %1294 = vst [vmem:[%s2324_s3 + $0x40] sm:$0xff] %v1106_v57  ;;  %v1110_v61 = vadd.f32 %v1109_v60, %v2175_v24  ;;  %v1111_v62 = vpop.f32.mrb[11].mxu0  ;;  %v1148_v0 = vpop.f32.mrb[8].mxu1 }
 0x139   :  { %1295 = vst [vmem:[%s2324_s3 + $0x48] sm:$0xff] %v1108_v59  ;;  %v1112_v63 = vadd.f32 %v1111_v62, %v2175_v24  ;;  %v1149_v2 = vadd.f32 %v1148_v0, %v2173_v22  ;;  %v1150_v3 = vpop.f32.mrb[9].mxu1 }
 0x13a   :  { %1312 = vst [vmem:[%s2324_s3 + $0xd0] sm:$0xff] %v1110_v61  ;;  %v1151_v4 = vadd.f32 %v1150_v3, %v2173_v22  ;;  %v1152_v5 = vpop.f32.mrb[10].mxu1 }
 0x13b   :  { %1313 = vst [vmem:[%s2324_s3 + $0xd8] sm:$0xff] %v1112_v63  ;;  %1296 = vst [vmem:[%s2324_s3 + $0x50] sm:$0xff] %v1149_v2  ;;  %v1153_v6 = vadd.f32 %v1152_v5, %v2175_v24  ;;  %v1154_v7 = vpop.f32.mrb[11].mxu1 }
 0x13c   :  { %1297 = vst [vmem:[%s2324_s3 + $0x58] sm:$0xff] %v1151_v4  ;;  %v1155_v8 = vadd.f32 %v1154_v7, %v2175_v24 }
 0x13d   :  { %1314 = vst [vmem:[%s2324_s3 + $0xe0] sm:$0xff] %v1153_v6 }
 0x13e   :  { %1315 = vst [vmem:[%s2324_s3 + $0xe8] sm:$0xff] %v1155_v8 }
 0x155   :  { %v1191_v9 = vpop.f32.mrb[12].mxu0 }
 0x156   :  { %v1192_v10 = vadd.f32 %v1191_v9, %v2173_v22  ;;  %v1193_v11 = vpop.f32.mrb[13].mxu0 }
 0x157   :  { %v1194_v12 = vadd.f32 %v1193_v11, %v2173_v22  ;;  %v1195_v13 = vpop.f32.mrb[14].mxu0 }
 0x158   :  { %1298 = vst [vmem:[%s2324_s3 + $0x60] sm:$0xff] %v1192_v10  ;;  %v1196_v1 = vadd.f32 %v1195_v13, %v2175_v24  ;;  %v1197_v14 = vpop.f32.mrb[15].mxu0  ;;  %v1234_v16 = vpop.f32.mrb[12].mxu1 }
 0x159   :  { %1299 = vst [vmem:[%s2324_s3 + $0x68] sm:$0xff] %v1194_v12  ;;  %v1198_v15 = vadd.f32 %v1197_v14, %v2175_v24  ;;  %v1235_v17 = vadd.f32 %v1234_v16, %v2173_v22  ;;  %v1236_v18 = vpop.f32.mrb[13].mxu1 }
 0x15a   :  { %1316 = vst [vmem:[%s2324_s3 + $0xf0] sm:$0xff] %v1196_v1  ;;  %v1237_v19 = vadd.f32 %v1236_v18, %v2173_v22  ;;  %v1238_v20 = vpop.f32.mrb[14].mxu1 }
 0x15b   :  { %1317 = vst [vmem:[%s2324_s3 + $0xf8] sm:$0xff] %v1198_v15  ;;  %1300 = vst [vmem:[%s2324_s3 + $0x70] sm:$0xff] %v1235_v17  ;;  %v1239_v21 = vadd.f32 %v1238_v20, %v2175_v24  ;;  %v1240_v23 = vpop.f32.mrb[15].mxu1 }
 0x15c   :  { %1301 = vst [vmem:[%s2324_s3 + $0x78] sm:$0xff] %v1237_v19  ;;  %v1241_v25 = vadd.f32 %v1240_v23, %v2175_v24 }
 0x15d   :  { %1318 = vst [vmem:[%s2324_s3 + $0x100] sm:$0xff] %v1239_v21 }
 0x15e   :  { %1319 = vst [vmem:[%s2324_s3 + $0x108] sm:$0xff] %v1241_v25 }
 0x175   :  { %v1277_v26 = vpop.f32.mrb[16].mxu0 }
 0x176   :  { %v1278_v27 = vadd.f32 %v1277_v26, %v2173_v22  ;;  %v1279_v28 = vpop.f32.mrb[17].mxu0 }
 0x177   :  { %v1280_v30 = vadd.f32 %v1279_v28, %v2173_v22  ;;  %v1281_v31 = vpop.f32.mrb[18].mxu0 }
 0x178   :  { %1302 = vst [vmem:[%s2324_s3 + $0x80] sm:$0xff] %v1278_v27  ;;  %v1282_v29 = vadd.f32 %v1281_v31, %v2175_v24  ;;  %v1283_v32 = vpop.f32.mrb[19].mxu0 }
 0x179   :  { %1303 = vst [vmem:[%s2324_s3 + $0x88] sm:$0xff] %v1280_v30  ;;  %v1284_v33 = vadd.f32 %v1283_v32, %v2175_v24 }
 0x17a   :  { %1320 = vst [vmem:[%s2324_s3 + $0x110] sm:$0xff] %v1282_v29 }
 0x17b   :  { %1321 = vst [vmem:[%s2324_s3 + $0x118] sm:$0xff] %v1284_v33 }

// kernel: scale_up_forward.5
= control target key start
LH: loop header
LB: loop body
LE: loop exit
PB: predicated region body
PF: predicated region fallthrough
CT: control target
= control target key end

     0   :  { %v2071_v22 = vmov 0   ;;  %s2760_s1 = inlined_call_operand.vmem [shape: bf16[256,1536], index: 1, kind: input, shape index: {}]   ;;  %s2761_s0 = inlined_call_operand.vmem [shape: bf16[16,256], index: 0, kind: input, shape index: {}]   ;;  %s2762_s2 = inlined_call_operand.vmem [shape: f32[16,1], index: 2, kind: input, shape index: {}]   ;;  %s2763_s3 = inlined_call_operand.vmem [shape: bf16[16,1536], index: 3, kind: output, shape index: {}]  }
   0x1   :  { %v1780_v0 = vld [vmem:[%s2760_s1 + $0x4] ss:$48 sps:$4 sm:$0xff]   ;;  %v1782_v1 = vld [vmem:[%s2760_s1 + $0xc] ss:$48 sps:$4 sm:$0xff]   ;;  %v1784_v2 = vld [vmem:[%s2760_s1] ss:$48 sps:$4 sm:$0xff]   ;;  %1779 = vset.pattern.permute.xlu0 %v2071_v22 }
   0x2   :  { %1190 = vmatprep.subr.bf16.mxu0 %v1780_v0  ;;  %v1785_v3 = vld [vmem:[%s2760_s1 + $0x8] ss:$48 sps:$4 sm:$0xff]   ;;  %1233 = vmatprep.subr.bf16.mxu1 %v1782_v1  ;;  %v1786_v4 = vld [vmem:[%s2760_s1 + $0x64] ss:$48 sps:$4 sm:$0xff]   ;;  %v1788_v5 = vld [vmem:[%s2760_s1 + $0x6c] ss:$48 sps:$4 sm:$0xff]  }
   0x3   :  { %1191 = vmatpush1.bf16.msra.mxu0 %v1784_v2  ;;  %1234 = vmatpush1.bf16.msra.mxu1 %v1785_v3  ;;  %v1790_v6 = vld [vmem:[%s2760_s1 + $0x60] ss:$48 sps:$4 sm:$0xff]   ;;  %v1791_v7 = vld [vmem:[%s2760_s1 + $0x68] ss:$48 sps:$4 sm:$0xff]   ;;  %v1792_v8 = vld [vmem:[%s2760_s1 + $0xc4] ss:$48 sps:$4 sm:$0xff]  }
   0x4   :  { %1192 = vmatprep.subr.bf16.mxu0 %v1786_v4  ;;  %1235 = vmatprep.subr.bf16.mxu1 %v1788_v5  ;;  %v1794_v9 = vld [vmem:[%s2760_s1 + $0xcc] ss:$48 sps:$4 sm:$0xff]   ;;  %v1796_v10 = vld [vmem:[%s2760_s1 + $0xc0] ss:$48 sps:$4 sm:$0xff]   ;;  %v1797_v11 = vld [vmem:[%s2760_s1 + $0xc8] ss:$48 sps:$4 sm:$0xff]  }
   0x5   :  { %v1798_v12 = vld [vmem:[%s2760_s1 + $0x124] ss:$48 sps:$4 sm:$0xff]   ;;  %v1800_v13 = vld [vmem:[%s2760_s1 + $0x12c] ss:$48 sps:$4 sm:$0xff]   ;;  %v1802_v14 = vld [vmem:[%s2760_s1 + $0x120] ss:$48 sps:$4 sm:$0xff]  }
   0x6   :  { %v1803_v15 = vld [vmem:[%s2760_s1 + $0x128] ss:$48 sps:$4 sm:$0xff]   ;;  %v1804_v16 = vld [vmem:[%s2760_s1 + $0x184] ss:$48 sps:$4 sm:$0xff]   ;;  %v1806_v17 = vld [vmem:[%s2760_s1 + $0x18c] ss:$48 sps:$4 sm:$0xff]  }
   0x7   :  { %1193 = vmatpush1.bf16.msra.mxu0 %v1790_v6  ;;  %1236 = vmatpush1.bf16.msra.mxu1 %v1791_v7  ;;  %v1808_v18 = vld [vmem:[%s2760_s1 + $0x180] ss:$48 sps:$4 sm:$0xff]   ;;  %v1809_v19 = vld [vmem:[%s2760_s1 + $0x188] ss:$48 sps:$4 sm:$0xff]   ;;  %v1810_v20 = vld [vmem:[%s2760_s1 + $0x1e4] ss:$48 sps:$4 sm:$0xff]  }
   0x8   :  { %1194 = vmatprep.subr.bf16.mxu0 %v1792_v8  ;;  %1237 = vmatprep.subr.bf16.mxu1 %v1794_v9  ;;  %v1812_v21 = vld [vmem:[%s2760_s1 + $0x1ec] ss:$48 sps:$4 sm:$0xff]   ;;  %v1814_v23 = vld [vmem:[%s2760_s1 + $0x1e0] ss:$48 sps:$4 sm:$0xff]   ;;  %v1815_v24 = vld [vmem:[%s2760_s1 + $0x1e8] ss:$48 sps:$4 sm:$0xff]  }
   0x9   :  { %v1816_v25 = vld [vmem:[%s2760_s1 + $0x244] ss:$48 sps:$4 sm:$0xff]   ;;  %v1818_v26 = vld [vmem:[%s2760_s1 + $0x24c] ss:$48 sps:$4 sm:$0xff]   ;;  %v1820_v27 = vld [vmem:[%s2760_s1 + $0x240] ss:$48 sps:$4 sm:$0xff]  }
   0xa   :  { %v1821_v28 = vld [vmem:[%s2760_s1 + $0x248] ss:$48 sps:$4 sm:$0xff]   ;;  %v1822_v29 = vld [vmem:[%s2760_s1 + $0x2a4] ss:$48 sps:$4 sm:$0xff]   ;;  %v1824_v30 = vld [vmem:[%s2760_s1 + $0x2ac] ss:$48 sps:$4 sm:$0xff]  }
   0xb   :  { %1195 = vmatpush1.bf16.msra.mxu0 %v1796_v10  ;;  %1238 = vmatpush1.bf16.msra.mxu1 %v1797_v11  ;;  %v1826_v31 = vld [vmem:[%s2760_s1 + $0x2a0] ss:$48 sps:$4 sm:$0xff]   ;;  %v1827_v32 = vld [vmem:[%s2760_s1 + $0x2a8] ss:$48 sps:$4 sm:$0xff]   ;;  %v1828_v33 = vld [vmem:[%s2760_s1 + $0x304] ss:$48 sps:$4 sm:$0xff]  }
   0xc   :  { %1196 = vmatprep.subr.bf16.mxu0 %v1798_v12  ;;  %1239 = vmatprep.subr.bf16.mxu1 %v1800_v13  ;;  %v1830_v34 = vld [vmem:[%s2760_s1 + $0x30c] ss:$48 sps:$4 sm:$0xff]   ;;  %v1832_v35 = vld [vmem:[%s2760_s1 + $0x300] ss:$48 sps:$4 sm:$0xff]   ;;  %v1833_v36 = vld [vmem:[%s2760_s1 + $0x308] ss:$48 sps:$4 sm:$0xff]  }
   0xd   :  { %v1834_v37 = vld [vmem:[%s2760_s1 + $0x364] ss:$48 sps:$4 sm:$0xff]   ;;  %v1836_v38 = vld [vmem:[%s2760_s1 + $0x36c] ss:$48 sps:$4 sm:$0xff]   ;;  %v1838_v39 = vld [vmem:[%s2760_s1 + $0x360] ss:$48 sps:$4 sm:$0xff]  }
   0xe   :  { %v1839_v40 = vld [vmem:[%s2760_s1 + $0x368] ss:$48 sps:$4 sm:$0xff]   ;;  %v1840_v41 = vld [vmem:[%s2760_s1 + $0x3c4] ss:$48 sps:$4 sm:$0xff]   ;;  %v1842_v42 = vld [vmem:[%s2760_s1 + $0x3cc] ss:$48 sps:$4 sm:$0xff]  }
   0xf   :  { %1197 = vmatpush1.bf16.msra.mxu0 %v1802_v14  ;;  %1240 = vmatpush1.bf16.msra.mxu1 %v1803_v15  ;;  %v1844_v43 = vld [vmem:[%s2760_s1 + $0x3c0] ss:$48 sps:$4 sm:$0xff]   ;;  %v1845_v44 = vld [vmem:[%s2760_s1 + $0x3c8] ss:$48 sps:$4 sm:$0xff]   ;;  %v1846_v45 = vld [vmem:[%s2760_s1 + $0x424] ss:$48 sps:$4 sm:$0xff]  }
  0x10   :  { %1198 = vmatprep.subr.bf16.mxu0 %v1804_v16  ;;  %1241 = vmatprep.subr.bf16.mxu1 %v1806_v17  ;;  %v1848_v46 = vld [vmem:[%s2760_s1 + $0x42c] ss:$48 sps:$4 sm:$0xff]   ;;  %v1850_v47 = vld [vmem:[%s2760_s1 + $0x420] ss:$48 sps:$4 sm:$0xff]   ;;  %v1851_v48 = vld [vmem:[%s2760_s1 + $0x428] ss:$48 sps:$4 sm:$0xff]  }
  0x11   :  { %v2239_v49 = vld [vmem:[%s2761_s0 + $0x4] ss:$8 sps:$4 sm:$0xff]   ;;  %v1856_v52 = vld [vmem:[%s2760_s1 + $0x480] ss:$48 sps:$4 sm:$0xff]   ;;  %v1857_v53 = vld [vmem:[%s2760_s1 + $0x488] ss:$48 sps:$4 sm:$0xff]  }
  0x12   :  { %v1852_v50 = vld [vmem:[%s2760_s1 + $0x484] ss:$48 sps:$4 sm:$0xff]   ;;  %v1854_v51 = vld [vmem:[%s2760_s1 + $0x48c] ss:$48 sps:$4 sm:$0xff]   ;;  %1222 = vmatprep.mubr.bf16.mxu0 %v2239_v49  ;;  %1265 = vmatprep.mubr.bf16.mxu1 %v2239_v49  ;;  %v1862_v56 = vld [vmem:[%s2760_s1 + $0x4e0] ss:$48 sps:$4 sm:$0xff]  }
  0x13   :  { %1199 = vmatpush1.bf16.msra.mxu0 %v1808_v18  ;;  %1242 = vmatpush1.bf16.msra.mxu1 %v1809_v19  ;;  %v1858_v54 = vld [vmem:[%s2760_s1 + $0x4e4] ss:$48 sps:$4 sm:$0xff]   ;;  %v1860_v55 = vld [vmem:[%s2760_s1 + $0x4ec] ss:$48 sps:$4 sm:$0xff]   ;;  %v1863_v57 = vld [vmem:[%s2760_s1 + $0x4e8] ss:$48 sps:$4 sm:$0xff]  }
  0x14   :  { %1200 = vmatprep.subr.bf16.mxu0 %v1810_v20  ;;  %1243 = vmatprep.subr.bf16.mxu1 %v1812_v21  ;;  %v1864_v58 = vld [vmem:[%s2760_s1 + $0x544] ss:$48 sps:$4 sm:$0xff]   ;;  %v1866_v59 = vld [vmem:[%s2760_s1 + $0x54c] ss:$48 sps:$4 sm:$0xff]   ;;  %v1868_v60 = vld [vmem:[%s2760_s1 + $0x540] ss:$48 sps:$4 sm:$0xff]  }
  0x15   :  { %v1869_v61 = vld [vmem:[%s2760_s1 + $0x548] ss:$48 sps:$4 sm:$0xff]   ;;  %v1870_v62 = vld [vmem:[%s2760_s1 + $0x5a4] ss:$48 sps:$4 sm:$0xff]   ;;  %v1872_v63 = vld [vmem:[%s2760_s1 + $0x5ac] ss:$48 sps:$4 sm:$0xff]  }
  0x16   :  { %v1874_v0 = vld [vmem:[%s2760_s1 + $0x5a0] ss:$48 sps:$4 sm:$0xff]   ;;  %v1875_v1 = vld [vmem:[%s2760_s1 + $0x5a8] ss:$48 sps:$4 sm:$0xff]   ;;  %v1881_v2 = vld [vmem:[%s2760_s1 + $0x14] ss:$48 sps:$4 sm:$0xff]  }
  0x17   :  { %1201 = vmatpush1.bf16.msra.mxu0 %v1814_v23  ;;  %1244 = vmatpush1.bf16.msra.mxu1 %v1815_v24  ;;  %v1884_v3 = vld [vmem:[%s2760_s1 + $0x1c] ss:$48 sps:$4 sm:$0xff]   ;;  %v2300_v4 = vld [vmem:[%s2761_s0] ss:$8 sps:$4 sm:$0xff]   ;;  %v1887_v7 = vld [vmem:[%s2760_s1 + $0x74] ss:$48 sps:$4 sm:$0xff]  }
  0x18   :  { %1202 = vmatprep.subr.bf16.mxu0 %v1816_v25  ;;  %1245 = vmatprep.subr.bf16.mxu1 %v1818_v26  ;;  %v1879_v5 = vld [vmem:[%s2760_s1 + $0x10] ss:$48 sps:$4 sm:$0xff]   ;;  %v1882_v6 = vld [vmem:[%s2760_s1 + $0x18] ss:$48 sps:$4 sm:$0xff]   ;;  %v1890_v8 = vld [vmem:[%s2760_s1 + $0x7c] ss:$48 sps:$4 sm:$0xff]  }
  0x19   :  { %v1885_v9 = vld [vmem:[%s2760_s1 + $0x70] ss:$48 sps:$4 sm:$0xff]   ;;  %v1888_v10 = vld [vmem:[%s2760_s1 + $0x78] ss:$48 sps:$4 sm:$0xff]   ;;  %v1893_v11 = vld [vmem:[%s2760_s1 + $0xd4] ss:$48 sps:$4 sm:$0xff]  }
  0x1a   :  { %v1896_v12 = vld [vmem:[%s2760_s1 + $0xdc] ss:$48 sps:$4 sm:$0xff]   ;;  %v1891_v13 = vld [vmem:[%s2760_s1 + $0xd0] ss:$48 sps:$4 sm:$0xff]   ;;  %v1894_v14 = vld [vmem:[%s2760_s1 + $0xd8] ss:$48 sps:$4 sm:$0xff]  }
  0x1b   :  { %1203 = vmatpush1.bf16.msra.mxu0 %v1820_v27  ;;  %1246 = vmatpush1.bf16.msra.mxu1 %v1821_v28  ;;  %v1899_v15 = vld [vmem:[%s2760_s1 + $0x134] ss:$48 sps:$4 sm:$0xff]   ;;  %v1902_v16 = vld [vmem:[%s2760_s1 + $0x13c] ss:$48 sps:$4 sm:$0xff]   ;;  %v1897_v17 = vld [vmem:[%s2760_s1 + $0x130] ss:$48 sps:$4 sm:$0xff]  }
  0x1c   :  { %1204 = vmatprep.subr.bf16.mxu0 %v1822_v29  ;;  %1247 = vmatprep.subr.bf16.mxu1 %v1824_v30  ;;  %v1900_v18 = vld [vmem:[%s2760_s1 + $0x138] ss:$48 sps:$4 sm:$0xff]   ;;  %v1905_v19 = vld [vmem:[%s2760_s1 + $0x194] ss:$48 sps:$4 sm:$0xff]   ;;  %v1908_v20 = vld [vmem:[%s2760_s1 + $0x19c] ss:$48 sps:$4 sm:$0xff]  }
  0x1d   :  { %v1903_v21 = vld [vmem:[%s2760_s1 + $0x190] ss:$48 sps:$4 sm:$0xff]   ;;  %v1906_v22 = vld [vmem:[%s2760_s1 + $0x198] ss:$48 sps:$4 sm:$0xff]   ;;  %v1911_v23 = vld [vmem:[%s2760_s1 + $0x1f4] ss:$48 sps:$4 sm:$0xff]  }
  0x1e   :  { %v1914_v24 = vld [vmem:[%s2760_s1 + $0x1fc] ss:$48 sps:$4 sm:$0xff]   ;;  %v1909_v25 = vld [vmem:[%s2760_s1 + $0x1f0] ss:$48 sps:$4 sm:$0xff]   ;;  %v1912_v26 = vld [vmem:[%s2760_s1 + $0x1f8] ss:$48 sps:$4 sm:$0xff]  }
  0x1f   :  { %1205 = vmatpush1.bf16.msra.mxu0 %v1826_v31  ;;  %1248 = vmatpush1.bf16.msra.mxu1 %v1827_v32  ;;  %v1917_v27 = vld [vmem:[%s2760_s1 + $0x254] ss:$48 sps:$4 sm:$0xff]   ;;  %v1920_v28 = vld [vmem:[%s2760_s1 + $0x25c] ss:$48 sps:$4 sm:$0xff]   ;;  %v1915_v29 = vld [vmem:[%s2760_s1 + $0x250] ss:$48 sps:$4 sm:$0xff]  }
  0x20   :  { %1206 = vmatprep.subr.bf16.mxu0 %v1828_v33  ;;  %1249 = vmatprep.subr.bf16.mxu1 %v1830_v34  ;;  %v1918_v30 = vld [vmem:[%s2760_s1 + $0x258] ss:$48 sps:$4 sm:$0xff]   ;;  %v1923_v31 = vld [vmem:[%s2760_s1 + $0x2b4] ss:$48 sps:$4 sm:$0xff]   ;;  %v1926_v32 = vld [vmem:[%s2760_s1 + $0x2bc] ss:$48 sps:$4 sm:$0xff]  }
  0x21   :  { %v1921_v33 = vld [vmem:[%s2760_s1 + $0x2b0] ss:$48 sps:$4 sm:$0xff]   ;;  %v1924_v34 = vld [vmem:[%s2760_s1 + $0x2b8] ss:$48 sps:$4 sm:$0xff]  }
  0x23   :  { %1207 = vmatpush1.bf16.msra.mxu0 %v1832_v35  ;;  %1250 = vmatpush1.bf16.msra.mxu1 %v1833_v36  ;;  %v1929_v35 = vld [vmem:[%s2760_s1 + $0x314] ss:$48 sps:$4 sm:$0xff]   ;;  %v1932_v36 = vld [vmem:[%s2760_s1 + $0x31c] ss:$48 sps:$4 sm:$0xff]  }
  0x24   :  { %1208 = vmatprep.subr.bf16.mxu0 %v1834_v37  ;;  %1251 = vmatprep.subr.bf16.mxu1 %v1836_v38  ;;  %v1927_v37 = vld [vmem:[%s2760_s1 + $0x310] ss:$48 sps:$4 sm:$0xff]   ;;  %v1930_v38 = vld [vmem:[%s2760_s1 + $0x318] ss:$48 sps:$4 sm:$0xff]  }
  0x27   :  { %1209 = vmatpush1.bf16.msra.mxu0 %v1838_v39  ;;  %1252 = vmatpush1.bf16.msra.mxu1 %v1839_v40  ;;  %v1935_v39 = vld [vmem:[%s2760_s1 + $0x374] ss:$48 sps:$4 sm:$0xff]   ;;  %v1938_v40 = vld [vmem:[%s2760_s1 + $0x37c] ss:$48 sps:$4 sm:$0xff]  }
  0x28   :  { %1210 = vmatprep.subr.bf16.mxu0 %v1840_v41  ;;  %1253 = vmatprep.subr.bf16.mxu1 %v1842_v42  ;;  %v1933_v41 = vld [vmem:[%s2760_s1 + $0x370] ss:$48 sps:$4 sm:$0xff]   ;;  %v1936_v42 = vld [vmem:[%s2760_s1 + $0x378] ss:$48 sps:$4 sm:$0xff]  }
  0x2b   :  { %1211 = vmatpush1.bf16.msra.mxu0 %v1844_v43  ;;  %1254 = vmatpush1.bf16.msra.mxu1 %v1845_v44  ;;  %v208_v43 = vld [vmem:[%s2762_s2] sm:$0xff] }
  0x2c   :  { %1212 = vmatprep.subr.bf16.mxu0 %v1846_v45  ;;  %1255 = vmatprep.subr.bf16.mxu1 %v1848_v46  ;;  %v1941_v44 = vld [vmem:[%s2760_s1 + $0x3d4] ss:$48 sps:$4 sm:$0xff]   ;;  %v1944_v45 = vld [vmem:[%s2760_s1 + $0x3dc] ss:$48 sps:$4 sm:$0xff]  }
  0x2d   :  { %212 = vperm.xlu0 %1779, %v208_v43   ;;  %v209_v46 = vld [vmem:[%s2762_s2 + $0x8] sm:$0xff] }
  0x2e   :  { %v2034_v43 = vld [vmem:[%s2760_s1 + $0x38c] ss:$48 sps:$4 sm:$0xff]  }
  0x2f   :  { %1213 = vmatpush1.bf16.msra.mxu0 %v1850_v47  ;;  %1256 = vmatpush1.bf16.msra.mxu1 %v1851_v48  ;;  %v1939_v47 = vld [vmem:[%s2760_s1 + $0x3d0] ss:$48 sps:$4 sm:$0xff]   ;;  %v1942_v48 = vld [vmem:[%s2760_s1 + $0x3d8] ss:$48 sps:$4 sm:$0xff]  }
  0x30   :  { %1214 = vmatprep.subr.bf16.mxu0 %v1852_v50  ;;  %1257 = vmatprep.subr.bf16.mxu1 %v1854_v51  ;;  %v1947_v50 = vld [vmem:[%s2760_s1 + $0x434] ss:$48 sps:$4 sm:$0xff]   ;;  %v1950_v51 = vld [vmem:[%s2760_s1 + $0x43c] ss:$48 sps:$4 sm:$0xff]  }
  0x31   :  { %217 = vperm.xlu0 %1779, %v209_v46   ;;  %v2037_v46 = vld [vmem:[%s2760_s1 + $0x3e4] ss:$48 sps:$4 sm:$0xff]  }
  0x33   :  { %1215 = vmatpush1.bf16.msra.mxu0 %v1856_v52  ;;  %1258 = vmatpush1.bf16.msra.mxu1 %v1857_v53  ;;  %v1945_v52 = vld [vmem:[%s2760_s1 + $0x430] ss:$48 sps:$4 sm:$0xff]   ;;  %v1948_v53 = vld [vmem:[%s2760_s1 + $0x438] ss:$48 sps:$4 sm:$0xff]  }
  0x34   :  { %1216 = vmatprep.subr.bf16.mxu0 %v1858_v54  ;;  %1259 = vmatprep.subr.bf16.mxu1 %v1860_v55  ;;  %v1953_v54 = vld [vmem:[%s2760_s1 + $0x494] ss:$48 sps:$4 sm:$0xff]   ;;  %v1956_v55 = vld [vmem:[%s2760_s1 + $0x49c] ss:$48 sps:$4 sm:$0xff]  }
  0x37   :  { %1217 = vmatpush1.bf16.msra.mxu0 %v1862_v56  ;;  %1260 = vmatpush1.bf16.msra.mxu1 %v1863_v57  ;;  %v1951_v56 = vld [vmem:[%s2760_s1 + $0x490] ss:$48 sps:$4 sm:$0xff]   ;;  %v1954_v57 = vld [vmem:[%s2760_s1 + $0x498] ss:$48 sps:$4 sm:$0xff]  }
  0x38   :  { %1218 = vmatprep.subr.bf16.mxu0 %v1864_v58  ;;  %1261 = vmatprep.subr.bf16.mxu1 %v1866_v59  ;;  %v1959_v58 = vld [vmem:[%s2760_s1 + $0x4f4] ss:$48 sps:$4 sm:$0xff]   ;;  %v1962_v59 = vld [vmem:[%s2760_s1 + $0x4fc] ss:$48 sps:$4 sm:$0xff]  }
  0x3b   :  { %1219 = vmatpush1.bf16.msra.mxu0 %v1868_v60  ;;  %1262 = vmatpush1.bf16.msra.mxu1 %v1869_v61  ;;  %v1957_v60 = vld [vmem:[%s2760_s1 + $0x4f0] ss:$48 sps:$4 sm:$0xff]   ;;  %v1960_v61 = vld [vmem:[%s2760_s1 + $0x4f8] ss:$48 sps:$4 sm:$0xff]  }
  0x3c   :  { %1220 = vmatprep.subr.bf16.mxu0 %v1870_v62  ;;  %1263 = vmatprep.subr.bf16.mxu1 %v1872_v63  ;;  %v1965_v62 = vld [vmem:[%s2760_s1 + $0x554] ss:$48 sps:$4 sm:$0xff]   ;;  %v1968_v63 = vld [vmem:[%s2760_s1 + $0x55c] ss:$48 sps:$4 sm:$0xff]  }
  0x3f   :  { %1221 = vmatpush1.bf16.msra.mxu0 %v1874_v0  ;;  %1264 = vmatpush1.bf16.msra.mxu1 %v1875_v1  ;;  %v1963_v0 = vld [vmem:[%s2760_s1 + $0x550] ss:$48 sps:$4 sm:$0xff]   ;;  %v1966_v1 = vld [vmem:[%s2760_s1 + $0x558] ss:$48 sps:$4 sm:$0xff]  }
  0x40   :  { %1276 = vmatprep.subr.bf16.mxu0 %v1881_v2  ;;  %1319 = vmatprep.subr.bf16.mxu1 %v1884_v3  ;;  %v1971_v2 = vld [vmem:[%s2760_s1 + $0x5b4] ss:$48 sps:$4 sm:$0xff]   ;;  %v1974_v3 = vld [vmem:[%s2760_s1 + $0x5bc] ss:$48 sps:$4 sm:$0xff]  }
  0x42   :  { %1223 = vmatmul.mubr.bf16.vlgmr.msra.gmra.mrb[0].mxu0 %v2300_v4  ;;  %1266 = vmatmul.mubr.bf16.vlgmr.msra.gmra.mrb[0].mxu1 %v2300_v4 }
  0x43   :  { %1277 = vmatpush1.bf16.msra.mxu0 %v1879_v5  ;;  %1320 = vmatpush1.bf16.msra.mxu1 %v1882_v6  ;;  %v1969_v5 = vld [vmem:[%s2760_s1 + $0x5b0] ss:$48 sps:$4 sm:$0xff]   ;;  %v1972_v6 = vld [vmem:[%s2760_s1 + $0x5b8] ss:$48 sps:$4 sm:$0xff]  }
  0x44   :  { %1278 = vmatprep.subr.bf16.mxu0 %v1887_v7  ;;  %1321 = vmatprep.subr.bf16.mxu1 %v1890_v8  ;;  %v1977_v7 = vld [vmem:[%s2760_s1 + $0x24] ss:$48 sps:$4 sm:$0xff]   ;;  %v1980_v8 = vld [vmem:[%s2760_s1 + $0x2c] ss:$48 sps:$4 sm:$0xff]  }
  0x45   :  { %1308 = vmatprep.mubr.bf16.mxu0 %v2239_v49  ;;  %1351 = vmatprep.mubr.bf16.mxu1 %v2239_v49 }
  0x47   :  { %1279 = vmatpush1.bf16.msra.mxu0 %v1885_v9  ;;  %1322 = vmatpush1.bf16.msra.mxu1 %v1888_v10  ;;  %v1975_v9 = vld [vmem:[%s2760_s1 + $0x20] ss:$48 sps:$4 sm:$0xff]   ;;  %v1978_v10 = vld [vmem:[%s2760_s1 + $0x28] ss:$48 sps:$4 sm:$0xff]  }
  0x48   :  { %1280 = vmatprep.subr.bf16.mxu0 %v1893_v11  ;;  %1323 = vmatprep.subr.bf16.mxu1 %v1896_v12  ;;  %v1983_v11 = vld [vmem:[%s2760_s1 + $0x84] ss:$48 sps:$4 sm:$0xff]   ;;  %v1986_v12 = vld [vmem:[%s2760_s1 + $0x8c] ss:$48 sps:$4 sm:$0xff]  }
  0x4b   :  { %1281 = vmatpush1.bf16.msra.mxu0 %v1891_v13  ;;  %1324 = vmatpush1.bf16.msra.mxu1 %v1894_v14  ;;  %v1981_v13 = vld [vmem:[%s2760_s1 + $0x80] ss:$48 sps:$4 sm:$0xff]   ;;  %v1984_v14 = vld [vmem:[%s2760_s1 + $0x88] ss:$48 sps:$4 sm:$0xff]  }
  0x4c   :  { %1282 = vmatprep.subr.bf16.mxu0 %v1899_v15  ;;  %1325 = vmatprep.subr.bf16.mxu1 %v1902_v16  ;;  %v1989_v15 = vld [vmem:[%s2760_s1 + $0xe4] ss:$48 sps:$4 sm:$0xff]   ;;  %v1992_v16 = vld [vmem:[%s2760_s1 + $0xec] ss:$48 sps:$4 sm:$0xff]  }
  0x4f   :  { %1283 = vmatpush1.bf16.msra.mxu0 %v1897_v17  ;;  %1326 = vmatpush1.bf16.msra.mxu1 %v1900_v18  ;;  %v1987_v17 = vld [vmem:[%s2760_s1 + $0xe0] ss:$48 sps:$4 sm:$0xff]   ;;  %v1990_v18 = vld [vmem:[%s2760_s1 + $0xe8] ss:$48 sps:$4 sm:$0xff]  }
  0x50   :  { %1284 = vmatprep.subr.bf16.mxu0 %v1905_v19  ;;  %1327 = vmatprep.subr.bf16.mxu1 %v1908_v20  ;;  %v1995_v19 = vld [vmem:[%s2760_s1 + $0x144] ss:$48 sps:$4 sm:$0xff]   ;;  %v1993_v20 = vld [vmem:[%s2760_s1 + $0x140] ss:$48 sps:$4 sm:$0xff]  }
  0x53   :  { %1285 = vmatpush1.bf16.msra.mxu0 %v1903_v21  ;;  %1328 = vmatpush1.bf16.msra.mxu1 %v1906_v22  ;;  %v1996_v21 = vld [vmem:[%s2760_s1 + $0x148] ss:$48 sps:$4 sm:$0xff]   ;;  %v2001_v22 = vld [vmem:[%s2760_s1 + $0x1a4] ss:$48 sps:$4 sm:$0xff]  }
  0x54   :  { %1286 = vmatprep.subr.bf16.mxu0 %v1911_v23  ;;  %1329 = vmatprep.subr.bf16.mxu1 %v1914_v24  ;;  %v2004_v23 = vld [vmem:[%s2760_s1 + $0x1ac] ss:$48 sps:$4 sm:$0xff]   ;;  %v1999_v24 = vld [vmem:[%s2760_s1 + $0x1a0] ss:$48 sps:$4 sm:$0xff]  }
  0x57   :  { %1287 = vmatpush1.bf16.msra.mxu0 %v1909_v25  ;;  %1330 = vmatpush1.bf16.msra.mxu1 %v1912_v26  ;;  %v2002_v25 = vld [vmem:[%s2760_s1 + $0x1a8] ss:$48 sps:$4 sm:$0xff]   ;;  %v2007_v26 = vld [vmem:[%s2760_s1 + $0x204] ss:$48 sps:$4 sm:$0xff]  }
  0x58   :  { %1288 = vmatprep.subr.bf16.mxu0 %v1917_v27  ;;  %1331 = vmatprep.subr.bf16.mxu1 %v1920_v28  ;;  %v2010_v27 = vld [vmem:[%s2760_s1 + $0x20c] ss:$48 sps:$4 sm:$0xff]   ;;  %v2005_v28 = vld [vmem:[%s2760_s1 + $0x200] ss:$48 sps:$4 sm:$0xff]  }
  0x5b   :  { %1289 = vmatpush1.bf16.msra.mxu0 %v1915_v29  ;;  %1332 = vmatpush1.bf16.msra.mxu1 %v1918_v30  ;;  %v2008_v29 = vld [vmem:[%s2760_s1 + $0x208] ss:$48 sps:$4 sm:$0xff]   ;;  %v2013_v30 = vld [vmem:[%s2760_s1 + $0x264] ss:$48 sps:$4 sm:$0xff]  }
  0x5c   :  { %1290 = vmatprep.subr.bf16.mxu0 %v1923_v31  ;;  %1333 = vmatprep.subr.bf16.mxu1 %v1926_v32  ;;  %v2016_v31 = vld [vmem:[%s2760_s1 + $0x26c] ss:$48 sps:$4 sm:$0xff]   ;;  %v2011_v32 = vld [vmem:[%s2760_s1 + $0x260] ss:$48 sps:$4 sm:$0xff]  }
  0x5f   :  { %1291 = vmatpush1.bf16.msra.mxu0 %v1921_v33  ;;  %1334 = vmatpush1.bf16.msra.mxu1 %v1924_v34  ;;  %v2014_v33 = vld [vmem:[%s2760_s1 + $0x268] ss:$48 sps:$4 sm:$0xff]   ;;  %v2019_v34 = vld [vmem:[%s2760_s1 + $0x2c4] ss:$48 sps:$4 sm:$0xff]  }
  0x60   :  { %1292 = vmatprep.subr.bf16.mxu0 %v1929_v35  ;;  %1335 = vmatprep.subr.bf16.mxu1 %v1932_v36  ;;  %v2022_v35 = vld [vmem:[%s2760_s1 + $0x2cc] ss:$48 sps:$4 sm:$0xff]   ;;  %v2017_v36 = vld [vmem:[%s2760_s1 + $0x2c0] ss:$48 sps:$4 sm:$0xff]  }
  0x63   :  { %1293 = vmatpush1.bf16.msra.mxu0 %v1927_v37  ;;  %1336 = vmatpush1.bf16.msra.mxu1 %v1930_v38  ;;  %v2020_v37 = vld [vmem:[%s2760_s1 + $0x2c8] ss:$48 sps:$4 sm:$0xff]   ;;  %v2025_v38 = vld [vmem:[%s2760_s1 + $0x324] ss:$48 sps:$4 sm:$0xff]  }
  0x64   :  { %1294 = vmatprep.subr.bf16.mxu0 %v1935_v39  ;;  %1337 = vmatprep.subr.bf16.mxu1 %v1938_v40  ;;  %v2028_v39 = vld [vmem:[%s2760_s1 + $0x32c] ss:$48 sps:$4 sm:$0xff]   ;;  %v2023_v40 = vld [vmem:[%s2760_s1 + $0x320] ss:$48 sps:$4 sm:$0xff]  }
  0x67   :  { %1295 = vmatpush1.bf16.msra.mxu0 %v1933_v41  ;;  %1338 = vmatpush1.bf16.msra.mxu1 %v1936_v42  ;;  %v2026_v41 = vld [vmem:[%s2760_s1 + $0x328] ss:$48 sps:$4 sm:$0xff]   ;;  %v2031_v42 = vld [vmem:[%s2760_s1 + $0x384] ss:$48 sps:$4 sm:$0xff]  }
  0x68   :  { %1296 = vmatprep.subr.bf16.mxu0 %v1941_v44  ;;  %1339 = vmatprep.subr.bf16.mxu1 %v1944_v45  ;;  %v2029_v44 = vld [vmem:[%s2760_s1 + $0x380] ss:$48 sps:$4 sm:$0xff]   ;;  %v2032_v45 = vld [vmem:[%s2760_s1 + $0x388] ss:$48 sps:$4 sm:$0xff]  }
  0x6b   :  { %1297 = vmatpush1.bf16.msra.mxu0 %v1939_v47  ;;  %1340 = vmatpush1.bf16.msra.mxu1 %v1942_v48  ;;  %v2040_v47 = vld [vmem:[%s2760_s1 + $0x3ec] ss:$48 sps:$4 sm:$0xff]   ;;  %v2035_v48 = vld [vmem:[%s2760_s1 + $0x3e0] ss:$48 sps:$4 sm:$0xff]  }
  0x6c   :  { %1298 = vmatprep.subr.bf16.mxu0 %v1947_v50  ;;  %1341 = vmatprep.subr.bf16.mxu1 %v1950_v51  ;;  %v2038_v50 = vld [vmem:[%s2760_s1 + $0x3e8] ss:$48 sps:$4 sm:$0xff]   ;;  %v2043_v51 = vld [vmem:[%s2760_s1 + $0x444] ss:$48 sps:$4 sm:$0xff]  }
  0x6f   :  { %1299 = vmatpush1.bf16.msra.mxu0 %v1945_v52  ;;  %1342 = vmatpush1.bf16.msra.mxu1 %v1948_v53  ;;  %v2046_v52 = vld [vmem:[%s2760_s1 + $0x44c] ss:$48 sps:$4 sm:$0xff]   ;;  %v2041_v53 = vld [vmem:[%s2760_s1 + $0x440] ss:$48 sps:$4 sm:$0xff]  }
  0x70   :  { %1300 = vmatprep.subr.bf16.mxu0 %v1953_v54  ;;  %1343 = vmatprep.subr.bf16.mxu1 %v1956_v55  ;;  %v2044_v54 = vld [vmem:[%s2760_s1 + $0x448] ss:$48 sps:$4 sm:$0xff]   ;;  %v2049_v55 = vld [vmem:[%s2760_s1 + $0x4a4] ss:$48 sps:$4 sm:$0xff]  }
  0x73   :  { %1301 = vmatpush1.bf16.msra.mxu0 %v1951_v56  ;;  %1344 = vmatpush1.bf16.msra.mxu1 %v1954_v57  ;;  %v2052_v56 = vld [vmem:[%s2760_s1 + $0x4ac] ss:$48 sps:$4 sm:$0xff]   ;;  %v2047_v57 = vld [vmem:[%s2760_s1 + $0x4a0] ss:$48 sps:$4 sm:$0xff]  }
  0x74   :  { %1302 = vmatprep.subr.bf16.mxu0 %v1959_v58  ;;  %1345 = vmatprep.subr.bf16.mxu1 %v1962_v59  ;;  %v2050_v58 = vld [vmem:[%s2760_s1 + $0x4a8] ss:$48 sps:$4 sm:$0xff]   ;;  %v2055_v59 = vld [vmem:[%s2760_s1 + $0x504] ss:$48 sps:$4 sm:$0xff]  }
  0x77   :  { %1303 = vmatpush1.bf16.msra.mxu0 %v1957_v60  ;;  %1346 = vmatpush1.bf16.msra.mxu1 %v1960_v61  ;;  %v2058_v60 = vld [vmem:[%s2760_s1 + $0x50c] ss:$48 sps:$4 sm:$0xff]   ;;  %v2053_v61 = vld [vmem:[%s2760_s1 + $0x500] ss:$48 sps:$4 sm:$0xff]  }
  0x78   :  { %1304 = vmatprep.subr.bf16.mxu0 %v1965_v62  ;;  %1347 = vmatprep.subr.bf16.mxu1 %v1968_v63  ;;  %v2056_v62 = vld [vmem:[%s2760_s1 + $0x508] ss:$48 sps:$4 sm:$0xff]   ;;  %v2061_v63 = vld [vmem:[%s2760_s1 + $0x564] ss:$48 sps:$4 sm:$0xff]  }
  0x7b   :  { %1305 = vmatpush1.bf16.msra.mxu0 %v1963_v0  ;;  %1348 = vmatpush1.bf16.msra.mxu1 %v1966_v1  ;;  %v2064_v0 = vld [vmem:[%s2760_s1 + $0x56c] ss:$48 sps:$4 sm:$0xff]   ;;  %v2059_v1 = vld [vmem:[%s2760_s1 + $0x560] ss:$48 sps:$4 sm:$0xff]  }
  0x7c   :  { %1306 = vmatprep.subr.bf16.mxu0 %v1971_v2  ;;  %1349 = vmatprep.subr.bf16.mxu1 %v1974_v3  ;;  %v2062_v2 = vld [vmem:[%s2760_s1 + $0x568] ss:$48 sps:$4 sm:$0xff]   ;;  %v2067_v3 = vld [vmem:[%s2760_s1 + $0x5c4] ss:$48 sps:$4 sm:$0xff]  }
  0x7f   :  { %1307 = vmatpush1.bf16.msra.mxu0 %v1969_v5  ;;  %1350 = vmatpush1.bf16.msra.mxu1 %v1972_v6  ;;  %v2070_v5 = vld [vmem:[%s2760_s1 + $0x5cc] ss:$48 sps:$4 sm:$0xff]   ;;  %v2065_v6 = vld [vmem:[%s2760_s1 + $0x5c0] ss:$48 sps:$4 sm:$0xff]  }
  0x80   :  { %1362 = vmatprep.subr.bf16.mxu0 %v1977_v7  ;;  %1405 = vmatprep.subr.bf16.mxu1 %v1980_v8  ;;  %v2068_v7 = vld [vmem:[%s2760_s1 + $0x5c8] ss:$48 sps:$4 sm:$0xff]  }
  0x82   :  { %1309 = vmatmul.mubr.bf16.vlgmr.msra.gmra.mrb[4].mxu0 %v2300_v4  ;;  %1352 = vmatmul.mubr.bf16.vlgmr.msra.gmra.mrb[4].mxu1 %v2300_v4 }
  0x83   :  { %1363 = vmatpush1.bf16.msra.mxu0 %v1975_v9  ;;  %1406 = vmatpush1.bf16.msra.mxu1 %v1978_v10 }
  0x84   :  { %1364 = vmatprep.subr.bf16.mxu0 %v1983_v11  ;;  %1407 = vmatprep.subr.bf16.mxu1 %v1986_v12 }
  0x85   :  { %1394 = vmatprep.mubr.bf16.mxu0 %v2239_v49  ;;  %1437 = vmatprep.mubr.bf16.mxu1 %v2239_v49  ;;  %v1998_v49 = vld [vmem:[%s2760_s1 + $0x14c] ss:$48 sps:$4 sm:$0xff]  }
  0x87   :  { %1365 = vmatpush1.bf16.msra.mxu0 %v1981_v13  ;;  %1408 = vmatpush1.bf16.msra.mxu1 %v1984_v14 }
  0x88   :  { %1366 = vmatprep.subr.bf16.mxu0 %v1989_v15  ;;  %1409 = vmatprep.subr.bf16.mxu1 %v1992_v16 }
  0x8b   :  { %1367 = vmatpush1.bf16.msra.mxu0 %v1987_v17  ;;  %1410 = vmatpush1.bf16.msra.mxu1 %v1990_v18 }
  0x8c   :  { %1368 = vmatprep.subr.bf16.mxu0 %v1995_v19  ;;  %1411 = vmatprep.subr.bf16.mxu1 %v1998_v49 }
  0x8f   :  { %1369 = vmatpush1.bf16.msra.mxu0 %v1993_v20  ;;  %1412 = vmatpush1.bf16.msra.mxu1 %v1996_v21 }
  0x90   :  { %1370 = vmatprep.subr.bf16.mxu0 %v2001_v22  ;;  %1413 = vmatprep.subr.bf16.mxu1 %v2004_v23 }
  0x93   :  { %1371 = vmatpush1.bf16.msra.mxu0 %v1999_v24  ;;  %1414 = vmatpush1.bf16.msra.mxu1 %v2002_v25 }
  0x94   :  { %1372 = vmatprep.subr.bf16.mxu0 %v2007_v26  ;;  %1415 = vmatprep.subr.bf16.mxu1 %v2010_v27 }
  0x97   :  { %1373 = vmatpush1.bf16.msra.mxu0 %v2005_v28  ;;  %1416 = vmatpush1.bf16.msra.mxu1 %v2008_v29 }
  0x98   :  { %1374 = vmatprep.subr.bf16.mxu0 %v2013_v30  ;;  %1417 = vmatprep.subr.bf16.mxu1 %v2016_v31 }
  0x9b   :  { %1375 = vmatpush1.bf16.msra.mxu0 %v2011_v32  ;;  %1418 = vmatpush1.bf16.msra.mxu1 %v2014_v33 }
  0x9c   :  { %1376 = vmatprep.subr.bf16.mxu0 %v2019_v34  ;;  %1419 = vmatprep.subr.bf16.mxu1 %v2022_v35 }
  0x9f   :  { %1377 = vmatpush1.bf16.msra.mxu0 %v2017_v36  ;;  %1420 = vmatpush1.bf16.msra.mxu1 %v2020_v37 }
  0xa0   :  { %1378 = vmatprep.subr.bf16.mxu0 %v2025_v38  ;;  %1421 = vmatprep.subr.bf16.mxu1 %v2028_v39 }
  0xa3   :  { %1379 = vmatpush1.bf16.msra.mxu0 %v2023_v40  ;;  %1422 = vmatpush1.bf16.msra.mxu1 %v2026_v41 }
  0xa4   :  { %1380 = vmatprep.subr.bf16.mxu0 %v2031_v42  ;;  %1423 = vmatprep.subr.bf16.mxu1 %v2034_v43 }
  0xa7   :  { %1381 = vmatpush1.bf16.msra.mxu0 %v2029_v44  ;;  %1424 = vmatpush1.bf16.msra.mxu1 %v2032_v45 }
  0xa8   :  { %1382 = vmatprep.subr.bf16.mxu0 %v2037_v46  ;;  %1425 = vmatprep.subr.bf16.mxu1 %v2040_v47 }
  0xab   :  { %1383 = vmatpush1.bf16.msra.mxu0 %v2035_v48  ;;  %1426 = vmatpush1.bf16.msra.mxu1 %v2038_v50 }
  0xac   :  { %1384 = vmatprep.subr.bf16.mxu0 %v2043_v51  ;;  %1427 = vmatprep.subr.bf16.mxu1 %v2046_v52  ;;  %v2696_v8 = vpop.permute.xlu0 %212 }
  0xaf   :  { %1385 = vmatpush1.bf16.msra.mxu0 %v2041_v53  ;;  %1428 = vmatpush1.bf16.msra.mxu1 %v2044_v54 }
  0xb0   :  { %1386 = vmatprep.subr.bf16.mxu0 %v2049_v55  ;;  %1429 = vmatprep.subr.bf16.mxu1 %v2052_v56  ;;  %v2698_v9 = vpop.permute.xlu0 %217 }
  0xb3   :  { %1387 = vmatpush1.bf16.msra.mxu0 %v2047_v57  ;;  %1430 = vmatpush1.bf16.msra.mxu1 %v2050_v58 }
  0xb4   :  { %1388 = vmatprep.subr.bf16.mxu0 %v2055_v59  ;;  %1431 = vmatprep.subr.bf16.mxu1 %v2058_v60 }
  0xb7   :  { %1389 = vmatpush1.bf16.msra.mxu0 %v2053_v61  ;;  %1432 = vmatpush1.bf16.msra.mxu1 %v2056_v62 }
  0xb8   :  { %1390 = vmatprep.subr.bf16.mxu0 %v2061_v63  ;;  %1433 = vmatprep.subr.bf16.mxu1 %v2064_v0 }
  0xbb   :  { %1391 = vmatpush1.bf16.msra.mxu0 %v2059_v1  ;;  %1434 = vmatpush1.bf16.msra.mxu1 %v2062_v2 }
  0xbc   :  { %1392 = vmatprep.subr.bf16.mxu0 %v2067_v3  ;;  %1435 = vmatprep.subr.bf16.mxu1 %v2070_v5 }
  0xbf   :  { %1393 = vmatpush1.bf16.msra.mxu0 %v2065_v6  ;;  %1436 = vmatpush1.bf16.msra.mxu1 %v2068_v7 }
  0xc2   :  { %1395 = vmatmul.mubr.bf16.vlgmr.msra.gmra.mrb[8].mxu0 %v2300_v4  ;;  %1438 = vmatmul.mubr.bf16.vlgmr.msra.gmra.mrb[8].mxu1 %v2300_v4 }
 0x115   :  { %v1224_v10 = vpop.f32.mrb[0].mxu0  ;;  %v1267_v11 = vpop.f32.mrb[0].mxu1 }
 0x116   :  { %v1225_v12 = vadd.f32 %v1224_v10, %v2696_v8  ;;  %v1268_v13 = vadd.f32 %v1267_v11, %v2696_v8  ;;  %v1226_v14 = vpop.f32.mrb[1].mxu0  ;;  %v1269_v15 = vpop.f32.mrb[1].mxu1 }
 0x117   :  { %v1227_v16 = vadd.f32 %v1226_v14, %v2696_v8  ;;  %v1270_v17 = vadd.f32 %v1269_v15, %v2696_v8  ;;  %v1228_v18 = vpop.f32.mrb[2].mxu0  ;;  %v1271_v19 = vpop.f32.mrb[2].mxu1 }
 0x118   :  { %v1448_v49 = vmax.f32 %v1225_v12, 0.0  ;;  %v1450_v4 = vmax.f32 %v1268_v13, 0.0  ;;  %v1229_v20 = vadd.f32 %v1228_v18, %v2698_v9  ;;  %v1272_v21 = vadd.f32 %v1271_v19, %v2698_v9  ;;  %v1230_v22 = vpop.f32.mrb[3].mxu0  ;;  %v1273_v23 = vpop.f32.mrb[3].mxu1 }
 0x119   :  { %v1449_v24 = vmax.f32 %v1227_v16, 0.0  ;;  %v1451_v25 = vmax.f32 %v1270_v17, 0.0  ;;  %v1231_v26 = vadd.f32 %v1230_v22, %v2698_v9  ;;  %v1274_v27 = vadd.f32 %v1273_v23, %v2698_v9 }
 0x11a   :  { %v1460_v28 = vmax.f32 %v1229_v20, 0.0  ;;  %v1462_v29 = vmax.f32 %v1272_v21, 0.0 }
 0x11b   :  { %v1766_v30 = vpack.c.bf16 %v1449_v24, %v1448_v49  ;;  %v1767_v31 = vpack.c.bf16 %v1451_v25, %v1450_v4  ;;  %v1461_v32 = vmax.f32 %v1231_v26, 0.0  ;;  %v1463_v33 = vmax.f32 %v1274_v27, 0.0 }
 0x11d   :  { %1544 = vst [vmem:[%s2763_s3] sm:$0xff] %v1766_v30  ;;  %1545 = vst [vmem:[%s2763_s3 + $0x8] sm:$0xff] %v1767_v31  ;;  %v1772_v34 = vpack.c.bf16 %v1461_v32, %v1460_v28  ;;  %v1773_v35 = vpack.c.bf16 %v1463_v33, %v1462_v29 }
 0x11f   :  { %1550 = vst [vmem:[%s2763_s3 + $0x30] sm:$0xff] %v1772_v34  ;;  %1551 = vst [vmem:[%s2763_s3 + $0x38] sm:$0xff] %v1773_v35 }
 0x155   :  { %v1310_v36 = vpop.f32.mrb[4].mxu0  ;;  %v1353_v37 = vpop.f32.mrb[4].mxu1 }
 0x156   :  { %v1311_v38 = vadd.f32 %v1310_v36, %v2696_v8  ;;  %v1354_v39 = vadd.f32 %v1353_v37, %v2696_v8  ;;  %v1312_v40 = vpop.f32.mrb[5].mxu0  ;;  %v1355_v41 = vpop.f32.mrb[5].mxu1 }
 0x157   :  { %v1313_v42 = vadd.f32 %v1312_v40, %v2696_v8  ;;  %v1356_v43 = vadd.f32 %v1355_v41, %v2696_v8  ;;  %v1314_v44 = vpop.f32.mrb[6].mxu0  ;;  %v1357_v45 = vpop.f32.mrb[6].mxu1 }
 0x158   :  { %v1452_v46 = vmax.f32 %v1311_v38, 0.0  ;;  %v1454_v47 = vmax.f32 %v1354_v39, 0.0  ;;  %v1315_v48 = vadd.f32 %v1314_v44, %v2698_v9  ;;  %v1358_v50 = vadd.f32 %v1357_v45, %v2698_v9  ;;  %v1316_v51 = vpop.f32.mrb[7].mxu0  ;;  %v1359_v52 = vpop.f32.mrb[7].mxu1 }
 0x159   :  { %v1453_v53 = vmax.f32 %v1313_v42, 0.0  ;;  %v1455_v54 = vmax.f32 %v1356_v43, 0.0  ;;  %v1317_v55 = vadd.f32 %v1316_v51, %v2698_v9  ;;  %v1360_v56 = vadd.f32 %v1359_v52, %v2698_v9 }
 0x15a   :  { %v1464_v57 = vmax.f32 %v1315_v48, 0.0  ;;  %v1466_v58 = vmax.f32 %v1358_v50, 0.0 }
 0x15b   :  { %v1768_v59 = vpack.c.bf16 %v1453_v53, %v1452_v46  ;;  %v1769_v60 = vpack.c.bf16 %v1455_v54, %v1454_v47  ;;  %v1465_v61 = vmax.f32 %v1317_v55, 0.0  ;;  %v1467_v62 = vmax.f32 %v1360_v56, 0.0 }
 0x15d   :  { %1546 = vst [vmem:[%s2763_s3 + $0x10] sm:$0xff] %v1768_v59  ;;  %1547 = vst [vmem:[%s2763_s3 + $0x18] sm:$0xff] %v1769_v60  ;;  %v1774_v63 = vpack.c.bf16 %v1465_v61, %v1464_v57  ;;  %v1775_v0 = vpack.c.bf16 %v1467_v62, %v1466_v58 }
 0x15f   :  { %1552 = vst [vmem:[%s2763_s3 + $0x40] sm:$0xff] %v1774_v63  ;;  %1553 = vst [vmem:[%s2763_s3 + $0x48] sm:$0xff] %v1775_v0 }
 0x195   :  { %v1396_v1 = vpop.f32.mrb[8].mxu0  ;;  %v1439_v2 = vpop.f32.mrb[8].mxu1 }
 0x196   :  { %v1397_v3 = vadd.f32 %v1396_v1, %v2696_v8  ;;  %v1440_v5 = vadd.f32 %v1439_v2, %v2696_v8  ;;  %v1398_v6 = vpop.f32.mrb[9].mxu0  ;;  %v1441_v7 = vpop.f32.mrb[9].mxu1 }
 0x197   :  { %v1399_v10 = vadd.f32 %v1398_v6, %v2696_v8  ;;  %v1442_v11 = vadd.f32 %v1441_v7, %v2696_v8  ;;  %v1400_v12 = vpop.f32.mrb[10].mxu0  ;;  %v1443_v13 = vpop.f32.mrb[10].mxu1 }
 0x198   :  { %v1456_v14 = vmax.f32 %v1397_v3, 0.0  ;;  %v1458_v15 = vmax.f32 %v1440_v5, 0.0  ;;  %v1401_v16 = vadd.f32 %v1400_v12, %v2698_v9  ;;  %v1444_v17 = vadd.f32 %v1443_v13, %v2698_v9  ;;  %v1402_v18 = vpop.f32.mrb[11].mxu0  ;;  %v1445_v19 = vpop.f32.mrb[11].mxu1 }
 0x199   :  { %v1457_v49 = vmax.f32 %v1399_v10, 0.0  ;;  %v1459_v4 = vmax.f32 %v1442_v11, 0.0  ;;  %v1403_v20 = vadd.f32 %v1402_v18, %v2698_v9  ;;  %v1446_v21 = vadd.f32 %v1445_v19, %v2698_v9 }
 0x19a   :  { %v1468_v22 = vmax.f32 %v1401_v16, 0.0  ;;  %v1470_v23 = vmax.f32 %v1444_v17, 0.0 }
 0x19b   :  { %v1770_v24 = vpack.c.bf16 %v1457_v49, %v1456_v14  ;;  %v1771_v8 = vpack.c.bf16 %v1459_v4, %v1458_v15  ;;  %v1469_v25 = vmax.f32 %v1403_v20, 0.0  ;;  %v1471_v26 = vmax.f32 %v1446_v21, 0.0 }
 0x19d   :  { %1548 = vst [vmem:[%s2763_s3 + $0x20] sm:$0xff] %v1770_v24  ;;  %1549 = vst [vmem:[%s2763_s3 + $0x28] sm:$0xff] %v1771_v8  ;;  %v1776_v27 = vpack.c.bf16 %v1469_v25, %v1468_v22  ;;  %v1777_v28 = vpack.c.bf16 %v1471_v26, %v1470_v23 }
 0x19f   :  { %1554 = vst [vmem:[%s2763_s3 + $0x50] sm:$0xff] %v1776_v27  ;;  %1555 = vst [vmem:[%s2763_s3 + $0x58] sm:$0xff] %v1777_v28 }

// kernel: scale_up_forward.6
= control target key start
LH: loop header
LB: loop body
LE: loop exit
PB: predicated region body
PF: predicated region fallthrough
CT: control target
= control target key end

     0   :  { %v640_v1 = vmov 0   ;;  %s909_s1 = inlined_call_operand.vmem [shape: bf16[256,256], index: 1, kind: input, shape index: {}]   ;;  %s910_s0 = inlined_call_operand.vmem [shape: bf16[96,256], index: 0, kind: input, shape index: {}]   ;;  %s911_s2 = inlined_call_operand.vmem [shape: f32[96,1], index: 2, kind: input, shape index: {}]   ;;  %s912_s3 = inlined_call_operand.vmem [shape: f32[96,256], index: 3, kind: output, shape index: {}]  }
   0x1   :  { %v574_v0 = vld [vmem:[%s909_s1 + $0x4] ss:$8 sps:$4 sm:$0xff]   ;;  %573 = vset.pattern.permute.xlu1 %v640_v1  ;;  %572 = vset.pattern.permute.xlu0 %v640_v1  ;;  %v576_v2 = vld [vmem:[%s909_s1] ss:$8 sps:$4 sm:$0xff]   ;;  %v577_v3 = vld [vmem:[%s909_s1 + $0x14] ss:$8 sps:$4 sm:$0xff]  }
   0x2   :  { %350 = vmatprep.subr.bf16.mxu0 %v574_v0  ;;  %539 = vmatprep.subr.bf16.mxu1 %v574_v0  ;;  %v579_v4 = vld [vmem:[%s909_s1 + $0x10] ss:$8 sps:$4 sm:$0xff]   ;;  %v580_v5 = vld [vmem:[%s909_s1 + $0x24] ss:$8 sps:$4 sm:$0xff]   ;;  %v582_v6 = vld [vmem:[%s909_s1 + $0x20] ss:$8 sps:$4 sm:$0xff]  }
   0x3   :  { %351 = vmatpush1.bf16.msra.mxu0 %v576_v2  ;;  %555 = vmatpush1.bf16.msra.mxu1 %v576_v2  ;;  %v583_v7 = vld [vmem:[%s909_s1 + $0x34] ss:$8 sps:$4 sm:$0xff]   ;;  %v585_v8 = vld [vmem:[%s909_s1 + $0x30] ss:$8 sps:$4 sm:$0xff]   ;;  %v586_v9 = vld [vmem:[%s909_s1 + $0x44] ss:$8 sps:$4 sm:$0xff]  }
   0x4   :  { %352 = vmatprep.subr.bf16.mxu0 %v577_v3  ;;  %540 = vmatprep.subr.bf16.mxu1 %v577_v3  ;;  %v588_v10 = vld [vmem:[%s909_s1 + $0x40] ss:$8 sps:$4 sm:$0xff]   ;;  %v589_v11 = vld [vmem:[%s909_s1 + $0x54] ss:$8 sps:$4 sm:$0xff]   ;;  %v591_v12 = vld [vmem:[%s909_s1 + $0x50] ss:$8 sps:$4 sm:$0xff]  }
   0x5   :  { %v592_v13 = vld [vmem:[%s909_s1 + $0x64] ss:$8 sps:$4 sm:$0xff]   ;;  %v594_v15 = vld [vmem:[%s909_s1 + $0x60] ss:$8 sps:$4 sm:$0xff]   ;;  %v627_v16 = vld [vmem:[%s910_s0 + $0x34] ss:$8 sps:$4 sm:$0xff]  }
   0x6   :  { %v624_v14 = vld [vmem:[%s910_s0 + $0x4] ss:$8 sps:$4 sm:$0xff]   ;;  %v595_v17 = vld [vmem:[%s909_s1 + $0x74] ss:$8 sps:$4 sm:$0xff]   ;;  %412 = vmatprep.mubr.bf16.mxu1 %v627_v16  ;;  %v597_v18 = vld [vmem:[%s909_s1 + $0x70] ss:$8 sps:$4 sm:$0xff]  }
   0x7   :  { %353 = vmatpush1.bf16.msra.mxu0 %v579_v4  ;;  %556 = vmatpush1.bf16.msra.mxu1 %v579_v4  ;;  %v598_v19 = vld [vmem:[%s909_s1 + $0x84] ss:$8 sps:$4 sm:$0xff]   ;;  %v60_v20 = vld [vmem:[%s911_s2 + $0x10] sm:$0xff]  ;;  %v600_v22 = vld [vmem:[%s909_s1 + $0x80] ss:$8 sps:$4 sm:$0xff]  }
   0x8   :  { %354 = vmatprep.subr.bf16.mxu0 %v580_v5  ;;  %541 = vmatprep.subr.bf16.mxu1 %v580_v5  ;;  %v58_v21 = vld [vmem:[%s911_s2] sm:$0xff]  ;;  %v61_v23 = vld [vmem:[%s911_s2 + $0x18] sm:$0xff]  ;;  %v59_v24 = vld [vmem:[%s911_s2 + $0x8] sm:$0xff] }
   0x9   :  { %382 = vmatprep.mubr.bf16.mxu0 %v624_v14  ;;  %82 = vperm.xlu1 %573, %v60_v20   ;;  %v601_v25 = vld [vmem:[%s909_s1 + $0x94] ss:$8 sps:$4 sm:$0xff]   ;;  %v603_v26 = vld [vmem:[%s909_s1 + $0x90] ss:$8 sps:$4 sm:$0xff]   ;;  %v63_v27 = vld [vmem:[%s911_s2 + $0x28] sm:$0xff] }
   0xa   :  { %72 = vperm.xlu0 %572, %v58_v21   ;;  %v62_v28 = vld [vmem:[%s911_s2 + $0x20] sm:$0xff]  ;;  %v65_v31 = vld [vmem:[%s911_s2 + $0x38] sm:$0xff]  ;;  %v64_v32 = vld [vmem:[%s911_s2 + $0x30] sm:$0xff] }
   0xb   :  { %355 = vmatpush1.bf16.msra.mxu0 %v582_v6  ;;  %557 = vmatpush1.bf16.msra.mxu1 %v582_v6  ;;  %v604_v29 = vld [vmem:[%s909_s1 + $0xa4] ss:$8 sps:$4 sm:$0xff]   ;;  %v606_v30 = vld [vmem:[%s909_s1 + $0xa0] ss:$8 sps:$4 sm:$0xff]   ;;  %v607_v33 = vld [vmem:[%s909_s1 + $0xb4] ss:$8 sps:$4 sm:$0xff]  }
   0xc   :  { %356 = vmatprep.subr.bf16.mxu0 %v583_v7  ;;  %542 = vmatprep.subr.bf16.mxu1 %v583_v7  ;;  %v609_v34 = vld [vmem:[%s909_s1 + $0xb0] ss:$8 sps:$4 sm:$0xff]   ;;  %v67_v35 = vld [vmem:[%s911_s2 + $0x48] sm:$0xff]  ;;  %v66_v36 = vld [vmem:[%s911_s2 + $0x40] sm:$0xff] }
   0xd   :  { %87 = vperm.xlu1 %573, %v61_v23   ;;  %v610_v37 = vld [vmem:[%s909_s1 + $0xc4] ss:$8 sps:$4 sm:$0xff]   ;;  %v612_v38 = vld [vmem:[%s909_s1 + $0xc0] ss:$8 sps:$4 sm:$0xff]   ;;  %v69_v39 = vld [vmem:[%s911_s2 + $0x58] sm:$0xff] }
   0xe   :  { %77 = vperm.xlu0 %572, %v59_v24   ;;  %v68_v40 = vld [vmem:[%s911_s2 + $0x50] sm:$0xff]  ;;  %v616_v43 = vld [vmem:[%s909_s1 + $0xe4] ss:$8 sps:$4 sm:$0xff]   ;;  %v618_v44 = vld [vmem:[%s909_s1 + $0xe0] ss:$8 sps:$4 sm:$0xff]  }
   0xf   :  { %357 = vmatpush1.bf16.msra.mxu0 %v585_v8  ;;  %558 = vmatpush1.bf16.msra.mxu1 %v585_v8  ;;  %v613_v41 = vld [vmem:[%s909_s1 + $0xd4] ss:$8 sps:$4 sm:$0xff]   ;;  %v615_v42 = vld [vmem:[%s909_s1 + $0xd0] ss:$8 sps:$4 sm:$0xff]   ;;  %v622_v47 = vld [vmem:[%s910_s0] ss:$8 sps:$4 sm:$0xff]  }
  0x10   :  { %358 = vmatprep.subr.bf16.mxu0 %v586_v9  ;;  %543 = vmatprep.subr.bf16.mxu1 %v586_v9  ;;  %v619_v45 = vld [vmem:[%s909_s1 + $0xf4] ss:$8 sps:$4 sm:$0xff]   ;;  %v621_v46 = vld [vmem:[%s909_s1 + $0xf0] ss:$8 sps:$4 sm:$0xff]   ;;  %v630_v50 = vld [vmem:[%s910_s0 + $0x44] ss:$8 sps:$4 sm:$0xff]  }
  0x11   :  { %97 = vperm.xlu1 %573, %v63_v27   ;;  %v625_v48 = vld [vmem:[%s910_s0 + $0x30] ss:$8 sps:$4 sm:$0xff]   ;;  %v628_v49 = vld [vmem:[%s910_s0 + $0x14] ss:$8 sps:$4 sm:$0xff]   ;;  %v633_v52 = vld [vmem:[%s910_s0 + $0x40] ss:$8 sps:$4 sm:$0xff]  }
  0x12   :  { %92 = vperm.xlu0 %572, %v62_v28   ;;  %v632_v51 = vld [vmem:[%s910_s0 + $0x10] ss:$8 sps:$4 sm:$0xff]   ;;  %v634_v53 = vld [vmem:[%s910_s0 + $0x24] ss:$8 sps:$4 sm:$0xff]   ;;  %v636_v54 = vld [vmem:[%s910_s0 + $0x54] ss:$8 sps:$4 sm:$0xff]  }
  0x13   :  { %359 = vmatpush1.bf16.msra.mxu0 %v588_v10  ;;  %559 = vmatpush1.bf16.msra.mxu1 %v588_v10  ;;  %v638_v55 = vld [vmem:[%s910_s0 + $0x20] ss:$8 sps:$4 sm:$0xff]   ;;  %v639_v56 = vld [vmem:[%s910_s0 + $0x50] ss:$8 sps:$4 sm:$0xff]  }
  0x14   :  { %360 = vmatprep.subr.bf16.mxu0 %v589_v11  ;;  %544 = vmatprep.subr.bf16.mxu1 %v589_v11 }
  0x15   :  { %107 = vperm.xlu1 %573, %v65_v31  }
  0x16   :  { %102 = vperm.xlu0 %572, %v64_v32  }
  0x17   :  { %361 = vmatpush1.bf16.msra.mxu0 %v591_v12  ;;  %560 = vmatpush1.bf16.msra.mxu1 %v591_v12 }
  0x18   :  { %362 = vmatprep.subr.bf16.mxu0 %v592_v13  ;;  %545 = vmatprep.subr.bf16.mxu1 %v592_v13 }
  0x19   :  { %117 = vperm.xlu1 %573, %v67_v35  }
  0x1a   :  { %112 = vperm.xlu0 %572, %v66_v36  }
  0x1b   :  { %363 = vmatpush1.bf16.msra.mxu0 %v594_v15  ;;  %561 = vmatpush1.bf16.msra.mxu1 %v594_v15 }
  0x1c   :  { %364 = vmatprep.subr.bf16.mxu0 %v595_v17  ;;  %546 = vmatprep.subr.bf16.mxu1 %v595_v17 }
  0x1d   :  { %127 = vperm.xlu1 %573, %v69_v39  }
  0x1e   :  { %122 = vperm.xlu0 %572, %v68_v40  }
  0x1f   :  { %365 = vmatpush1.bf16.msra.mxu0 %v597_v18  ;;  %562 = vmatpush1.bf16.msra.mxu1 %v597_v18 }
  0x20   :  { %366 = vmatprep.subr.bf16.mxu0 %v598_v19  ;;  %547 = vmatprep.subr.bf16.mxu1 %v598_v19 }
  0x23   :  { %367 = vmatpush1.bf16.msra.mxu0 %v600_v22  ;;  %563 = vmatpush1.bf16.msra.mxu1 %v600_v22 }
  0x24   :  { %368 = vmatprep.subr.bf16.mxu0 %v601_v25  ;;  %548 = vmatprep.subr.bf16.mxu1 %v601_v25 }
  0x27   :  { %369 = vmatpush1.bf16.msra.mxu0 %v603_v26  ;;  %564 = vmatpush1.bf16.msra.mxu1 %v603_v26 }
  0x28   :  { %370 = vmatprep.subr.bf16.mxu0 %v604_v29  ;;  %549 = vmatprep.subr.bf16.mxu1 %v604_v29 }
  0x2b   :  { %371 = vmatpush1.bf16.msra.mxu0 %v606_v30  ;;  %565 = vmatpush1.bf16.msra.mxu1 %v606_v30 }
  0x2c   :  { %372 = vmatprep.subr.bf16.mxu0 %v607_v33  ;;  %550 = vmatprep.subr.bf16.mxu1 %v607_v33 }
  0x2f   :  { %373 = vmatpush1.bf16.msra.mxu0 %v609_v34  ;;  %566 = vmatpush1.bf16.msra.mxu1 %v609_v34 }
  0x30   :  { %374 = vmatprep.subr.bf16.mxu0 %v610_v37  ;;  %551 = vmatprep.subr.bf16.mxu1 %v610_v37 }
  0x33   :  { %375 = vmatpush1.bf16.msra.mxu0 %v612_v38  ;;  %567 = vmatpush1.bf16.msra.mxu1 %v612_v38 }
  0x34   :  { %376 = vmatprep.subr.bf16.mxu0 %v613_v41  ;;  %552 = vmatprep.subr.bf16.mxu1 %v613_v41 }
  0x37   :  { %377 = vmatpush1.bf16.msra.mxu0 %v615_v42  ;;  %568 = vmatpush1.bf16.msra.mxu1 %v615_v42 }
  0x38   :  { %378 = vmatprep.subr.bf16.mxu0 %v616_v43  ;;  %553 = vmatprep.subr.bf16.mxu1 %v616_v43 }
  0x3b   :  { %379 = vmatpush1.bf16.msra.mxu0 %v618_v44  ;;  %569 = vmatpush1.bf16.msra.mxu1 %v618_v44 }
  0x3c   :  { %380 = vmatprep.subr.bf16.mxu0 %v619_v45  ;;  %554 = vmatprep.subr.bf16.mxu1 %v619_v45 }
  0x3f   :  { %381 = vmatpush1.bf16.msra.mxu0 %v621_v46  ;;  %570 = vmatpush1.bf16.msra.mxu1 %v621_v46 }
  0x42   :  { %383 = vmatmul.mubr.bf16.vlgmr.msra.gmra.mrb[0].mxu0 %v622_v47  ;;  %413 = vmatmul.mubr.bf16.vlgmr.msra.gmra.mrb[0].mxu1 %v625_v48 }
  0x43   :  { %392 = vmatprep.mubr.bf16.mxu0 %v628_v49  ;;  %422 = vmatprep.mubr.bf16.mxu1 %v630_v50 }
  0x4a   :  { %393 = vmatmul.mubr.bf16.gmra.mrb[4].mxu0 %v632_v51  ;;  %423 = vmatmul.mubr.bf16.gmra.mrb[4].mxu1 %v633_v52 }
  0x4b   :  { %402 = vmatprep.mubr.bf16.mxu0 %v634_v53  ;;  %432 = vmatprep.mubr.bf16.mxu1 %v636_v54 }
  0x52   :  { %403 = vmatmul.mubr.bf16.gmra.mrb[8].mxu0 %v638_v55  ;;  %433 = vmatmul.mubr.bf16.gmra.mrb[8].mxu1 %v639_v56 }
  0x88   :  { %v83_v57 = vpop.permute.xlu1 %82 }
  0x89   :  { %v73_v58 = vpop.permute.xlu0 %72 }
  0x8c   :  { %v88_v59 = vpop.permute.xlu1 %87 }
  0x8d   :  { %v78_v60 = vpop.permute.xlu0 %77 }
  0x90   :  { %v829_v61 = vpop.permute.xlu1 %97 }
  0x91   :  { %v831_v62 = vpop.permute.xlu0 %92 }
  0x94   :  { %v108_v63 = vpop.permute.xlu1 %107 }
  0x95   :  { %v103_v0 = vpop.permute.xlu0 %102 }
  0x98   :  { %v118_v25 = vpop.permute.xlu1 %117 }
  0x99   :  { %v113_v26 = vpop.permute.xlu0 %112 }
  0x9c   :  { %v128_v51 = vpop.permute.xlu1 %127 }
  0x9d   :  { %v123_v52 = vpop.permute.xlu0 %122 }
 0x115   :  { %v384_v1 = vpop.f32.mrb[0].mxu0  ;;  %v414_v2 = vpop.f32.mrb[0].mxu1 }
 0x116   :  { %v385_v3 = vadd.f32 %v384_v1, %v73_v58  ;;  %v415_v4 = vadd.f32 %v414_v2, %v103_v0  ;;  %v386_v5 = vpop.f32.mrb[1].mxu0  ;;  %v416_v6 = vpop.f32.mrb[1].mxu1 }
 0x117   :  { %v387_v7 = vadd.f32 %v386_v5, %v73_v58  ;;  %v417_v8 = vadd.f32 %v416_v6, %v103_v0  ;;  %v388_v9 = vpop.f32.mrb[2].mxu0  ;;  %v418_v10 = vpop.f32.mrb[2].mxu1 }
 0x118   :  { %v443_v11 = vmax.f32 %v385_v3, 0.0  ;;  %v455_v12 = vmax.f32 %v415_v4, 0.0  ;;  %v389_v13 = vadd.f32 %v388_v9, %v78_v60  ;;  %v419_v14 = vadd.f32 %v418_v10, %v108_v63  ;;  %v390_v15 = vpop.f32.mrb[3].mxu0  ;;  %v420_v16 = vpop.f32.mrb[3].mxu1 }
 0x119   :  { %v444_v17 = vmax.f32 %v387_v7, 0.0  ;;  %v456_v18 = vmax.f32 %v417_v8, 0.0  ;;  %v391_v19 = vadd.f32 %v390_v15, %v78_v60  ;;  %v421_v20 = vadd.f32 %v420_v16, %v108_v63 }
 0x11a   :  { %467 = vst [vmem:[%s912_s3] sm:$0xff] %v443_v11  ;;  %479 = vst [vmem:[%s912_s3 + $0x60] sm:$0xff] %v455_v12  ;;  %v445_v21 = vmax.f32 %v389_v13, 0.0  ;;  %v457_v22 = vmax.f32 %v419_v14, 0.0 }
 0x11b   :  { %468 = vst [vmem:[%s912_s3 + $0x8] sm:$0xff] %v444_v17  ;;  %480 = vst [vmem:[%s912_s3 + $0x68] sm:$0xff] %v456_v18  ;;  %v446_v23 = vmax.f32 %v391_v19, 0.0  ;;  %v458_v24 = vmax.f32 %v421_v20, 0.0 }
 0x11c   :  { %469 = vst [vmem:[%s912_s3 + $0x10] sm:$0xff] %v445_v21  ;;  %481 = vst [vmem:[%s912_s3 + $0x70] sm:$0xff] %v457_v22 }
 0x11d   :  { %470 = vst [vmem:[%s912_s3 + $0x18] sm:$0xff] %v446_v23  ;;  %482 = vst [vmem:[%s912_s3 + $0x78] sm:$0xff] %v458_v24  ;;  %v394_v27 = vpop.f32.mrb[4].mxu0  ;;  %v424_v28 = vpop.f32.mrb[4].mxu1 }
 0x11e   :  { %v395_v29 = vadd.f32 %v394_v27, %v83_v57  ;;  %v425_v30 = vadd.f32 %v424_v28, %v113_v26  ;;  %v396_v31 = vpop.f32.mrb[5].mxu0  ;;  %v426_v32 = vpop.f32.mrb[5].mxu1 }
 0x11f   :  { %v397_v33 = vadd.f32 %v396_v31, %v83_v57  ;;  %v427_v34 = vadd.f32 %v426_v32, %v113_v26  ;;  %v398_v35 = vpop.f32.mrb[6].mxu0  ;;  %v428_v36 = vpop.f32.mrb[6].mxu1 }
 0x120   :  { %v447_v37 = vmax.f32 %v395_v29, 0.0  ;;  %v459_v38 = vmax.f32 %v425_v30, 0.0  ;;  %v399_v39 = vadd.f32 %v398_v35, %v88_v59  ;;  %v429_v40 = vadd.f32 %v428_v36, %v118_v25  ;;  %v400_v41 = vpop.f32.mrb[7].mxu0  ;;  %v430_v42 = vpop.f32.mrb[7].mxu1 }
 0x121   :  { %v448_v43 = vmax.f32 %v397_v33, 0.0  ;;  %v460_v44 = vmax.f32 %v427_v34, 0.0  ;;  %v401_v45 = vadd.f32 %v400_v41, %v88_v59  ;;  %v431_v46 = vadd.f32 %v430_v42, %v118_v25 }
 0x122   :  { %471 = vst [vmem:[%s912_s3 + $0x20] sm:$0xff] %v447_v37  ;;  %483 = vst [vmem:[%s912_s3 + $0x80] sm:$0xff] %v459_v38  ;;  %v449_v47 = vmax.f32 %v399_v39, 0.0  ;;  %v461_v48 = vmax.f32 %v429_v40, 0.0 }
 0x123   :  { %472 = vst [vmem:[%s912_s3 + $0x28] sm:$0xff] %v448_v43  ;;  %484 = vst [vmem:[%s912_s3 + $0x88] sm:$0xff] %v460_v44  ;;  %v450_v49 = vmax.f32 %v401_v45, 0.0  ;;  %v462_v50 = vmax.f32 %v431_v46, 0.0 }
 0x124   :  { %473 = vst [vmem:[%s912_s3 + $0x30] sm:$0xff] %v449_v47  ;;  %485 = vst [vmem:[%s912_s3 + $0x90] sm:$0xff] %v461_v48 }
 0x125   :  { %474 = vst [vmem:[%s912_s3 + $0x38] sm:$0xff] %v450_v49  ;;  %486 = vst [vmem:[%s912_s3 + $0x98] sm:$0xff] %v462_v50  ;;  %v404_v53 = vpop.f32.mrb[8].mxu0  ;;  %v434_v54 = vpop.f32.mrb[8].mxu1 }
 0x126   :  { %v405_v55 = vadd.f32 %v404_v53, %v831_v62  ;;  %v435_v56 = vadd.f32 %v434_v54, %v123_v52  ;;  %v406_v57 = vpop.f32.mrb[9].mxu0  ;;  %v436_v58 = vpop.f32.mrb[9].mxu1 }
 0x127   :  { %v407_v59 = vadd.f32 %v406_v57, %v831_v62  ;;  %v437_v60 = vadd.f32 %v436_v58, %v123_v52  ;;  %v408_v63 = vpop.f32.mrb[10].mxu0  ;;  %v438_v0 = vpop.f32.mrb[10].mxu1 }
 0x128   :  { %v451_v1 = vmax.f32 %v405_v55, 0.0  ;;  %v463_v2 = vmax.f32 %v435_v56, 0.0  ;;  %v409_v3 = vadd.f32 %v408_v63, %v829_v61  ;;  %v439_v4 = vadd.f32 %v438_v0, %v128_v51  ;;  %v410_v5 = vpop.f32.mrb[11].mxu0  ;;  %v440_v6 = vpop.f32.mrb[11].mxu1 }
 0x129   :  { %v452_v7 = vmax.f32 %v407_v59, 0.0  ;;  %v464_v8 = vmax.f32 %v437_v60, 0.0  ;;  %v411_v9 = vadd.f32 %v410_v5, %v829_v61  ;;  %v441_v10 = vadd.f32 %v440_v6, %v128_v51 }
 0x12a   :  { %475 = vst [vmem:[%s912_s3 + $0x40] sm:$0xff] %v451_v1  ;;  %487 = vst [vmem:[%s912_s3 + $0xa0] sm:$0xff] %v463_v2  ;;  %v453_v62 = vmax.f32 %v409_v3, 0.0  ;;  %v465_v11 = vmax.f32 %v439_v4, 0.0 }
 0x12b   :  { %476 = vst [vmem:[%s912_s3 + $0x48] sm:$0xff] %v452_v7  ;;  %488 = vst [vmem:[%s912_s3 + $0xa8] sm:$0xff] %v464_v8  ;;  %v454_v61 = vmax.f32 %v411_v9, 0.0  ;;  %v466_v12 = vmax.f32 %v441_v10, 0.0 }
 0x12c   :  { %477 = vst [vmem:[%s912_s3 + $0x50] sm:$0xff] %v453_v62  ;;  %489 = vst [vmem:[%s912_s3 + $0xb0] sm:$0xff] %v465_v11 }
 0x12d   :  { %478 = vst [vmem:[%s912_s3 + $0x58] sm:$0xff] %v454_v61  ;;  %490 = vst [vmem:[%s912_s3 + $0xb8] sm:$0xff] %v466_v12 }

// kernel: scale_up_forward.7
= control target key start
LH: loop header
LB: loop body
LE: loop exit
PB: predicated region body
PF: predicated region fallthrough
CT: control target
= control target key end

     0   :  { %s6274_s9 = smov 0   ;;  %s6276_s10 = smov 0   ;;  %s17409_s0 = inlined_call_operand.vmem [shape: f32[2,2,1536], index: 0, kind: input, shape index: {}]   ;;  %s17410_s1 = inlined_call_operand.vmem [shape: f32[2,8,1152], index: 1, kind: input, shape index: {}]   ;;  %s17411_s2 = inlined_call_operand.vmem [shape: f32[2,8,1536], index: 2, kind: output, shape index: {}]  }
   0x1   :  { %s6278_s11 = smov 0   ;;  %s6280_s12 = smov 0  }
   0x2   :  { %s6282_s13 = smov 0  }
   0x3 LB: > { %s21_s14 = sadd.s32 1, %s6248_s11  ;;  %s24_s15 = sadd.s32 1, %s6252_s12  ;;  %s6256_s13 = sphi %s6282_s13, %s12_s13   ;;  %s6252_s12 = sphi %s6280_s12, %s17427_s12   ;;  %s6248_s11 = sphi %s6278_s11, %s17426_s11   ;;  %s6244_s10 = sphi %s6276_s10, %s17425_s10   ;;  %s6240_s9 = sphi %s6274_s9, %s17424_s9  }
   0x4   : > { %p22_p0 = scmp.ge.s32.totalorder %s21_s14, 3  ;;  %p6125_p1 = scmp.ge.s32.totalorder %s6256_s13, 1 }
   0x5   : > { %p143_p2 = scmp.lt.s32.totalorder %s6256_s13, 7 }
   0x6   : > { %s17429_s14 = smov (%p22_p0, %s21_s14), 0  ;;  %s17431_s15 = smov (!%p22_p0, %s24_s15), %s6252_s12 }
   0x7   : > { %p144_p3 = pnand %p6125_p1, %p143_p2  ;;  %p26_p4 = scmp.ge.s32.totalorder %s17431_s15, 2 }
   0x8   : > { %s6126_s16 = sshll.u32 (!%p144_p3), %s6240_s9, 2  ;;  %p179_p5 = scmp.lt.s32.totalorder (!%p144_p3), %s6244_s10, 1  ;;  %v279_v0 = vlaneseq (!%p144_p3)  ;;  %v6258_v30 = vmov (!%p144_p3), 0  }
   0x9   : > { %s17433_s15 = smov (%p26_p4, %s17431_s15), 0  ;;  %147 = sbr.rel (%p144_p3) target bundleno = 1536 (0x600), region = 28 }
   0xa   : > { %p181_p6 = scmp.lt.s32.totalorder (!%p144_p3), %s6126_s16, 11  ;;  %v6309_v1 = vshrl.u32 (!%p144_p3), %v279_v0, 7 }
   0xc   : > { %v6316_v3 = vadd.s32 (!%p144_p3), 8, %v6309_v1  ;;  %v6319_v5 = vsub.s32 (!%p144_p3), 0, %v6309_v1  ;;  %v6322_v6 = vsub.s32 (!%p144_p3), 2, %v6309_v1  ;;  %v6325_v7 = vsub.s32 (!%p144_p3), 1, %v6309_v1 }
   0xd   : > { %v6328_v8 = vsub.s32 (!%p144_p3), 3, %v6309_v1  ;;  %v6331_v9 = vsub.s32 (!%p144_p3), 6, %v6309_v1  ;;  %v6334_v10 = vsub.s32 (!%p144_p3), 7, %v6309_v1  ;;  %v6337_v11 = vsub.s32 (!%p144_p3), 4, %v6309_v1 }
   0xe   : > { %v6340_v14 = vsub.s32 (!%p144_p3), 5, %v6309_v1  ;;  %v6343_v15 = vadd.s32 (!%p144_p3), 16, %v6309_v1  ;;  %v6346_v16 = vadd.s32 (!%p144_p3), 24, %v6309_v1  ;;  %v6349_v17 = vadd.s32 (!%p144_p3), 32, %v6309_v1 }
   0xf   : > { %v6352_v18 = vadd.s32 (!%p144_p3), 40, %v6309_v1  ;;  %v6355_v19 = vadd.s32 (!%p144_p3), 48, %v6309_v1  ;;  %v6358_v22 = vadd.s32 (!%p144_p3), 56, %v6309_v1  ;;  %v6361_v23 = vadd.s32 (!%p144_p3), 64, %v6309_v1 }
  0x10   : > { %s17435_s10 = smov (!%p179_p5, %s6244_s10), 1  ;;  %s17437_s16 = smov (!%p181_p6, %s6126_s16), 11  ;;  %v6364_v25 = vadd.s32 72, %v6309_v1  ;;  %v6367_v26 = vadd.s32 80, %v6309_v1  ;;  %v6370_v27 = vadd.s32 88, %v6309_v1 }
  0x11   : > { %s6173_s17 = smul.u32 12, %s17435_s10 }
  0x12   : > { %s6174_s23 = smul.u32 72, %s17435_s10 }
  0x13   : > { %s6307_s18 = sadd.s32 %s6173_s17, %s17437_s16 }
  0x14   : > { %s6127_s19 = sshll.u32 %s6307_s18, 1  ;;  %s8788_s26 = scalar_lea.vmem %s17410_s1, %s6174_s23 }
  0x15   : > { %s186_s22 = scalar_lea.vmem %s17409_s0, %s6127_s19  ;;  %s6130_s27 = sshll.u32 %s6307_s18, 3 }
  0x16   : > { %v204_v2 = vld [vmem:[%s186_s22] sm:$0xff]  ;;  %s201_s30 = scalar_lea.vmem %s17411_s2, %s6130_s27 }
  0x17   : > { %v214_v4 = vfloor.f32 %v204_v2 }
  0x19   : > { %v215_v12 = vsub.f32 %v204_v2, %v214_v4  ;;  %v6175_v13 = vtrunc.f32 %v214_v4 }
  0x1b   : > { %v216_v20 = vsub.f32 1.0, %v215_v12  ;;  %v6176_v21 = vcvt.f32.s32 %v6175_v13  ;;  %v274_v24 = vrot.slane %v215_v12, 7 }
  0x1d   : > { %v218_v28 = vadd.s32 1, %v6176_v21  ;;  %vm219_vm0 = vcmp.ge.s32.totalorder %v6176_v21, 0  ;;  %vm220_vm1 = vcmp.lt.s32.totalorder %v6176_v21, 33  ;;  %v232_v29 = vmul.u32 33, %v6176_v21 }
  0x1e   : > { %v222_v31 = vsel %vm219_vm0, 1, %v6258_v30  ;;  %v227_v32 = vsel %vm220_vm1, 1, %v6258_v30  ;;  %v233_v33 = vrot.slane %v6176_v21, 7  ;;  %v270_v34 = vrot.slane %v216_v20, 7  ;;  %vm6374_vm4 = vmand %vm219_vm0, %vm220_vm1 }
  0x1f   : > { %v6131_v35 = vrot.slane %v222_v31, 9  ;;  %v6132_v36 = vrot.slane %v227_v32, 9  ;;  %vm238_vm2 = vcmp.ge.s32.totalorder %v218_v28, 0  ;;  %vm239_vm3 = vcmp.lt.s32.totalorder %v218_v28, 33 }
  0x20   : > { %v234_v38 = vadd.s32 %v233_v33, %v232_v29  ;;  %v243_v39 = vrot.slane %v218_v28, 7  ;;  %v248_v40 = vsel %vm238_vm2, 1, %v6258_v30  ;;  %v253_v41 = vsel %vm239_vm3, 1, %v6258_v30  ;;  %vm6388_vm7 = vmand %vm238_vm2, %vm239_vm3 }
  0x21   : > { %vm6380_vm5 = vcmp.ne.s32.totalorder %v6131_v35, 0  ;;  %vm6384_vm6 = vcmp.ne.s32.totalorder %v6132_v36, 0  ;;  %v6135_v45 = vrot.slane %v248_v40, 9  ;;  %v6136_v46 = vrot.slane %v253_v41, 9 }
  0x22   : > { %vm226_vm8 = vmand %vm6374_vm4, %vm6380_vm5  ;;  %v6133_v47 = vrot.slane %v234_v38, 9  ;;  %v244_v48 = vadd.s32 %v243_v39, %v232_v29  ;;  %v258_v49 = vmul.u32 33, %v218_v28  ;;  %v6396_v50 = vmul.f32 %v270_v34, %v216_v20 }
  0x23   : > { %vm231_vm9 = vmand %vm226_vm8, %vm6384_vm6  ;;  %vm6400_vm10 = vcmp.ne.s32.totalorder %v6135_v45, 0  ;;  %vm6404_vm11 = vcmp.ne.s32.totalorder %v6136_v46, 0  ;;  %v6408_v53 = vmul.f32 %v274_v24, %v216_v20  ;;  %v6410_v54 = vmul.f32 %v270_v34, %v215_v12 }
  0x24   : > { %v6412_v55 = vsel %vm231_vm9, %v6133_v47, 4294967295  ;;  %vm241_vm12 = vmand %vm6388_vm7, %vm6380_vm5  ;;  %v6134_v56 = vrot.slane %v244_v48, 9  ;;  %v259_v57 = vadd.s32 %v258_v49, %v233_v33  ;;  %v265_v58 = vadd.s32 %v258_v49, %v243_v39 }
  0x25   : > { %vm242_vm13 = vmand %vm241_vm12, %vm6384_vm6  ;;  %v6420_v59 = vmul.f32 %v274_v24, %v215_v12  ;;  %v431_v60 = vrot.slane %v6412_v55, %v6322_v6  ;;  %v3477_v61 = vrot.slane %v6410_v54, %v6328_v8  ;;  %v4090_v62 = vrot.slane %v6408_v53, %v6328_v8 }
  0x26   : > { %v6428_v63 = vsel %vm242_vm13, %v6134_v56, 4294967295  ;;  %vm252_vm14 = vmand %vm6374_vm4, %vm6400_vm10  ;;  %v6137_v0 = vrot.slane %v259_v57, 9  ;;  %v6138_v2 = vrot.slane %v265_v58, 9  ;;  %v4703_v4 = vrot.slane %v6396_v50, %v6328_v8 }
  0x27   : > { %vm257_vm15 = vmand %vm252_vm14, %vm6404_vm11  ;;  %v6439_v12 = vrot.slane %v431_v60, %v6319_v5  ;;  %v1039_v13 = vrot.slane %v6428_v63, %v6322_v6  ;;  %v2864_v20 = vrot.slane %v6420_v59, %v6328_v8  ;;  %v6446_v21 = vadd.s32 96, %v6309_v1 }
  0x28   : > { %v6448_v24 = vsel %vm257_vm15, %v6137_v0, 4294967295  ;;  %vm263_vm0 = vmand %vm6388_vm7, %vm6400_vm10  ;;  %v6455_v28 = vrot.slane %v3477_v61, %v6325_v7  ;;  %v439_v29 = vrot.slane %v6412_v55, %v6331_v9  ;;  %v6460_v31 = vadd.s32 104, %v6309_v1 }
  0x29   : > { %vm264_vm1 = vmand %vm263_vm0, %vm6404_vm11  ;;  %v6465_v8 = vrot.slane %v1039_v13, %v6319_v5  ;;  %v1647_v32 = vrot.slane %v6448_v24, %v6322_v6  ;;  %v6470_v33 = vrot.slane %v4090_v62, %v6325_v7  ;;  %v6473_v34 = vrot.slane %v4703_v4, %v6325_v7 }
  0x2a   : > { %v6475_v35 = vsel %vm264_vm1, %v6138_v2, 4294967295  ;;  %vm457_vm2 = vcmp.eq.s32.totalorder %v6309_v1, %v6439_v12  ;;  %v6480_v36 = vrot.slane %v439_v29, %v6319_v5  ;;  %v1047_v37 = vrot.slane %v6428_v63, %v6331_v9 }
  0x2b   : > { %vm461_vm3 = vcmp.eq.s32.totalorder %v6316_v3, %v6439_v12  ;;  %v6487_v38 = vrot.slane %v1647_v32, %v6319_v5  ;;  %v2255_v39 = vrot.slane %v6475_v35, %v6322_v6  ;;  %v6492_v40 = vrot.slane %v2864_v20, %v6325_v7 }
  0x2c   : > { %vm1065_vm4 = vcmp.eq.s32.totalorder %v6309_v1, %v6465_v8  ;;  %vm1069_vm5 = vcmp.eq.s32.totalorder %v6316_v3, %v6465_v8  ;;  %v6499_v41 = vrot.slane %v1047_v37, %v6319_v5  ;;  %v1655_v42 = vrot.slane %v6448_v24, %v6331_v9 }
  0x2d   : > { %vm1673_vm6 = vcmp.eq.s32.totalorder %v6309_v1, %v6487_v38  ;;  %vm1677_vm7 = vcmp.eq.s32.totalorder %v6316_v3, %v6487_v38  ;;  %v6508_v6 = vrot.slane %v2255_v39, %v6319_v5  ;;  %vm459_vm8 = vcmp.eq.s32.totalorder %v6309_v1, %v6480_v36 }
  0x2e   : > { %vm463_vm9 = vcmp.eq.s32.totalorder %v6316_v3, %v6480_v36  ;;  %v2263_v43 = vrot.slane %v6475_v35, %v6331_v9  ;;  %vm1067_vm10 = vcmp.eq.s32.totalorder %v6309_v1, %v6499_v41  ;;  %vm1071_vm11 = vcmp.eq.s32.totalorder %v6316_v3, %v6499_v41 }
  0x2f   : > { %v6521_v44 = vrot.slane %v1655_v42, %v6319_v5  ;;  %v2872_v45 = vrot.slane %v6420_v59, %v6334_v10  ;;  %vm2281_vm12 = vcmp.eq.s32.totalorder %v6309_v1, %v6508_v6  ;;  %vm2285_vm13 = vcmp.eq.s32.totalorder %v6316_v3, %v6508_v6 }
  0x30   : > { %v6530_v9 = vrot.slane %v2263_v43, %v6319_v5  ;;  %v3485_v46 = vrot.slane %v6410_v54, %v6334_v10  ;;  %v2894_v47 = vsel %vm2281_vm12, %v6492_v40, 0.0  ;;  %v2898_v48 = vsel %vm2285_vm13, %v6492_v40, 0.0 }
  0x31   : > { %vm1675_vm14 = vcmp.eq.s32.totalorder %v6309_v1, %v6521_v44  ;;  %vm1679_vm15 = vcmp.eq.s32.totalorder %v6316_v3, %v6521_v44  ;;  %v3507_v49 = vsel %vm1673_vm6, %v6455_v28, %v2894_v47  ;;  %v3511_v51 = vsel %vm1677_vm7, %v6455_v28, %v2898_v48 }
  0x32   : > { %vm2283_vm0 = vcmp.eq.s32.totalorder %v6309_v1, %v6530_v9  ;;  %vm2287_vm1 = vcmp.eq.s32.totalorder %v6316_v3, %v6530_v9  ;;  %v4120_v52 = vsel %vm1065_vm4, %v6470_v33, %v3507_v49  ;;  %v4124_v56 = vsel %vm1069_vm5, %v6470_v33, %v3511_v51 }
  0x33   : > { %v6561_v57 = vrot.slane %v2872_v45, %v6325_v7  ;;  %v6564_v58 = vrot.slane %v3485_v46, %v6325_v7  ;;  %v4733_v60 = vsel %vm457_vm2, %v6473_v34, %v4120_v52  ;;  %v4737_v61 = vsel %vm461_vm3, %v6473_v34, %v4124_v56 }
  0x34   : > { %v4098_v62 = vrot.slane %v6408_v53, %v6334_v10  ;;  %v4711_v0 = vrot.slane %v6396_v50, %v6334_v10  ;;  %v5318_v2 = vpack.c.bf16 %v4737_v61, %v4733_v60  ;;  %v427_v20 = vrot.slane %v6412_v55, %v6319_v5 }
  0x35   : > { %v2896_v4 = vsel %vm2283_vm0, %v6561_v57, 0.0  ;;  %v2900_v13 = vsel %vm2287_vm1, %v6561_v57, 0.0  ;;  %v1035_v42 = vrot.slane %v6428_v63, %v6319_v5  ;;  %v1643_v43 = vrot.slane %v6448_v24, %v6319_v5 }
  0x36   : > { %v3509_v29 = vsel %vm1675_vm14, %v6564_v58, %v2896_v4  ;;  %v3513_v32 = vsel %vm1679_vm15, %v6564_v58, %v2900_v13  ;;  %v6591_v10 = vrot.slane %v4098_v62, %v6325_v7  ;;  %v6594_v37 = vrot.slane %v4711_v0, %v6325_v7  ;;  %5605 = vmatprep.subr.bf16.mxu0 %v5318_v2 }
  0x37   : > { %v6597_v39 = vrot.slane %v427_v20, %v6319_v5  ;;  %v2251_v45 = vrot.slane %v6475_v35, %v6319_v5  ;;  %v2860_v48 = vrot.slane %v6420_v59, %v6325_v7  ;;  %v3473_v49 = vrot.slane %v6410_v54, %v6325_v7 }
  0x38   : > { %v4122_v46 = vsel %vm1067_vm10, %v6591_v10, %v3509_v29  ;;  %v4126_v47 = vsel %vm1071_vm11, %v6591_v10, %v3513_v32  ;;  %v6630_v60 = vrot.slane %v1035_v42, %v6319_v5  ;;  %v6633_v61 = vrot.slane %v1643_v43, %v6319_v5 }
  0x39   : > { %v4735_v51 = vsel %vm459_vm8, %v6594_v37, %v4122_v46  ;;  %v4739_v52 = vsel %vm463_vm9, %v6594_v37, %v4126_v47  ;;  %vm456_vm2 = vcmp.eq.s32.totalorder %v6309_v1, %v6597_v39  ;;  %vm460_vm3 = vcmp.eq.s32.totalorder %v6316_v3, %v6597_v39 }
  0x3a   : > { %v5320_v56 = vpack.c.bf16 %v4739_v52, %v4735_v51  ;;  %v6636_v62 = vrot.slane %v2251_v45, %v6319_v5  ;;  %v6639_v0 = vrot.slane %v2860_v48, %v6325_v7  ;;  %v6642_v2 = vrot.slane %v3473_v49, %v6325_v7 }
  0x3b   : > { %v4086_v4 = vrot.slane %v6408_v53, %v6325_v7  ;;  %v4699_v13 = vrot.slane %v6396_v50, %v6325_v7  ;;  %vm1064_vm4 = vcmp.eq.s32.totalorder %v6309_v1, %v6630_v60  ;;  %vm1068_vm5 = vcmp.eq.s32.totalorder %v6316_v3, %v6630_v60 }
  0x3c   : > { %5810 = vmatprep.subr.bf16.mxu1 %v5320_v56  ;;  %vm1672_vm6 = vcmp.eq.s32.totalorder %v6309_v1, %v6633_v61  ;;  %vm1676_vm7 = vcmp.eq.s32.totalorder %v6316_v3, %v6633_v61  ;;  %vm2280_vm8 = vcmp.eq.s32.totalorder %v6309_v1, %v6636_v62  ;;  %vm2284_vm9 = vcmp.eq.s32.totalorder %v6316_v3, %v6636_v62 }
  0x3d   : > { %v6661_v20 = vrot.slane %v4086_v4, %v6325_v7  ;;  %v6664_v29 = vrot.slane %v4699_v13, %v6325_v7  ;;  %v2893_v32 = vsel %vm2280_vm8, %v6639_v0, 0.0  ;;  %v2897_v42 = vsel %vm2284_vm9, %v6639_v0, 0.0 }
  0x3e   : > { %v435_v43 = vrot.slane %v6412_v55, %v6337_v11  ;;  %v1043_v45 = vrot.slane %v6428_v63, %v6337_v11  ;;  %v3506_v46 = vsel %vm1672_vm6, %v6642_v2, %v2893_v32  ;;  %v3510_v47 = vsel %vm1676_vm7, %v6642_v2, %v2897_v42 }
  0x3f   : > { %v1651_v48 = vrot.slane %v6448_v24, %v6337_v11  ;;  %v2259_v49 = vrot.slane %v6475_v35, %v6337_v11  ;;  %v4119_v51 = vsel %vm1064_vm4, %v6661_v20, %v3506_v46  ;;  %v4123_v55 = vsel %vm1068_vm5, %v6661_v20, %v3510_v47 }
  0x40   : > { %v6687_v63 = vrot.slane %v435_v43, %v6319_v5  ;;  %v6690_v52 = vrot.slane %v1043_v45, %v6319_v5  ;;  %v4732_v11 = vsel %vm456_vm2, %v6664_v29, %v4119_v51  ;;  %v4736_v24 = vsel %vm460_vm3, %v6664_v29, %v4123_v55 }
  0x41   : > { %v6701_v35 = vrot.slane %v1651_v48, %v6319_v5  ;;  %v6704_v56 = vrot.slane %v2259_v49, %v6319_v5  ;;  %v5317_v4 = vpack.c.bf16 %v4736_v24, %v4732_v11  ;;  %v2868_v5 = vrot.slane %v6420_v59, %v6340_v14 }
  0x42   : > { %vm458_vm10 = vcmp.eq.s32.totalorder %v6309_v1, %v6687_v63  ;;  %vm462_vm11 = vcmp.eq.s32.totalorder %v6316_v3, %v6687_v63  ;;  %vm1066_vm12 = vcmp.eq.s32.totalorder %v6309_v1, %v6690_v52  ;;  %vm1070_vm13 = vcmp.eq.s32.totalorder %v6316_v3, %v6690_v52 }
  0x43   : > { %vm1674_vm14 = vcmp.eq.s32.totalorder %v6309_v1, %v6701_v35  ;;  %vm1678_vm15 = vcmp.eq.s32.totalorder %v6316_v3, %v6701_v35  ;;  %vm2282_vm0 = vcmp.eq.s32.totalorder %v6309_v1, %v6704_v56  ;;  %5606 = vmatpush1.bf16.msra.mxu0 %v5317_v4  ;;  %vm2286_vm1 = vcmp.eq.s32.totalorder %v6316_v3, %v6704_v56 }
  0x44   : > { %v3481_v13 = vrot.slane %v6410_v54, %v6340_v14  ;;  %v4094_v32 = vrot.slane %v6408_v53, %v6340_v14  ;;  %v4707_v42 = vrot.slane %v6396_v50, %v6340_v14  ;;  %vm465_vm2 = vcmp.eq.s32.totalorder %v6343_v15, %v6439_v12 }
  0x45   : > { %vm469_vm3 = vcmp.eq.s32.totalorder %v6346_v16, %v6439_v12  ;;  %vm1073_vm4 = vcmp.eq.s32.totalorder %v6343_v15, %v6465_v8  ;;  %v6737_v59 = vrot.slane %v2868_v5, %v6325_v7  ;;  %vm1077_vm5 = vcmp.eq.s32.totalorder %v6346_v16, %v6465_v8 }
  0x46   : > { %v6740_v54 = vrot.slane %v3481_v13, %v6325_v7  ;;  %v6743_v53 = vrot.slane %v4094_v32, %v6325_v7  ;;  %v6748_v14 = vrot.slane %v4707_v42, %v6325_v7  ;;  %vm1681_vm6 = vcmp.eq.s32.totalorder %v6343_v15, %v6487_v38 }
  0x47   : > { %vm1685_vm7 = vcmp.eq.s32.totalorder %v6346_v16, %v6487_v38  ;;  %vm2289_vm8 = vcmp.eq.s32.totalorder %v6343_v15, %v6508_v6  ;;  %v2895_v50 = vsel %vm2282_vm0, %v6737_v59, 0.0  ;;  %v2899_v7 = vsel %vm2286_vm1, %v6737_v59, 0.0 }
  0x48   : > { %vm2293_vm9 = vcmp.eq.s32.totalorder %v6346_v16, %v6508_v6  ;;  %v2902_v43 = vsel %vm2289_vm8, %v6492_v40, 0.0  ;;  %v3508_v45 = vsel %vm1674_vm14, %v6740_v54, %v2895_v50  ;;  %v3512_v46 = vsel %vm1678_vm15, %v6740_v54, %v2899_v7 }
  0x49   : > { %v2906_v47 = vsel %vm2293_vm9, %v6492_v40, 0.0  ;;  %v3515_v48 = vsel %vm1681_vm6, %v6455_v28, %v2902_v43  ;;  %v4121_v49 = vsel %vm1066_vm12, %v6743_v53, %v3508_v45  ;;  %v4125_v51 = vsel %vm1070_vm13, %v6743_v53, %v3512_v46 }
  0x4a   : > { %v3519_v55 = vsel %vm1685_vm7, %v6455_v28, %v2906_v47  ;;  %v4128_v11 = vsel %vm1073_vm4, %v6470_v33, %v3515_v48  ;;  %v4734_v24 = vsel %vm458_vm10, %v6748_v14, %v4121_v49  ;;  %v4738_v4 = vsel %vm462_vm11, %v6748_v14, %v4125_v51 }
  0x4b   : > { %v4132_v5 = vsel %vm1077_vm5, %v6470_v33, %v3519_v55  ;;  %v4741_v13 = vsel %vm465_vm2, %v6473_v34, %v4128_v11  ;;  %v5319_v32 = vpack.c.bf16 %v4738_v4, %v4734_v24  ;;  %vm467_vm10 = vcmp.eq.s32.totalorder %v6343_v15, %v6480_v36 }
  0x4c   : > { %v4745_v42 = vsel %vm469_vm3, %v6473_v34, %v4132_v5  ;;  %vm471_vm11 = vcmp.eq.s32.totalorder %v6346_v16, %v6480_v36  ;;  %vm1075_vm12 = vcmp.eq.s32.totalorder %v6343_v15, %v6499_v41  ;;  %vm1079_vm13 = vcmp.eq.s32.totalorder %v6346_v16, %v6499_v41 }
  0x4d   : > { %v5322_v3 = vpack.c.bf16 %v4745_v42, %v4741_v13  ;;  %vm1683_vm14 = vcmp.eq.s32.totalorder %v6343_v15, %v6521_v44  ;;  %5811 = vmatpush1.bf16.msra.mxu1 %v5319_v32  ;;  %vm1687_vm15 = vcmp.eq.s32.totalorder %v6346_v16, %v6521_v44  ;;  %vm2291_vm0 = vcmp.eq.s32.totalorder %v6343_v15, %v6530_v9 }
  0x4e   : > { %vm2295_vm1 = vcmp.eq.s32.totalorder %v6346_v16, %v6530_v9  ;;  %vm464_vm2 = vcmp.eq.s32.totalorder %v6343_v15, %v6597_v39  ;;  %v2904_v50 = vsel %vm2291_vm0, %v6561_v57, 0.0  ;;  %vm468_vm3 = vcmp.eq.s32.totalorder %v6346_v16, %v6597_v39 }
  0x4f   : > { %5607 = vmatprep.subr.bf16.mxu0 %v5322_v3  ;;  %v2908_v7 = vsel %vm2295_vm1, %v6561_v57, 0.0  ;;  %vm1072_vm4 = vcmp.eq.s32.totalorder %v6343_v15, %v6630_v60  ;;  %v3517_v43 = vsel %vm1683_vm14, %v6564_v58, %v2904_v50  ;;  %vm1076_vm5 = vcmp.eq.s32.totalorder %v6346_v16, %v6630_v60 }
  0x50   : > { %v3521_v45 = vsel %vm1687_vm15, %v6564_v58, %v2908_v7  ;;  %vm1680_vm6 = vcmp.eq.s32.totalorder %v6343_v15, %v6633_v61  ;;  %v4130_v46 = vsel %vm1075_vm12, %v6591_v10, %v3517_v43  ;;  %vm1684_vm7 = vcmp.eq.s32.totalorder %v6346_v16, %v6633_v61 }
  0x51   : > { %v4134_v47 = vsel %vm1079_vm13, %v6591_v10, %v3521_v45  ;;  %vm2288_vm8 = vcmp.eq.s32.totalorder %v6343_v15, %v6636_v62  ;;  %v4743_v48 = vsel %vm467_vm10, %v6594_v37, %v4130_v46  ;;  %vm2292_vm9 = vcmp.eq.s32.totalorder %v6346_v16, %v6636_v62 }
  0x52   : > { %v4747_v49 = vsel %vm471_vm11, %v6594_v37, %v4134_v47  ;;  %v2901_v51 = vsel %vm2288_vm8, %v6639_v0, 0.0  ;;  %v2905_v11 = vsel %vm2292_vm9, %v6639_v0, 0.0  ;;  %vm466_vm12 = vcmp.eq.s32.totalorder %v6343_v15, %v6687_v63 }
  0x53   : > { %v5324_v55 = vpack.c.bf16 %v4747_v49, %v4743_v48  ;;  %v3514_v24 = vsel %vm1680_vm6, %v6642_v2, %v2901_v51  ;;  %v3518_v4 = vsel %vm1684_vm7, %v6642_v2, %v2905_v11  ;;  %vm470_vm10 = vcmp.eq.s32.totalorder %v6346_v16, %v6687_v63 }
  0x54   : > { %v4127_v5 = vsel %vm1072_vm4, %v6661_v20, %v3514_v24  ;;  %vm1074_vm11 = vcmp.eq.s32.totalorder %v6343_v15, %v6690_v52  ;;  %v4131_v13 = vsel %vm1076_vm5, %v6661_v20, %v3518_v4  ;;  %vm1078_vm13 = vcmp.eq.s32.totalorder %v6346_v16, %v6690_v52 }
  0x55   : > { %5812 = vmatprep.subr.bf16.mxu1 %v5324_v55  ;;  %v4740_v32 = vsel %vm464_vm2, %v6664_v29, %v4127_v5  ;;  %vm1682_vm14 = vcmp.eq.s32.totalorder %v6343_v15, %v6701_v35  ;;  %v4744_v42 = vsel %vm468_vm3, %v6664_v29, %v4131_v13  ;;  %vm1686_vm15 = vcmp.eq.s32.totalorder %v6346_v16, %v6701_v35 }
  0x56   : > { %vm2290_vm0 = vcmp.eq.s32.totalorder %v6343_v15, %v6704_v56  ;;  %vm2294_vm1 = vcmp.eq.s32.totalorder %v6346_v16, %v6704_v56  ;;  %v5321_v3 = vpack.c.bf16 %v4744_v42, %v4740_v32  ;;  %vm473_vm2 = vcmp.eq.s32.totalorder %v6349_v17, %v6439_v12 }
  0x57   : > { %v2903_v50 = vsel %vm2290_vm0, %v6737_v59, 0.0  ;;  %v2907_v7 = vsel %vm2294_vm1, %v6737_v59, 0.0  ;;  %vm477_vm3 = vcmp.eq.s32.totalorder %v6352_v18, %v6439_v12  ;;  %vm1081_vm4 = vcmp.eq.s32.totalorder %v6349_v17, %v6465_v8 }
  0x58   : > { %v3516_v43 = vsel %vm1682_vm14, %v6740_v54, %v2903_v50  ;;  %v3520_v45 = vsel %vm1686_vm15, %v6740_v54, %v2907_v7  ;;  %5608 = vmatpush1.bf16.msra.mxu0 %v5321_v3  ;;  %vm1085_vm5 = vcmp.eq.s32.totalorder %v6352_v18, %v6465_v8  ;;  %vm1689_vm6 = vcmp.eq.s32.totalorder %v6349_v17, %v6487_v38 }
  0x59   : > { %v4129_v46 = vsel %vm1074_vm11, %v6743_v53, %v3516_v43  ;;  %v4133_v47 = vsel %vm1078_vm13, %v6743_v53, %v3520_v45  ;;  %vm1693_vm7 = vcmp.eq.s32.totalorder %v6352_v18, %v6487_v38  ;;  %vm2297_vm8 = vcmp.eq.s32.totalorder %v6349_v17, %v6508_v6 }
  0x5a   : > { %v4742_v48 = vsel %vm466_vm12, %v6748_v14, %v4129_v46  ;;  %v4746_v49 = vsel %vm470_vm10, %v6748_v14, %v4133_v47  ;;  %vm2301_vm9 = vcmp.eq.s32.totalorder %v6352_v18, %v6508_v6  ;;  %v2910_v55 = vsel %vm2297_vm8, %v6492_v40, 0.0 }
  0x5b   : > { %v5323_v51 = vpack.c.bf16 %v4746_v49, %v4742_v48  ;;  %vm475_vm12 = vcmp.eq.s32.totalorder %v6349_v17, %v6480_v36  ;;  %v2914_v15 = vsel %vm2301_vm9, %v6492_v40, 0.0  ;;  %v3523_v16 = vsel %vm1689_vm6, %v6455_v28, %v2910_v55 }
  0x5c   : > { %vm479_vm10 = vcmp.eq.s32.totalorder %v6352_v18, %v6480_v36  ;;  %vm1083_vm11 = vcmp.eq.s32.totalorder %v6349_v17, %v6499_v41  ;;  %v3527_v11 = vsel %vm1693_vm7, %v6455_v28, %v2914_v15  ;;  %v4136_v24 = vsel %vm1081_vm4, %v6470_v33, %v3523_v16 }
  0x5d   : > { %5813 = vmatpush1.bf16.msra.mxu1 %v5323_v51  ;;  %vm1087_vm13 = vcmp.eq.s32.totalorder %v6352_v18, %v6499_v41  ;;  %vm1691_vm14 = vcmp.eq.s32.totalorder %v6349_v17, %v6521_v44  ;;  %v4140_v4 = vsel %vm1085_vm5, %v6470_v33, %v3527_v11  ;;  %v4749_v5 = vsel %vm473_vm2, %v6473_v34, %v4136_v24 }
  0x5e   : > { %vm1695_vm15 = vcmp.eq.s32.totalorder %v6352_v18, %v6521_v44  ;;  %vm2299_vm0 = vcmp.eq.s32.totalorder %v6349_v17, %v6530_v9  ;;  %v4753_v13 = vsel %vm477_vm3, %v6473_v34, %v4140_v4  ;;  %vm2303_vm1 = vcmp.eq.s32.totalorder %v6352_v18, %v6530_v9 }
  0x5f   : > { %v2912_v32 = vsel %vm2299_vm0, %v6561_v57, 0.0  ;;  %vm472_vm4 = vcmp.eq.s32.totalorder %v6349_v17, %v6597_v39  ;;  %v5326_v42 = vpack.c.bf16 %v4753_v13, %v4749_v5  ;;  %v2916_v3 = vsel %vm2303_vm1, %v6561_v57, 0.0 }
  0x60   : > { %v3525_v50 = vsel %vm1691_vm14, %v6564_v58, %v2912_v32  ;;  %vm476_vm2 = vcmp.eq.s32.totalorder %v6352_v18, %v6597_v39  ;;  %v3529_v7 = vsel %vm1695_vm15, %v6564_v58, %v2916_v3  ;;  %vm1080_vm3 = vcmp.eq.s32.totalorder %v6349_v17, %v6630_v60 }
  0x61   : > { %v4138_v43 = vsel %vm1083_vm11, %v6591_v10, %v3525_v50  ;;  %vm1084_vm5 = vcmp.eq.s32.totalorder %v6352_v18, %v6630_v60  ;;  %5609 = vmatprep.subr.bf16.mxu0 %v5326_v42  ;;  %v4142_v45 = vsel %vm1087_vm13, %v6591_v10, %v3529_v7  ;;  %vm1688_vm6 = vcmp.eq.s32.totalorder %v6349_v17, %v6633_v61 }
  0x62   : > { %v4751_v46 = vsel %vm475_vm12, %v6594_v37, %v4138_v43  ;;  %vm1692_vm7 = vcmp.eq.s32.totalorder %v6352_v18, %v6633_v61  ;;  %v4755_v47 = vsel %vm479_vm10, %v6594_v37, %v4142_v45  ;;  %vm2296_vm8 = vcmp.eq.s32.totalorder %v6349_v17, %v6636_v62 }
  0x63   : > { %vm2300_vm9 = vcmp.eq.s32.totalorder %v6352_v18, %v6636_v62  ;;  %vm474_vm12 = vcmp.eq.s32.totalorder %v6349_v17, %v6687_v63  ;;  %v5328_v48 = vpack.c.bf16 %v4755_v47, %v4751_v46  ;;  %v2909_v49 = vsel %vm2296_vm8, %v6639_v0, 0.0 }
  0x64   : > { %v2913_v51 = vsel %vm2300_vm9, %v6639_v0, 0.0  ;;  %vm478_vm11 = vcmp.eq.s32.totalorder %v6352_v18, %v6687_v63  ;;  %v3522_v55 = vsel %vm1688_vm6, %v6642_v2, %v2909_v49  ;;  %vm1082_vm10 = vcmp.eq.s32.totalorder %v6349_v17, %v6690_v52 }
  0x65   : > { %v3526_v15 = vsel %vm1692_vm7, %v6642_v2, %v2913_v51  ;;  %vm1086_vm13 = vcmp.eq.s32.totalorder %v6352_v18, %v6690_v52  ;;  %5814 = vmatprep.subr.bf16.mxu1 %v5328_v48  ;;  %v4135_v16 = vsel %vm1080_vm3, %v6661_v20, %v3522_v55  ;;  %vm1690_vm14 = vcmp.eq.s32.totalorder %v6349_v17, %v6701_v35 }
  0x66   : > { %v4139_v11 = vsel %vm1084_vm5, %v6661_v20, %v3526_v15  ;;  %vm1694_vm15 = vcmp.eq.s32.totalorder %v6352_v18, %v6701_v35  ;;  %v4748_v24 = vsel %vm472_vm4, %v6664_v29, %v4135_v16  ;;  %vm2298_vm0 = vcmp.eq.s32.totalorder %v6349_v17, %v6704_v56 }
  0x67   : > { %v4752_v4 = vsel %vm476_vm2, %v6664_v29, %v4139_v11  ;;  %vm2302_vm1 = vcmp.eq.s32.totalorder %v6352_v18, %v6704_v56  ;;  %v2911_v13 = vsel %vm2298_vm0, %v6737_v59, 0.0  ;;  %vm481_vm3 = vcmp.eq.s32.totalorder %v6355_v19, %v6439_v12 }
  0x68   : > { %v5325_v5 = vpack.c.bf16 %v4752_v4, %v4748_v24  ;;  %v2915_v32 = vsel %vm2302_vm1, %v6737_v59, 0.0  ;;  %v3524_v42 = vsel %vm1690_vm14, %v6740_v54, %v2911_v13  ;;  %vm485_vm4 = vcmp.eq.s32.totalorder %v6358_v22, %v6439_v12 }
  0x69   : > { %v3528_v3 = vsel %vm1694_vm15, %v6740_v54, %v2915_v32  ;;  %vm1089_vm2 = vcmp.eq.s32.totalorder %v6355_v19, %v6465_v8  ;;  %v4137_v50 = vsel %vm1082_vm10, %v6743_v53, %v3524_v42  ;;  %vm1093_vm5 = vcmp.eq.s32.totalorder %v6358_v22, %v6465_v8 }
  0x6a   : > { %5610 = vmatpush1.bf16.msra.mxu0 %v5325_v5  ;;  %v4141_v7 = vsel %vm1086_vm13, %v6743_v53, %v3528_v3  ;;  %vm1697_vm6 = vcmp.eq.s32.totalorder %v6355_v19, %v6487_v38  ;;  %v4750_v43 = vsel %vm474_vm12, %v6748_v14, %v4137_v50  ;;  %vm1701_vm7 = vcmp.eq.s32.totalorder %v6358_v22, %v6487_v38 }
  0x6b   : > { %v4754_v45 = vsel %vm478_vm11, %v6748_v14, %v4141_v7  ;;  %vm2305_vm8 = vcmp.eq.s32.totalorder %v6355_v19, %v6508_v6  ;;  %vm2309_vm9 = vcmp.eq.s32.totalorder %v6358_v22, %v6508_v6  ;;  %vm483_vm12 = vcmp.eq.s32.totalorder %v6355_v19, %v6480_v36 }
  0x6c   : > { %v5327_v46 = vpack.c.bf16 %v4754_v45, %v4750_v43  ;;  %v2918_v47 = vsel %vm2305_vm8, %v6492_v40, 0.0  ;;  %v2922_v17 = vsel %vm2309_vm9, %v6492_v40, 0.0  ;;  %vm487_vm11 = vcmp.eq.s32.totalorder %v6358_v22, %v6480_v36 }
  0x6d   : > { %v3531_v18 = vsel %vm1697_vm6, %v6455_v28, %v2918_v47  ;;  %vm1091_vm10 = vcmp.eq.s32.totalorder %v6355_v19, %v6499_v41  ;;  %v3535_v48 = vsel %vm1701_vm7, %v6455_v28, %v2922_v17  ;;  %vm1095_vm13 = vcmp.eq.s32.totalorder %v6358_v22, %v6499_v41 }
  0x6e   : > { %5815 = vmatpush1.bf16.msra.mxu1 %v5327_v46  ;;  %v4144_v49 = vsel %vm1089_vm2, %v6470_v33, %v3531_v18  ;;  %vm1699_vm14 = vcmp.eq.s32.totalorder %v6355_v19, %v6521_v44  ;;  %v4148_v51 = vsel %vm1093_vm5, %v6470_v33, %v3535_v48  ;;  %vm1703_vm15 = vcmp.eq.s32.totalorder %v6358_v22, %v6521_v44 }
  0x6f   : > { %v4757_v55 = vsel %vm481_vm3, %v6473_v34, %v4144_v49  ;;  %vm2307_vm0 = vcmp.eq.s32.totalorder %v6355_v19, %v6530_v9  ;;  %v4761_v15 = vsel %vm485_vm4, %v6473_v34, %v4148_v51  ;;  %vm2311_vm1 = vcmp.eq.s32.totalorder %v6358_v22, %v6530_v9 }
  0x70   : > { %v2920_v16 = vsel %vm2307_vm0, %v6561_v57, 0.0  ;;  %vm480_vm2 = vcmp.eq.s32.totalorder %v6355_v19, %v6597_v39  ;;  %v5330_v11 = vpack.c.bf16 %v4761_v15, %v4757_v55  ;;  %v2924_v24 = vsel %vm2311_vm1, %v6561_v57, 0.0 }
  0x71   : > { %v3533_v4 = vsel %vm1699_vm14, %v6564_v58, %v2920_v16  ;;  %vm484_vm3 = vcmp.eq.s32.totalorder %v6358_v22, %v6597_v39  ;;  %v3537_v5 = vsel %vm1703_vm15, %v6564_v58, %v2924_v24  ;;  %vm1088_vm4 = vcmp.eq.s32.totalorder %v6355_v19, %v6630_v60 }
  0x72   : > { %v4146_v13 = vsel %vm1091_vm10, %v6591_v10, %v3533_v4  ;;  %vm1092_vm5 = vcmp.eq.s32.totalorder %v6358_v22, %v6630_v60  ;;  %5611 = vmatprep.subr.bf16.mxu0 %v5330_v11  ;;  %v4150_v32 = vsel %vm1095_vm13, %v6591_v10, %v3537_v5  ;;  %vm1696_vm6 = vcmp.eq.s32.totalorder %v6355_v19, %v6633_v61 }
  0x73   : > { %v4759_v42 = vsel %vm483_vm12, %v6594_v37, %v4146_v13  ;;  %vm1700_vm7 = vcmp.eq.s32.totalorder %v6358_v22, %v6633_v61  ;;  %v4763_v3 = vsel %vm487_vm11, %v6594_v37, %v4150_v32  ;;  %vm2304_vm8 = vcmp.eq.s32.totalorder %v6355_v19, %v6636_v62 }
  0x74   : > { %vm2308_vm9 = vcmp.eq.s32.totalorder %v6358_v22, %v6636_v62  ;;  %vm482_vm12 = vcmp.eq.s32.totalorder %v6355_v19, %v6687_v63  ;;  %v5332_v50 = vpack.c.bf16 %v4763_v3, %v4759_v42  ;;  %v2917_v7 = vsel %vm2304_vm8, %v6639_v0, 0.0 }
  0x75   : > { %v2921_v43 = vsel %vm2308_vm9, %v6639_v0, 0.0  ;;  %vm486_vm10 = vcmp.eq.s32.totalorder %v6358_v22, %v6687_v63  ;;  %v3530_v45 = vsel %vm1696_vm6, %v6642_v2, %v2917_v7  ;;  %vm1090_vm11 = vcmp.eq.s32.totalorder %v6355_v19, %v6690_v52 }
  0x76   : > { %v3534_v46 = vsel %vm1700_vm7, %v6642_v2, %v2921_v43  ;;  %vm1094_vm13 = vcmp.eq.s32.totalorder %v6358_v22, %v6690_v52  ;;  %5816 = vmatprep.subr.bf16.mxu1 %v5332_v50  ;;  %v4143_v47 = vsel %vm1088_vm4, %v6661_v20, %v3530_v45  ;;  %vm1698_vm14 = vcmp.eq.s32.totalorder %v6355_v19, %v6701_v35 }
  0x77   : > { %v4147_v17 = vsel %vm1092_vm5, %v6661_v20, %v3534_v46  ;;  %vm1702_vm15 = vcmp.eq.s32.totalorder %v6358_v22, %v6701_v35  ;;  %v4756_v18 = vsel %vm480_vm2, %v6664_v29, %v4143_v47  ;;  %vm2306_vm0 = vcmp.eq.s32.totalorder %v6355_v19, %v6704_v56 }
  0x78   : > { %v4760_v48 = vsel %vm484_vm3, %v6664_v29, %v4147_v17  ;;  %vm2310_vm1 = vcmp.eq.s32.totalorder %v6358_v22, %v6704_v56  ;;  %v2919_v51 = vsel %vm2306_vm0, %v6737_v59, 0.0  ;;  %vm489_vm4 = vcmp.eq.s32.totalorder %v6361_v23, %v6439_v12 }
  0x79   : > { %v5329_v49 = vpack.c.bf16 %v4760_v48, %v4756_v18  ;;  %v2923_v55 = vsel %vm2310_vm1, %v6737_v59, 0.0  ;;  %v3532_v15 = vsel %vm1698_vm14, %v6740_v54, %v2919_v51  ;;  %vm493_vm2 = vcmp.eq.s32.totalorder %v6364_v25, %v6439_v12 }
  0x7a   : > { %v3536_v16 = vsel %vm1702_vm15, %v6740_v54, %v2923_v55  ;;  %vm1097_vm3 = vcmp.eq.s32.totalorder %v6361_v23, %v6465_v8  ;;  %v4145_v11 = vsel %vm1090_vm11, %v6743_v53, %v3532_v15  ;;  %vm1101_vm5 = vcmp.eq.s32.totalorder %v6364_v25, %v6465_v8 }
  0x7b   : > { %5612 = vmatpush1.bf16.msra.mxu0 %v5329_v49  ;;  %v4149_v24 = vsel %vm1094_vm13, %v6743_v53, %v3536_v16  ;;  %vm1705_vm6 = vcmp.eq.s32.totalorder %v6361_v23, %v6487_v38  ;;  %v4758_v4 = vsel %vm482_vm12, %v6748_v14, %v4145_v11  ;;  %vm1709_vm7 = vcmp.eq.s32.totalorder %v6364_v25, %v6487_v38 }
  0x7c   : > { %v4762_v5 = vsel %vm486_vm10, %v6748_v14, %v4149_v24  ;;  %vm2313_vm8 = vcmp.eq.s32.totalorder %v6361_v23, %v6508_v6  ;;  %vm2317_vm9 = vcmp.eq.s32.totalorder %v6364_v25, %v6508_v6  ;;  %vm491_vm12 = vcmp.eq.s32.totalorder %v6361_v23, %v6480_v36 }
  0x7d   : > { %v5331_v13 = vpack.c.bf16 %v4762_v5, %v4758_v4  ;;  %v2926_v32 = vsel %vm2313_vm8, %v6492_v40, 0.0  ;;  %v2930_v19 = vsel %vm2317_vm9, %v6492_v40, 0.0  ;;  %vm495_vm10 = vcmp.eq.s32.totalorder %v6364_v25, %v6480_v36 }
  0x7e   : > { %v3539_v22 = vsel %vm1705_vm6, %v6455_v28, %v2926_v32  ;;  %vm1099_vm11 = vcmp.eq.s32.totalorder %v6361_v23, %v6499_v41  ;;  %v3543_v42 = vsel %vm1709_vm7, %v6455_v28, %v2930_v19  ;;  %vm1103_vm13 = vcmp.eq.s32.totalorder %v6364_v25, %v6499_v41 }
  0x7f   : > { %5817 = vmatpush1.bf16.msra.mxu1 %v5331_v13  ;;  %v4152_v3 = vsel %vm1097_vm3, %v6470_v33, %v3539_v22  ;;  %vm1707_vm14 = vcmp.eq.s32.totalorder %v6361_v23, %v6521_v44  ;;  %v4156_v50 = vsel %vm1101_vm5, %v6470_v33, %v3543_v42  ;;  %vm1711_vm15 = vcmp.eq.s32.totalorder %v6364_v25, %v6521_v44 }
  0x80   : > { %v4765_v7 = vsel %vm489_vm4, %v6473_v34, %v4152_v3  ;;  %vm2315_vm0 = vcmp.eq.s32.totalorder %v6361_v23, %v6530_v9  ;;  %v4769_v43 = vsel %vm493_vm2, %v6473_v34, %v4156_v50  ;;  %vm2319_vm1 = vcmp.eq.s32.totalorder %v6364_v25, %v6530_v9 }
  0x81   : > { %v2928_v45 = vsel %vm2315_vm0, %v6561_v57, 0.0  ;;  %vm488_vm3 = vcmp.eq.s32.totalorder %v6361_v23, %v6597_v39  ;;  %v5334_v46 = vpack.c.bf16 %v4769_v43, %v4765_v7  ;;  %v2932_v47 = vsel %vm2319_vm1, %v6561_v57, 0.0 }
  0x82   : > { %v3541_v17 = vsel %vm1707_vm14, %v6564_v58, %v2928_v45  ;;  %vm492_vm4 = vcmp.eq.s32.totalorder %v6364_v25, %v6597_v39  ;;  %v3545_v18 = vsel %vm1711_vm15, %v6564_v58, %v2932_v47  ;;  %vm1096_vm2 = vcmp.eq.s32.totalorder %v6361_v23, %v6630_v60 }
  0x83   : > { %v4154_v48 = vsel %vm1099_vm11, %v6591_v10, %v3541_v17  ;;  %vm1100_vm5 = vcmp.eq.s32.totalorder %v6364_v25, %v6630_v60  ;;  %5613 = vmatprep.subr.bf16.mxu0 %v5334_v46  ;;  %v4158_v49 = vsel %vm1103_vm13, %v6591_v10, %v3545_v18  ;;  %vm1704_vm6 = vcmp.eq.s32.totalorder %v6361_v23, %v6633_v61 }
  0x84   : > { %v4767_v51 = vsel %vm491_vm12, %v6594_v37, %v4154_v48  ;;  %vm1708_vm7 = vcmp.eq.s32.totalorder %v6364_v25, %v6633_v61  ;;  %v4771_v55 = vsel %vm495_vm10, %v6594_v37, %v4158_v49  ;;  %vm2312_vm8 = vcmp.eq.s32.totalorder %v6361_v23, %v6636_v62 }
  0x85   : > { %vm2316_vm9 = vcmp.eq.s32.totalorder %v6364_v25, %v6636_v62  ;;  %vm490_vm12 = vcmp.eq.s32.totalorder %v6361_v23, %v6687_v63  ;;  %v5336_v15 = vpack.c.bf16 %v4771_v55, %v4767_v51  ;;  %v2925_v16 = vsel %vm2312_vm8, %v6639_v0, 0.0 }
  0x86   : > { %v2929_v11 = vsel %vm2316_vm9, %v6639_v0, 0.0  ;;  %vm494_vm11 = vcmp.eq.s32.totalorder %v6364_v25, %v6687_v63  ;;  %v3538_v24 = vsel %vm1704_vm6, %v6642_v2, %v2925_v16  ;;  %vm1098_vm10 = vcmp.eq.s32.totalorder %v6361_v23, %v6690_v52 }
  0x87   : > { %v3542_v4 = vsel %vm1708_vm7, %v6642_v2, %v2929_v11  ;;  %vm1102_vm13 = vcmp.eq.s32.totalorder %v6364_v25, %v6690_v52  ;;  %5818 = vmatprep.subr.bf16.mxu1 %v5336_v15  ;;  %v4151_v5 = vsel %vm1096_vm2, %v6661_v20, %v3538_v24  ;;  %vm1706_vm14 = vcmp.eq.s32.totalorder %v6361_v23, %v6701_v35 }
  0x88   : > { %v4155_v13 = vsel %vm1100_vm5, %v6661_v20, %v3542_v4  ;;  %vm1710_vm15 = vcmp.eq.s32.totalorder %v6364_v25, %v6701_v35  ;;  %v4764_v32 = vsel %vm488_vm3, %v6664_v29, %v4151_v5  ;;  %vm2314_vm0 = vcmp.eq.s32.totalorder %v6361_v23, %v6704_v56 }
  0x89   : > { %v4768_v19 = vsel %vm492_vm4, %v6664_v29, %v4155_v13  ;;  %vm2318_vm1 = vcmp.eq.s32.totalorder %v6364_v25, %v6704_v56  ;;  %v2927_v42 = vsel %vm2314_vm0, %v6737_v59, 0.0  ;;  %vm497_vm2 = vcmp.eq.s32.totalorder %v6367_v26, %v6439_v12 }
  0x8a   : > { %v5333_v22 = vpack.c.bf16 %v4768_v19, %v4764_v32  ;;  %v2931_v3 = vsel %vm2318_vm1, %v6737_v59, 0.0  ;;  %v3540_v50 = vsel %vm1706_vm14, %v6740_v54, %v2927_v42  ;;  %vm501_vm3 = vcmp.eq.s32.totalorder %v6370_v27, %v6439_v12 }
  0x8b   : > { %v3544_v7 = vsel %vm1710_vm15, %v6740_v54, %v2931_v3  ;;  %vm1105_vm4 = vcmp.eq.s32.totalorder %v6367_v26, %v6465_v8  ;;  %v4153_v43 = vsel %vm1098_vm10, %v6743_v53, %v3540_v50  ;;  %vm1109_vm5 = vcmp.eq.s32.totalorder %v6370_v27, %v6465_v8 }
  0x8c   : > { %5614 = vmatpush1.bf16.msra.mxu0 %v5333_v22  ;;  %v4157_v45 = vsel %vm1102_vm13, %v6743_v53, %v3544_v7  ;;  %vm1713_vm6 = vcmp.eq.s32.totalorder %v6367_v26, %v6487_v38  ;;  %v4766_v46 = vsel %vm490_vm12, %v6748_v14, %v4153_v43  ;;  %vm1717_vm7 = vcmp.eq.s32.totalorder %v6370_v27, %v6487_v38 }
  0x8d   : > { %v4770_v47 = vsel %vm494_vm11, %v6748_v14, %v4157_v45  ;;  %vm2321_vm8 = vcmp.eq.s32.totalorder %v6367_v26, %v6508_v6  ;;  %vm2325_vm9 = vcmp.eq.s32.totalorder %v6370_v27, %v6508_v6  ;;  %vm499_vm12 = vcmp.eq.s32.totalorder %v6367_v26, %v6480_v36 }
  0x8e   : > { %v5335_v17 = vpack.c.bf16 %v4770_v47, %v4766_v46  ;;  %v2934_v18 = vsel %vm2321_vm8, %v6492_v40, 0.0  ;;  %v2938_v23 = vsel %vm2325_vm9, %v6492_v40, 0.0  ;;  %vm503_vm11 = vcmp.eq.s32.totalorder %v6370_v27, %v6480_v36 }
  0x8f   : > { %v3547_v25 = vsel %vm1713_vm6, %v6455_v28, %v2934_v18  ;;  %vm1107_vm10 = vcmp.eq.s32.totalorder %v6367_v26, %v6499_v41  ;;  %v3551_v48 = vsel %vm1717_vm7, %v6455_v28, %v2938_v23  ;;  %vm1111_vm13 = vcmp.eq.s32.totalorder %v6370_v27, %v6499_v41 }
  0x90   : > { %5819 = vmatpush1.bf16.msra.mxu1 %v5335_v17  ;;  %v4160_v49 = vsel %vm1105_vm4, %v6470_v33, %v3547_v25  ;;  %vm1715_vm14 = vcmp.eq.s32.totalorder %v6367_v26, %v6521_v44  ;;  %v4164_v51 = vsel %vm1109_vm5, %v6470_v33, %v3551_v48  ;;  %vm1719_vm15 = vcmp.eq.s32.totalorder %v6370_v27, %v6521_v44 }
  0x91   : > { %v4773_v55 = vsel %vm497_vm2, %v6473_v34, %v4160_v49  ;;  %vm2323_vm0 = vcmp.eq.s32.totalorder %v6367_v26, %v6530_v9  ;;  %v4777_v15 = vsel %vm501_vm3, %v6473_v34, %v4164_v51  ;;  %vm2327_vm1 = vcmp.eq.s32.totalorder %v6370_v27, %v6530_v9 }
  0x92   : > { %v2936_v16 = vsel %vm2323_vm0, %v6561_v57, 0.0  ;;  %vm496_vm4 = vcmp.eq.s32.totalorder %v6367_v26, %v6597_v39  ;;  %v5338_v11 = vpack.c.bf16 %v4777_v15, %v4773_v55  ;;  %v2940_v24 = vsel %vm2327_vm1, %v6561_v57, 0.0 }
  0x93   : > { %v3549_v4 = vsel %vm1715_vm14, %v6564_v58, %v2936_v16  ;;  %vm500_vm2 = vcmp.eq.s32.totalorder %v6370_v27, %v6597_v39  ;;  %v3553_v5 = vsel %vm1719_vm15, %v6564_v58, %v2940_v24  ;;  %vm1104_vm3 = vcmp.eq.s32.totalorder %v6367_v26, %v6630_v60 }
  0x94   : > { %v4162_v13 = vsel %vm1107_vm10, %v6591_v10, %v3549_v4  ;;  %vm1108_vm5 = vcmp.eq.s32.totalorder %v6370_v27, %v6630_v60  ;;  %5615 = vmatprep.subr.bf16.mxu0 %v5338_v11  ;;  %v4166_v32 = vsel %vm1111_vm13, %v6591_v10, %v3553_v5  ;;  %vm1712_vm6 = vcmp.eq.s32.totalorder %v6367_v26, %v6633_v61 }
  0x95   : > { %v4775_v19 = vsel %vm499_vm12, %v6594_v37, %v4162_v13  ;;  %vm1716_vm7 = vcmp.eq.s32.totalorder %v6370_v27, %v6633_v61  ;;  %v4779_v22 = vsel %vm503_vm11, %v6594_v37, %v4166_v32  ;;  %vm2320_vm8 = vcmp.eq.s32.totalorder %v6367_v26, %v6636_v62 }
  0x96   : > { %vm2324_vm9 = vcmp.eq.s32.totalorder %v6370_v27, %v6636_v62  ;;  %vm498_vm12 = vcmp.eq.s32.totalorder %v6367_v26, %v6687_v63  ;;  %v5340_v42 = vpack.c.bf16 %v4779_v22, %v4775_v19  ;;  %v2933_v3 = vsel %vm2320_vm8, %v6639_v0, 0.0 }
  0x97   : > { %v2937_v50 = vsel %vm2324_vm9, %v6639_v0, 0.0  ;;  %vm502_vm10 = vcmp.eq.s32.totalorder %v6370_v27, %v6687_v63  ;;  %v3546_v7 = vsel %vm1712_vm6, %v6642_v2, %v2933_v3  ;;  %vm1106_vm11 = vcmp.eq.s32.totalorder %v6367_v26, %v6690_v52 }
  0x98   : > { %v3550_v43 = vsel %vm1716_vm7, %v6642_v2, %v2937_v50  ;;  %vm1110_vm13 = vcmp.eq.s32.totalorder %v6370_v27, %v6690_v52  ;;  %5820 = vmatprep.subr.bf16.mxu1 %v5340_v42  ;;  %v4159_v45 = vsel %vm1104_vm3, %v6661_v20, %v3546_v7  ;;  %vm1714_vm14 = vcmp.eq.s32.totalorder %v6367_v26, %v6701_v35 }
  0x99   : > { %v4163_v46 = vsel %vm1108_vm5, %v6661_v20, %v3550_v43  ;;  %vm1718_vm15 = vcmp.eq.s32.totalorder %v6370_v27, %v6701_v35  ;;  %v4772_v47 = vsel %vm496_vm4, %v6664_v29, %v4159_v45  ;;  %vm2322_vm0 = vcmp.eq.s32.totalorder %v6367_v26, %v6704_v56 }
  0x9a   : > { %v4776_v17 = vsel %vm500_vm2, %v6664_v29, %v4163_v46  ;;  %vm2326_vm1 = vcmp.eq.s32.totalorder %v6370_v27, %v6704_v56  ;;  %v2935_v23 = vsel %vm2322_vm0, %v6737_v59, 0.0  ;;  %vm505_vm3 = vcmp.eq.s32.totalorder %v6446_v21, %v6439_v12 }
  0x9b   : > { %v5337_v18 = vpack.c.bf16 %v4776_v17, %v4772_v47  ;;  %v2939_v25 = vsel %vm2326_vm1, %v6737_v59, 0.0  ;;  %v3548_v48 = vsel %vm1714_vm14, %v6740_v54, %v2935_v23  ;;  %vm509_vm4 = vcmp.eq.s32.totalorder %v6460_v31, %v6439_v12 }
  0x9c   : > { %v3552_v49 = vsel %vm1718_vm15, %v6740_v54, %v2939_v25  ;;  %vm1113_vm2 = vcmp.eq.s32.totalorder %v6446_v21, %v6465_v8  ;;  %v4161_v51 = vsel %vm1106_vm11, %v6743_v53, %v3548_v48  ;;  %vm1117_vm5 = vcmp.eq.s32.totalorder %v6460_v31, %v6465_v8 }
  0x9d   : > { %5616 = vmatpush1.bf16.msra.mxu0 %v5337_v18  ;;  %v4165_v55 = vsel %vm1110_vm13, %v6743_v53, %v3552_v49  ;;  %vm1721_vm6 = vcmp.eq.s32.totalorder %v6446_v21, %v6487_v38  ;;  %v4774_v15 = vsel %vm498_vm12, %v6748_v14, %v4161_v51  ;;  %vm1725_vm7 = vcmp.eq.s32.totalorder %v6460_v31, %v6487_v38 }
  0x9e   : > { %v4778_v16 = vsel %vm502_vm10, %v6748_v14, %v4165_v55  ;;  %vm2329_vm8 = vcmp.eq.s32.totalorder %v6446_v21, %v6508_v6  ;;  %vm2333_vm9 = vcmp.eq.s32.totalorder %v6460_v31, %v6508_v6  ;;  %vm507_vm12 = vcmp.eq.s32.totalorder %v6446_v21, %v6480_v36 }
  0x9f   : > { %v5339_v11 = vpack.c.bf16 %v4778_v16, %v4774_v15  ;;  %v2942_v24 = vsel %vm2329_vm8, %v6492_v40, 0.0  ;;  %v2946_v26 = vsel %vm2333_vm9, %v6492_v40, 0.0  ;;  %vm511_vm10 = vcmp.eq.s32.totalorder %v6460_v31, %v6480_v36 }
  0xa0   : > { %v3555_v27 = vsel %vm1721_vm6, %v6455_v28, %v2942_v24  ;;  %vm1115_vm11 = vcmp.eq.s32.totalorder %v6446_v21, %v6499_v41  ;;  %v3559_v4 = vsel %vm1725_vm7, %v6455_v28, %v2946_v26  ;;  %vm1119_vm13 = vcmp.eq.s32.totalorder %v6460_v31, %v6499_v41 }
  0xa1   : > { %5821 = vmatpush1.bf16.msra.mxu1 %v5339_v11  ;;  %v4168_v5 = vsel %vm1113_vm2, %v6470_v33, %v3555_v27  ;;  %vm1723_vm14 = vcmp.eq.s32.totalorder %v6446_v21, %v6521_v44  ;;  %v4172_v13 = vsel %vm1117_vm5, %v6470_v33, %v3559_v4  ;;  %vm1727_vm15 = vcmp.eq.s32.totalorder %v6460_v31, %v6521_v44 }
  0xa2   : > { %v4781_v32 = vsel %vm505_vm3, %v6473_v34, %v4168_v5  ;;  %vm2331_vm0 = vcmp.eq.s32.totalorder %v6446_v21, %v6530_v9  ;;  %v4785_v19 = vsel %vm509_vm4, %v6473_v34, %v4172_v13  ;;  %vm2335_vm1 = vcmp.eq.s32.totalorder %v6460_v31, %v6530_v9 }
  0xa3   : > { %v2944_v22 = vsel %vm2331_vm0, %v6561_v57, 0.0  ;;  %vm504_vm2 = vcmp.eq.s32.totalorder %v6446_v21, %v6597_v39  ;;  %v5342_v42 = vpack.c.bf16 %v4785_v19, %v4781_v32  ;;  %v2948_v3 = vsel %vm2335_vm1, %v6561_v57, 0.0 }
  0xa4   : > { %v3557_v50 = vsel %vm1723_vm14, %v6564_v58, %v2944_v22  ;;  %vm508_vm3 = vcmp.eq.s32.totalorder %v6460_v31, %v6597_v39  ;;  %v3561_v7 = vsel %vm1727_vm15, %v6564_v58, %v2948_v3  ;;  %vm1112_vm4 = vcmp.eq.s32.totalorder %v6446_v21, %v6630_v60 }
  0xa5   : > { %v4170_v43 = vsel %vm1115_vm11, %v6591_v10, %v3557_v50  ;;  %vm1116_vm5 = vcmp.eq.s32.totalorder %v6460_v31, %v6630_v60  ;;  %5617 = vmatprep.subr.bf16.mxu0 %v5342_v42  ;;  %v4174_v45 = vsel %vm1119_vm13, %v6591_v10, %v3561_v7  ;;  %vm1720_vm6 = vcmp.eq.s32.totalorder %v6446_v21, %v6633_v61 }
  0xa6   : > { %v4783_v46 = vsel %vm507_vm12, %v6594_v37, %v4170_v43  ;;  %vm1724_vm7 = vcmp.eq.s32.totalorder %v6460_v31, %v6633_v61  ;;  %v4787_v47 = vsel %vm511_vm10, %v6594_v37, %v4174_v45  ;;  %vm2328_vm8 = vcmp.eq.s32.totalorder %v6446_v21, %v6636_v62 }
  0xa7   : > { %vm2332_vm9 = vcmp.eq.s32.totalorder %v6460_v31, %v6636_v62  ;;  %vm506_vm12 = vcmp.eq.s32.totalorder %v6446_v21, %v6687_v63  ;;  %v5344_v17 = vpack.c.bf16 %v4787_v47, %v4783_v46  ;;  %v2941_v18 = vsel %vm2328_vm8, %v6639_v0, 0.0 }
  0xa8   : > { %v2945_v23 = vsel %vm2332_vm9, %v6639_v0, 0.0  ;;  %vm510_vm11 = vcmp.eq.s32.totalorder %v6460_v31, %v6687_v63  ;;  %v3554_v25 = vsel %vm1720_vm6, %v6642_v2, %v2941_v18  ;;  %vm1114_vm10 = vcmp.eq.s32.totalorder %v6446_v21, %v6690_v52 }
  0xa9   : > { %v3558_v48 = vsel %vm1724_vm7, %v6642_v2, %v2945_v23  ;;  %vm1118_vm13 = vcmp.eq.s32.totalorder %v6460_v31, %v6690_v52  ;;  %5822 = vmatprep.subr.bf16.mxu1 %v5344_v17  ;;  %v4167_v49 = vsel %vm1112_vm4, %v6661_v20, %v3554_v25  ;;  %vm1722_vm14 = vcmp.eq.s32.totalorder %v6446_v21, %v6701_v35 }
  0xaa   : > { %v4171_v51 = vsel %vm1116_vm5, %v6661_v20, %v3558_v48  ;;  %vm1726_vm15 = vcmp.eq.s32.totalorder %v6460_v31, %v6701_v35  ;;  %v4780_v55 = vsel %vm504_vm2, %v6664_v29, %v4167_v49  ;;  %vm2330_vm0 = vcmp.eq.s32.totalorder %v6446_v21, %v6704_v56 }
  0xab   : > { %v4784_v15 = vsel %vm508_vm3, %v6664_v29, %v4171_v51  ;;  %vm2334_vm1 = vcmp.eq.s32.totalorder %v6460_v31, %v6704_v56  ;;  %v2943_v11 = vsel %vm2330_vm0, %v6737_v59, 0.0  ;;  %v7621_v26 = vadd.s32 112, %v6309_v1 }
  0xac   : > { %v5341_v16 = vpack.c.bf16 %v4784_v15, %v4780_v55  ;;  %v2947_v24 = vsel %vm2334_vm1, %v6737_v59, 0.0  ;;  %v3556_v27 = vsel %vm1722_vm14, %v6740_v54, %v2943_v11  ;;  %v7626_v5 = vadd.s32 120, %v6309_v1 }
  0xad   : > { %v3560_v4 = vsel %vm1726_vm15, %v6740_v54, %v2947_v24  ;;  %v7629_v13 = vadd.s32 128, %v6309_v1  ;;  %v4169_v32 = vsel %vm1114_vm10, %v6743_v53, %v3556_v27  ;;  %vm513_vm2 = vcmp.eq.s32.totalorder %v7621_v26, %v6439_v12 }
  0xae   : > { %5618 = vmatpush1.bf16.msra.mxu0 %v5341_v16  ;;  %v4173_v19 = vsel %vm1118_vm13, %v6743_v53, %v3560_v4  ;;  %vm1121_vm3 = vcmp.eq.s32.totalorder %v7621_v26, %v6465_v8  ;;  %v4782_v22 = vsel %vm506_vm12, %v6748_v14, %v4169_v32  ;;  %vm517_vm4 = vcmp.eq.s32.totalorder %v7626_v5, %v6439_v12 }
  0xaf   : > { %v4786_v42 = vsel %vm510_vm11, %v6748_v14, %v4173_v19  ;;  %vm1125_vm5 = vcmp.eq.s32.totalorder %v7626_v5, %v6465_v8  ;;  %vm1729_vm6 = vcmp.eq.s32.totalorder %v7621_v26, %v6487_v38  ;;  %vm1733_vm7 = vcmp.eq.s32.totalorder %v7626_v5, %v6487_v38 }
  0xb0   : > { %v5343_v3 = vpack.c.bf16 %v4786_v42, %v4782_v22  ;;  %vm2337_vm8 = vcmp.eq.s32.totalorder %v7621_v26, %v6508_v6  ;;  %vm2341_vm9 = vcmp.eq.s32.totalorder %v7626_v5, %v6508_v6  ;;  %vm515_vm12 = vcmp.eq.s32.totalorder %v7621_v26, %v6480_v36 }
  0xb1   : > { %v2950_v21 = vsel %vm2337_vm8, %v6492_v40, 0.0  ;;  %vm519_vm11 = vcmp.eq.s32.totalorder %v7626_v5, %v6480_v36  ;;  %v2954_v31 = vsel %vm2341_vm9, %v6492_v40, 0.0  ;;  %vm1123_vm10 = vcmp.eq.s32.totalorder %v7621_v26, %v6499_v41 }
  0xb2   : > { %5823 = vmatpush1.bf16.msra.mxu1 %v5343_v3  ;;  %v3563_v50 = vsel %vm1729_vm6, %v6455_v28, %v2950_v21  ;;  %vm1127_vm13 = vcmp.eq.s32.totalorder %v7626_v5, %v6499_v41  ;;  %v3567_v7 = vsel %vm1733_vm7, %v6455_v28, %v2954_v31  ;;  %vm1731_vm14 = vcmp.eq.s32.totalorder %v7621_v26, %v6521_v44 }
  0xb3   : > { %v4176_v43 = vsel %vm1121_vm3, %v6470_v33, %v3563_v50  ;;  %vm1735_vm15 = vcmp.eq.s32.totalorder %v7626_v5, %v6521_v44  ;;  %v4180_v45 = vsel %vm1125_vm5, %v6470_v33, %v3567_v7  ;;  %vm2339_vm0 = vcmp.eq.s32.totalorder %v7621_v26, %v6530_v9 }
  0xb4   : > { %v4789_v46 = vsel %vm513_vm2, %v6473_v34, %v4176_v43  ;;  %vm2343_vm1 = vcmp.eq.s32.totalorder %v7626_v5, %v6530_v9  ;;  %v4793_v47 = vsel %vm517_vm4, %v6473_v34, %v4180_v45  ;;  %v2952_v17 = vsel %vm2339_vm0, %v6561_v57, 0.0 }
  0xb5   : > { %v2956_v18 = vsel %vm2343_vm1, %v6561_v57, 0.0  ;;  %vm512_vm3 = vcmp.eq.s32.totalorder %v7621_v26, %v6597_v39  ;;  %v5346_v23 = vpack.c.bf16 %v4793_v47, %v4789_v46  ;;  %v3565_v25 = vsel %vm1731_vm14, %v6564_v58, %v2952_v17 }
  0xb6   : > { %v3569_v48 = vsel %vm1735_vm15, %v6564_v58, %v2956_v18  ;;  %vm516_vm2 = vcmp.eq.s32.totalorder %v7626_v5, %v6597_v39  ;;  %v4178_v49 = vsel %vm1123_vm10, %v6591_v10, %v3565_v25  ;;  %vm1120_vm4 = vcmp.eq.s32.totalorder %v7621_v26, %v6630_v60 }
  0xb7   : > { %v4182_v51 = vsel %vm1127_vm13, %v6591_v10, %v3569_v48  ;;  %vm1124_vm5 = vcmp.eq.s32.totalorder %v7626_v5, %v6630_v60  ;;  %5619 = vmatprep.subr.bf16.mxu0 %v5346_v23  ;;  %v4791_v55 = vsel %vm515_vm12, %v6594_v37, %v4178_v49  ;;  %vm1728_vm6 = vcmp.eq.s32.totalorder %v7621_v26, %v6633_v61 }
  0xb8   : > { %v4795_v15 = vsel %vm519_vm11, %v6594_v37, %v4182_v51  ;;  %vm1732_vm7 = vcmp.eq.s32.totalorder %v7626_v5, %v6633_v61  ;;  %vm2336_vm8 = vcmp.eq.s32.totalorder %v7621_v26, %v6636_v62  ;;  %vm2340_vm9 = vcmp.eq.s32.totalorder %v7626_v5, %v6636_v62 }
  0xb9   : > { %v5348_v16 = vpack.c.bf16 %v4795_v15, %v4791_v55  ;;  %vm514_vm12 = vcmp.eq.s32.totalorder %v7621_v26, %v6687_v63  ;;  %v2949_v11 = vsel %vm2336_vm8, %v6639_v0, 0.0  ;;  %v2953_v24 = vsel %vm2340_vm9, %v6639_v0, 0.0 }
  0xba   : > { %vm518_vm11 = vcmp.eq.s32.totalorder %v7626_v5, %v6687_v63  ;;  %vm1122_vm10 = vcmp.eq.s32.totalorder %v7621_v26, %v6690_v52  ;;  %v3562_v27 = vsel %vm1728_vm6, %v6642_v2, %v2949_v11  ;;  %v3566_v4 = vsel %vm1732_vm7, %v6642_v2, %v2953_v24 }
  0xbb   : > { %5824 = vmatprep.subr.bf16.mxu1 %v5348_v16  ;;  %vm1126_vm13 = vcmp.eq.s32.totalorder %v7626_v5, %v6690_v52  ;;  %vm1730_vm14 = vcmp.eq.s32.totalorder %v7621_v26, %v6701_v35  ;;  %v4175_v32 = vsel %vm1120_vm4, %v6661_v20, %v3562_v27  ;;  %v4179_v19 = vsel %vm1124_vm5, %v6661_v20, %v3566_v4 }
  0xbc   : > { %vm1734_vm15 = vcmp.eq.s32.totalorder %v7626_v5, %v6701_v35  ;;  %vm2338_vm0 = vcmp.eq.s32.totalorder %v7621_v26, %v6704_v56  ;;  %v4788_v22 = vsel %vm512_vm3, %v6664_v29, %v4175_v32  ;;  %v4792_v42 = vsel %vm516_vm2, %v6664_v29, %v4179_v19 }
  0xbd   : > { %vm2342_vm1 = vcmp.eq.s32.totalorder %v7626_v5, %v6704_v56  ;;  %v2951_v3 = vsel %vm2338_vm0, %v6737_v59, 0.0  ;;  %v5345_v21 = vpack.c.bf16 %v4792_v42, %v4788_v22  ;;  %v7775_v7 = vadd.s32 136, %v6309_v1 }
  0xbe   : > { %v2955_v31 = vsel %vm2342_vm1, %v6737_v59, 0.0  ;;  %v3564_v50 = vsel %vm1730_vm14, %v6740_v54, %v2951_v3  ;;  %vm521_vm3 = vcmp.eq.s32.totalorder %v7629_v13, %v6439_v12  ;;  %vm1129_vm2 = vcmp.eq.s32.totalorder %v7629_v13, %v6465_v8 }
  0xbf   : > { %v3568_v43 = vsel %vm1734_vm15, %v6740_v54, %v2955_v31  ;;  %v4177_v45 = vsel %vm1122_vm10, %v6743_v53, %v3564_v50  ;;  %5620 = vmatpush1.bf16.msra.mxu0 %v5345_v21  ;;  %vm525_vm4 = vcmp.eq.s32.totalorder %v7775_v7, %v6439_v12  ;;  %vm1133_vm5 = vcmp.eq.s32.totalorder %v7775_v7, %v6465_v8 }
  0xc0   : > { %v4181_v46 = vsel %vm1126_vm13, %v6743_v53, %v3568_v43  ;;  %v4790_v47 = vsel %vm514_vm12, %v6748_v14, %v4177_v45  ;;  %vm1737_vm6 = vcmp.eq.s32.totalorder %v7629_v13, %v6487_v38  ;;  %vm1741_vm7 = vcmp.eq.s32.totalorder %v7775_v7, %v6487_v38 }
  0xc1   : > { %v4794_v17 = vsel %vm518_vm11, %v6748_v14, %v4181_v46  ;;  %vm2345_vm8 = vcmp.eq.s32.totalorder %v7629_v13, %v6508_v6  ;;  %vm2349_vm9 = vcmp.eq.s32.totalorder %v7775_v7, %v6508_v6  ;;  %vm523_vm12 = vcmp.eq.s32.totalorder %v7629_v13, %v6480_v36 }
  0xc2   : > { %v5347_v26 = vpack.c.bf16 %v4794_v17, %v4790_v47  ;;  %v2958_v18 = vsel %vm2345_vm8, %v6492_v40, 0.0  ;;  %v2962_v5 = vsel %vm2349_vm9, %v6492_v40, 0.0  ;;  %vm527_vm11 = vcmp.eq.s32.totalorder %v7775_v7, %v6480_v36 }
  0xc3   : > { %v3571_v23 = vsel %vm1737_vm6, %v6455_v28, %v2958_v18  ;;  %vm1131_vm10 = vcmp.eq.s32.totalorder %v7629_v13, %v6499_v41  ;;  %v3575_v25 = vsel %vm1741_vm7, %v6455_v28, %v2962_v5  ;;  %vm1135_vm13 = vcmp.eq.s32.totalorder %v7775_v7, %v6499_v41 }
  0xc4   : > { %5825 = vmatpush1.bf16.msra.mxu1 %v5347_v26  ;;  %v4184_v48 = vsel %vm1129_vm2, %v6470_v33, %v3571_v23  ;;  %vm1739_vm14 = vcmp.eq.s32.totalorder %v7629_v13, %v6521_v44  ;;  %v4188_v49 = vsel %vm1133_vm5, %v6470_v33, %v3575_v25  ;;  %vm1743_vm15 = vcmp.eq.s32.totalorder %v7775_v7, %v6521_v44 }
  0xc5   : > { %v4797_v51 = vsel %vm521_vm3, %v6473_v34, %v4184_v48  ;;  %vm2347_vm0 = vcmp.eq.s32.totalorder %v7629_v13, %v6530_v9  ;;  %v4801_v55 = vsel %vm525_vm4, %v6473_v34, %v4188_v49  ;;  %vm2351_vm1 = vcmp.eq.s32.totalorder %v7775_v7, %v6530_v9 }
  0xc6   : > { %v2960_v15 = vsel %vm2347_vm0, %v6561_v57, 0.0  ;;  %vm520_vm2 = vcmp.eq.s32.totalorder %v7629_v13, %v6597_v39  ;;  %v5350_v16 = vpack.c.bf16 %v4801_v55, %v4797_v51  ;;  %v2964_v11 = vsel %vm2351_vm1, %v6561_v57, 0.0 }
  0xc7   : > { %v3573_v24 = vsel %vm1739_vm14, %v6564_v58, %v2960_v15  ;;  %vm524_vm3 = vcmp.eq.s32.totalorder %v7775_v7, %v6597_v39  ;;  %v3577_v27 = vsel %vm1743_vm15, %v6564_v58, %v2964_v11  ;;  %vm1128_vm4 = vcmp.eq.s32.totalorder %v7629_v13, %v6630_v60 }
  0xc8   : > { %v4186_v4 = vsel %vm1131_vm10, %v6591_v10, %v3573_v24  ;;  %vm1132_vm5 = vcmp.eq.s32.totalorder %v7775_v7, %v6630_v60  ;;  %5621 = vmatprep.subr.bf16.mxu0 %v5350_v16  ;;  %v4190_v32 = vsel %vm1135_vm13, %v6591_v10, %v3577_v27  ;;  %vm1736_vm6 = vcmp.eq.s32.totalorder %v7629_v13, %v6633_v61 }
  0xc9   : > { %v4799_v19 = vsel %vm523_vm12, %v6594_v37, %v4186_v4  ;;  %vm1740_vm7 = vcmp.eq.s32.totalorder %v7775_v7, %v6633_v61  ;;  %v4803_v22 = vsel %vm527_vm11, %v6594_v37, %v4190_v32  ;;  %vm2344_vm8 = vcmp.eq.s32.totalorder %v7629_v13, %v6636_v62 }
  0xca   : > { %vm2348_vm9 = vcmp.eq.s32.totalorder %v7775_v7, %v6636_v62  ;;  %vm522_vm12 = vcmp.eq.s32.totalorder %v7629_v13, %v6687_v63  ;;  %v5352_v42 = vpack.c.bf16 %v4803_v22, %v4799_v19  ;;  %v2957_v3 = vsel %vm2344_vm8, %v6639_v0, 0.0 }
  0xcb   : > { %v2961_v21 = vsel %vm2348_vm9, %v6639_v0, 0.0  ;;  %vm526_vm10 = vcmp.eq.s32.totalorder %v7775_v7, %v6687_v63  ;;  %v3570_v31 = vsel %vm1736_vm6, %v6642_v2, %v2957_v3  ;;  %vm1130_vm11 = vcmp.eq.s32.totalorder %v7629_v13, %v6690_v52 }
  0xcc   : > { %v3574_v50 = vsel %vm1740_vm7, %v6642_v2, %v2961_v21  ;;  %vm1134_vm13 = vcmp.eq.s32.totalorder %v7775_v7, %v6690_v52  ;;  %5826 = vmatprep.subr.bf16.mxu1 %v5352_v42  ;;  %v4183_v43 = vsel %vm1128_vm4, %v6661_v20, %v3570_v31  ;;  %vm1738_vm14 = vcmp.eq.s32.totalorder %v7629_v13, %v6701_v35 }
  0xcd   : > { %v4187_v45 = vsel %vm1132_vm5, %v6661_v20, %v3574_v50  ;;  %vm1742_vm15 = vcmp.eq.s32.totalorder %v7775_v7, %v6701_v35  ;;  %v4796_v46 = vsel %vm520_vm2, %v6664_v29, %v4183_v43  ;;  %vm2346_vm0 = vcmp.eq.s32.totalorder %v7629_v13, %v6704_v56 }
  0xce   : > { %v4800_v47 = vsel %vm524_vm3, %v6664_v29, %v4187_v45  ;;  %vm2350_vm1 = vcmp.eq.s32.totalorder %v7775_v7, %v6704_v56  ;;  %v2959_v26 = vsel %vm2346_vm0, %v6737_v59, 0.0  ;;  %v7921_v5 = vadd.s32 144, %v6309_v1 }
  0xcf   : > { %v5349_v17 = vpack.c.bf16 %v4800_v47, %v4796_v46  ;;  %v2963_v18 = vsel %vm2350_vm1, %v6737_v59, 0.0  ;;  %v3572_v23 = vsel %vm1738_vm14, %v6740_v54, %v2959_v26  ;;  %v7926_v48 = vadd.s32 152, %v6309_v1 }
  0xd0   : > { %v3576_v25 = vsel %vm1742_vm15, %v6740_v54, %v2963_v18  ;;  %v7929_v49 = vadd.s32 160, %v6309_v1  ;;  %v4185_v51 = vsel %vm1130_vm11, %v6743_v53, %v3572_v23  ;;  %vm529_vm2 = vcmp.eq.s32.totalorder %v7921_v5, %v6439_v12 }
  0xd1   : > { %5622 = vmatpush1.bf16.msra.mxu0 %v5349_v17  ;;  %v4189_v55 = vsel %vm1134_vm13, %v6743_v53, %v3576_v25  ;;  %vm1137_vm3 = vcmp.eq.s32.totalorder %v7921_v5, %v6465_v8  ;;  %v4798_v15 = vsel %vm522_vm12, %v6748_v14, %v4185_v51  ;;  %vm533_vm4 = vcmp.eq.s32.totalorder %v7926_v48, %v6439_v12 }
  0xd2   : > { %v4802_v16 = vsel %vm526_vm10, %v6748_v14, %v4189_v55  ;;  %vm1141_vm5 = vcmp.eq.s32.totalorder %v7926_v48, %v6465_v8  ;;  %vm1745_vm6 = vcmp.eq.s32.totalorder %v7921_v5, %v6487_v38  ;;  %vm1749_vm7 = vcmp.eq.s32.totalorder %v7926_v48, %v6487_v38 }
  0xd3   : > { %v5351_v11 = vpack.c.bf16 %v4802_v16, %v4798_v15  ;;  %vm2353_vm8 = vcmp.eq.s32.totalorder %v7921_v5, %v6508_v6  ;;  %vm2357_vm9 = vcmp.eq.s32.totalorder %v7926_v48, %v6508_v6  ;;  %vm531_vm12 = vcmp.eq.s32.totalorder %v7921_v5, %v6480_v36 }
  0xd4   : > { %v2966_v13 = vsel %vm2353_vm8, %v6492_v40, 0.0  ;;  %vm535_vm10 = vcmp.eq.s32.totalorder %v7926_v48, %v6480_v36  ;;  %v2970_v7 = vsel %vm2357_vm9, %v6492_v40, 0.0  ;;  %vm1139_vm11 = vcmp.eq.s32.totalorder %v7921_v5, %v6499_v41 }
  0xd5   : > { %5827 = vmatpush1.bf16.msra.mxu1 %v5351_v11  ;;  %v3579_v24 = vsel %vm1745_vm6, %v6455_v28, %v2966_v13  ;;  %vm1143_vm13 = vcmp.eq.s32.totalorder %v7926_v48, %v6499_v41  ;;  %v3583_v27 = vsel %vm1749_vm7, %v6455_v28, %v2970_v7  ;;  %vm1747_vm14 = vcmp.eq.s32.totalorder %v7921_v5, %v6521_v44 }
  0xd6   : > { %v4192_v4 = vsel %vm1137_vm3, %v6470_v33, %v3579_v24  ;;  %vm1751_vm15 = vcmp.eq.s32.totalorder %v7926_v48, %v6521_v44  ;;  %v4196_v32 = vsel %vm1141_vm5, %v6470_v33, %v3583_v27  ;;  %vm2355_vm0 = vcmp.eq.s32.totalorder %v7921_v5, %v6530_v9 }
  0xd7   : > { %v4805_v19 = vsel %vm529_vm2, %v6473_v34, %v4192_v4  ;;  %vm2359_vm1 = vcmp.eq.s32.totalorder %v7926_v48, %v6530_v9  ;;  %v4809_v22 = vsel %vm533_vm4, %v6473_v34, %v4196_v32  ;;  %v2968_v42 = vsel %vm2355_vm0, %v6561_v57, 0.0 }
  0xd8   : > { %v2972_v3 = vsel %vm2359_vm1, %v6561_v57, 0.0  ;;  %vm528_vm3 = vcmp.eq.s32.totalorder %v7921_v5, %v6597_v39  ;;  %v5354_v21 = vpack.c.bf16 %v4809_v22, %v4805_v19  ;;  %v3581_v31 = vsel %vm1747_vm14, %v6564_v58, %v2968_v42 }
  0xd9   : > { %v3585_v50 = vsel %vm1751_vm15, %v6564_v58, %v2972_v3  ;;  %vm532_vm2 = vcmp.eq.s32.totalorder %v7926_v48, %v6597_v39  ;;  %v4194_v43 = vsel %vm1139_vm11, %v6591_v10, %v3581_v31  ;;  %vm1136_vm4 = vcmp.eq.s32.totalorder %v7921_v5, %v6630_v60 }
  0xda   : > { %v4198_v45 = vsel %vm1143_vm13, %v6591_v10, %v3585_v50  ;;  %vm1140_vm5 = vcmp.eq.s32.totalorder %v7926_v48, %v6630_v60  ;;  %5623 = vmatprep.subr.bf16.mxu0 %v5354_v21  ;;  %v4807_v46 = vsel %vm531_vm12, %v6594_v37, %v4194_v43  ;;  %vm1744_vm6 = vcmp.eq.s32.totalorder %v7921_v5, %v6633_v61 }
  0xdb   : > { %v4811_v47 = vsel %vm535_vm10, %v6594_v37, %v4198_v45  ;;  %vm1748_vm7 = vcmp.eq.s32.totalorder %v7926_v48, %v6633_v61  ;;  %vm2352_vm8 = vcmp.eq.s32.totalorder %v7921_v5, %v6636_v62  ;;  %vm2356_vm9 = vcmp.eq.s32.totalorder %v7926_v48, %v6636_v62 }
  0xdc   : > { %v5356_v17 = vpack.c.bf16 %v4811_v47, %v4807_v46  ;;  %vm530_vm12 = vcmp.eq.s32.totalorder %v7921_v5, %v6687_v63  ;;  %v2965_v26 = vsel %vm2352_vm8, %v6639_v0, 0.0  ;;  %v2969_v18 = vsel %vm2356_vm9, %v6639_v0, 0.0 }
  0xdd   : > { %vm534_vm10 = vcmp.eq.s32.totalorder %v7926_v48, %v6687_v63  ;;  %vm1138_vm11 = vcmp.eq.s32.totalorder %v7921_v5, %v6690_v52  ;;  %v3578_v23 = vsel %vm1744_vm6, %v6642_v2, %v2965_v26  ;;  %v3582_v25 = vsel %vm1748_vm7, %v6642_v2, %v2969_v18 }
  0xde   : > { %5828 = vmatprep.subr.bf16.mxu1 %v5356_v17  ;;  %vm1142_vm13 = vcmp.eq.s32.totalorder %v7926_v48, %v6690_v52  ;;  %vm1746_vm14 = vcmp.eq.s32.totalorder %v7921_v5, %v6701_v35  ;;  %v4191_v51 = vsel %vm1136_vm4, %v6661_v20, %v3578_v23  ;;  %v4195_v55 = vsel %vm1140_vm5, %v6661_v20, %v3582_v25 }
  0xdf   : > { %vm1750_vm15 = vcmp.eq.s32.totalorder %v7926_v48, %v6701_v35  ;;  %vm2354_vm0 = vcmp.eq.s32.totalorder %v7921_v5, %v6704_v56  ;;  %v4804_v15 = vsel %vm528_vm3, %v6664_v29, %v4191_v51  ;;  %v4808_v16 = vsel %vm532_vm2, %v6664_v29, %v4195_v55 }
  0xe0   : > { %vm2358_vm1 = vcmp.eq.s32.totalorder %v7926_v48, %v6704_v56  ;;  %v2967_v11 = vsel %vm2354_vm0, %v6737_v59, 0.0  ;;  %v5353_v13 = vpack.c.bf16 %v4808_v16, %v4804_v15  ;;  %v8075_v27 = vadd.s32 168, %v6309_v1 }
  0xe1   : > { %v2971_v7 = vsel %vm2358_vm1, %v6737_v59, 0.0  ;;  %v3580_v24 = vsel %vm1746_vm14, %v6740_v54, %v2967_v11  ;;  %vm537_vm3 = vcmp.eq.s32.totalorder %v7929_v49, %v6439_v12  ;;  %vm1145_vm2 = vcmp.eq.s32.totalorder %v7929_v49, %v6465_v8 }
  0xe2   : > { %v3584_v4 = vsel %vm1750_vm15, %v6740_v54, %v2971_v7  ;;  %v4193_v32 = vsel %vm1138_vm11, %v6743_v53, %v3580_v24  ;;  %5624 = vmatpush1.bf16.msra.mxu0 %v5353_v13  ;;  %vm541_vm4 = vcmp.eq.s32.totalorder %v8075_v27, %v6439_v12  ;;  %vm1149_vm5 = vcmp.eq.s32.totalorder %v8075_v27, %v6465_v8 }
  0xe3   : > { %v4197_v19 = vsel %vm1142_vm13, %v6743_v53, %v3584_v4  ;;  %v4806_v22 = vsel %vm530_vm12, %v6748_v14, %v4193_v32  ;;  %vm1753_vm6 = vcmp.eq.s32.totalorder %v7929_v49, %v6487_v38  ;;  %vm1757_vm7 = vcmp.eq.s32.totalorder %v8075_v27, %v6487_v38 }
  0xe4   : > { %v4810_v42 = vsel %vm534_vm10, %v6748_v14, %v4197_v19  ;;  %vm2361_vm8 = vcmp.eq.s32.totalorder %v7929_v49, %v6508_v6  ;;  %vm2365_vm9 = vcmp.eq.s32.totalorder %v8075_v27, %v6508_v6  ;;  %vm539_vm12 = vcmp.eq.s32.totalorder %v7929_v49, %v6480_v36 }
  0xe5   : > { %v5355_v5 = vpack.c.bf16 %v4810_v42, %v4806_v22  ;;  %v2974_v3 = vsel %vm2361_vm8, %v6492_v40, 0.0  ;;  %v2978_v48 = vsel %vm2365_vm9, %v6492_v40, 0.0  ;;  %vm543_vm10 = vcmp.eq.s32.totalorder %v8075_v27, %v6480_v36 }
  0xe6   : > { %v3587_v21 = vsel %vm1753_vm6, %v6455_v28, %v2974_v3  ;;  %vm1147_vm11 = vcmp.eq.s32.totalorder %v7929_v49, %v6499_v41  ;;  %v3591_v31 = vsel %vm1757_vm7, %v6455_v28, %v2978_v48  ;;  %vm1151_vm13 = vcmp.eq.s32.totalorder %v8075_v27, %v6499_v41 }
  0xe7   : > { %5829 = vmatpush1.bf16.msra.mxu1 %v5355_v5  ;;  %v4200_v50 = vsel %vm1145_vm2, %v6470_v33, %v3587_v21  ;;  %vm1755_vm14 = vcmp.eq.s32.totalorder %v7929_v49, %v6521_v44  ;;  %v4204_v43 = vsel %vm1149_vm5, %v6470_v33, %v3591_v31  ;;  %vm1759_vm15 = vcmp.eq.s32.totalorder %v8075_v27, %v6521_v44 }
  0xe8   : > { %v4813_v45 = vsel %vm537_vm3, %v6473_v34, %v4200_v50  ;;  %vm2363_vm0 = vcmp.eq.s32.totalorder %v7929_v49, %v6530_v9  ;;  %v4817_v46 = vsel %vm541_vm4, %v6473_v34, %v4204_v43  ;;  %vm2367_vm1 = vcmp.eq.s32.totalorder %v8075_v27, %v6530_v9 }
  0xe9   : > { %v2976_v47 = vsel %vm2363_vm0, %v6561_v57, 0.0  ;;  %vm536_vm2 = vcmp.eq.s32.totalorder %v7929_v49, %v6597_v39  ;;  %v5358_v17 = vpack.c.bf16 %v4817_v46, %v4813_v45  ;;  %v2980_v26 = vsel %vm2367_vm1, %v6561_v57, 0.0 }
  0xea   : > { %v3589_v18 = vsel %vm1755_vm14, %v6564_v58, %v2976_v47  ;;  %vm540_vm3 = vcmp.eq.s32.totalorder %v8075_v27, %v6597_v39  ;;  %v3593_v23 = vsel %vm1759_vm15, %v6564_v58, %v2980_v26  ;;  %vm1144_vm4 = vcmp.eq.s32.totalorder %v7929_v49, %v6630_v60 }
  0xeb   : > { %v4202_v25 = vsel %vm1147_vm11, %v6591_v10, %v3589_v18  ;;  %vm1148_vm5 = vcmp.eq.s32.totalorder %v8075_v27, %v6630_v60  ;;  %5625 = vmatprep.subr.bf16.mxu0 %v5358_v17  ;;  %v4206_v51 = vsel %vm1151_vm13, %v6591_v10, %v3593_v23  ;;  %vm1752_vm6 = vcmp.eq.s32.totalorder %v7929_v49, %v6633_v61 }
  0xec   : > { %v4815_v55 = vsel %vm539_vm12, %v6594_v37, %v4202_v25  ;;  %vm1756_vm7 = vcmp.eq.s32.totalorder %v8075_v27, %v6633_v61  ;;  %v4819_v15 = vsel %vm543_vm10, %v6594_v37, %v4206_v51  ;;  %vm2360_vm8 = vcmp.eq.s32.totalorder %v7929_v49, %v6636_v62 }
  0xed   : > { %vm2364_vm9 = vcmp.eq.s32.totalorder %v8075_v27, %v6636_v62  ;;  %vm538_vm12 = vcmp.eq.s32.totalorder %v7929_v49, %v6687_v63  ;;  %v5360_v16 = vpack.c.bf16 %v4819_v15, %v4815_v55  ;;  %v2973_v11 = vsel %vm2360_vm8, %v6639_v0, 0.0 }
  0xee   : > { %v2977_v13 = vsel %vm2364_vm9, %v6639_v0, 0.0  ;;  %vm542_vm11 = vcmp.eq.s32.totalorder %v8075_v27, %v6687_v63  ;;  %v3586_v7 = vsel %vm1752_vm6, %v6642_v2, %v2973_v11  ;;  %vm1146_vm10 = vcmp.eq.s32.totalorder %v7929_v49, %v6690_v52 }
  0xef   : > { %v3590_v24 = vsel %vm1756_vm7, %v6642_v2, %v2977_v13  ;;  %vm1150_vm13 = vcmp.eq.s32.totalorder %v8075_v27, %v6690_v52  ;;  %5830 = vmatprep.subr.bf16.mxu1 %v5360_v16  ;;  %v4199_v4 = vsel %vm1144_vm4, %v6661_v20, %v3586_v7  ;;  %vm1754_vm14 = vcmp.eq.s32.totalorder %v7929_v49, %v6701_v35 }
  0xf0   : > { %v4203_v32 = vsel %vm1148_vm5, %v6661_v20, %v3590_v24  ;;  %vm1758_vm15 = vcmp.eq.s32.totalorder %v8075_v27, %v6701_v35  ;;  %v4812_v19 = vsel %vm536_vm2, %v6664_v29, %v4199_v4  ;;  %vm2362_vm0 = vcmp.eq.s32.totalorder %v7929_v49, %v6704_v56 }
  0xf1   : > { %v4816_v22 = vsel %vm540_vm3, %v6664_v29, %v4203_v32  ;;  %vm2366_vm1 = vcmp.eq.s32.totalorder %v8075_v27, %v6704_v56  ;;  %v2975_v5 = vsel %vm2362_vm0, %v6737_v59, 0.0  ;;  %v8221_v48 = vadd.s32 176, %v6309_v1 }
  0xf2   : > { %v5357_v42 = vpack.c.bf16 %v4816_v22, %v4812_v19  ;;  %v2979_v3 = vsel %vm2366_vm1, %v6737_v59, 0.0  ;;  %v3588_v21 = vsel %vm1754_vm14, %v6740_v54, %v2975_v5  ;;  %v8226_v50 = vadd.s32 184, %v6309_v1 }
  0xf3   : > { %v3592_v31 = vsel %vm1758_vm15, %v6740_v54, %v2979_v3  ;;  %v8229_v43 = vadd.s32 192, %v6309_v1  ;;  %v4201_v45 = vsel %vm1146_vm10, %v6743_v53, %v3588_v21  ;;  %vm545_vm2 = vcmp.eq.s32.totalorder %v8221_v48, %v6439_v12 }
  0xf4   : > { %5626 = vmatpush1.bf16.msra.mxu0 %v5357_v42  ;;  %v4205_v46 = vsel %vm1150_vm13, %v6743_v53, %v3592_v31  ;;  %vm1153_vm3 = vcmp.eq.s32.totalorder %v8221_v48, %v6465_v8  ;;  %v4814_v47 = vsel %vm538_vm12, %v6748_v14, %v4201_v45  ;;  %vm549_vm4 = vcmp.eq.s32.totalorder %v8226_v50, %v6439_v12 }
  0xf5   : > { %v4818_v17 = vsel %vm542_vm11, %v6748_v14, %v4205_v46  ;;  %vm1157_vm5 = vcmp.eq.s32.totalorder %v8226_v50, %v6465_v8  ;;  %vm1761_vm6 = vcmp.eq.s32.totalorder %v8221_v48, %v6487_v38  ;;  %vm1765_vm7 = vcmp.eq.s32.totalorder %v8226_v50, %v6487_v38 }
  0xf6   : > { %v5359_v26 = vpack.c.bf16 %v4818_v17, %v4814_v47  ;;  %vm2369_vm8 = vcmp.eq.s32.totalorder %v8221_v48, %v6508_v6  ;;  %vm2373_vm9 = vcmp.eq.s32.totalorder %v8226_v50, %v6508_v6  ;;  %vm547_vm12 = vcmp.eq.s32.totalorder %v8221_v48, %v6480_v36 }
  0xf7   : > { %v2982_v49 = vsel %vm2369_vm8, %v6492_v40, 0.0  ;;  %vm551_vm11 = vcmp.eq.s32.totalorder %v8226_v50, %v6480_v36  ;;  %v2986_v27 = vsel %vm2373_vm9, %v6492_v40, 0.0  ;;  %vm1155_vm10 = vcmp.eq.s32.totalorder %v8221_v48, %v6499_v41 }
  0xf8   : > { %5831 = vmatpush1.bf16.msra.mxu1 %v5359_v26  ;;  %v3595_v18 = vsel %vm1761_vm6, %v6455_v28, %v2982_v49  ;;  %vm1159_vm13 = vcmp.eq.s32.totalorder %v8226_v50, %v6499_v41  ;;  %v3599_v23 = vsel %vm1765_vm7, %v6455_v28, %v2986_v27  ;;  %vm1763_vm14 = vcmp.eq.s32.totalorder %v8221_v48, %v6521_v44 }
  0xf9   : > { %v4208_v25 = vsel %vm1153_vm3, %v6470_v33, %v3595_v18  ;;  %vm1767_vm15 = vcmp.eq.s32.totalorder %v8226_v50, %v6521_v44  ;;  %v4212_v51 = vsel %vm1157_vm5, %v6470_v33, %v3599_v23  ;;  %vm2371_vm0 = vcmp.eq.s32.totalorder %v8221_v48, %v6530_v9 }
  0xfa   : > { %v4821_v55 = vsel %vm545_vm2, %v6473_v34, %v4208_v25  ;;  %vm2375_vm1 = vcmp.eq.s32.totalorder %v8226_v50, %v6530_v9  ;;  %v4825_v15 = vsel %vm549_vm4, %v6473_v34, %v4212_v51  ;;  %v2984_v16 = vsel %vm2371_vm0, %v6561_v57, 0.0 }
  0xfb   : > { %v2988_v11 = vsel %vm2375_vm1, %v6561_v57, 0.0  ;;  %vm544_vm3 = vcmp.eq.s32.totalorder %v8221_v48, %v6597_v39  ;;  %v5362_v13 = vpack.c.bf16 %v4825_v15, %v4821_v55  ;;  %v3597_v7 = vsel %vm1763_vm14, %v6564_v58, %v2984_v16 }
  0xfc   : > { %v3601_v24 = vsel %vm1767_vm15, %v6564_v58, %v2988_v11  ;;  %vm548_vm2 = vcmp.eq.s32.totalorder %v8226_v50, %v6597_v39  ;;  %v4210_v4 = vsel %vm1155_vm10, %v6591_v10, %v3597_v7  ;;  %vm1152_vm4 = vcmp.eq.s32.totalorder %v8221_v48, %v6630_v60 }
  0xfd   : > { %v4214_v32 = vsel %vm1159_vm13, %v6591_v10, %v3601_v24  ;;  %vm1156_vm5 = vcmp.eq.s32.totalorder %v8226_v50, %v6630_v60  ;;  %5627 = vmatprep.subr.bf16.mxu0 %v5362_v13  ;;  %v4823_v19 = vsel %vm547_vm12, %v6594_v37, %v4210_v4  ;;  %vm1760_vm6 = vcmp.eq.s32.totalorder %v8221_v48, %v6633_v61 }
  0xfe   : > { %v4827_v22 = vsel %vm551_vm11, %v6594_v37, %v4214_v32  ;;  %vm1764_vm7 = vcmp.eq.s32.totalorder %v8226_v50, %v6633_v61  ;;  %vm2368_vm8 = vcmp.eq.s32.totalorder %v8221_v48, %v6636_v62  ;;  %vm2372_vm9 = vcmp.eq.s32.totalorder %v8226_v50, %v6636_v62 }
  0xff   : > { %v5364_v42 = vpack.c.bf16 %v4827_v22, %v4823_v19  ;;  %vm546_vm12 = vcmp.eq.s32.totalorder %v8221_v48, %v6687_v63  ;;  %v2981_v5 = vsel %vm2368_vm8, %v6639_v0, 0.0  ;;  %v2985_v3 = vsel %vm2372_vm9, %v6639_v0, 0.0 }
 0x100   : > { %vm550_vm11 = vcmp.eq.s32.totalorder %v8226_v50, %v6687_v63  ;;  %vm1154_vm10 = vcmp.eq.s32.totalorder %v8221_v48, %v6690_v52  ;;  %v3594_v21 = vsel %vm1760_vm6, %v6642_v2, %v2981_v5  ;;  %v3598_v31 = vsel %vm1764_vm7, %v6642_v2, %v2985_v3 }
 0x101   : > { %5832 = vmatprep.subr.bf16.mxu1 %v5364_v42  ;;  %vm1158_vm13 = vcmp.eq.s32.totalorder %v8226_v50, %v6690_v52  ;;  %vm1762_vm14 = vcmp.eq.s32.totalorder %v8221_v48, %v6701_v35  ;;  %v4207_v45 = vsel %vm1152_vm4, %v6661_v20, %v3594_v21  ;;  %v4211_v46 = vsel %vm1156_vm5, %v6661_v20, %v3598_v31 }
 0x102   : > { %vm1766_vm15 = vcmp.eq.s32.totalorder %v8226_v50, %v6701_v35  ;;  %vm2370_vm0 = vcmp.eq.s32.totalorder %v8221_v48, %v6704_v56  ;;  %v4820_v47 = vsel %vm544_vm3, %v6664_v29, %v4207_v45  ;;  %v4824_v17 = vsel %vm548_vm2, %v6664_v29, %v4211_v46 }
 0x103   : > { %vm2374_vm1 = vcmp.eq.s32.totalorder %v8226_v50, %v6704_v56  ;;  %v2983_v26 = vsel %vm2370_vm0, %v6737_v59, 0.0  ;;  %v5361_v49 = vpack.c.bf16 %v4824_v17, %v4820_v47  ;;  %v8375_v23 = vadd.s32 200, %v6309_v1 }
 0x104   : > { %v2987_v27 = vsel %vm2374_vm1, %v6737_v59, 0.0  ;;  %v3596_v18 = vsel %vm1762_vm14, %v6740_v54, %v2983_v26  ;;  %vm553_vm3 = vcmp.eq.s32.totalorder %v8229_v43, %v6439_v12  ;;  %vm1161_vm2 = vcmp.eq.s32.totalorder %v8229_v43, %v6465_v8 }
 0x105   : > { %v3600_v25 = vsel %vm1766_vm15, %v6740_v54, %v2987_v27  ;;  %v4209_v51 = vsel %vm1154_vm10, %v6743_v53, %v3596_v18  ;;  %5628 = vmatpush1.bf16.msra.mxu0 %v5361_v49  ;;  %vm557_vm4 = vcmp.eq.s32.totalorder %v8375_v23, %v6439_v12  ;;  %vm1165_vm5 = vcmp.eq.s32.totalorder %v8375_v23, %v6465_v8 }
 0x106   : > { %v4213_v55 = vsel %vm1158_vm13, %v6743_v53, %v3600_v25  ;;  %v4822_v15 = vsel %vm546_vm12, %v6748_v14, %v4209_v51  ;;  %vm1769_vm6 = vcmp.eq.s32.totalorder %v8229_v43, %v6487_v38  ;;  %vm1773_vm7 = vcmp.eq.s32.totalorder %v8375_v23, %v6487_v38 }
 0x107   : > { %v4826_v16 = vsel %vm550_vm11, %v6748_v14, %v4213_v55  ;;  %vm2377_vm8 = vcmp.eq.s32.totalorder %v8229_v43, %v6508_v6  ;;  %vm2381_vm9 = vcmp.eq.s32.totalorder %v8375_v23, %v6508_v6  ;;  %vm555_vm12 = vcmp.eq.s32.totalorder %v8229_v43, %v6480_v36 }
 0x108   : > { %v5363_v48 = vpack.c.bf16 %v4826_v16, %v4822_v15  ;;  %v2990_v11 = vsel %vm2377_vm8, %v6492_v40, 0.0  ;;  %v2994_v50 = vsel %vm2381_vm9, %v6492_v40, 0.0  ;;  %vm559_vm11 = vcmp.eq.s32.totalorder %v8375_v23, %v6480_v36 }
 0x109   : > { %v3603_v13 = vsel %vm1769_vm6, %v6455_v28, %v2990_v11  ;;  %vm1163_vm10 = vcmp.eq.s32.totalorder %v8229_v43, %v6499_v41  ;;  %v3607_v7 = vsel %vm1773_vm7, %v6455_v28, %v2994_v50  ;;  %vm1167_vm13 = vcmp.eq.s32.totalorder %v8375_v23, %v6499_v41 }
 0x10a   : > { %5833 = vmatpush1.bf16.msra.mxu1 %v5363_v48  ;;  %v4216_v24 = vsel %vm1161_vm2, %v6470_v33, %v3603_v13  ;;  %vm1771_vm14 = vcmp.eq.s32.totalorder %v8229_v43, %v6521_v44  ;;  %v4220_v4 = vsel %vm1165_vm5, %v6470_v33, %v3607_v7  ;;  %vm1775_vm15 = vcmp.eq.s32.totalorder %v8375_v23, %v6521_v44 }
 0x10b   : > { %v4829_v32 = vsel %vm553_vm3, %v6473_v34, %v4216_v24  ;;  %vm2379_vm0 = vcmp.eq.s32.totalorder %v8229_v43, %v6530_v9  ;;  %v4833_v19 = vsel %vm557_vm4, %v6473_v34, %v4220_v4  ;;  %vm2383_vm1 = vcmp.eq.s32.totalorder %v8375_v23, %v6530_v9 }
 0x10c   : > { %v2992_v22 = vsel %vm2379_vm0, %v6561_v57, 0.0  ;;  %vm552_vm2 = vcmp.eq.s32.totalorder %v8229_v43, %v6597_v39  ;;  %v5366_v42 = vpack.c.bf16 %v4833_v19, %v4829_v32  ;;  %v2996_v5 = vsel %vm2383_vm1, %v6561_v57, 0.0 }
 0x10d   : > { %v3605_v3 = vsel %vm1771_vm14, %v6564_v58, %v2992_v22  ;;  %vm556_vm3 = vcmp.eq.s32.totalorder %v8375_v23, %v6597_v39  ;;  %v3609_v21 = vsel %vm1775_vm15, %v6564_v58, %v2996_v5  ;;  %vm1160_vm4 = vcmp.eq.s32.totalorder %v8229_v43, %v6630_v60 }
 0x10e   : > { %v4218_v31 = vsel %vm1163_vm10, %v6591_v10, %v3605_v3  ;;  %vm1164_vm5 = vcmp.eq.s32.totalorder %v8375_v23, %v6630_v60  ;;  %5629 = vmatprep.subr.bf16.mxu0 %v5366_v42  ;;  %v4222_v45 = vsel %vm1167_vm13, %v6591_v10, %v3609_v21  ;;  %vm1768_vm6 = vcmp.eq.s32.totalorder %v8229_v43, %v6633_v61 }
 0x10f   : > { %v4831_v46 = vsel %vm555_vm12, %v6594_v37, %v4218_v31  ;;  %vm1772_vm7 = vcmp.eq.s32.totalorder %v8375_v23, %v6633_v61  ;;  %v4835_v47 = vsel %vm559_vm11, %v6594_v37, %v4222_v45  ;;  %vm2376_vm8 = vcmp.eq.s32.totalorder %v8229_v43, %v6636_v62 }
 0x110   : > { %vm2380_vm9 = vcmp.eq.s32.totalorder %v8375_v23, %v6636_v62  ;;  %vm554_vm12 = vcmp.eq.s32.totalorder %v8229_v43, %v6687_v63  ;;  %v5368_v17 = vpack.c.bf16 %v4835_v47, %v4831_v46  ;;  %v2989_v26 = vsel %vm2376_vm8, %v6639_v0, 0.0 }
 0x111   : > { %v2993_v49 = vsel %vm2380_vm9, %v6639_v0, 0.0  ;;  %vm558_vm10 = vcmp.eq.s32.totalorder %v8375_v23, %v6687_v63  ;;  %v3602_v27 = vsel %vm1768_vm6, %v6642_v2, %v2989_v26  ;;  %vm1162_vm11 = vcmp.eq.s32.totalorder %v8229_v43, %v6690_v52 }
 0x112   : > { %v3606_v18 = vsel %vm1772_vm7, %v6642_v2, %v2993_v49  ;;  %vm1166_vm13 = vcmp.eq.s32.totalorder %v8375_v23, %v6690_v52  ;;  %5834 = vmatprep.subr.bf16.mxu1 %v5368_v17  ;;  %v4215_v25 = vsel %vm1160_vm4, %v6661_v20, %v3602_v27  ;;  %vm1770_vm14 = vcmp.eq.s32.totalorder %v8229_v43, %v6701_v35 }
 0x113   : > { %v4219_v51 = vsel %vm1164_vm5, %v6661_v20, %v3606_v18  ;;  %vm1774_vm15 = vcmp.eq.s32.totalorder %v8375_v23, %v6701_v35  ;;  %v4828_v55 = vsel %vm552_vm2, %v6664_v29, %v4215_v25  ;;  %vm2378_vm0 = vcmp.eq.s32.totalorder %v8229_v43, %v6704_v56 }
 0x114   : > { %v4832_v15 = vsel %vm556_vm3, %v6664_v29, %v4219_v51  ;;  %vm2382_vm1 = vcmp.eq.s32.totalorder %v8375_v23, %v6704_v56  ;;  %v2991_v48 = vsel %vm2378_vm0, %v6737_v59, 0.0  ;;  %v8521_v50 = vadd.s32 208, %v6309_v1 }
 0x115   : > { %v5365_v16 = vpack.c.bf16 %v4832_v15, %v4828_v55  ;;  %v2995_v11 = vsel %vm2382_vm1, %v6737_v59, 0.0  ;;  %v3604_v13 = vsel %vm1770_vm14, %v6740_v54, %v2991_v48  ;;  %v8526_v24 = vadd.s32 216, %v6309_v1 }
 0x116   : > { %v3608_v7 = vsel %vm1774_vm15, %v6740_v54, %v2995_v11  ;;  %v8529_v4 = vadd.s32 224, %v6309_v1  ;;  %v4217_v32 = vsel %vm1162_vm11, %v6743_v53, %v3604_v13  ;;  %vm561_vm2 = vcmp.eq.s32.totalorder %v8521_v50, %v6439_v12 }
 0x117   : > { %5630 = vmatpush1.bf16.msra.mxu0 %v5365_v16  ;;  %v4221_v19 = vsel %vm1166_vm13, %v6743_v53, %v3608_v7  ;;  %vm1169_vm3 = vcmp.eq.s32.totalorder %v8521_v50, %v6465_v8  ;;  %v4830_v22 = vsel %vm554_vm12, %v6748_v14, %v4217_v32  ;;  %vm565_vm4 = vcmp.eq.s32.totalorder %v8526_v24, %v6439_v12 }
 0x118   : > { %v4834_v42 = vsel %vm558_vm10, %v6748_v14, %v4221_v19  ;;  %vm1173_vm5 = vcmp.eq.s32.totalorder %v8526_v24, %v6465_v8  ;;  %vm1777_vm6 = vcmp.eq.s32.totalorder %v8521_v50, %v6487_v38  ;;  %vm1781_vm7 = vcmp.eq.s32.totalorder %v8526_v24, %v6487_v38 }
 0x119   : > { %v5367_v5 = vpack.c.bf16 %v4834_v42, %v4830_v22  ;;  %vm2385_vm8 = vcmp.eq.s32.totalorder %v8521_v50, %v6508_v6  ;;  %vm2389_vm9 = vcmp.eq.s32.totalorder %v8526_v24, %v6508_v6  ;;  %vm563_vm12 = vcmp.eq.s32.totalorder %v8521_v50, %v6480_v36 }
 0x11a   : > { %v2998_v43 = vsel %vm2385_vm8, %v6492_v40, 0.0  ;;  %vm567_vm10 = vcmp.eq.s32.totalorder %v8526_v24, %v6480_v36  ;;  %v3002_v23 = vsel %vm2389_vm9, %v6492_v40, 0.0  ;;  %vm1171_vm11 = vcmp.eq.s32.totalorder %v8521_v50, %v6499_v41 }
 0x11b   : > { %5835 = vmatpush1.bf16.msra.mxu1 %v5367_v5  ;;  %v3611_v3 = vsel %vm1777_vm6, %v6455_v28, %v2998_v43  ;;  %vm1175_vm13 = vcmp.eq.s32.totalorder %v8526_v24, %v6499_v41  ;;  %v3615_v21 = vsel %vm1781_vm7, %v6455_v28, %v3002_v23  ;;  %vm1779_vm14 = vcmp.eq.s32.totalorder %v8521_v50, %v6521_v44 }
 0x11c   : > { %v4224_v31 = vsel %vm1169_vm3, %v6470_v33, %v3611_v3  ;;  %vm1783_vm15 = vcmp.eq.s32.totalorder %v8526_v24, %v6521_v44  ;;  %v4228_v45 = vsel %vm1173_vm5, %v6470_v33, %v3615_v21  ;;  %vm2387_vm0 = vcmp.eq.s32.totalorder %v8521_v50, %v6530_v9 }
 0x11d   : > { %v4837_v46 = vsel %vm561_vm2, %v6473_v34, %v4224_v31  ;;  %vm2391_vm1 = vcmp.eq.s32.totalorder %v8526_v24, %v6530_v9  ;;  %v4841_v47 = vsel %vm565_vm4, %v6473_v34, %v4228_v45  ;;  %v3000_v17 = vsel %vm2387_vm0, %v6561_v57, 0.0 }
 0x11e   : > { %v3004_v26 = vsel %vm2391_vm1, %v6561_v57, 0.0  ;;  %vm560_vm3 = vcmp.eq.s32.totalorder %v8521_v50, %v6597_v39  ;;  %v5370_v49 = vpack.c.bf16 %v4841_v47, %v4837_v46  ;;  %v3613_v27 = vsel %vm1779_vm14, %v6564_v58, %v3000_v17 }
 0x11f   : > { %v3617_v18 = vsel %vm1783_vm15, %v6564_v58, %v3004_v26  ;;  %vm564_vm2 = vcmp.eq.s32.totalorder %v8526_v24, %v6597_v39  ;;  %v4226_v25 = vsel %vm1171_vm11, %v6591_v10, %v3613_v27  ;;  %vm1168_vm4 = vcmp.eq.s32.totalorder %v8521_v50, %v6630_v60 }
 0x120   : > { %v4230_v51 = vsel %vm1175_vm13, %v6591_v10, %v3617_v18  ;;  %vm1172_vm5 = vcmp.eq.s32.totalorder %v8526_v24, %v6630_v60  ;;  %5631 = vmatprep.subr.bf16.mxu0 %v5370_v49  ;;  %v4839_v55 = vsel %vm563_vm12, %v6594_v37, %v4226_v25  ;;  %vm1776_vm6 = vcmp.eq.s32.totalorder %v8521_v50, %v6633_v61 }
 0x121   : > { %v4843_v15 = vsel %vm567_vm10, %v6594_v37, %v4230_v51  ;;  %vm1780_vm7 = vcmp.eq.s32.totalorder %v8526_v24, %v6633_v61  ;;  %vm2384_vm8 = vcmp.eq.s32.totalorder %v8521_v50, %v6636_v62  ;;  %vm2388_vm9 = vcmp.eq.s32.totalorder %v8526_v24, %v6636_v62 }
 0x122   : > { %v5372_v16 = vpack.c.bf16 %v4843_v15, %v4839_v55  ;;  %vm562_vm12 = vcmp.eq.s32.totalorder %v8521_v50, %v6687_v63  ;;  %v2997_v48 = vsel %vm2384_vm8, %v6639_v0, 0.0  ;;  %v3001_v11 = vsel %vm2388_vm9, %v6639_v0, 0.0 }
 0x123   : > { %vm566_vm10 = vcmp.eq.s32.totalorder %v8526_v24, %v6687_v63  ;;  %vm1170_vm11 = vcmp.eq.s32.totalorder %v8521_v50, %v6690_v52  ;;  %v3610_v13 = vsel %vm1776_vm6, %v6642_v2, %v2997_v48  ;;  %v3614_v7 = vsel %vm1780_vm7, %v6642_v2, %v3001_v11 }
 0x124   : > { %5836 = vmatprep.subr.bf16.mxu1 %v5372_v16  ;;  %vm1174_vm13 = vcmp.eq.s32.totalorder %v8526_v24, %v6690_v52  ;;  %vm1778_vm14 = vcmp.eq.s32.totalorder %v8521_v50, %v6701_v35  ;;  %v4223_v32 = vsel %vm1168_vm4, %v6661_v20, %v3610_v13  ;;  %v4227_v19 = vsel %vm1172_vm5, %v6661_v20, %v3614_v7 }
 0x125   : > { %vm1782_vm15 = vcmp.eq.s32.totalorder %v8526_v24, %v6701_v35  ;;  %vm2386_vm0 = vcmp.eq.s32.totalorder %v8521_v50, %v6704_v56  ;;  %v4836_v22 = vsel %vm560_vm3, %v6664_v29, %v4223_v32  ;;  %v4840_v42 = vsel %vm564_vm2, %v6664_v29, %v4227_v19 }
 0x126   : > { %vm2390_vm1 = vcmp.eq.s32.totalorder %v8526_v24, %v6704_v56  ;;  %v2999_v5 = vsel %vm2386_vm0, %v6737_v59, 0.0  ;;  %v5369_v43 = vpack.c.bf16 %v4840_v42, %v4836_v22  ;;  %v8675_v21 = vadd.s32 232, %v6309_v1 }
 0x127   : > { %v3003_v23 = vsel %vm2390_vm1, %v6737_v59, 0.0  ;;  %v3612_v3 = vsel %vm1778_vm14, %v6740_v54, %v2999_v5  ;;  %vm569_vm3 = vcmp.eq.s32.totalorder %v8529_v4, %v6439_v12  ;;  %vm1177_vm2 = vcmp.eq.s32.totalorder %v8529_v4, %v6465_v8 }
 0x128   : > { %v3616_v31 = vsel %vm1782_vm15, %v6740_v54, %v3003_v23  ;;  %v4225_v45 = vsel %vm1170_vm11, %v6743_v53, %v3612_v3  ;;  %5632 = vmatpush1.bf16.msra.mxu0 %v5369_v43  ;;  %vm573_vm4 = vcmp.eq.s32.totalorder %v8675_v21, %v6439_v12  ;;  %vm1181_vm5 = vcmp.eq.s32.totalorder %v8675_v21, %v6465_v8 }
 0x129   : > { %v4229_v46 = vsel %vm1174_vm13, %v6743_v53, %v3616_v31  ;;  %v4838_v47 = vsel %vm562_vm12, %v6748_v14, %v4225_v45  ;;  %vm1785_vm6 = vcmp.eq.s32.totalorder %v8529_v4, %v6487_v38  ;;  %vm1789_vm7 = vcmp.eq.s32.totalorder %v8675_v21, %v6487_v38 }
 0x12a   : > { %v4842_v17 = vsel %vm566_vm10, %v6748_v14, %v4229_v46  ;;  %vm2393_vm8 = vcmp.eq.s32.totalorder %v8529_v4, %v6508_v6  ;;  %vm2397_vm9 = vcmp.eq.s32.totalorder %v8675_v21, %v6508_v6  ;;  %vm571_vm12 = vcmp.eq.s32.totalorder %v8529_v4, %v6480_v36  ;;  %v206_v46 = vld [vmem:[%s8788_s26 + $0x8] sm:$0xff] }
 0x12b   : > { %v5371_v50 = vpack.c.bf16 %v4842_v17, %v4838_v47  ;;  %v3006_v26 = vsel %vm2393_vm8, %v6492_v40, 0.0  ;;  %v3010_v24 = vsel %vm2397_vm9, %v6492_v40, 0.0  ;;  %vm575_vm10 = vcmp.eq.s32.totalorder %v8675_v21, %v6480_v36 }
 0x12c   : > { %v3619_v49 = vsel %vm1785_vm6, %v6455_v28, %v3006_v26  ;;  %vm1179_vm11 = vcmp.eq.s32.totalorder %v8529_v4, %v6499_v41  ;;  %v3623_v27 = vsel %vm1789_vm7, %v6455_v28, %v3010_v24  ;;  %vm1183_vm13 = vcmp.eq.s32.totalorder %v8675_v21, %v6499_v41 }
 0x12d   : > { %5837 = vmatpush1.bf16.msra.mxu1 %v5371_v50  ;;  %v4232_v18 = vsel %vm1177_vm2, %v6470_v33, %v3619_v49  ;;  %vm1787_vm14 = vcmp.eq.s32.totalorder %v8529_v4, %v6521_v44  ;;  %v4236_v25 = vsel %vm1181_vm5, %v6470_v33, %v3623_v27  ;;  %vm1791_vm15 = vcmp.eq.s32.totalorder %v8675_v21, %v6521_v44 }
 0x12e   : > { %v4845_v51 = vsel %vm569_vm3, %v6473_v34, %v4232_v18  ;;  %vm2395_vm0 = vcmp.eq.s32.totalorder %v8529_v4, %v6530_v9  ;;  %v4849_v55 = vsel %vm573_vm4, %v6473_v34, %v4236_v25  ;;  %vm2399_vm1 = vcmp.eq.s32.totalorder %v8675_v21, %v6530_v9 }
 0x12f   : > { %v3008_v15 = vsel %vm2395_vm0, %v6561_v57, 0.0  ;;  %vm568_vm2 = vcmp.eq.s32.totalorder %v8529_v4, %v6597_v39  ;;  %v5374_v16 = vpack.c.bf16 %v4849_v55, %v4845_v51  ;;  %v3012_v48 = vsel %vm2399_vm1, %v6561_v57, 0.0 }
 0x130   : > { %v3621_v11 = vsel %vm1787_vm14, %v6564_v58, %v3008_v15  ;;  %vm572_vm3 = vcmp.eq.s32.totalorder %v8675_v21, %v6597_v39  ;;  %v3625_v13 = vsel %vm1791_vm15, %v6564_v58, %v3012_v48  ;;  %vm1176_vm4 = vcmp.eq.s32.totalorder %v8529_v4, %v6630_v60 }
 0x131   : > { %v4234_v7 = vsel %vm1179_vm11, %v6591_v10, %v3621_v11  ;;  %vm1180_vm5 = vcmp.eq.s32.totalorder %v8675_v21, %v6630_v60  ;;  %5633 = vmatprep.subr.bf16.mxu0 %v5374_v16  ;;  %v4238_v32 = vsel %vm1183_vm13, %v6591_v10, %v3625_v13  ;;  %vm1784_vm6 = vcmp.eq.s32.totalorder %v8529_v4, %v6633_v61 }
 0x132   : > { %v4847_v19 = vsel %vm571_vm12, %v6594_v37, %v4234_v7  ;;  %vm1788_vm7 = vcmp.eq.s32.totalorder %v8675_v21, %v6633_v61  ;;  %v4851_v22 = vsel %vm575_vm10, %v6594_v37, %v4238_v32  ;;  %vm2392_vm8 = vcmp.eq.s32.totalorder %v8529_v4, %v6636_v62 }
 0x133   : > { %vm2396_vm9 = vcmp.eq.s32.totalorder %v8675_v21, %v6636_v62  ;;  %vm570_vm12 = vcmp.eq.s32.totalorder %v8529_v4, %v6687_v63  ;;  %v5376_v42 = vpack.c.bf16 %v4851_v22, %v4847_v19  ;;  %v3005_v5 = vsel %vm2392_vm8, %v6639_v0, 0.0 }
 0x134   : > { %v3009_v43 = vsel %vm2396_vm9, %v6639_v0, 0.0  ;;  %vm574_vm10 = vcmp.eq.s32.totalorder %v8675_v21, %v6687_v63  ;;  %v3618_v23 = vsel %vm1784_vm6, %v6642_v2, %v3005_v5  ;;  %vm1178_vm11 = vcmp.eq.s32.totalorder %v8529_v4, %v6690_v52 }
 0x135   : > { %v3622_v3 = vsel %vm1788_vm7, %v6642_v2, %v3009_v43  ;;  %vm1182_vm13 = vcmp.eq.s32.totalorder %v8675_v21, %v6690_v52  ;;  %5838 = vmatprep.subr.bf16.mxu1 %v5376_v42  ;;  %v4231_v31 = vsel %vm1176_vm4, %v6661_v20, %v3618_v23  ;;  %vm1786_vm14 = vcmp.eq.s32.totalorder %v8529_v4, %v6701_v35 }
 0x136   : > { %v4235_v45 = vsel %vm1180_vm5, %v6661_v20, %v3622_v3  ;;  %vm1790_vm15 = vcmp.eq.s32.totalorder %v8675_v21, %v6701_v35  ;;  %v4844_v47 = vsel %vm568_vm2, %v6664_v29, %v4231_v31  ;;  %vm2394_vm0 = vcmp.eq.s32.totalorder %v8529_v4, %v6704_v56 }
 0x137   : > { %v4848_v17 = vsel %vm572_vm3, %v6664_v29, %v4235_v45  ;;  %vm2398_vm1 = vcmp.eq.s32.totalorder %v8675_v21, %v6704_v56  ;;  %v3007_v26 = vsel %vm2394_vm0, %v6737_v59, 0.0  ;;  %v8828_v49 = vadd.s32 240, %v6309_v1 }
 0x138   : > { %v5373_v50 = vpack.c.bf16 %v4848_v17, %v4844_v47  ;;  %v3011_v24 = vsel %vm2398_vm1, %v6737_v59, 0.0  ;;  %v3620_v27 = vsel %vm1786_vm14, %v6740_v54, %v3007_v26  ;;  %v8833_v25 = vadd.s32 248, %v6309_v1 }
 0x139   : > { %v3624_v18 = vsel %vm1790_vm15, %v6740_v54, %v3011_v24  ;;  %v5309_v51 = vpack.c.bf16 %v206_v46, %v206_v46  ;;  %v4233_v55 = vsel %vm1178_vm11, %v6743_v53, %v3620_v27  ;;  %vm577_vm2 = vcmp.eq.s32.totalorder %v8828_v49, %v6439_v12 }
 0x13a   : > { %5634 = vmatpush1.bf16.msra.mxu0 %v5373_v50  ;;  %v4237_v15 = vsel %vm1182_vm13, %v6743_v53, %v3624_v18  ;;  %vm1185_vm3 = vcmp.eq.s32.totalorder %v8828_v49, %v6465_v8  ;;  %v4846_v16 = vsel %vm570_vm12, %v6748_v14, %v4233_v55  ;;  %vm581_vm4 = vcmp.eq.s32.totalorder %v8833_v25, %v6439_v12 }
 0x13b   : > { %v4850_v48 = vsel %vm574_vm10, %v6748_v14, %v4237_v15  ;;  %vm1189_vm5 = vcmp.eq.s32.totalorder %v8833_v25, %v6465_v8  ;;  %5637 = vmatprep.mubr.bf16.mxu0 %v5309_v51  ;;  %vm1793_vm6 = vcmp.eq.s32.totalorder %v8828_v49, %v6487_v38  ;;  %vm1797_vm7 = vcmp.eq.s32.totalorder %v8833_v25, %v6487_v38  ;;  %v205_v15 = vld [vmem:[%s8788_s26] sm:$0xff] }
 0x13c   : > { %v5375_v11 = vpack.c.bf16 %v4850_v48, %v4846_v16  ;;  %vm2401_vm8 = vcmp.eq.s32.totalorder %v8828_v49, %v6508_v6  ;;  %5842 = vmatprep.mubr.bf16.mxu1 %v5309_v51  ;;  %vm2405_vm9 = vcmp.eq.s32.totalorder %v8833_v25, %v6508_v6  ;;  %vm579_vm12 = vcmp.eq.s32.totalorder %v8828_v49, %v6480_v36 }
 0x13d   : > { %v3014_v4 = vsel %vm2401_vm8, %v6492_v40, 0.0  ;;  %vm583_vm10 = vcmp.eq.s32.totalorder %v8833_v25, %v6480_v36  ;;  %v3018_v21 = vsel %vm2405_vm9, %v6492_v40, 0.0  ;;  %vm1187_vm11 = vcmp.eq.s32.totalorder %v8828_v49, %v6499_v41 }
 0x13e   : > { %5839 = vmatpush1.bf16.msra.mxu1 %v5375_v11  ;;  %v3627_v13 = vsel %vm1793_vm6, %v6455_v28, %v3014_v4  ;;  %vm1191_vm13 = vcmp.eq.s32.totalorder %v8833_v25, %v6499_v41  ;;  %v3631_v7 = vsel %vm1797_vm7, %v6455_v28, %v3018_v21  ;;  %vm1795_vm14 = vcmp.eq.s32.totalorder %v8828_v49, %v6521_v44 }
 0x13f   : > { %v4240_v32 = vsel %vm1185_vm3, %v6470_v33, %v3627_v13  ;;  %vm1799_vm15 = vcmp.eq.s32.totalorder %v8833_v25, %v6521_v44  ;;  %v4244_v19 = vsel %vm1189_vm5, %v6470_v33, %v3631_v7  ;;  %vm2403_vm0 = vcmp.eq.s32.totalorder %v8828_v49, %v6530_v9 }
 0x140   : > { %v4853_v22 = vsel %vm577_vm2, %v6473_v34, %v4240_v32  ;;  %vm2407_vm1 = vcmp.eq.s32.totalorder %v8833_v25, %v6530_v9  ;;  %v4857_v42 = vsel %vm581_vm4, %v6473_v34, %v4244_v19  ;;  %v3016_v5 = vsel %vm2403_vm0, %v6561_v57, 0.0 }
 0x141   : > { %v3020_v43 = vsel %vm2407_vm1, %v6561_v57, 0.0  ;;  %vm576_vm3 = vcmp.eq.s32.totalorder %v8828_v49, %v6597_v39  ;;  %v5378_v23 = vpack.c.bf16 %v4857_v42, %v4853_v22  ;;  %v3629_v3 = vsel %vm1795_vm14, %v6564_v58, %v3016_v5 }
 0x142   : > { %v3633_v31 = vsel %vm1799_vm15, %v6564_v58, %v3020_v43  ;;  %vm580_vm2 = vcmp.eq.s32.totalorder %v8833_v25, %v6597_v39  ;;  %v4242_v45 = vsel %vm1187_vm11, %v6591_v10, %v3629_v3  ;;  %vm1184_vm4 = vcmp.eq.s32.totalorder %v8828_v49, %v6630_v60 }
 0x143   : > { %v4246_v46 = vsel %vm1191_vm13, %v6591_v10, %v3633_v31  ;;  %vm1188_vm5 = vcmp.eq.s32.totalorder %v8833_v25, %v6630_v60  ;;  %5635 = vmatprep.subr.bf16.mxu0 %v5378_v23  ;;  %v4855_v47 = vsel %vm579_vm12, %v6594_v37, %v4242_v45  ;;  %vm1792_vm6 = vcmp.eq.s32.totalorder %v8828_v49, %v6633_v61 }
 0x144   : > { %v4859_v17 = vsel %vm583_vm10, %v6594_v37, %v4246_v46  ;;  %vm1796_vm7 = vcmp.eq.s32.totalorder %v8833_v25, %v6633_v61  ;;  %vm2400_vm8 = vcmp.eq.s32.totalorder %v8828_v49, %v6636_v62  ;;  %vm2404_vm9 = vcmp.eq.s32.totalorder %v8833_v25, %v6636_v62 }
 0x145   : > { %v5380_v50 = vpack.c.bf16 %v4859_v17, %v4855_v47  ;;  %vm578_vm12 = vcmp.eq.s32.totalorder %v8828_v49, %v6687_v63  ;;  %v3013_v26 = vsel %vm2400_vm8, %v6639_v0, 0.0  ;;  %v3017_v24 = vsel %vm2404_vm9, %v6639_v0, 0.0 }
 0x146   : > { %vm582_vm10 = vcmp.eq.s32.totalorder %v8833_v25, %v6687_v63  ;;  %vm1186_vm11 = vcmp.eq.s32.totalorder %v8828_v49, %v6690_v52  ;;  %v3626_v27 = vsel %vm1792_vm6, %v6642_v2, %v3013_v26  ;;  %v3630_v18 = vsel %vm1796_vm7, %v6642_v2, %v3017_v24 }
 0x147   : > { %5840 = vmatprep.subr.bf16.mxu1 %v5380_v50  ;;  %vm1190_vm13 = vcmp.eq.s32.totalorder %v8833_v25, %v6690_v52  ;;  %vm1794_vm14 = vcmp.eq.s32.totalorder %v8828_v49, %v6701_v35  ;;  %v4239_v51 = vsel %vm1184_vm4, %v6661_v20, %v3626_v27  ;;  %v4243_v55 = vsel %vm1188_vm5, %v6661_v20, %v3630_v18 }
 0x148   : > { %vm1798_vm15 = vcmp.eq.s32.totalorder %v8833_v25, %v6701_v35  ;;  %vm2402_vm0 = vcmp.eq.s32.totalorder %v8828_v49, %v6704_v56  ;;  %v4852_v16 = vsel %vm576_vm3, %v6664_v29, %v4239_v51  ;;  %v4856_v48 = vsel %vm580_vm2, %v6664_v29, %v4243_v55 }
 0x149   : > { %vm2406_vm1 = vcmp.eq.s32.totalorder %v8833_v25, %v6704_v56  ;;  %v3015_v11 = vsel %vm2402_vm0, %v6737_v59, 0.0  ;;  %v5377_v4 = vpack.c.bf16 %v4856_v48, %v4852_v16  ;;  %v8980_v7 = vadd.s32 256, %v6309_v1 }
 0x14a   : > { %v3019_v21 = vsel %vm2406_vm1, %v6737_v59, 0.0  ;;  %v3628_v13 = vsel %vm1794_vm14, %v6740_v54, %v3015_v11  ;;  %v8988_v22 = vadd.s32 264, %v6309_v1  ;;  %v5308_v42 = vpack.c.bf16 %v205_v15, %v205_v15 }
 0x14b   : > { %v3632_v32 = vsel %vm1798_vm15, %v6740_v54, %v3019_v21  ;;  %v4241_v19 = vsel %vm1186_vm11, %v6743_v53, %v3628_v13  ;;  %5636 = vmatpush1.bf16.msra.mxu0 %v5377_v4  ;;  %vm585_vm3 = vcmp.eq.s32.totalorder %v8980_v7, %v6439_v12  ;;  %vm1193_vm2 = vcmp.eq.s32.totalorder %v8980_v7, %v6465_v8 }
 0x14c   : > { %v4245_v5 = vsel %vm1190_vm13, %v6743_v53, %v3632_v32  ;;  %v4854_v43 = vsel %vm578_vm12, %v6748_v14, %v4241_v19  ;;  %vm589_vm4 = vcmp.eq.s32.totalorder %v8988_v22, %v6439_v12  ;;  %vm1197_vm5 = vcmp.eq.s32.totalorder %v8988_v22, %v6465_v8 }
 0x14d   : > { %v4858_v23 = vsel %vm582_vm10, %v6748_v14, %v4245_v5  ;;  %vm1801_vm6 = vcmp.eq.s32.totalorder %v8980_v7, %v6487_v38  ;;  %vm1805_vm7 = vcmp.eq.s32.totalorder %v8988_v22, %v6487_v38  ;;  %vm2409_vm8 = vcmp.eq.s32.totalorder %v8980_v7, %v6508_v6 }
 0x14e   : > { %v5379_v49 = vpack.c.bf16 %v4858_v23, %v4854_v43  ;;  %vm2413_vm9 = vcmp.eq.s32.totalorder %v8988_v22, %v6508_v6  ;;  %v3022_v25 = vsel %vm2409_vm8, %v6492_v40, 0.0  ;;  %vm587_vm12 = vcmp.eq.s32.totalorder %v8980_v7, %v6480_v36  ;;  %5638 = vmatmul.mubr.bf16.vlgmr.msra.gmra.mrb[0].mxu0 %v5308_v42 }
 0x14f   : > { %v3026_v3 = vsel %vm2413_vm9, %v6492_v40, 0.0  ;;  %vm591_vm10 = vcmp.eq.s32.totalorder %v8988_v22, %v6480_v36  ;;  %v3635_v31 = vsel %vm1801_vm6, %v6455_v28, %v3022_v25  ;;  %vm1195_vm11 = vcmp.eq.s32.totalorder %v8980_v7, %v6499_v41 }
 0x150   : > { %5841 = vmatpush1.bf16.msra.mxu1 %v5379_v49  ;;  %v3639_v45 = vsel %vm1805_vm7, %v6455_v28, %v3026_v3  ;;  %vm1199_vm13 = vcmp.eq.s32.totalorder %v8988_v22, %v6499_v41  ;;  %v4248_v46 = vsel %vm1193_vm2, %v6470_v33, %v3635_v31  ;;  %vm1803_vm14 = vcmp.eq.s32.totalorder %v8980_v7, %v6521_v44 }
 0x151   : > { %v4252_v47 = vsel %vm1197_vm5, %v6470_v33, %v3639_v45  ;;  %vm1807_vm15 = vcmp.eq.s32.totalorder %v8988_v22, %v6521_v44  ;;  %v4861_v17 = vsel %vm585_vm3, %v6473_v34, %v4248_v46  ;;  %vm2411_vm0 = vcmp.eq.s32.totalorder %v8980_v7, %v6530_v9 }
 0x152   : > { %v4865_v50 = vsel %vm589_vm4, %v6473_v34, %v4252_v47  ;;  %vm2415_vm1 = vcmp.eq.s32.totalorder %v8988_v22, %v6530_v9  ;;  %v3024_v24 = vsel %vm2411_vm0, %v6561_v57, 0.0  ;;  %vm584_vm2 = vcmp.eq.s32.totalorder %v8980_v7, %v6597_v39 }
 0x153   : > { %v5382_v26 = vpack.c.bf16 %v4865_v50, %v4861_v17  ;;  %v3028_v27 = vsel %vm2415_vm1, %v6561_v57, 0.0  ;;  %5843 = vmatmul.mubr.bf16.vlgmr.msra.gmra.mrb[0].mxu1 %v5308_v42  ;;  %v3637_v18 = vsel %vm1803_vm14, %v6564_v58, %v3024_v24  ;;  %vm588_vm3 = vcmp.eq.s32.totalorder %v8988_v22, %v6597_v39 }
 0x154   : > { %v3641_v51 = vsel %vm1807_vm15, %v6564_v58, %v3028_v27  ;;  %vm1192_vm4 = vcmp.eq.s32.totalorder %v8980_v7, %v6630_v60  ;;  %v4250_v55 = vsel %vm1195_vm11, %v6591_v10, %v3637_v18  ;;  %vm1196_vm5 = vcmp.eq.s32.totalorder %v8988_v22, %v6630_v60 }
 0x155   : > { %5646 = vmatprep.subr.bf16.mxu0 %v5382_v26  ;;  %v4254_v15 = vsel %vm1199_vm13, %v6591_v10, %v3641_v51  ;;  %vm1800_vm6 = vcmp.eq.s32.totalorder %v8980_v7, %v6633_v61  ;;  %v4863_v16 = vsel %vm587_vm12, %v6594_v37, %v4250_v55  ;;  %vm1804_vm7 = vcmp.eq.s32.totalorder %v8988_v22, %v6633_v61 }
 0x156   : > { %v4867_v48 = vsel %vm591_vm10, %v6594_v37, %v4254_v15  ;;  %vm2408_vm8 = vcmp.eq.s32.totalorder %v8980_v7, %v6636_v62  ;;  %vm2412_vm9 = vcmp.eq.s32.totalorder %v8988_v22, %v6636_v62  ;;  %vm586_vm12 = vcmp.eq.s32.totalorder %v8980_v7, %v6687_v63 }
 0x157   : > { %v5384_v11 = vpack.c.bf16 %v4867_v48, %v4863_v16  ;;  %v3021_v4 = vsel %vm2408_vm8, %v6639_v0, 0.0  ;;  %v3025_v21 = vsel %vm2412_vm9, %v6639_v0, 0.0  ;;  %vm590_vm10 = vcmp.eq.s32.totalorder %v8988_v22, %v6687_v63 }
 0x158   : > { %v3634_v13 = vsel %vm1800_vm6, %v6642_v2, %v3021_v4  ;;  %vm1194_vm11 = vcmp.eq.s32.totalorder %v8980_v7, %v6690_v52  ;;  %v3638_v32 = vsel %vm1804_vm7, %v6642_v2, %v3025_v21  ;;  %vm1198_vm13 = vcmp.eq.s32.totalorder %v8988_v22, %v6690_v52 }
 0x159   : > { %5851 = vmatprep.subr.bf16.mxu1 %v5384_v11  ;;  %v4247_v19 = vsel %vm1192_vm4, %v6661_v20, %v3634_v13  ;;  %vm1802_vm14 = vcmp.eq.s32.totalorder %v8980_v7, %v6701_v35  ;;  %v4251_v42 = vsel %vm1196_vm5, %v6661_v20, %v3638_v32  ;;  %vm1806_vm15 = vcmp.eq.s32.totalorder %v8988_v22, %v6701_v35 }
 0x15a   : > { %v4860_v5 = vsel %vm584_vm2, %v6664_v29, %v4247_v19  ;;  %vm2410_vm0 = vcmp.eq.s32.totalorder %v8980_v7, %v6704_v56  ;;  %v4864_v43 = vsel %vm588_vm3, %v6664_v29, %v4251_v42  ;;  %vm2414_vm1 = vcmp.eq.s32.totalorder %v8988_v22, %v6704_v56 }
 0x15b   : > { %v3023_v23 = vsel %vm2410_vm0, %v6737_v59, 0.0  ;;  %v9128_v49 = vadd.s32 272, %v6309_v1  ;;  %v5381_v25 = vpack.c.bf16 %v4864_v43, %v4860_v5  ;;  %v3027_v3 = vsel %vm2414_vm1, %v6737_v59, 0.0 }
 0x15c   : > { %v3636_v31 = vsel %vm1802_vm14, %v6740_v54, %v3023_v23  ;;  %v9133_v45 = vadd.s32 280, %v6309_v1  ;;  %v3640_v46 = vsel %vm1806_vm15, %v6740_v54, %v3027_v3 }
 0x15d   : > { %v4249_v47 = vsel %vm1194_vm11, %v6743_v53, %v3636_v31  ;;  %vm593_vm2 = vcmp.eq.s32.totalorder %v9128_v49, %v6439_v12  ;;  %vm1201_vm3 = vcmp.eq.s32.totalorder %v9128_v49, %v6465_v8  ;;  %5647 = vmatpush1.bf16.msra.mxu0 %v5381_v25  ;;  %v4253_v17 = vsel %vm1198_vm13, %v6743_v53, %v3640_v46 }
 0x15e   : > { %v4862_v50 = vsel %vm586_vm12, %v6748_v14, %v4249_v47  ;;  %vm597_vm4 = vcmp.eq.s32.totalorder %v9133_v45, %v6439_v12  ;;  %vm1205_vm5 = vcmp.eq.s32.totalorder %v9133_v45, %v6465_v8  ;;  %v4866_v26 = vsel %vm590_vm10, %v6748_v14, %v4253_v17 }
 0x15f   : > { %vm1809_vm6 = vcmp.eq.s32.totalorder %v9128_v49, %v6487_v38  ;;  %vm1813_vm7 = vcmp.eq.s32.totalorder %v9133_v45, %v6487_v38  ;;  %vm2417_vm8 = vcmp.eq.s32.totalorder %v9128_v49, %v6508_v6  ;;  %v5383_v7 = vpack.c.bf16 %v4866_v26, %v4862_v50 }
 0x160   : > { %vm2421_vm9 = vcmp.eq.s32.totalorder %v9133_v45, %v6508_v6  ;;  %v3030_v24 = vsel %vm2417_vm8, %v6492_v40, 0.0  ;;  %vm595_vm12 = vcmp.eq.s32.totalorder %v9128_v49, %v6480_v36  ;;  %vm599_vm10 = vcmp.eq.s32.totalorder %v9133_v45, %v6480_v36 }
 0x161   : > { %v3034_v22 = vsel %vm2421_vm9, %v6492_v40, 0.0  ;;  %v3643_v27 = vsel %vm1809_vm6, %v6455_v28, %v3030_v24  ;;  %vm1203_vm11 = vcmp.eq.s32.totalorder %v9128_v49, %v6499_v41  ;;  %5852 = vmatpush1.bf16.msra.mxu1 %v5383_v7  ;;  %vm1207_vm13 = vcmp.eq.s32.totalorder %v9133_v45, %v6499_v41 }
 0x162   : > { %v3647_v18 = vsel %vm1813_vm7, %v6455_v28, %v3034_v22  ;;  %v4256_v51 = vsel %vm1201_vm3, %v6470_v33, %v3643_v27  ;;  %vm1811_vm14 = vcmp.eq.s32.totalorder %v9128_v49, %v6521_v44  ;;  %vm1815_vm15 = vcmp.eq.s32.totalorder %v9133_v45, %v6521_v44 }
 0x163   : > { %v4260_v55 = vsel %vm1205_vm5, %v6470_v33, %v3647_v18  ;;  %v4869_v15 = vsel %vm593_vm2, %v6473_v34, %v4256_v51  ;;  %vm2419_vm0 = vcmp.eq.s32.totalorder %v9128_v49, %v6530_v9  ;;  %vm2423_vm1 = vcmp.eq.s32.totalorder %v9133_v45, %v6530_v9 }
 0x164   : > { %v4873_v16 = vsel %vm597_vm4, %v6473_v34, %v4260_v55  ;;  %v3032_v48 = vsel %vm2419_vm0, %v6561_v57, 0.0  ;;  %vm592_vm3 = vcmp.eq.s32.totalorder %v9128_v49, %v6597_v39  ;;  %v3036_v4 = vsel %vm2423_vm1, %v6561_v57, 0.0 }
 0x165   : > { %v5386_v11 = vpack.c.bf16 %v4873_v16, %v4869_v15  ;;  %v3645_v21 = vsel %vm1811_vm14, %v6564_v58, %v3032_v48  ;;  %vm596_vm2 = vcmp.eq.s32.totalorder %v9133_v45, %v6597_v39  ;;  %v3649_v13 = vsel %vm1815_vm15, %v6564_v58, %v3036_v4 }
 0x166   : > { %v4258_v32 = vsel %vm1203_vm11, %v6591_v10, %v3645_v21  ;;  %vm1200_vm4 = vcmp.eq.s32.totalorder %v9128_v49, %v6630_v60  ;;  %vm1204_vm5 = vcmp.eq.s32.totalorder %v9133_v45, %v6630_v60  ;;  %v4262_v19 = vsel %vm1207_vm13, %v6591_v10, %v3649_v13 }
 0x167   : > { %5648 = vmatprep.subr.bf16.mxu0 %v5386_v11  ;;  %v4871_v42 = vsel %vm595_vm12, %v6594_v37, %v4258_v32  ;;  %vm1808_vm6 = vcmp.eq.s32.totalorder %v9128_v49, %v6633_v61  ;;  %vm1812_vm7 = vcmp.eq.s32.totalorder %v9133_v45, %v6633_v61  ;;  %v4875_v5 = vsel %vm599_vm10, %v6594_v37, %v4262_v19 }
 0x168   : > { %vm2416_vm8 = vcmp.eq.s32.totalorder %v9128_v49, %v6636_v62  ;;  %vm2420_vm9 = vcmp.eq.s32.totalorder %v9133_v45, %v6636_v62  ;;  %vm594_vm12 = vcmp.eq.s32.totalorder %v9128_v49, %v6687_v63  ;;  %v5388_v43 = vpack.c.bf16 %v4875_v5, %v4871_v42 }
 0x169   : > { %v3029_v23 = vsel %vm2416_vm8, %v6639_v0, 0.0  ;;  %v3033_v25 = vsel %vm2420_vm9, %v6639_v0, 0.0  ;;  %vm598_vm11 = vcmp.eq.s32.totalorder %v9133_v45, %v6687_v63  ;;  %vm1202_vm10 = vcmp.eq.s32.totalorder %v9128_v49, %v6690_v52 }
 0x16a   : > { %v3642_v3 = vsel %vm1808_vm6, %v6642_v2, %v3029_v23  ;;  %v3646_v31 = vsel %vm1812_vm7, %v6642_v2, %v3033_v25  ;;  %vm1206_vm13 = vcmp.eq.s32.totalorder %v9133_v45, %v6690_v52  ;;  %5853 = vmatprep.subr.bf16.mxu1 %v5388_v43  ;;  %vm1810_vm14 = vcmp.eq.s32.totalorder %v9128_v49, %v6701_v35 }
 0x16b   : > { %v4255_v46 = vsel %vm1200_vm4, %v6661_v20, %v3642_v3  ;;  %v4259_v47 = vsel %vm1204_vm5, %v6661_v20, %v3646_v31  ;;  %vm1814_vm15 = vcmp.eq.s32.totalorder %v9133_v45, %v6701_v35  ;;  %vm2418_vm0 = vcmp.eq.s32.totalorder %v9128_v49, %v6704_v56 }
 0x16c   : > { %v4868_v17 = vsel %vm592_vm3, %v6664_v29, %v4255_v46  ;;  %v4872_v50 = vsel %vm596_vm2, %v6664_v29, %v4259_v47  ;;  %vm2422_vm1 = vcmp.eq.s32.totalorder %v9133_v45, %v6704_v56  ;;  %v3031_v7 = vsel %vm2418_vm0, %v6737_v59, 0.0 }
 0x16d   : > { %v5385_v26 = vpack.c.bf16 %v4872_v50, %v4868_v17  ;;  %v3035_v24 = vsel %vm2422_vm1, %v6737_v59, 0.0  ;;  %v9279_v22 = vadd.s32 288, %v6309_v1  ;;  %v3644_v27 = vsel %vm1810_vm14, %v6740_v54, %v3031_v7 }
 0x16e   : > { %v3648_v18 = vsel %vm1814_vm15, %v6740_v54, %v3035_v24  ;;  %v9284_v51 = vadd.s32 296, %v6309_v1  ;;  %v9287_v55 = vadd.s32 304, %v6309_v1  ;;  %v4257_v15 = vsel %vm1202_vm10, %v6743_v53, %v3644_v27 }
 0x16f   : > { %5649 = vmatpush1.bf16.msra.mxu0 %v5385_v26  ;;  %v4261_v16 = vsel %vm1206_vm13, %v6743_v53, %v3648_v18  ;;  %vm601_vm3 = vcmp.eq.s32.totalorder %v9279_v22, %v6439_v12  ;;  %vm1209_vm2 = vcmp.eq.s32.totalorder %v9279_v22, %v6465_v8  ;;  %v4870_v48 = vsel %vm594_vm12, %v6748_v14, %v4257_v15 }
 0x170   : > { %v4874_v11 = vsel %vm598_vm11, %v6748_v14, %v4261_v16  ;;  %vm605_vm4 = vcmp.eq.s32.totalorder %v9284_v51, %v6439_v12  ;;  %vm1213_vm5 = vcmp.eq.s32.totalorder %v9284_v51, %v6465_v8  ;;  %vm1817_vm6 = vcmp.eq.s32.totalorder %v9279_v22, %v6487_v38 }
 0x171   : > { %v5387_v4 = vpack.c.bf16 %v4874_v11, %v4870_v48  ;;  %vm1821_vm7 = vcmp.eq.s32.totalorder %v9284_v51, %v6487_v38  ;;  %vm2425_vm8 = vcmp.eq.s32.totalorder %v9279_v22, %v6508_v6  ;;  %vm2429_vm9 = vcmp.eq.s32.totalorder %v9284_v51, %v6508_v6 }
 0x172   : > { %v3038_v49 = vsel %vm2425_vm8, %v6492_v40, 0.0  ;;  %vm603_vm12 = vcmp.eq.s32.totalorder %v9279_v22, %v6480_v36  ;;  %vm607_vm11 = vcmp.eq.s32.totalorder %v9284_v51, %v6480_v36  ;;  %v3042_v45 = vsel %vm2429_vm9, %v6492_v40, 0.0 }
 0x173   : > { %5854 = vmatpush1.bf16.msra.mxu1 %v5387_v4  ;;  %v3651_v21 = vsel %vm1817_vm6, %v6455_v28, %v3038_v49  ;;  %vm1211_vm10 = vcmp.eq.s32.totalorder %v9279_v22, %v6499_v41  ;;  %vm1215_vm13 = vcmp.eq.s32.totalorder %v9284_v51, %v6499_v41  ;;  %v3655_v13 = vsel %vm1821_vm7, %v6455_v28, %v3042_v45 }
 0x174   : > { %v4264_v32 = vsel %vm1209_vm2, %v6470_v33, %v3651_v21  ;;  %vm1819_vm14 = vcmp.eq.s32.totalorder %v9279_v22, %v6521_v44  ;;  %vm1823_vm15 = vcmp.eq.s32.totalorder %v9284_v51, %v6521_v44  ;;  %v4268_v19 = vsel %vm1213_vm5, %v6470_v33, %v3655_v13 }
 0x175   : > { %v4877_v42 = vsel %vm601_vm3, %v6473_v34, %v4264_v32  ;;  %vm2427_vm0 = vcmp.eq.s32.totalorder %v9279_v22, %v6530_v9  ;;  %vm2431_vm1 = vcmp.eq.s32.totalorder %v9284_v51, %v6530_v9  ;;  %v4881_v5 = vsel %vm605_vm4, %v6473_v34, %v4268_v19 }
 0x176   : > { %v3040_v43 = vsel %vm2427_vm0, %v6561_v57, 0.0  ;;  %v3044_v23 = vsel %vm2431_vm1, %v6561_v57, 0.0  ;;  %vm600_vm2 = vcmp.eq.s32.totalorder %v9279_v22, %v6597_v39  ;;  %v5390_v25 = vpack.c.bf16 %v4881_v5, %v4877_v42 }
 0x177   : > { %v3653_v3 = vsel %vm1819_vm14, %v6564_v58, %v3040_v43  ;;  %v3657_v31 = vsel %vm1823_vm15, %v6564_v58, %v3044_v23  ;;  %vm604_vm3 = vcmp.eq.s32.totalorder %v9284_v51, %v6597_v39  ;;  %vm1208_vm4 = vcmp.eq.s32.totalorder %v9279_v22, %v6630_v60 }
 0x178   : > { %v4266_v46 = vsel %vm1211_vm10, %v6591_v10, %v3653_v3  ;;  %v4270_v47 = vsel %vm1215_vm13, %v6591_v10, %v3657_v31  ;;  %vm1212_vm5 = vcmp.eq.s32.totalorder %v9284_v51, %v6630_v60  ;;  %5650 = vmatprep.subr.bf16.mxu0 %v5390_v25  ;;  %vm1816_vm6 = vcmp.eq.s32.totalorder %v9279_v22, %v6633_v61 }
 0x179   : > { %v4879_v17 = vsel %vm603_vm12, %v6594_v37, %v4266_v46  ;;  %v4883_v50 = vsel %vm607_vm11, %v6594_v37, %v4270_v47  ;;  %vm1820_vm7 = vcmp.eq.s32.totalorder %v9284_v51, %v6633_v61  ;;  %vm2424_vm8 = vcmp.eq.s32.totalorder %v9279_v22, %v6636_v62 }
 0x17a   : > { %v5392_v26 = vpack.c.bf16 %v4883_v50, %v4879_v17  ;;  %vm2428_vm9 = vcmp.eq.s32.totalorder %v9284_v51, %v6636_v62  ;;  %vm602_vm12 = vcmp.eq.s32.totalorder %v9279_v22, %v6687_v63  ;;  %v3037_v7 = vsel %vm2424_vm8, %v6639_v0, 0.0 }
 0x17b   : > { %v3041_v24 = vsel %vm2428_vm9, %v6639_v0, 0.0  ;;  %vm606_vm11 = vcmp.eq.s32.totalorder %v9284_v51, %v6687_v63  ;;  %vm1210_vm10 = vcmp.eq.s32.totalorder %v9279_v22, %v6690_v52  ;;  %v3650_v27 = vsel %vm1816_vm6, %v6642_v2, %v3037_v7 }
 0x17c   : > { %5855 = vmatprep.subr.bf16.mxu1 %v5392_v26  ;;  %v3654_v18 = vsel %vm1820_vm7, %v6642_v2, %v3041_v24  ;;  %vm1214_vm13 = vcmp.eq.s32.totalorder %v9284_v51, %v6690_v52  ;;  %vm1818_vm14 = vcmp.eq.s32.totalorder %v9279_v22, %v6701_v35  ;;  %v4263_v15 = vsel %vm1208_vm4, %v6661_v20, %v3650_v27 }
 0x17d   : > { %v4267_v16 = vsel %vm1212_vm5, %v6661_v20, %v3654_v18  ;;  %vm1822_vm15 = vcmp.eq.s32.totalorder %v9284_v51, %v6701_v35  ;;  %vm2426_vm0 = vcmp.eq.s32.totalorder %v9279_v22, %v6704_v56  ;;  %v4876_v48 = vsel %vm600_vm2, %v6664_v29, %v4263_v15 }
 0x17e   : > { %v4880_v11 = vsel %vm604_vm3, %v6664_v29, %v4267_v16  ;;  %vm2430_vm1 = vcmp.eq.s32.totalorder %v9284_v51, %v6704_v56  ;;  %v3039_v4 = vsel %vm2426_vm0, %v6737_v59, 0.0  ;;  %v9433_v13 = vadd.s32 312, %v6309_v1 }
 0x17f   : > { %v5389_v49 = vpack.c.bf16 %v4880_v11, %v4876_v48  ;;  %v3043_v45 = vsel %vm2430_vm1, %v6737_v59, 0.0  ;;  %v3652_v21 = vsel %vm1818_vm14, %v6740_v54, %v3039_v4  ;;  %vm609_vm2 = vcmp.eq.s32.totalorder %v9287_v55, %v6439_v12 }
 0x180   : > { %v3656_v32 = vsel %vm1822_vm15, %v6740_v54, %v3043_v45  ;;  %v4265_v19 = vsel %vm1210_vm10, %v6743_v53, %v3652_v21  ;;  %vm1217_vm3 = vcmp.eq.s32.totalorder %v9287_v55, %v6465_v8  ;;  %vm613_vm4 = vcmp.eq.s32.totalorder %v9433_v13, %v6439_v12 }
 0x181   : > { %5651 = vmatpush1.bf16.msra.mxu0 %v5389_v49  ;;  %v4269_v42 = vsel %vm1214_vm13, %v6743_v53, %v3656_v32  ;;  %v4878_v5 = vsel %vm602_vm12, %v6748_v14, %v4265_v19  ;;  %vm1221_vm5 = vcmp.eq.s32.totalorder %v9433_v13, %v6465_v8  ;;  %vm1825_vm6 = vcmp.eq.s32.totalorder %v9287_v55, %v6487_v38 }
 0x182   : > { %v4882_v43 = vsel %vm606_vm11, %v6748_v14, %v4269_v42  ;;  %vm1829_vm7 = vcmp.eq.s32.totalorder %v9433_v13, %v6487_v38  ;;  %vm2433_vm8 = vcmp.eq.s32.totalorder %v9287_v55, %v6508_v6  ;;  %vm2437_vm9 = vcmp.eq.s32.totalorder %v9433_v13, %v6508_v6 }
 0x183   : > { %v5391_v22 = vpack.c.bf16 %v4882_v43, %v4878_v5  ;;  %v3046_v23 = vsel %vm2433_vm8, %v6492_v40, 0.0  ;;  %vm611_vm12 = vcmp.eq.s32.totalorder %v9287_v55, %v6480_v36  ;;  %v3050_v51 = vsel %vm2437_vm9, %v6492_v40, 0.0 }
 0x184   : > { %v3659_v25 = vsel %vm1825_vm6, %v6455_v28, %v3046_v23  ;;  %vm615_vm11 = vcmp.eq.s32.totalorder %v9433_v13, %v6480_v36  ;;  %vm1219_vm10 = vcmp.eq.s32.totalorder %v9287_v55, %v6499_v41  ;;  %v3663_v3 = vsel %vm1829_vm7, %v6455_v28, %v3050_v51 }
 0x185   : > { %5856 = vmatpush1.bf16.msra.mxu1 %v5391_v22  ;;  %v4272_v31 = vsel %vm1217_vm3, %v6470_v33, %v3659_v25  ;;  %vm1223_vm13 = vcmp.eq.s32.totalorder %v9433_v13, %v6499_v41  ;;  %vm1827_vm14 = vcmp.eq.s32.totalorder %v9287_v55, %v6521_v44  ;;  %v4276_v46 = vsel %vm1221_vm5, %v6470_v33, %v3663_v3 }
 0x186   : > { %v4885_v47 = vsel %vm609_vm2, %v6473_v34, %v4272_v31  ;;  %vm1831_vm15 = vcmp.eq.s32.totalorder %v9433_v13, %v6521_v44  ;;  %vm2435_vm0 = vcmp.eq.s32.totalorder %v9287_v55, %v6530_v9  ;;  %v4889_v17 = vsel %vm613_vm4, %v6473_v34, %v4276_v46 }
 0x187   : > { %vm2439_vm1 = vcmp.eq.s32.totalorder %v9433_v13, %v6530_v9  ;;  %v3048_v50 = vsel %vm2435_vm0, %v6561_v57, 0.0  ;;  %vm608_vm3 = vcmp.eq.s32.totalorder %v9287_v55, %v6597_v39  ;;  %v5394_v26 = vpack.c.bf16 %v4889_v17, %v4885_v47 }
 0x188   : > { %v3052_v7 = vsel %vm2439_vm1, %v6561_v57, 0.0  ;;  %v3661_v24 = vsel %vm1827_vm14, %v6564_v58, %v3048_v50  ;;  %vm612_vm2 = vcmp.eq.s32.totalorder %v9433_v13, %v6597_v39  ;;  %vm1216_vm4 = vcmp.eq.s32.totalorder %v9287_v55, %v6630_v60 }
 0x189   : > { %v3665_v27 = vsel %vm1831_vm15, %v6564_v58, %v3052_v7  ;;  %v4274_v18 = vsel %vm1219_vm10, %v6591_v10, %v3661_v24  ;;  %vm1220_vm5 = vcmp.eq.s32.totalorder %v9433_v13, %v6630_v60  ;;  %5652 = vmatprep.subr.bf16.mxu0 %v5394_v26  ;;  %vm1824_vm6 = vcmp.eq.s32.totalorder %v9287_v55, %v6633_v61 }
 0x18a   : > { %v4278_v15 = vsel %vm1223_vm13, %v6591_v10, %v3665_v27  ;;  %v4887_v16 = vsel %vm611_vm12, %v6594_v37, %v4274_v18  ;;  %vm1828_vm7 = vcmp.eq.s32.totalorder %v9433_v13, %v6633_v61  ;;  %vm2432_vm8 = vcmp.eq.s32.totalorder %v9287_v55, %v6636_v62 }
 0x18b   : > { %v4891_v48 = vsel %vm615_vm11, %v6594_v37, %v4278_v15  ;;  %vm2436_vm9 = vcmp.eq.s32.totalorder %v9433_v13, %v6636_v62  ;;  %vm610_vm12 = vcmp.eq.s32.totalorder %v9287_v55, %v6687_v63  ;;  %v3045_v4 = vsel %vm2432_vm8, %v6639_v0, 0.0 }
 0x18c   : > { %v5396_v11 = vpack.c.bf16 %v4891_v48, %v4887_v16  ;;  %v3049_v49 = vsel %vm2436_vm9, %v6639_v0, 0.0  ;;  %vm614_vm10 = vcmp.eq.s32.totalorder %v9433_v13, %v6687_v63  ;;  %v3658_v45 = vsel %vm1824_vm6, %v6642_v2, %v3045_v4 }
 0x18d   : > { %v3662_v21 = vsel %vm1828_vm7, %v6642_v2, %v3049_v49  ;;  %vm1218_vm11 = vcmp.eq.s32.totalorder %v9287_v55, %v6690_v52  ;;  %vm1222_vm13 = vcmp.eq.s32.totalorder %v9433_v13, %v6690_v52  ;;  %v4271_v32 = vsel %vm1216_vm4, %v6661_v20, %v3658_v45 }
 0x18e   : > { %5857 = vmatprep.subr.bf16.mxu1 %v5396_v11  ;;  %v4275_v19 = vsel %vm1220_vm5, %v6661_v20, %v3662_v21  ;;  %vm1826_vm14 = vcmp.eq.s32.totalorder %v9287_v55, %v6701_v35  ;;  %vm1830_vm15 = vcmp.eq.s32.totalorder %v9433_v13, %v6701_v35  ;;  %v4884_v42 = vsel %vm608_vm3, %v6664_v29, %v4271_v32 }
 0x18f   : > { %v4888_v5 = vsel %vm612_vm2, %v6664_v29, %v4275_v19  ;;  %vm2434_vm0 = vcmp.eq.s32.totalorder %v9287_v55, %v6704_v56  ;;  %vm2438_vm1 = vcmp.eq.s32.totalorder %v9433_v13, %v6704_v56  ;;  %v9579_v51 = vadd.s32 320, %v6309_v1 }
 0x190   : > { %v5393_v43 = vpack.c.bf16 %v4888_v5, %v4884_v42  ;;  %v3047_v22 = vsel %vm2434_vm0, %v6737_v59, 0.0  ;;  %v3051_v23 = vsel %vm2438_vm1, %v6737_v59, 0.0  ;;  %v9584_v31 = vadd.s32 328, %v6309_v1 }
 0x191   : > { %v3660_v25 = vsel %vm1826_vm14, %v6740_v54, %v3047_v22  ;;  %v3664_v3 = vsel %vm1830_vm15, %v6740_v54, %v3051_v23  ;;  %v9587_v46 = vadd.s32 336, %v6309_v1  ;;  %vm617_vm3 = vcmp.eq.s32.totalorder %v9579_v51, %v6439_v12 }
 0x192   : > { %5653 = vmatpush1.bf16.msra.mxu0 %v5393_v43  ;;  %v4273_v47 = vsel %vm1218_vm11, %v6743_v53, %v3660_v25  ;;  %v4277_v17 = vsel %vm1222_vm13, %v6743_v53, %v3664_v3  ;;  %vm1225_vm2 = vcmp.eq.s32.totalorder %v9579_v51, %v6465_v8  ;;  %vm621_vm4 = vcmp.eq.s32.totalorder %v9584_v31, %v6439_v12 }
 0x193   : > { %v4886_v50 = vsel %vm610_vm12, %v6748_v14, %v4273_v47  ;;  %v4890_v26 = vsel %vm614_vm10, %v6748_v14, %v4277_v17  ;;  %vm1229_vm5 = vcmp.eq.s32.totalorder %v9584_v31, %v6465_v8  ;;  %vm1833_vm6 = vcmp.eq.s32.totalorder %v9579_v51, %v6487_v38 }
 0x194   : > { %v5395_v7 = vpack.c.bf16 %v4890_v26, %v4886_v50  ;;  %vm1837_vm7 = vcmp.eq.s32.totalorder %v9584_v31, %v6487_v38  ;;  %vm2441_vm8 = vcmp.eq.s32.totalorder %v9579_v51, %v6508_v6  ;;  %vm2445_vm9 = vcmp.eq.s32.totalorder %v9584_v31, %v6508_v6 }
 0x195   : > { %v3054_v55 = vsel %vm2441_vm8, %v6492_v40, 0.0  ;;  %vm619_vm12 = vcmp.eq.s32.totalorder %v9579_v51, %v6480_v36  ;;  %vm623_vm10 = vcmp.eq.s32.totalorder %v9584_v31, %v6480_v36  ;;  %v3058_v13 = vsel %vm2445_vm9, %v6492_v40, 0.0 }
 0x196   : > { %5858 = vmatpush1.bf16.msra.mxu1 %v5395_v7  ;;  %v3667_v24 = vsel %vm1833_vm6, %v6455_v28, %v3054_v55  ;;  %vm1227_vm11 = vcmp.eq.s32.totalorder %v9579_v51, %v6499_v41  ;;  %vm1231_vm13 = vcmp.eq.s32.totalorder %v9584_v31, %v6499_v41  ;;  %v3671_v27 = vsel %vm1837_vm7, %v6455_v28, %v3058_v13 }
 0x197   : > { %v4280_v18 = vsel %vm1225_vm2, %v6470_v33, %v3667_v24  ;;  %vm1835_vm14 = vcmp.eq.s32.totalorder %v9579_v51, %v6521_v44  ;;  %vm1839_vm15 = vcmp.eq.s32.totalorder %v9584_v31, %v6521_v44  ;;  %v4284_v15 = vsel %vm1229_vm5, %v6470_v33, %v3671_v27 }
 0x198   : > { %v4893_v16 = vsel %vm617_vm3, %v6473_v34, %v4280_v18  ;;  %vm2443_vm0 = vcmp.eq.s32.totalorder %v9579_v51, %v6530_v9  ;;  %vm2447_vm1 = vcmp.eq.s32.totalorder %v9584_v31, %v6530_v9  ;;  %v4897_v48 = vsel %vm621_vm4, %v6473_v34, %v4284_v15 }
 0x199   : > { %v3056_v11 = vsel %vm2443_vm0, %v6561_v57, 0.0  ;;  %v3060_v4 = vsel %vm2447_vm1, %v6561_v57, 0.0  ;;  %vm616_vm2 = vcmp.eq.s32.totalorder %v9579_v51, %v6597_v39  ;;  %v5398_v49 = vpack.c.bf16 %v4897_v48, %v4893_v16 }
 0x19a   : > { %v3669_v45 = vsel %vm1835_vm14, %v6564_v58, %v3056_v11  ;;  %v3673_v21 = vsel %vm1839_vm15, %v6564_v58, %v3060_v4  ;;  %vm620_vm3 = vcmp.eq.s32.totalorder %v9584_v31, %v6597_v39  ;;  %vm1224_vm4 = vcmp.eq.s32.totalorder %v9579_v51, %v6630_v60 }
 0x19b   : > { %v4282_v32 = vsel %vm1227_vm11, %v6591_v10, %v3669_v45  ;;  %v4286_v19 = vsel %vm1231_vm13, %v6591_v10, %v3673_v21  ;;  %vm1228_vm5 = vcmp.eq.s32.totalorder %v9584_v31, %v6630_v60  ;;  %5654 = vmatprep.subr.bf16.mxu0 %v5398_v49  ;;  %vm1832_vm6 = vcmp.eq.s32.totalorder %v9579_v51, %v6633_v61 }
 0x19c   : > { %v4895_v42 = vsel %vm619_vm12, %v6594_v37, %v4282_v32  ;;  %v4899_v5 = vsel %vm623_vm10, %v6594_v37, %v4286_v19  ;;  %vm1836_vm7 = vcmp.eq.s32.totalorder %v9584_v31, %v6633_v61  ;;  %vm2440_vm8 = vcmp.eq.s32.totalorder %v9579_v51, %v6636_v62 }
 0x19d   : > { %v5400_v43 = vpack.c.bf16 %v4899_v5, %v4895_v42  ;;  %vm2444_vm9 = vcmp.eq.s32.totalorder %v9584_v31, %v6636_v62  ;;  %vm618_vm12 = vcmp.eq.s32.totalorder %v9579_v51, %v6687_v63  ;;  %v3053_v22 = vsel %vm2440_vm8, %v6639_v0, 0.0 }
 0x19e   : > { %v3057_v23 = vsel %vm2444_vm9, %v6639_v0, 0.0  ;;  %vm622_vm10 = vcmp.eq.s32.totalorder %v9584_v31, %v6687_v63  ;;  %vm1226_vm11 = vcmp.eq.s32.totalorder %v9579_v51, %v6690_v52  ;;  %v3666_v25 = vsel %vm1832_vm6, %v6642_v2, %v3053_v22 }
 0x19f   : > { %5859 = vmatprep.subr.bf16.mxu1 %v5400_v43  ;;  %v3670_v3 = vsel %vm1836_vm7, %v6642_v2, %v3057_v23  ;;  %vm1230_vm13 = vcmp.eq.s32.totalorder %v9584_v31, %v6690_v52  ;;  %vm1834_vm14 = vcmp.eq.s32.totalorder %v9579_v51, %v6701_v35  ;;  %v4279_v47 = vsel %vm1224_vm4, %v6661_v20, %v3666_v25 }
 0x1a0   : > { %v4283_v17 = vsel %vm1228_vm5, %v6661_v20, %v3670_v3  ;;  %vm1838_vm15 = vcmp.eq.s32.totalorder %v9584_v31, %v6701_v35  ;;  %vm2442_vm0 = vcmp.eq.s32.totalorder %v9579_v51, %v6704_v56  ;;  %v4892_v50 = vsel %vm616_vm2, %v6664_v29, %v4279_v47 }
 0x1a1   : > { %v4896_v26 = vsel %vm620_vm3, %v6664_v29, %v4283_v17  ;;  %vm2446_vm1 = vcmp.eq.s32.totalorder %v9584_v31, %v6704_v56  ;;  %v3055_v7 = vsel %vm2442_vm0, %v6737_v59, 0.0  ;;  %v9733_v27 = vadd.s32 344, %v6309_v1 }
 0x1a2   : > { %v5397_v55 = vpack.c.bf16 %v4896_v26, %v4892_v50  ;;  %v3059_v13 = vsel %vm2446_vm1, %v6737_v59, 0.0  ;;  %v3668_v24 = vsel %vm1834_vm14, %v6740_v54, %v3055_v7  ;;  %vm625_vm2 = vcmp.eq.s32.totalorder %v9587_v46, %v6439_v12 }
 0x1a3   : > { %v3672_v18 = vsel %vm1838_vm15, %v6740_v54, %v3059_v13  ;;  %v4281_v15 = vsel %vm1226_vm11, %v6743_v53, %v3668_v24  ;;  %vm1233_vm3 = vcmp.eq.s32.totalorder %v9587_v46, %v6465_v8  ;;  %vm629_vm4 = vcmp.eq.s32.totalorder %v9733_v27, %v6439_v12 }
 0x1a4   : > { %5655 = vmatpush1.bf16.msra.mxu0 %v5397_v55  ;;  %v4285_v16 = vsel %vm1230_vm13, %v6743_v53, %v3672_v18  ;;  %v4894_v48 = vsel %vm618_vm12, %v6748_v14, %v4281_v15  ;;  %vm1237_vm5 = vcmp.eq.s32.totalorder %v9733_v27, %v6465_v8  ;;  %vm1841_vm6 = vcmp.eq.s32.totalorder %v9587_v46, %v6487_v38 }
 0x1a5   : > { %v4898_v11 = vsel %vm622_vm10, %v6748_v14, %v4285_v16  ;;  %vm1845_vm7 = vcmp.eq.s32.totalorder %v9733_v27, %v6487_v38  ;;  %vm2449_vm8 = vcmp.eq.s32.totalorder %v9587_v46, %v6508_v6  ;;  %vm2453_vm9 = vcmp.eq.s32.totalorder %v9733_v27, %v6508_v6 }
 0x1a6   : > { %v5399_v51 = vpack.c.bf16 %v4898_v11, %v4894_v48  ;;  %v3062_v4 = vsel %vm2449_vm8, %v6492_v40, 0.0  ;;  %vm627_vm12 = vcmp.eq.s32.totalorder %v9587_v46, %v6480_v36  ;;  %v3066_v31 = vsel %vm2453_vm9, %v6492_v40, 0.0 }
 0x1a7   : > { %v3675_v49 = vsel %vm1841_vm6, %v6455_v28, %v3062_v4  ;;  %vm631_vm10 = vcmp.eq.s32.totalorder %v9733_v27, %v6480_v36  ;;  %vm1235_vm11 = vcmp.eq.s32.totalorder %v9587_v46, %v6499_v41  ;;  %v3679_v45 = vsel %vm1845_vm7, %v6455_v28, %v3066_v31 }
 0x1a8   : > { %5860 = vmatpush1.bf16.msra.mxu1 %v5399_v51  ;;  %v4288_v21 = vsel %vm1233_vm3, %v6470_v33, %v3675_v49  ;;  %vm1239_vm13 = vcmp.eq.s32.totalorder %v9733_v27, %v6499_v41  ;;  %vm1843_vm14 = vcmp.eq.s32.totalorder %v9587_v46, %v6521_v44  ;;  %v4292_v32 = vsel %vm1237_vm5, %v6470_v33, %v3679_v45 }
 0x1a9   : > { %v4901_v19 = vsel %vm625_vm2, %v6473_v34, %v4288_v21  ;;  %vm1847_vm15 = vcmp.eq.s32.totalorder %v9733_v27, %v6521_v44  ;;  %vm2451_vm0 = vcmp.eq.s32.totalorder %v9587_v46, %v6530_v9  ;;  %v4905_v42 = vsel %vm629_vm4, %v6473_v34, %v4292_v32 }
 0x1aa   : > { %vm2455_vm1 = vcmp.eq.s32.totalorder %v9733_v27, %v6530_v9  ;;  %v3064_v5 = vsel %vm2451_vm0, %v6561_v57, 0.0  ;;  %vm624_vm3 = vcmp.eq.s32.totalorder %v9587_v46, %v6597_v39  ;;  %v5402_v43 = vpack.c.bf16 %v4905_v42, %v4901_v19 }
 0x1ab   : > { %v3068_v22 = vsel %vm2455_vm1, %v6561_v57, 0.0  ;;  %v3677_v23 = vsel %vm1843_vm14, %v6564_v58, %v3064_v5  ;;  %vm628_vm2 = vcmp.eq.s32.totalorder %v9733_v27, %v6597_v39  ;;  %vm1232_vm4 = vcmp.eq.s32.totalorder %v9587_v46, %v6630_v60 }
 0x1ac   : > { %v3681_v25 = vsel %vm1847_vm15, %v6564_v58, %v3068_v22  ;;  %v4290_v3 = vsel %vm1235_vm11, %v6591_v10, %v3677_v23  ;;  %vm1236_vm5 = vcmp.eq.s32.totalorder %v9733_v27, %v6630_v60  ;;  %5656 = vmatprep.subr.bf16.mxu0 %v5402_v43  ;;  %vm1840_vm6 = vcmp.eq.s32.totalorder %v9587_v46, %v6633_v61 }
 0x1ad   : > { %v4294_v47 = vsel %vm1239_vm13, %v6591_v10, %v3681_v25  ;;  %v4903_v17 = vsel %vm627_vm12, %v6594_v37, %v4290_v3  ;;  %vm1844_vm7 = vcmp.eq.s32.totalorder %v9733_v27, %v6633_v61  ;;  %vm2448_vm8 = vcmp.eq.s32.totalorder %v9587_v46, %v6636_v62 }
 0x1ae   : > { %v4907_v50 = vsel %vm631_vm10, %v6594_v37, %v4294_v47  ;;  %vm2452_vm9 = vcmp.eq.s32.totalorder %v9733_v27, %v6636_v62  ;;  %vm626_vm12 = vcmp.eq.s32.totalorder %v9587_v46, %v6687_v63  ;;  %v3061_v7 = vsel %vm2448_vm8, %v6639_v0, 0.0 }
 0x1af   : > { %v5404_v26 = vpack.c.bf16 %v4907_v50, %v4903_v17  ;;  %v3065_v55 = vsel %vm2452_vm9, %v6639_v0, 0.0  ;;  %vm630_vm11 = vcmp.eq.s32.totalorder %v9733_v27, %v6687_v63  ;;  %v3674_v13 = vsel %vm1840_vm6, %v6642_v2, %v3061_v7 }
 0x1b0   : > { %v3678_v24 = vsel %vm1844_vm7, %v6642_v2, %v3065_v55  ;;  %vm1234_vm10 = vcmp.eq.s32.totalorder %v9587_v46, %v6690_v52  ;;  %vm1238_vm13 = vcmp.eq.s32.totalorder %v9733_v27, %v6690_v52  ;;  %v4287_v18 = vsel %vm1232_vm4, %v6661_v20, %v3674_v13 }
 0x1b1   : > { %5861 = vmatprep.subr.bf16.mxu1 %v5404_v26  ;;  %v4291_v15 = vsel %vm1236_vm5, %v6661_v20, %v3678_v24  ;;  %vm1842_vm14 = vcmp.eq.s32.totalorder %v9587_v46, %v6701_v35  ;;  %vm1846_vm15 = vcmp.eq.s32.totalorder %v9733_v27, %v6701_v35  ;;  %v4900_v16 = vsel %vm624_vm3, %v6664_v29, %v4287_v18 }
 0x1b2   : > { %v4904_v48 = vsel %vm628_vm2, %v6664_v29, %v4291_v15  ;;  %vm2450_vm0 = vcmp.eq.s32.totalorder %v9587_v46, %v6704_v56  ;;  %vm2454_vm1 = vcmp.eq.s32.totalorder %v9733_v27, %v6704_v56  ;;  %v9879_v31 = vadd.s32 352, %v6309_v1 }
 0x1b3   : > { %v5401_v11 = vpack.c.bf16 %v4904_v48, %v4900_v16  ;;  %v3063_v51 = vsel %vm2450_vm0, %v6737_v59, 0.0  ;;  %v3067_v4 = vsel %vm2454_vm1, %v6737_v59, 0.0  ;;  %v9884_v21 = vadd.s32 360, %v6309_v1 }
 0x1b4   : > { %v3676_v49 = vsel %vm1842_vm14, %v6740_v54, %v3063_v51  ;;  %v3680_v45 = vsel %vm1846_vm15, %v6740_v54, %v3067_v4  ;;  %v9887_v32 = vadd.s32 368, %v6309_v1  ;;  %vm633_vm3 = vcmp.eq.s32.totalorder %v9879_v31, %v6439_v12 }
 0x1b5   : > { %5657 = vmatpush1.bf16.msra.mxu0 %v5401_v11  ;;  %v4289_v19 = vsel %vm1234_vm10, %v6743_v53, %v3676_v49  ;;  %v4293_v42 = vsel %vm1238_vm13, %v6743_v53, %v3680_v45  ;;  %vm1241_vm2 = vcmp.eq.s32.totalorder %v9879_v31, %v6465_v8  ;;  %vm637_vm4 = vcmp.eq.s32.totalorder %v9884_v21, %v6439_v12 }
 0x1b6   : > { %v4902_v5 = vsel %vm626_vm12, %v6748_v14, %v4289_v19  ;;  %v4906_v43 = vsel %vm630_vm11, %v6748_v14, %v4293_v42  ;;  %vm1245_vm5 = vcmp.eq.s32.totalorder %v9884_v21, %v6465_v8  ;;  %vm1849_vm6 = vcmp.eq.s32.totalorder %v9879_v31, %v6487_v38 }
 0x1b7   : > { %v5403_v22 = vpack.c.bf16 %v4906_v43, %v4902_v5  ;;  %vm1853_vm7 = vcmp.eq.s32.totalorder %v9884_v21, %v6487_v38  ;;  %vm2457_vm8 = vcmp.eq.s32.totalorder %v9879_v31, %v6508_v6  ;;  %vm2461_vm9 = vcmp.eq.s32.totalorder %v9884_v21, %v6508_v6 }
 0x1b8   : > { %v3070_v46 = vsel %vm2457_vm8, %v6492_v40, 0.0  ;;  %vm635_vm12 = vcmp.eq.s32.totalorder %v9879_v31, %v6480_v36  ;;  %vm639_vm11 = vcmp.eq.s32.totalorder %v9884_v21, %v6480_v36  ;;  %v3074_v27 = vsel %vm2461_vm9, %v6492_v40, 0.0 }
 0x1b9   : > { %5862 = vmatpush1.bf16.msra.mxu1 %v5403_v22  ;;  %v3683_v23 = vsel %vm1849_vm6, %v6455_v28, %v3070_v46  ;;  %vm1243_vm10 = vcmp.eq.s32.totalorder %v9879_v31, %v6499_v41  ;;  %vm1247_vm13 = vcmp.eq.s32.totalorder %v9884_v21, %v6499_v41  ;;  %v3687_v25 = vsel %vm1853_vm7, %v6455_v28, %v3074_v27 }
 0x1ba   : > { %v4296_v3 = vsel %vm1241_vm2, %v6470_v33, %v3683_v23  ;;  %vm1851_vm14 = vcmp.eq.s32.totalorder %v9879_v31, %v6521_v44  ;;  %vm1855_vm15 = vcmp.eq.s32.totalorder %v9884_v21, %v6521_v44  ;;  %v4300_v47 = vsel %vm1245_vm5, %v6470_v33, %v3687_v25 }
 0x1bb   : > { %v4909_v17 = vsel %vm633_vm3, %v6473_v34, %v4296_v3  ;;  %vm2459_vm0 = vcmp.eq.s32.totalorder %v9879_v31, %v6530_v9  ;;  %vm2463_vm1 = vcmp.eq.s32.totalorder %v9884_v21, %v6530_v9  ;;  %v4913_v50 = vsel %vm637_vm4, %v6473_v34, %v4300_v47 }
 0x1bc   : > { %v3072_v26 = vsel %vm2459_vm0, %v6561_v57, 0.0  ;;  %v3076_v7 = vsel %vm2463_vm1, %v6561_v57, 0.0  ;;  %vm632_vm2 = vcmp.eq.s32.totalorder %v9879_v31, %v6597_v39  ;;  %v5406_v55 = vpack.c.bf16 %v4913_v50, %v4909_v17 }
 0x1bd   : > { %v3685_v13 = vsel %vm1851_vm14, %v6564_v58, %v3072_v26  ;;  %v3689_v24 = vsel %vm1855_vm15, %v6564_v58, %v3076_v7  ;;  %vm636_vm3 = vcmp.eq.s32.totalorder %v9884_v21, %v6597_v39  ;;  %vm1240_vm4 = vcmp.eq.s32.totalorder %v9879_v31, %v6630_v60 }
 0x1be   : > { %v4298_v18 = vsel %vm1243_vm10, %v6591_v10, %v3685_v13  ;;  %v4302_v15 = vsel %vm1247_vm13, %v6591_v10, %v3689_v24  ;;  %vm1244_vm5 = vcmp.eq.s32.totalorder %v9884_v21, %v6630_v60  ;;  %5658 = vmatprep.subr.bf16.mxu0 %v5406_v55  ;;  %vm1848_vm6 = vcmp.eq.s32.totalorder %v9879_v31, %v6633_v61 }
 0x1bf   : > { %v4911_v16 = vsel %vm635_vm12, %v6594_v37, %v4298_v18  ;;  %v4915_v48 = vsel %vm639_vm11, %v6594_v37, %v4302_v15  ;;  %vm1852_vm7 = vcmp.eq.s32.totalorder %v9884_v21, %v6633_v61  ;;  %vm2456_vm8 = vcmp.eq.s32.totalorder %v9879_v31, %v6636_v62 }
 0x1c0   : > { %v5408_v11 = vpack.c.bf16 %v4915_v48, %v4911_v16  ;;  %vm2460_vm9 = vcmp.eq.s32.totalorder %v9884_v21, %v6636_v62  ;;  %vm634_vm12 = vcmp.eq.s32.totalorder %v9879_v31, %v6687_v63  ;;  %v3069_v51 = vsel %vm2456_vm8, %v6639_v0, 0.0 }
 0x1c1   : > { %v3073_v4 = vsel %vm2460_vm9, %v6639_v0, 0.0  ;;  %vm638_vm11 = vcmp.eq.s32.totalorder %v9884_v21, %v6687_v63  ;;  %vm1242_vm10 = vcmp.eq.s32.totalorder %v9879_v31, %v6690_v52  ;;  %v3682_v49 = vsel %vm1848_vm6, %v6642_v2, %v3069_v51 }
 0x1c2   : > { %5863 = vmatprep.subr.bf16.mxu1 %v5408_v11  ;;  %v3686_v45 = vsel %vm1852_vm7, %v6642_v2, %v3073_v4  ;;  %vm1246_vm13 = vcmp.eq.s32.totalorder %v9884_v21, %v6690_v52  ;;  %vm1850_vm14 = vcmp.eq.s32.totalorder %v9879_v31, %v6701_v35  ;;  %v4295_v19 = vsel %vm1240_vm4, %v6661_v20, %v3682_v49 }
 0x1c3   : > { %v4299_v42 = vsel %vm1244_vm5, %v6661_v20, %v3686_v45  ;;  %vm1854_vm15 = vcmp.eq.s32.totalorder %v9884_v21, %v6701_v35  ;;  %vm2458_vm0 = vcmp.eq.s32.totalorder %v9879_v31, %v6704_v56  ;;  %v4908_v5 = vsel %vm632_vm2, %v6664_v29, %v4295_v19 }
 0x1c4   : > { %v4912_v43 = vsel %vm636_vm3, %v6664_v29, %v4299_v42  ;;  %vm2462_vm1 = vcmp.eq.s32.totalorder %v9884_v21, %v6704_v56  ;;  %v3071_v22 = vsel %vm2458_vm0, %v6737_v59, 0.0  ;;  %v10033_v25 = vadd.s32 376, %v6309_v1 }
 0x1c5   : > { %v5405_v46 = vpack.c.bf16 %v4912_v43, %v4908_v5  ;;  %v3075_v27 = vsel %vm2462_vm1, %v6737_v59, 0.0  ;;  %v3684_v23 = vsel %vm1850_vm14, %v6740_v54, %v3071_v22  ;;  %vm641_vm2 = vcmp.eq.s32.totalorder %v9887_v32, %v6439_v12 }
 0x1c6   : > { %v3688_v3 = vsel %vm1854_vm15, %v6740_v54, %v3075_v27  ;;  %v4297_v47 = vsel %vm1242_vm10, %v6743_v53, %v3684_v23  ;;  %vm1249_vm3 = vcmp.eq.s32.totalorder %v9887_v32, %v6465_v8  ;;  %vm645_vm4 = vcmp.eq.s32.totalorder %v10033_v25, %v6439_v12 }
 0x1c7   : > { %5659 = vmatpush1.bf16.msra.mxu0 %v5405_v46  ;;  %v4301_v17 = vsel %vm1246_vm13, %v6743_v53, %v3688_v3  ;;  %v4910_v50 = vsel %vm634_vm12, %v6748_v14, %v4297_v47  ;;  %vm1253_vm5 = vcmp.eq.s32.totalorder %v10033_v25, %v6465_v8  ;;  %vm1857_vm6 = vcmp.eq.s32.totalorder %v9887_v32, %v6487_v38 }
 0x1c8   : > { %v4914_v26 = vsel %vm638_vm11, %v6748_v14, %v4301_v17  ;;  %vm1861_vm7 = vcmp.eq.s32.totalorder %v10033_v25, %v6487_v38  ;;  %vm2465_vm8 = vcmp.eq.s32.totalorder %v9887_v32, %v6508_v6  ;;  %vm2469_vm9 = vcmp.eq.s32.totalorder %v10033_v25, %v6508_v6 }
 0x1c9   : > { %v5407_v31 = vpack.c.bf16 %v4914_v26, %v4910_v50  ;;  %v3078_v7 = vsel %vm2465_vm8, %v6492_v40, 0.0  ;;  %vm643_vm12 = vcmp.eq.s32.totalorder %v9887_v32, %v6480_v36  ;;  %v3082_v21 = vsel %vm2469_vm9, %v6492_v40, 0.0 }
 0x1ca   : > { %v3691_v55 = vsel %vm1857_vm6, %v6455_v28, %v3078_v7  ;;  %vm647_vm11 = vcmp.eq.s32.totalorder %v10033_v25, %v6480_v36  ;;  %vm1251_vm10 = vcmp.eq.s32.totalorder %v9887_v32, %v6499_v41  ;;  %v3695_v13 = vsel %vm1861_vm7, %v6455_v28, %v3082_v21 }
 0x1cb   : > { %5864 = vmatpush1.bf16.msra.mxu1 %v5407_v31  ;;  %v4304_v24 = vsel %vm1249_vm3, %v6470_v33, %v3691_v55  ;;  %vm1255_vm13 = vcmp.eq.s32.totalorder %v10033_v25, %v6499_v41  ;;  %vm1859_vm14 = vcmp.eq.s32.totalorder %v9887_v32, %v6521_v44  ;;  %v4308_v18 = vsel %vm1253_vm5, %v6470_v33, %v3695_v13 }
 0x1cc   : > { %v4917_v15 = vsel %vm641_vm2, %v6473_v34, %v4304_v24  ;;  %vm1863_vm15 = vcmp.eq.s32.totalorder %v10033_v25, %v6521_v44  ;;  %vm2467_vm0 = vcmp.eq.s32.totalorder %v9887_v32, %v6530_v9  ;;  %v4921_v16 = vsel %vm645_vm4, %v6473_v34, %v4308_v18 }
 0x1cd   : > { %vm2471_vm1 = vcmp.eq.s32.totalorder %v10033_v25, %v6530_v9  ;;  %v3080_v48 = vsel %vm2467_vm0, %v6561_v57, 0.0  ;;  %vm640_vm3 = vcmp.eq.s32.totalorder %v9887_v32, %v6597_v39  ;;  %v5410_v11 = vpack.c.bf16 %v4921_v16, %v4917_v15 }
 0x1ce   : > { %v3084_v51 = vsel %vm2471_vm1, %v6561_v57, 0.0  ;;  %v3693_v4 = vsel %vm1859_vm14, %v6564_v58, %v3080_v48  ;;  %vm644_vm2 = vcmp.eq.s32.totalorder %v10033_v25, %v6597_v39  ;;  %vm1248_vm4 = vcmp.eq.s32.totalorder %v9887_v32, %v6630_v60 }
 0x1cf   : > { %v3697_v49 = vsel %vm1863_vm15, %v6564_v58, %v3084_v51  ;;  %v4306_v45 = vsel %vm1251_vm10, %v6591_v10, %v3693_v4  ;;  %vm1252_vm5 = vcmp.eq.s32.totalorder %v10033_v25, %v6630_v60  ;;  %5660 = vmatprep.subr.bf16.mxu0 %v5410_v11  ;;  %vm1856_vm6 = vcmp.eq.s32.totalorder %v9887_v32, %v6633_v61 }
 0x1d0   : > { %v4310_v19 = vsel %vm1255_vm13, %v6591_v10, %v3697_v49  ;;  %v4919_v42 = vsel %vm643_vm12, %v6594_v37, %v4306_v45  ;;  %vm1860_vm7 = vcmp.eq.s32.totalorder %v10033_v25, %v6633_v61  ;;  %vm2464_vm8 = vcmp.eq.s32.totalorder %v9887_v32, %v6636_v62 }
 0x1d1   : > { %v4923_v5 = vsel %vm647_vm11, %v6594_v37, %v4310_v19  ;;  %vm2468_vm9 = vcmp.eq.s32.totalorder %v10033_v25, %v6636_v62  ;;  %vm642_vm12 = vcmp.eq.s32.totalorder %v9887_v32, %v6687_v63  ;;  %v3077_v22 = vsel %vm2464_vm8, %v6639_v0, 0.0 }
 0x1d2   : > { %v5412_v43 = vpack.c.bf16 %v4923_v5, %v4919_v42  ;;  %v3081_v46 = vsel %vm2468_vm9, %v6639_v0, 0.0  ;;  %vm646_vm10 = vcmp.eq.s32.totalorder %v10033_v25, %v6687_v63  ;;  %v3690_v27 = vsel %vm1856_vm6, %v6642_v2, %v3077_v22 }
 0x1d3   : > { %v3694_v23 = vsel %vm1860_vm7, %v6642_v2, %v3081_v46  ;;  %vm1250_vm11 = vcmp.eq.s32.totalorder %v9887_v32, %v6690_v52  ;;  %vm1254_vm13 = vcmp.eq.s32.totalorder %v10033_v25, %v6690_v52  ;;  %v4303_v3 = vsel %vm1248_vm4, %v6661_v20, %v3690_v27 }
 0x1d4   : > { %5865 = vmatprep.subr.bf16.mxu1 %v5412_v43  ;;  %v4307_v47 = vsel %vm1252_vm5, %v6661_v20, %v3694_v23  ;;  %vm1858_vm14 = vcmp.eq.s32.totalorder %v9887_v32, %v6701_v35  ;;  %vm1862_vm15 = vcmp.eq.s32.totalorder %v10033_v25, %v6701_v35  ;;  %v4916_v17 = vsel %vm640_vm3, %v6664_v29, %v4303_v3 }
 0x1d5   : > { %v4920_v50 = vsel %vm644_vm2, %v6664_v29, %v4307_v47  ;;  %vm2466_vm0 = vcmp.eq.s32.totalorder %v9887_v32, %v6704_v56  ;;  %vm2470_vm1 = vcmp.eq.s32.totalorder %v10033_v25, %v6704_v56  ;;  %v10179_v21 = vadd.s32 384, %v6309_v1 }
 0x1d6   : > { %v5409_v26 = vpack.c.bf16 %v4920_v50, %v4916_v17  ;;  %v3079_v31 = vsel %vm2466_vm0, %v6737_v59, 0.0  ;;  %v3083_v7 = vsel %vm2470_vm1, %v6737_v59, 0.0  ;;  %v10184_v24 = vadd.s32 392, %v6309_v1 }
 0x1d7   : > { %v3692_v55 = vsel %vm1858_vm14, %v6740_v54, %v3079_v31  ;;  %v3696_v13 = vsel %vm1862_vm15, %v6740_v54, %v3083_v7  ;;  %v10187_v18 = vadd.s32 400, %v6309_v1  ;;  %vm649_vm3 = vcmp.eq.s32.totalorder %v10179_v21, %v6439_v12 }
 0x1d8   : > { %5661 = vmatpush1.bf16.msra.mxu0 %v5409_v26  ;;  %v4305_v15 = vsel %vm1250_vm11, %v6743_v53, %v3692_v55  ;;  %v4309_v16 = vsel %vm1254_vm13, %v6743_v53, %v3696_v13  ;;  %vm1257_vm2 = vcmp.eq.s32.totalorder %v10179_v21, %v6465_v8  ;;  %vm653_vm4 = vcmp.eq.s32.totalorder %v10184_v24, %v6439_v12 }
 0x1d9   : > { %v4918_v48 = vsel %vm642_vm12, %v6748_v14, %v4305_v15  ;;  %v4922_v11 = vsel %vm646_vm10, %v6748_v14, %v4309_v16  ;;  %vm1261_vm5 = vcmp.eq.s32.totalorder %v10184_v24, %v6465_v8  ;;  %vm1865_vm6 = vcmp.eq.s32.totalorder %v10179_v21, %v6487_v38 }
 0x1da   : > { %v5411_v51 = vpack.c.bf16 %v4922_v11, %v4918_v48  ;;  %vm1869_vm7 = vcmp.eq.s32.totalorder %v10184_v24, %v6487_v38  ;;  %vm2473_vm8 = vcmp.eq.s32.totalorder %v10179_v21, %v6508_v6  ;;  %vm2477_vm9 = vcmp.eq.s32.totalorder %v10184_v24, %v6508_v6 }
 0x1db   : > { %v3086_v32 = vsel %vm2473_vm8, %v6492_v40, 0.0  ;;  %vm651_vm12 = vcmp.eq.s32.totalorder %v10179_v21, %v6480_v36  ;;  %vm655_vm10 = vcmp.eq.s32.totalorder %v10184_v24, %v6480_v36  ;;  %v3090_v25 = vsel %vm2477_vm9, %v6492_v40, 0.0 }
 0x1dc   : > { %5866 = vmatpush1.bf16.msra.mxu1 %v5411_v51  ;;  %v3699_v4 = vsel %vm1865_vm6, %v6455_v28, %v3086_v32  ;;  %vm1259_vm11 = vcmp.eq.s32.totalorder %v10179_v21, %v6499_v41  ;;  %vm1263_vm13 = vcmp.eq.s32.totalorder %v10184_v24, %v6499_v41  ;;  %v3703_v49 = vsel %vm1869_vm7, %v6455_v28, %v3090_v25 }
 0x1dd   : > { %v4312_v45 = vsel %vm1257_vm2, %v6470_v33, %v3699_v4  ;;  %vm1867_vm14 = vcmp.eq.s32.totalorder %v10179_v21, %v6521_v44  ;;  %vm1871_vm15 = vcmp.eq.s32.totalorder %v10184_v24, %v6521_v44  ;;  %v4316_v19 = vsel %vm1261_vm5, %v6470_v33, %v3703_v49 }
 0x1de   : > { %v4925_v42 = vsel %vm649_vm3, %v6473_v34, %v4312_v45  ;;  %vm2475_vm0 = vcmp.eq.s32.totalorder %v10179_v21, %v6530_v9  ;;  %vm2479_vm1 = vcmp.eq.s32.totalorder %v10184_v24, %v6530_v9  ;;  %v4929_v5 = vsel %vm653_vm4, %v6473_v34, %v4316_v19 }
 0x1df   : > { %v3088_v43 = vsel %vm2475_vm0, %v6561_v57, 0.0  ;;  %v3092_v22 = vsel %vm2479_vm1, %v6561_v57, 0.0  ;;  %vm648_vm2 = vcmp.eq.s32.totalorder %v10179_v21, %v6597_v39  ;;  %v5414_v46 = vpack.c.bf16 %v4929_v5, %v4925_v42 }
 0x1e0   : > { %v3701_v27 = vsel %vm1867_vm14, %v6564_v58, %v3088_v43  ;;  %v3705_v23 = vsel %vm1871_vm15, %v6564_v58, %v3092_v22  ;;  %vm652_vm3 = vcmp.eq.s32.totalorder %v10184_v24, %v6597_v39  ;;  %vm1256_vm4 = vcmp.eq.s32.totalorder %v10179_v21, %v6630_v60 }
 0x1e1   : > { %v4314_v3 = vsel %vm1259_vm11, %v6591_v10, %v3701_v27  ;;  %v4318_v47 = vsel %vm1263_vm13, %v6591_v10, %v3705_v23  ;;  %vm1260_vm5 = vcmp.eq.s32.totalorder %v10184_v24, %v6630_v60  ;;  %5662 = vmatprep.subr.bf16.mxu0 %v5414_v46  ;;  %vm1864_vm6 = vcmp.eq.s32.totalorder %v10179_v21, %v6633_v61 }
 0x1e2   : > { %v4927_v17 = vsel %vm651_vm12, %v6594_v37, %v4314_v3  ;;  %v4931_v50 = vsel %vm655_vm10, %v6594_v37, %v4318_v47  ;;  %vm1868_vm7 = vcmp.eq.s32.totalorder %v10184_v24, %v6633_v61  ;;  %vm2472_vm8 = vcmp.eq.s32.totalorder %v10179_v21, %v6636_v62 }
 0x1e3   : > { %v5416_v26 = vpack.c.bf16 %v4931_v50, %v4927_v17  ;;  %vm2476_vm9 = vcmp.eq.s32.totalorder %v10184_v24, %v6636_v62  ;;  %vm650_vm12 = vcmp.eq.s32.totalorder %v10179_v21, %v6687_v63  ;;  %v3085_v31 = vsel %vm2472_vm8, %v6639_v0, 0.0 }
 0x1e4   : > { %v3089_v7 = vsel %vm2476_vm9, %v6639_v0, 0.0  ;;  %vm654_vm10 = vcmp.eq.s32.totalorder %v10184_v24, %v6687_v63  ;;  %vm1258_vm11 = vcmp.eq.s32.totalorder %v10179_v21, %v6690_v52  ;;  %v3698_v55 = vsel %vm1864_vm6, %v6642_v2, %v3085_v31 }
 0x1e5   : > { %5867 = vmatprep.subr.bf16.mxu1 %v5416_v26  ;;  %v3702_v13 = vsel %vm1868_vm7, %v6642_v2, %v3089_v7  ;;  %vm1262_vm13 = vcmp.eq.s32.totalorder %v10184_v24, %v6690_v52  ;;  %vm1866_vm14 = vcmp.eq.s32.totalorder %v10179_v21, %v6701_v35  ;;  %v4311_v15 = vsel %vm1256_vm4, %v6661_v20, %v3698_v55 }
 0x1e6   : > { %v4315_v16 = vsel %vm1260_vm5, %v6661_v20, %v3702_v13  ;;  %vm1870_vm15 = vcmp.eq.s32.totalorder %v10184_v24, %v6701_v35  ;;  %vm2474_vm0 = vcmp.eq.s32.totalorder %v10179_v21, %v6704_v56  ;;  %v4924_v48 = vsel %vm648_vm2, %v6664_v29, %v4311_v15 }
 0x1e7   : > { %v4928_v11 = vsel %vm652_vm3, %v6664_v29, %v4315_v16  ;;  %vm2478_vm1 = vcmp.eq.s32.totalorder %v10184_v24, %v6704_v56  ;;  %v3087_v51 = vsel %vm2474_vm0, %v6737_v59, 0.0  ;;  %v10333_v49 = vadd.s32 408, %v6309_v1 }
 0x1e8   : > { %v5413_v32 = vpack.c.bf16 %v4928_v11, %v4924_v48  ;;  %v3091_v25 = vsel %vm2478_vm1, %v6737_v59, 0.0  ;;  %v3700_v4 = vsel %vm1866_vm14, %v6740_v54, %v3087_v51  ;;  %vm657_vm2 = vcmp.eq.s32.totalorder %v10187_v18, %v6439_v12 }
 0x1e9   : > { %v3704_v45 = vsel %vm1870_vm15, %v6740_v54, %v3091_v25  ;;  %v4313_v19 = vsel %vm1258_vm11, %v6743_v53, %v3700_v4  ;;  %vm1265_vm3 = vcmp.eq.s32.totalorder %v10187_v18, %v6465_v8  ;;  %vm661_vm4 = vcmp.eq.s32.totalorder %v10333_v49, %v6439_v12 }
 0x1ea   : > { %5663 = vmatpush1.bf16.msra.mxu0 %v5413_v32  ;;  %v4317_v42 = vsel %vm1262_vm13, %v6743_v53, %v3704_v45  ;;  %v4926_v5 = vsel %vm650_vm12, %v6748_v14, %v4313_v19  ;;  %vm1269_vm5 = vcmp.eq.s32.totalorder %v10333_v49, %v6465_v8  ;;  %vm1873_vm6 = vcmp.eq.s32.totalorder %v10187_v18, %v6487_v38 }
 0x1eb   : > { %v4930_v43 = vsel %vm654_vm10, %v6748_v14, %v4317_v42  ;;  %vm1877_vm7 = vcmp.eq.s32.totalorder %v10333_v49, %v6487_v38  ;;  %vm2481_vm8 = vcmp.eq.s32.totalorder %v10187_v18, %v6508_v6  ;;  %vm2485_vm9 = vcmp.eq.s32.totalorder %v10333_v49, %v6508_v6 }
 0x1ec   : > { %v5415_v21 = vpack.c.bf16 %v4930_v43, %v4926_v5  ;;  %v3094_v22 = vsel %vm2481_vm8, %v6492_v40, 0.0  ;;  %vm659_vm12 = vcmp.eq.s32.totalorder %v10187_v18, %v6480_v36  ;;  %v3098_v24 = vsel %vm2485_vm9, %v6492_v40, 0.0 }
 0x1ed   : > { %v3707_v46 = vsel %vm1873_vm6, %v6455_v28, %v3094_v22  ;;  %vm663_vm10 = vcmp.eq.s32.totalorder %v10333_v49, %v6480_v36  ;;  %vm1267_vm11 = vcmp.eq.s32.totalorder %v10187_v18, %v6499_v41  ;;  %v3711_v27 = vsel %vm1877_vm7, %v6455_v28, %v3098_v24 }
 0x1ee   : > { %5868 = vmatpush1.bf16.msra.mxu1 %v5415_v21  ;;  %v4320_v23 = vsel %vm1265_vm3, %v6470_v33, %v3707_v46  ;;  %vm1271_vm13 = vcmp.eq.s32.totalorder %v10333_v49, %v6499_v41  ;;  %vm1875_vm14 = vcmp.eq.s32.totalorder %v10187_v18, %v6521_v44  ;;  %v4324_v3 = vsel %vm1269_vm5, %v6470_v33, %v3711_v27 }
 0x1ef   : > { %v4933_v47 = vsel %vm657_vm2, %v6473_v34, %v4320_v23  ;;  %vm1879_vm15 = vcmp.eq.s32.totalorder %v10333_v49, %v6521_v44  ;;  %vm2483_vm0 = vcmp.eq.s32.totalorder %v10187_v18, %v6530_v9  ;;  %v4937_v17 = vsel %vm661_vm4, %v6473_v34, %v4324_v3 }
 0x1f0   : > { %vm2487_vm1 = vcmp.eq.s32.totalorder %v10333_v49, %v6530_v9  ;;  %v3096_v50 = vsel %vm2483_vm0, %v6561_v57, 0.0  ;;  %vm656_vm3 = vcmp.eq.s32.totalorder %v10187_v18, %v6597_v39  ;;  %v5418_v26 = vpack.c.bf16 %v4937_v17, %v4933_v47 }
 0x1f1   : > { %v3100_v31 = vsel %vm2487_vm1, %v6561_v57, 0.0  ;;  %v3709_v7 = vsel %vm1875_vm14, %v6564_v58, %v3096_v50  ;;  %vm660_vm2 = vcmp.eq.s32.totalorder %v10333_v49, %v6597_v39  ;;  %vm1264_vm4 = vcmp.eq.s32.totalorder %v10187_v18, %v6630_v60 }
 0x1f2   : > { %v3713_v55 = vsel %vm1879_vm15, %v6564_v58, %v3100_v31  ;;  %v4322_v13 = vsel %vm1267_vm11, %v6591_v10, %v3709_v7  ;;  %vm1268_vm5 = vcmp.eq.s32.totalorder %v10333_v49, %v6630_v60  ;;  %5664 = vmatprep.subr.bf16.mxu0 %v5418_v26  ;;  %vm1872_vm6 = vcmp.eq.s32.totalorder %v10187_v18, %v6633_v61 }
 0x1f3   : > { %v4326_v15 = vsel %vm1271_vm13, %v6591_v10, %v3713_v55  ;;  %v4935_v16 = vsel %vm659_vm12, %v6594_v37, %v4322_v13  ;;  %vm1876_vm7 = vcmp.eq.s32.totalorder %v10333_v49, %v6633_v61  ;;  %vm2480_vm8 = vcmp.eq.s32.totalorder %v10187_v18, %v6636_v62 }
 0x1f4   : > { %v4939_v48 = vsel %vm663_vm10, %v6594_v37, %v4326_v15  ;;  %vm2484_vm9 = vcmp.eq.s32.totalorder %v10333_v49, %v6636_v62  ;;  %vm658_vm12 = vcmp.eq.s32.totalorder %v10187_v18, %v6687_v63  ;;  %v3093_v51 = vsel %vm2480_vm8, %v6639_v0, 0.0 }
 0x1f5   : > { %v5420_v11 = vpack.c.bf16 %v4939_v48, %v4935_v16  ;;  %v3097_v32 = vsel %vm2484_vm9, %v6639_v0, 0.0  ;;  %vm662_vm11 = vcmp.eq.s32.totalorder %v10333_v49, %v6687_v63  ;;  %v3706_v25 = vsel %vm1872_vm6, %v6642_v2, %v3093_v51 }
 0x1f6   : > { %v3710_v4 = vsel %vm1876_vm7, %v6642_v2, %v3097_v32  ;;  %vm1266_vm10 = vcmp.eq.s32.totalorder %v10187_v18, %v6690_v52  ;;  %vm1270_vm13 = vcmp.eq.s32.totalorder %v10333_v49, %v6690_v52  ;;  %v4319_v45 = vsel %vm1264_vm4, %v6661_v20, %v3706_v25 }
 0x1f7   : > { %5869 = vmatprep.subr.bf16.mxu1 %v5420_v11  ;;  %v4323_v19 = vsel %vm1268_vm5, %v6661_v20, %v3710_v4  ;;  %vm1874_vm14 = vcmp.eq.s32.totalorder %v10187_v18, %v6701_v35  ;;  %vm1878_vm15 = vcmp.eq.s32.totalorder %v10333_v49, %v6701_v35  ;;  %v4932_v42 = vsel %vm656_vm3, %v6664_v29, %v4319_v45 }
 0x1f8   : > { %v4936_v5 = vsel %vm660_vm2, %v6664_v29, %v4323_v19  ;;  %vm2482_vm0 = vcmp.eq.s32.totalorder %v10187_v18, %v6704_v56  ;;  %vm2486_vm1 = vcmp.eq.s32.totalorder %v10333_v49, %v6704_v56  ;;  %v10479_v24 = vadd.s32 416, %v6309_v1 }
 0x1f9   : > { %v5417_v43 = vpack.c.bf16 %v4936_v5, %v4932_v42  ;;  %v3095_v21 = vsel %vm2482_vm0, %v6737_v59, 0.0  ;;  %v3099_v22 = vsel %vm2486_vm1, %v6737_v59, 0.0  ;;  %v10484_v23 = vadd.s32 424, %v6309_v1 }
 0x1fa   : > { %v3708_v46 = vsel %vm1874_vm14, %v6740_v54, %v3095_v21  ;;  %v3712_v27 = vsel %vm1878_vm15, %v6740_v54, %v3099_v22  ;;  %v10487_v3 = vadd.s32 432, %v6309_v1  ;;  %vm665_vm3 = vcmp.eq.s32.totalorder %v10479_v24, %v6439_v12 }
 0x1fb   : > { %5665 = vmatpush1.bf16.msra.mxu0 %v5417_v43  ;;  %v4321_v47 = vsel %vm1266_vm10, %v6743_v53, %v3708_v46  ;;  %v4325_v17 = vsel %vm1270_vm13, %v6743_v53, %v3712_v27  ;;  %vm1273_vm2 = vcmp.eq.s32.totalorder %v10479_v24, %v6465_v8  ;;  %vm669_vm4 = vcmp.eq.s32.totalorder %v10484_v23, %v6439_v12 }
 0x1fc   : > { %v4934_v50 = vsel %vm658_vm12, %v6748_v14, %v4321_v47  ;;  %v4938_v26 = vsel %vm662_vm11, %v6748_v14, %v4325_v17  ;;  %vm1277_vm5 = vcmp.eq.s32.totalorder %v10484_v23, %v6465_v8  ;;  %vm1881_vm6 = vcmp.eq.s32.totalorder %v10479_v24, %v6487_v38 }
 0x1fd   : > { %v5419_v31 = vpack.c.bf16 %v4938_v26, %v4934_v50  ;;  %vm1885_vm7 = vcmp.eq.s32.totalorder %v10484_v23, %v6487_v38  ;;  %vm2489_vm8 = vcmp.eq.s32.totalorder %v10479_v24, %v6508_v6  ;;  %vm2493_vm9 = vcmp.eq.s32.totalorder %v10484_v23, %v6508_v6 }
 0x1fe   : > { %v3102_v18 = vsel %vm2489_vm8, %v6492_v40, 0.0  ;;  %vm667_vm12 = vcmp.eq.s32.totalorder %v10479_v24, %v6480_v36  ;;  %vm671_vm11 = vcmp.eq.s32.totalorder %v10484_v23, %v6480_v36  ;;  %v3106_v49 = vsel %vm2493_vm9, %v6492_v40, 0.0 }
 0x1ff   : > { %5870 = vmatpush1.bf16.msra.mxu1 %v5419_v31  ;;  %v3715_v7 = vsel %vm1881_vm6, %v6455_v28, %v3102_v18  ;;  %vm1275_vm10 = vcmp.eq.s32.totalorder %v10479_v24, %v6499_v41  ;;  %vm1279_vm13 = vcmp.eq.s32.totalorder %v10484_v23, %v6499_v41  ;;  %v3719_v55 = vsel %vm1885_vm7, %v6455_v28, %v3106_v49 }
 0x200   : > { %v4328_v13 = vsel %vm1273_vm2, %v6470_v33, %v3715_v7  ;;  %vm1883_vm14 = vcmp.eq.s32.totalorder %v10479_v24, %v6521_v44  ;;  %vm1887_vm15 = vcmp.eq.s32.totalorder %v10484_v23, %v6521_v44  ;;  %v4332_v15 = vsel %vm1277_vm5, %v6470_v33, %v3719_v55 }
 0x201   : > { %v4941_v16 = vsel %vm665_vm3, %v6473_v34, %v4328_v13  ;;  %vm2491_vm0 = vcmp.eq.s32.totalorder %v10479_v24, %v6530_v9  ;;  %vm2495_vm1 = vcmp.eq.s32.totalorder %v10484_v23, %v6530_v9  ;;  %v4945_v48 = vsel %vm669_vm4, %v6473_v34, %v4332_v15 }
 0x202   : > { %v3104_v11 = vsel %vm2491_vm0, %v6561_v57, 0.0  ;;  %v3108_v51 = vsel %vm2495_vm1, %v6561_v57, 0.0  ;;  %vm664_vm2 = vcmp.eq.s32.totalorder %v10479_v24, %v6597_v39  ;;  %v5422_v32 = vpack.c.bf16 %v4945_v48, %v4941_v16 }
 0x203   : > { %v3717_v25 = vsel %vm1883_vm14, %v6564_v58, %v3104_v11  ;;  %v3721_v4 = vsel %vm1887_vm15, %v6564_v58, %v3108_v51  ;;  %vm668_vm3 = vcmp.eq.s32.totalorder %v10484_v23, %v6597_v39  ;;  %vm1272_vm4 = vcmp.eq.s32.totalorder %v10479_v24, %v6630_v60 }
 0x204   : > { %v4330_v45 = vsel %vm1275_vm10, %v6591_v10, %v3717_v25  ;;  %v4334_v19 = vsel %vm1279_vm13, %v6591_v10, %v3721_v4  ;;  %vm1276_vm5 = vcmp.eq.s32.totalorder %v10484_v23, %v6630_v60  ;;  %5666 = vmatprep.subr.bf16.mxu0 %v5422_v32  ;;  %vm1880_vm6 = vcmp.eq.s32.totalorder %v10479_v24, %v6633_v61 }
 0x205   : > { %v4943_v42 = vsel %vm667_vm12, %v6594_v37, %v4330_v45  ;;  %v4947_v5 = vsel %vm671_vm11, %v6594_v37, %v4334_v19  ;;  %vm1884_vm7 = vcmp.eq.s32.totalorder %v10484_v23, %v6633_v61  ;;  %vm2488_vm8 = vcmp.eq.s32.totalorder %v10479_v24, %v6636_v62 }
 0x206   : > { %v5424_v43 = vpack.c.bf16 %v4947_v5, %v4943_v42  ;;  %vm2492_vm9 = vcmp.eq.s32.totalorder %v10484_v23, %v6636_v62  ;;  %vm666_vm12 = vcmp.eq.s32.totalorder %v10479_v24, %v6687_v63  ;;  %v3101_v21 = vsel %vm2488_vm8, %v6639_v0, 0.0 }
 0x207   : > { %v3105_v22 = vsel %vm2492_vm9, %v6639_v0, 0.0  ;;  %vm670_vm11 = vcmp.eq.s32.totalorder %v10484_v23, %v6687_v63  ;;  %vm1274_vm10 = vcmp.eq.s32.totalorder %v10479_v24, %v6690_v52  ;;  %v3714_v46 = vsel %vm1880_vm6, %v6642_v2, %v3101_v21 }
 0x208   : > { %5871 = vmatprep.subr.bf16.mxu1 %v5424_v43  ;;  %v3718_v27 = vsel %vm1884_vm7, %v6642_v2, %v3105_v22  ;;  %vm1278_vm13 = vcmp.eq.s32.totalorder %v10484_v23, %v6690_v52  ;;  %vm1882_vm14 = vcmp.eq.s32.totalorder %v10479_v24, %v6701_v35  ;;  %v4327_v47 = vsel %vm1272_vm4, %v6661_v20, %v3714_v46 }
 0x209   : > { %v4331_v17 = vsel %vm1276_vm5, %v6661_v20, %v3718_v27  ;;  %vm1886_vm15 = vcmp.eq.s32.totalorder %v10484_v23, %v6701_v35  ;;  %vm2490_vm0 = vcmp.eq.s32.totalorder %v10479_v24, %v6704_v56  ;;  %v4940_v50 = vsel %vm664_vm2, %v6664_v29, %v4327_v47 }
 0x20a   : > { %v4944_v26 = vsel %vm668_vm3, %v6664_v29, %v4331_v17  ;;  %vm2494_vm1 = vcmp.eq.s32.totalorder %v10484_v23, %v6704_v56  ;;  %v3103_v31 = vsel %vm2490_vm0, %v6737_v59, 0.0  ;;  %v10633_v55 = vadd.s32 440, %v6309_v1 }
 0x20b   : > { %v5421_v18 = vpack.c.bf16 %v4944_v26, %v4940_v50  ;;  %v3107_v49 = vsel %vm2494_vm1, %v6737_v59, 0.0  ;;  %v3716_v7 = vsel %vm1882_vm14, %v6740_v54, %v3103_v31  ;;  %vm673_vm2 = vcmp.eq.s32.totalorder %v10487_v3, %v6439_v12 }
 0x20c   : > { %v3720_v13 = vsel %vm1886_vm15, %v6740_v54, %v3107_v49  ;;  %v4329_v15 = vsel %vm1274_vm10, %v6743_v53, %v3716_v7  ;;  %vm1281_vm3 = vcmp.eq.s32.totalorder %v10487_v3, %v6465_v8  ;;  %vm677_vm4 = vcmp.eq.s32.totalorder %v10633_v55, %v6439_v12 }
 0x20d   : > { %5667 = vmatpush1.bf16.msra.mxu0 %v5421_v18  ;;  %v4333_v16 = vsel %vm1278_vm13, %v6743_v53, %v3720_v13  ;;  %v4942_v48 = vsel %vm666_vm12, %v6748_v14, %v4329_v15  ;;  %vm1285_vm5 = vcmp.eq.s32.totalorder %v10633_v55, %v6465_v8  ;;  %vm1889_vm6 = vcmp.eq.s32.totalorder %v10487_v3, %v6487_v38 }
 0x20e   : > { %v4946_v11 = vsel %vm670_vm11, %v6748_v14, %v4333_v16  ;;  %vm1893_vm7 = vcmp.eq.s32.totalorder %v10633_v55, %v6487_v38  ;;  %vm2497_vm8 = vcmp.eq.s32.totalorder %v10487_v3, %v6508_v6  ;;  %vm2501_vm9 = vcmp.eq.s32.totalorder %v10633_v55, %v6508_v6 }
 0x20f   : > { %v5423_v24 = vpack.c.bf16 %v4946_v11, %v4942_v48  ;;  %v3110_v51 = vsel %vm2497_vm8, %v6492_v40, 0.0  ;;  %vm675_vm12 = vcmp.eq.s32.totalorder %v10487_v3, %v6480_v36  ;;  %v3114_v23 = vsel %vm2501_vm9, %v6492_v40, 0.0 }
 0x210   : > { %v3723_v32 = vsel %vm1889_vm6, %v6455_v28, %v3110_v51  ;;  %vm679_vm11 = vcmp.eq.s32.totalorder %v10633_v55, %v6480_v36  ;;  %vm1283_vm10 = vcmp.eq.s32.totalorder %v10487_v3, %v6499_v41  ;;  %v3727_v25 = vsel %vm1893_vm7, %v6455_v28, %v3114_v23 }
 0x211   : > { %5872 = vmatpush1.bf16.msra.mxu1 %v5423_v24  ;;  %v4336_v4 = vsel %vm1281_vm3, %v6470_v33, %v3723_v32  ;;  %vm1287_vm13 = vcmp.eq.s32.totalorder %v10633_v55, %v6499_v41  ;;  %vm1891_vm14 = vcmp.eq.s32.totalorder %v10487_v3, %v6521_v44  ;;  %v4340_v45 = vsel %vm1285_vm5, %v6470_v33, %v3727_v25 }
 0x212   : > { %v4949_v19 = vsel %vm673_vm2, %v6473_v34, %v4336_v4  ;;  %vm1895_vm15 = vcmp.eq.s32.totalorder %v10633_v55, %v6521_v44  ;;  %vm2499_vm0 = vcmp.eq.s32.totalorder %v10487_v3, %v6530_v9  ;;  %v4953_v42 = vsel %vm677_vm4, %v6473_v34, %v4340_v45 }
 0x213   : > { %vm2503_vm1 = vcmp.eq.s32.totalorder %v10633_v55, %v6530_v9  ;;  %v3112_v5 = vsel %vm2499_vm0, %v6561_v57, 0.0  ;;  %vm672_vm3 = vcmp.eq.s32.totalorder %v10487_v3, %v6597_v39  ;;  %v5426_v43 = vpack.c.bf16 %v4953_v42, %v4949_v19 }
 0x214   : > { %v3116_v21 = vsel %vm2503_vm1, %v6561_v57, 0.0  ;;  %v3725_v22 = vsel %vm1891_vm14, %v6564_v58, %v3112_v5  ;;  %vm676_vm2 = vcmp.eq.s32.totalorder %v10633_v55, %v6597_v39  ;;  %vm1280_vm4 = vcmp.eq.s32.totalorder %v10487_v3, %v6630_v60 }
 0x215   : > { %v3729_v46 = vsel %vm1895_vm15, %v6564_v58, %v3116_v21  ;;  %v4338_v27 = vsel %vm1283_vm10, %v6591_v10, %v3725_v22  ;;  %vm1284_vm5 = vcmp.eq.s32.totalorder %v10633_v55, %v6630_v60  ;;  %5668 = vmatprep.subr.bf16.mxu0 %v5426_v43  ;;  %vm1888_vm6 = vcmp.eq.s32.totalorder %v10487_v3, %v6633_v61 }
 0x216   : > { %v4342_v47 = vsel %vm1287_vm13, %v6591_v10, %v3729_v46  ;;  %v4951_v17 = vsel %vm675_vm12, %v6594_v37, %v4338_v27  ;;  %vm1892_vm7 = vcmp.eq.s32.totalorder %v10633_v55, %v6633_v61  ;;  %vm2496_vm8 = vcmp.eq.s32.totalorder %v10487_v3, %v6636_v62 }
 0x217   : > { %v4955_v50 = vsel %vm679_vm11, %v6594_v37, %v4342_v47  ;;  %vm2500_vm9 = vcmp.eq.s32.totalorder %v10633_v55, %v6636_v62  ;;  %vm674_vm12 = vcmp.eq.s32.totalorder %v10487_v3, %v6687_v63  ;;  %v3109_v31 = vsel %vm2496_vm8, %v6639_v0, 0.0 }
 0x218   : > { %v5428_v26 = vpack.c.bf16 %v4955_v50, %v4951_v17  ;;  %v3113_v18 = vsel %vm2500_vm9, %v6639_v0, 0.0  ;;  %vm678_vm10 = vcmp.eq.s32.totalorder %v10633_v55, %v6687_v63  ;;  %v3722_v49 = vsel %vm1888_vm6, %v6642_v2, %v3109_v31 }
 0x219   : > { %v3726_v7 = vsel %vm1892_vm7, %v6642_v2, %v3113_v18  ;;  %vm1282_vm11 = vcmp.eq.s32.totalorder %v10487_v3, %v6690_v52  ;;  %vm1286_vm13 = vcmp.eq.s32.totalorder %v10633_v55, %v6690_v52  ;;  %v4335_v13 = vsel %vm1280_vm4, %v6661_v20, %v3722_v49 }
 0x21a   : > { %5873 = vmatprep.subr.bf16.mxu1 %v5428_v26  ;;  %v4339_v15 = vsel %vm1284_vm5, %v6661_v20, %v3726_v7  ;;  %vm1890_vm14 = vcmp.eq.s32.totalorder %v10487_v3, %v6701_v35  ;;  %vm1894_vm15 = vcmp.eq.s32.totalorder %v10633_v55, %v6701_v35  ;;  %v4948_v16 = vsel %vm672_vm3, %v6664_v29, %v4335_v13 }
 0x21b   : > { %v4952_v48 = vsel %vm676_vm2, %v6664_v29, %v4339_v15  ;;  %vm2498_vm0 = vcmp.eq.s32.totalorder %v10487_v3, %v6704_v56  ;;  %vm2502_vm1 = vcmp.eq.s32.totalorder %v10633_v55, %v6704_v56  ;;  %v10779_v23 = vadd.s32 448, %v6309_v1 }
 0x21c   : > { %v5425_v11 = vpack.c.bf16 %v4952_v48, %v4948_v16  ;;  %v3111_v24 = vsel %vm2498_vm0, %v6737_v59, 0.0  ;;  %v3115_v51 = vsel %vm2502_vm1, %v6737_v59, 0.0  ;;  %v10784_v4 = vadd.s32 456, %v6309_v1 }
 0x21d   : > { %v3724_v32 = vsel %vm1890_vm14, %v6740_v54, %v3111_v24  ;;  %v3728_v25 = vsel %vm1894_vm15, %v6740_v54, %v3115_v51  ;;  %v10787_v45 = vadd.s32 464, %v6309_v1  ;;  %vm681_vm3 = vcmp.eq.s32.totalorder %v10779_v23, %v6439_v12 }
 0x21e   : > { %5669 = vmatpush1.bf16.msra.mxu0 %v5425_v11  ;;  %v4337_v19 = vsel %vm1282_vm11, %v6743_v53, %v3724_v32  ;;  %v4341_v42 = vsel %vm1286_vm13, %v6743_v53, %v3728_v25  ;;  %vm1289_vm2 = vcmp.eq.s32.totalorder %v10779_v23, %v6465_v8  ;;  %vm685_vm4 = vcmp.eq.s32.totalorder %v10784_v4, %v6439_v12 }
 0x21f   : > { %v4950_v5 = vsel %vm674_vm12, %v6748_v14, %v4337_v19  ;;  %v4954_v43 = vsel %vm678_vm10, %v6748_v14, %v4341_v42  ;;  %vm1293_vm5 = vcmp.eq.s32.totalorder %v10784_v4, %v6465_v8  ;;  %vm1897_vm6 = vcmp.eq.s32.totalorder %v10779_v23, %v6487_v38 }
 0x220   : > { %v5427_v21 = vpack.c.bf16 %v4954_v43, %v4950_v5  ;;  %vm1901_vm7 = vcmp.eq.s32.totalorder %v10784_v4, %v6487_v38  ;;  %vm2505_vm8 = vcmp.eq.s32.totalorder %v10779_v23, %v6508_v6  ;;  %vm2509_vm9 = vcmp.eq.s32.totalorder %v10784_v4, %v6508_v6 }
 0x221   : > { %v3118_v3 = vsel %vm2505_vm8, %v6492_v40, 0.0  ;;  %vm683_vm12 = vcmp.eq.s32.totalorder %v10779_v23, %v6480_v36  ;;  %vm687_vm10 = vcmp.eq.s32.totalorder %v10784_v4, %v6480_v36  ;;  %v3122_v55 = vsel %vm2509_vm9, %v6492_v40, 0.0 }
 0x222   : > { %5874 = vmatpush1.bf16.msra.mxu1 %v5427_v21  ;;  %v3731_v22 = vsel %vm1897_vm6, %v6455_v28, %v3118_v3  ;;  %vm1291_vm11 = vcmp.eq.s32.totalorder %v10779_v23, %v6499_v41  ;;  %vm1295_vm13 = vcmp.eq.s32.totalorder %v10784_v4, %v6499_v41  ;;  %v3735_v46 = vsel %vm1901_vm7, %v6455_v28, %v3122_v55 }
 0x223   : > { %v4344_v27 = vsel %vm1289_vm2, %v6470_v33, %v3731_v22  ;;  %vm1899_vm14 = vcmp.eq.s32.totalorder %v10779_v23, %v6521_v44  ;;  %vm1903_vm15 = vcmp.eq.s32.totalorder %v10784_v4, %v6521_v44  ;;  %v4348_v47 = vsel %vm1293_vm5, %v6470_v33, %v3735_v46 }
 0x224   : > { %v4957_v17 = vsel %vm681_vm3, %v6473_v34, %v4344_v27  ;;  %vm2507_vm0 = vcmp.eq.s32.totalorder %v10779_v23, %v6530_v9  ;;  %vm2511_vm1 = vcmp.eq.s32.totalorder %v10784_v4, %v6530_v9  ;;  %v4961_v50 = vsel %vm685_vm4, %v6473_v34, %v4348_v47 }
 0x225   : > { %v3120_v26 = vsel %vm2507_vm0, %v6561_v57, 0.0  ;;  %v3124_v31 = vsel %vm2511_vm1, %v6561_v57, 0.0  ;;  %vm680_vm2 = vcmp.eq.s32.totalorder %v10779_v23, %v6597_v39  ;;  %v5430_v18 = vpack.c.bf16 %v4961_v50, %v4957_v17 }
 0x226   : > { %v3733_v49 = vsel %vm1899_vm14, %v6564_v58, %v3120_v26  ;;  %v3737_v7 = vsel %vm1903_vm15, %v6564_v58, %v3124_v31  ;;  %vm684_vm3 = vcmp.eq.s32.totalorder %v10784_v4, %v6597_v39  ;;  %vm1288_vm4 = vcmp.eq.s32.totalorder %v10779_v23, %v6630_v60 }
 0x227   : > { %v4346_v13 = vsel %vm1291_vm11, %v6591_v10, %v3733_v49  ;;  %v4350_v15 = vsel %vm1295_vm13, %v6591_v10, %v3737_v7  ;;  %vm1292_vm5 = vcmp.eq.s32.totalorder %v10784_v4, %v6630_v60  ;;  %5670 = vmatprep.subr.bf16.mxu0 %v5430_v18  ;;  %vm1896_vm6 = vcmp.eq.s32.totalorder %v10779_v23, %v6633_v61 }
 0x228   : > { %v4959_v16 = vsel %vm683_vm12, %v6594_v37, %v4346_v13  ;;  %v4963_v48 = vsel %vm687_vm10, %v6594_v37, %v4350_v15  ;;  %vm1900_vm7 = vcmp.eq.s32.totalorder %v10784_v4, %v6633_v61  ;;  %vm2504_vm8 = vcmp.eq.s32.totalorder %v10779_v23, %v6636_v62 }
 0x229   : > { %v5432_v11 = vpack.c.bf16 %v4963_v48, %v4959_v16  ;;  %vm2508_vm9 = vcmp.eq.s32.totalorder %v10784_v4, %v6636_v62  ;;  %vm682_vm12 = vcmp.eq.s32.totalorder %v10779_v23, %v6687_v63  ;;  %v3117_v24 = vsel %vm2504_vm8, %v6639_v0, 0.0 }
 0x22a   : > { %v3121_v51 = vsel %vm2508_vm9, %v6639_v0, 0.0  ;;  %vm686_vm10 = vcmp.eq.s32.totalorder %v10784_v4, %v6687_v63  ;;  %vm1290_vm11 = vcmp.eq.s32.totalorder %v10779_v23, %v6690_v52  ;;  %v3730_v32 = vsel %vm1896_vm6, %v6642_v2, %v3117_v24 }
 0x22b   : > { %5875 = vmatprep.subr.bf16.mxu1 %v5432_v11  ;;  %v3734_v25 = vsel %vm1900_vm7, %v6642_v2, %v3121_v51  ;;  %vm1294_vm13 = vcmp.eq.s32.totalorder %v10784_v4, %v6690_v52  ;;  %vm1898_vm14 = vcmp.eq.s32.totalorder %v10779_v23, %v6701_v35  ;;  %v4343_v19 = vsel %vm1288_vm4, %v6661_v20, %v3730_v32 }
 0x22c   : > { %v4347_v42 = vsel %vm1292_vm5, %v6661_v20, %v3734_v25  ;;  %vm1902_vm15 = vcmp.eq.s32.totalorder %v10784_v4, %v6701_v35  ;;  %vm2506_vm0 = vcmp.eq.s32.totalorder %v10779_v23, %v6704_v56  ;;  %v4956_v5 = vsel %vm680_vm2, %v6664_v29, %v4343_v19 }
 0x22d   : > { %v4960_v43 = vsel %vm684_vm3, %v6664_v29, %v4347_v42  ;;  %vm2510_vm1 = vcmp.eq.s32.totalorder %v10784_v4, %v6704_v56  ;;  %v3119_v21 = vsel %vm2506_vm0, %v6737_v59, 0.0  ;;  %v10933_v46 = vadd.s32 472, %v6309_v1 }
 0x22e   : > { %v5429_v3 = vpack.c.bf16 %v4960_v43, %v4956_v5  ;;  %v3123_v55 = vsel %vm2510_vm1, %v6737_v59, 0.0  ;;  %v3732_v22 = vsel %vm1898_vm14, %v6740_v54, %v3119_v21  ;;  %vm689_vm2 = vcmp.eq.s32.totalorder %v10787_v45, %v6439_v12 }
 0x22f   : > { %v3736_v27 = vsel %vm1902_vm15, %v6740_v54, %v3123_v55  ;;  %v4345_v47 = vsel %vm1290_vm11, %v6743_v53, %v3732_v22  ;;  %vm1297_vm3 = vcmp.eq.s32.totalorder %v10787_v45, %v6465_v8  ;;  %vm693_vm4 = vcmp.eq.s32.totalorder %v10933_v46, %v6439_v12 }
 0x230   : > { %5671 = vmatpush1.bf16.msra.mxu0 %v5429_v3  ;;  %v4349_v17 = vsel %vm1294_vm13, %v6743_v53, %v3736_v27  ;;  %v4958_v50 = vsel %vm682_vm12, %v6748_v14, %v4345_v47  ;;  %vm1301_vm5 = vcmp.eq.s32.totalorder %v10933_v46, %v6465_v8  ;;  %vm1905_vm6 = vcmp.eq.s32.totalorder %v10787_v45, %v6487_v38 }
 0x231   : > { %v4962_v26 = vsel %vm686_vm10, %v6748_v14, %v4349_v17  ;;  %vm1909_vm7 = vcmp.eq.s32.totalorder %v10933_v46, %v6487_v38  ;;  %vm2513_vm8 = vcmp.eq.s32.totalorder %v10787_v45, %v6508_v6  ;;  %vm2517_vm9 = vcmp.eq.s32.totalorder %v10933_v46, %v6508_v6 }
 0x232   : > { %v5431_v23 = vpack.c.bf16 %v4962_v26, %v4958_v50  ;;  %v3126_v31 = vsel %vm2513_vm8, %v6492_v40, 0.0  ;;  %vm691_vm12 = vcmp.eq.s32.totalorder %v10787_v45, %v6480_v36  ;;  %v3130_v4 = vsel %vm2517_vm9, %v6492_v40, 0.0 }
 0x233   : > { %v3739_v18 = vsel %vm1905_vm6, %v6455_v28, %v3126_v31  ;;  %vm695_vm10 = vcmp.eq.s32.totalorder %v10933_v46, %v6480_v36  ;;  %vm1299_vm11 = vcmp.eq.s32.totalorder %v10787_v45, %v6499_v41  ;;  %v3743_v49 = vsel %vm1909_vm7, %v6455_v28, %v3130_v4 }
 0x234   : > { %5876 = vmatpush1.bf16.msra.mxu1 %v5431_v23  ;;  %v4352_v7 = vsel %vm1297_vm3, %v6470_v33, %v3739_v18  ;;  %vm1303_vm13 = vcmp.eq.s32.totalorder %v10933_v46, %v6499_v41  ;;  %vm1907_vm14 = vcmp.eq.s32.totalorder %v10787_v45, %v6521_v44  ;;  %v4356_v13 = vsel %vm1301_vm5, %v6470_v33, %v3743_v49 }
 0x235   : > { %v4965_v15 = vsel %vm689_vm2, %v6473_v34, %v4352_v7  ;;  %vm1911_vm15 = vcmp.eq.s32.totalorder %v10933_v46, %v6521_v44  ;;  %vm2515_vm0 = vcmp.eq.s32.totalorder %v10787_v45, %v6530_v9  ;;  %v4969_v16 = vsel %vm693_vm4, %v6473_v34, %v4356_v13 }
 0x236   : > { %vm2519_vm1 = vcmp.eq.s32.totalorder %v10933_v46, %v6530_v9  ;;  %v3128_v48 = vsel %vm2515_vm0, %v6561_v57, 0.0  ;;  %vm688_vm3 = vcmp.eq.s32.totalorder %v10787_v45, %v6597_v39  ;;  %v5434_v11 = vpack.c.bf16 %v4969_v16, %v4965_v15 }
 0x237   : > { %v3132_v24 = vsel %vm2519_vm1, %v6561_v57, 0.0  ;;  %v3741_v51 = vsel %vm1907_vm14, %v6564_v58, %v3128_v48  ;;  %vm692_vm2 = vcmp.eq.s32.totalorder %v10933_v46, %v6597_v39  ;;  %vm1296_vm4 = vcmp.eq.s32.totalorder %v10787_v45, %v6630_v60 }
 0x238   : > { %v3745_v32 = vsel %vm1911_vm15, %v6564_v58, %v3132_v24  ;;  %v4354_v25 = vsel %vm1299_vm11, %v6591_v10, %v3741_v51  ;;  %vm1300_vm5 = vcmp.eq.s32.totalorder %v10933_v46, %v6630_v60  ;;  %5672 = vmatprep.subr.bf16.mxu0 %v5434_v11  ;;  %vm1904_vm6 = vcmp.eq.s32.totalorder %v10787_v45, %v6633_v61 }
 0x239   : > { %v4358_v19 = vsel %vm1303_vm13, %v6591_v10, %v3745_v32  ;;  %v4967_v42 = vsel %vm691_vm12, %v6594_v37, %v4354_v25  ;;  %vm1908_vm7 = vcmp.eq.s32.totalorder %v10933_v46, %v6633_v61  ;;  %vm2512_vm8 = vcmp.eq.s32.totalorder %v10787_v45, %v6636_v62 }
 0x23a   : > { %v4971_v5 = vsel %vm695_vm10, %v6594_v37, %v4358_v19  ;;  %vm2516_vm9 = vcmp.eq.s32.totalorder %v10933_v46, %v6636_v62  ;;  %vm690_vm12 = vcmp.eq.s32.totalorder %v10787_v45, %v6687_v63  ;;  %v3125_v21 = vsel %vm2512_vm8, %v6639_v0, 0.0 }
 0x23b   : > { %v5436_v43 = vpack.c.bf16 %v4971_v5, %v4967_v42  ;;  %v3129_v3 = vsel %vm2516_vm9, %v6639_v0, 0.0  ;;  %vm694_vm11 = vcmp.eq.s32.totalorder %v10933_v46, %v6687_v63  ;;  %v3738_v55 = vsel %vm1904_vm6, %v6642_v2, %v3125_v21 }
 0x23c   : > { %v3742_v22 = vsel %vm1908_vm7, %v6642_v2, %v3129_v3  ;;  %vm1298_vm10 = vcmp.eq.s32.totalorder %v10787_v45, %v6690_v52  ;;  %vm1302_vm13 = vcmp.eq.s32.totalorder %v10933_v46, %v6690_v52  ;;  %v4351_v27 = vsel %vm1296_vm4, %v6661_v20, %v3738_v55 }
 0x23d   : > { %5877 = vmatprep.subr.bf16.mxu1 %v5436_v43  ;;  %v4355_v47 = vsel %vm1300_vm5, %v6661_v20, %v3742_v22  ;;  %vm1906_vm14 = vcmp.eq.s32.totalorder %v10787_v45, %v6701_v35  ;;  %vm1910_vm15 = vcmp.eq.s32.totalorder %v10933_v46, %v6701_v35  ;;  %v4964_v17 = vsel %vm688_vm3, %v6664_v29, %v4351_v27 }
 0x23e   : > { %v4968_v50 = vsel %vm692_vm2, %v6664_v29, %v4355_v47  ;;  %vm2514_vm0 = vcmp.eq.s32.totalorder %v10787_v45, %v6704_v56  ;;  %vm2518_vm1 = vcmp.eq.s32.totalorder %v10933_v46, %v6704_v56  ;;  %v11079_v4 = vadd.s32 480, %v6309_v1 }
 0x23f   : > { %v5433_v26 = vpack.c.bf16 %v4968_v50, %v4964_v17  ;;  %v3127_v23 = vsel %vm2514_vm0, %v6737_v59, 0.0  ;;  %v3131_v31 = vsel %vm2518_vm1, %v6737_v59, 0.0  ;;  %v11084_v7 = vadd.s32 488, %v6309_v1 }
 0x240   : > { %v3740_v18 = vsel %vm1906_vm14, %v6740_v54, %v3127_v23  ;;  %v3744_v49 = vsel %vm1910_vm15, %v6740_v54, %v3131_v31  ;;  %v11087_v13 = vadd.s32 496, %v6309_v1  ;;  %vm697_vm3 = vcmp.eq.s32.totalorder %v11079_v4, %v6439_v12 }
 0x241   : > { %5673 = vmatpush1.bf16.msra.mxu0 %v5433_v26  ;;  %v4353_v15 = vsel %vm1298_vm10, %v6743_v53, %v3740_v18  ;;  %v4357_v16 = vsel %vm1302_vm13, %v6743_v53, %v3744_v49  ;;  %vm1305_vm2 = vcmp.eq.s32.totalorder %v11079_v4, %v6465_v8  ;;  %vm701_vm4 = vcmp.eq.s32.totalorder %v11084_v7, %v6439_v12 }
 0x242   : > { %v4966_v48 = vsel %vm690_vm12, %v6748_v14, %v4353_v15  ;;  %v4970_v11 = vsel %vm694_vm11, %v6748_v14, %v4357_v16  ;;  %vm1309_vm5 = vcmp.eq.s32.totalorder %v11084_v7, %v6465_v8  ;;  %vm1913_vm6 = vcmp.eq.s32.totalorder %v11079_v4, %v6487_v38 }
 0x243   : > { %v5435_v24 = vpack.c.bf16 %v4970_v11, %v4966_v48  ;;  %vm1917_vm7 = vcmp.eq.s32.totalorder %v11084_v7, %v6487_v38  ;;  %vm2521_vm8 = vcmp.eq.s32.totalorder %v11079_v4, %v6508_v6  ;;  %vm2525_vm9 = vcmp.eq.s32.totalorder %v11084_v7, %v6508_v6 }
 0x244   : > { %v3134_v45 = vsel %vm2521_vm8, %v6492_v40, 0.0  ;;  %vm699_vm12 = vcmp.eq.s32.totalorder %v11079_v4, %v6480_v36  ;;  %vm703_vm11 = vcmp.eq.s32.totalorder %v11084_v7, %v6480_v36  ;;  %v3138_v46 = vsel %vm2525_vm9, %v6492_v40, 0.0 }
 0x245   : > { %5878 = vmatpush1.bf16.msra.mxu1 %v5435_v24  ;;  %v3747_v51 = vsel %vm1913_vm6, %v6455_v28, %v3134_v45  ;;  %vm1307_vm10 = vcmp.eq.s32.totalorder %v11079_v4, %v6499_v41  ;;  %vm1311_vm13 = vcmp.eq.s32.totalorder %v11084_v7, %v6499_v41  ;;  %v3751_v32 = vsel %vm1917_vm7, %v6455_v28, %v3138_v46 }
 0x246   : > { %v4360_v25 = vsel %vm1305_vm2, %v6470_v33, %v3747_v51  ;;  %vm1915_vm14 = vcmp.eq.s32.totalorder %v11079_v4, %v6521_v44  ;;  %vm1919_vm15 = vcmp.eq.s32.totalorder %v11084_v7, %v6521_v44  ;;  %v4364_v19 = vsel %vm1309_vm5, %v6470_v33, %v3751_v32 }
 0x247   : > { %v4973_v42 = vsel %vm697_vm3, %v6473_v34, %v4360_v25  ;;  %vm2523_vm0 = vcmp.eq.s32.totalorder %v11079_v4, %v6530_v9  ;;  %vm2527_vm1 = vcmp.eq.s32.totalorder %v11084_v7, %v6530_v9  ;;  %v4977_v5 = vsel %vm701_vm4, %v6473_v34, %v4364_v19 }
 0x248   : > { %v3136_v43 = vsel %vm2523_vm0, %v6561_v57, 0.0  ;;  %v3140_v21 = vsel %vm2527_vm1, %v6561_v57, 0.0  ;;  %vm696_vm2 = vcmp.eq.s32.totalorder %v11079_v4, %v6597_v39  ;;  %v5438_v3 = vpack.c.bf16 %v4977_v5, %v4973_v42 }
 0x249   : > { %v3749_v55 = vsel %vm1915_vm14, %v6564_v58, %v3136_v43  ;;  %v3753_v22 = vsel %vm1919_vm15, %v6564_v58, %v3140_v21  ;;  %vm700_vm3 = vcmp.eq.s32.totalorder %v11084_v7, %v6597_v39  ;;  %vm1304_vm4 = vcmp.eq.s32.totalorder %v11079_v4, %v6630_v60 }
 0x24a   : > { %v4362_v27 = vsel %vm1307_vm10, %v6591_v10, %v3749_v55  ;;  %v4366_v47 = vsel %vm1311_vm13, %v6591_v10, %v3753_v22  ;;  %vm1308_vm5 = vcmp.eq.s32.totalorder %v11084_v7, %v6630_v60  ;;  %5674 = vmatprep.subr.bf16.mxu0 %v5438_v3  ;;  %vm1912_vm6 = vcmp.eq.s32.totalorder %v11079_v4, %v6633_v61 }
 0x24b   : > { %v4975_v17 = vsel %vm699_vm12, %v6594_v37, %v4362_v27  ;;  %v4979_v50 = vsel %vm703_vm11, %v6594_v37, %v4366_v47  ;;  %vm1916_vm7 = vcmp.eq.s32.totalorder %v11084_v7, %v6633_v61  ;;  %vm2520_vm8 = vcmp.eq.s32.totalorder %v11079_v4, %v6636_v62 }
 0x24c   : > { %v5440_v26 = vpack.c.bf16 %v4979_v50, %v4975_v17  ;;  %vm2524_vm9 = vcmp.eq.s32.totalorder %v11084_v7, %v6636_v62  ;;  %vm698_vm12 = vcmp.eq.s32.totalorder %v11079_v4, %v6687_v63  ;;  %v3133_v23 = vsel %vm2520_vm8, %v6639_v0, 0.0 }
 0x24d   : > { %v3137_v31 = vsel %vm2524_vm9, %v6639_v0, 0.0  ;;  %vm702_vm11 = vcmp.eq.s32.totalorder %v11084_v7, %v6687_v63  ;;  %vm1306_vm10 = vcmp.eq.s32.totalorder %v11079_v4, %v6690_v52  ;;  %v3746_v18 = vsel %vm1912_vm6, %v6642_v2, %v3133_v23 }
 0x24e   : > { %5879 = vmatprep.subr.bf16.mxu1 %v5440_v26  ;;  %v3750_v49 = vsel %vm1916_vm7, %v6642_v2, %v3137_v31  ;;  %vm1310_vm13 = vcmp.eq.s32.totalorder %v11084_v7, %v6690_v52  ;;  %vm1914_vm14 = vcmp.eq.s32.totalorder %v11079_v4, %v6701_v35  ;;  %v4359_v15 = vsel %vm1304_vm4, %v6661_v20, %v3746_v18 }
 0x24f   : > { %v4363_v16 = vsel %vm1308_vm5, %v6661_v20, %v3750_v49  ;;  %vm1918_vm15 = vcmp.eq.s32.totalorder %v11084_v7, %v6701_v35  ;;  %vm2522_vm0 = vcmp.eq.s32.totalorder %v11079_v4, %v6704_v56  ;;  %v4972_v48 = vsel %vm696_vm2, %v6664_v29, %v4359_v15 }
 0x250   : > { %v4976_v11 = vsel %vm700_vm3, %v6664_v29, %v4363_v16  ;;  %vm2526_vm1 = vcmp.eq.s32.totalorder %v11084_v7, %v6704_v56  ;;  %v3135_v24 = vsel %vm2522_vm0, %v6737_v59, 0.0  ;;  %v11233_v32 = vadd.s32 504, %v6309_v1 }
 0x251   : > { %v5437_v45 = vpack.c.bf16 %v4976_v11, %v4972_v48  ;;  %v3139_v46 = vsel %vm2526_vm1, %v6737_v59, 0.0  ;;  %v3748_v51 = vsel %vm1914_vm14, %v6740_v54, %v3135_v24  ;;  %vm705_vm2 = vcmp.eq.s32.totalorder %v11087_v13, %v6439_v12 }
 0x252   : > { %v3752_v25 = vsel %vm1918_vm15, %v6740_v54, %v3139_v46  ;;  %v4361_v19 = vsel %vm1306_vm10, %v6743_v53, %v3748_v51  ;;  %vm1313_vm3 = vcmp.eq.s32.totalorder %v11087_v13, %v6465_v8  ;;  %vm709_vm4 = vcmp.eq.s32.totalorder %v11233_v32, %v6439_v12 }
 0x253   : > { %5675 = vmatpush1.bf16.msra.mxu0 %v5437_v45  ;;  %v4365_v42 = vsel %vm1310_vm13, %v6743_v53, %v3752_v25  ;;  %v4974_v5 = vsel %vm698_vm12, %v6748_v14, %v4361_v19  ;;  %vm1317_vm5 = vcmp.eq.s32.totalorder %v11233_v32, %v6465_v8  ;;  %vm1921_vm6 = vcmp.eq.s32.totalorder %v11087_v13, %v6487_v38  ;;  %v208_v25 = vld [vmem:[%s8788_s26 + $0x18] sm:$0xff] }
 0x254   : > { %v4978_v43 = vsel %vm702_vm11, %v6748_v14, %v4365_v42  ;;  %vm1925_vm7 = vcmp.eq.s32.totalorder %v11233_v32, %v6487_v38  ;;  %vm2529_vm8 = vcmp.eq.s32.totalorder %v11087_v13, %v6508_v6  ;;  %vm2533_vm9 = vcmp.eq.s32.totalorder %v11233_v32, %v6508_v6 }
 0x255   : > { %v5439_v4 = vpack.c.bf16 %v4978_v43, %v4974_v5  ;;  %v3142_v21 = vsel %vm2529_vm8, %v6492_v40, 0.0  ;;  %vm707_vm12 = vcmp.eq.s32.totalorder %v11087_v13, %v6480_v36  ;;  %v3146_v7 = vsel %vm2533_vm9, %v6492_v40, 0.0 }
 0x256   : > { %v3755_v3 = vsel %vm1921_vm6, %v6455_v28, %v3142_v21  ;;  %vm711_vm11 = vcmp.eq.s32.totalorder %v11233_v32, %v6480_v36  ;;  %vm1315_vm10 = vcmp.eq.s32.totalorder %v11087_v13, %v6499_v41  ;;  %v3759_v55 = vsel %vm1925_vm7, %v6455_v28, %v3146_v7 }
 0x257   : > { %5880 = vmatpush1.bf16.msra.mxu1 %v5439_v4  ;;  %v4368_v22 = vsel %vm1313_vm3, %v6470_v33, %v3755_v3  ;;  %vm1319_vm13 = vcmp.eq.s32.totalorder %v11233_v32, %v6499_v41  ;;  %vm1923_vm14 = vcmp.eq.s32.totalorder %v11087_v13, %v6521_v44  ;;  %v4372_v27 = vsel %vm1317_vm5, %v6470_v33, %v3759_v55  ;;  %v207_v4 = vld [vmem:[%s8788_s26 + $0x10] sm:$0xff] }
 0x258   : > { %v4981_v47 = vsel %vm705_vm2, %v6473_v34, %v4368_v22  ;;  %vm1927_vm15 = vcmp.eq.s32.totalorder %v11233_v32, %v6521_v44  ;;  %vm2531_vm0 = vcmp.eq.s32.totalorder %v11087_v13, %v6530_v9  ;;  %v4985_v17 = vsel %vm709_vm4, %v6473_v34, %v4372_v27 }
 0x259   : > { %vm2535_vm1 = vcmp.eq.s32.totalorder %v11233_v32, %v6530_v9  ;;  %v3144_v50 = vsel %vm2531_vm0, %v6561_v57, 0.0  ;;  %vm704_vm3 = vcmp.eq.s32.totalorder %v11087_v13, %v6597_v39  ;;  %v5442_v26 = vpack.c.bf16 %v4985_v17, %v4981_v47 }
 0x25a   : > { %v3148_v23 = vsel %vm2535_vm1, %v6561_v57, 0.0  ;;  %v3757_v31 = vsel %vm1923_vm14, %v6564_v58, %v3144_v50  ;;  %vm708_vm2 = vcmp.eq.s32.totalorder %v11233_v32, %v6597_v39  ;;  %vm1312_vm4 = vcmp.eq.s32.totalorder %v11087_v13, %v6630_v60 }
 0x25b   : > { %v3761_v18 = vsel %vm1927_vm15, %v6564_v58, %v3148_v23  ;;  %v4370_v49 = vsel %vm1315_vm10, %v6591_v10, %v3757_v31  ;;  %vm1316_vm5 = vcmp.eq.s32.totalorder %v11233_v32, %v6630_v60  ;;  %5676 = vmatprep.subr.bf16.mxu0 %v5442_v26  ;;  %vm1920_vm6 = vcmp.eq.s32.totalorder %v11087_v13, %v6633_v61 }
 0x25c   : > { %v4374_v15 = vsel %vm1319_vm13, %v6591_v10, %v3761_v18  ;;  %v4983_v16 = vsel %vm707_vm12, %v6594_v37, %v4370_v49  ;;  %vm1924_vm7 = vcmp.eq.s32.totalorder %v11233_v32, %v6633_v61  ;;  %vm2528_vm8 = vcmp.eq.s32.totalorder %v11087_v13, %v6636_v62 }
 0x25d   : > { %v4987_v48 = vsel %vm711_vm11, %v6594_v37, %v4374_v15  ;;  %vm2532_vm9 = vcmp.eq.s32.totalorder %v11233_v32, %v6636_v62  ;;  %vm706_vm12 = vcmp.eq.s32.totalorder %v11087_v13, %v6687_v63  ;;  %v3141_v24 = vsel %vm2528_vm8, %v6639_v0, 0.0 }
 0x25e   : > { %v5444_v11 = vpack.c.bf16 %v4987_v48, %v4983_v16  ;;  %v3145_v45 = vsel %vm2532_vm9, %v6639_v0, 0.0  ;;  %vm710_vm10 = vcmp.eq.s32.totalorder %v11233_v32, %v6687_v63  ;;  %v3754_v46 = vsel %vm1920_vm6, %v6642_v2, %v3141_v24 }
 0x25f   : > { %v3758_v51 = vsel %vm1924_vm7, %v6642_v2, %v3145_v45  ;;  %vm1314_vm11 = vcmp.eq.s32.totalorder %v11087_v13, %v6690_v52  ;;  %vm1318_vm13 = vcmp.eq.s32.totalorder %v11233_v32, %v6690_v52  ;;  %v4367_v19 = vsel %vm1312_vm4, %v6661_v20, %v3754_v46 }
 0x260   : > { %5881 = vmatprep.subr.bf16.mxu1 %v5444_v11  ;;  %v4371_v42 = vsel %vm1316_vm5, %v6661_v20, %v3758_v51  ;;  %vm1922_vm14 = vcmp.eq.s32.totalorder %v11087_v13, %v6701_v35  ;;  %vm1926_vm15 = vcmp.eq.s32.totalorder %v11233_v32, %v6701_v35  ;;  %v4980_v5 = vsel %vm704_vm3, %v6664_v29, %v4367_v19 }
 0x261   : > { %v4984_v43 = vsel %vm708_vm2, %v6664_v29, %v4371_v42  ;;  %vm2530_vm0 = vcmp.eq.s32.totalorder %v11087_v13, %v6704_v56  ;;  %vm2534_vm1 = vcmp.eq.s32.totalorder %v11233_v32, %v6704_v56  ;;  %v5311_v55 = vpack.c.bf16 %v208_v25, %v208_v25 }
 0x262   : > { %v5441_v21 = vpack.c.bf16 %v4984_v43, %v4980_v5  ;;  %v3143_v7 = vsel %vm2530_vm0, %v6737_v59, 0.0  ;;  %v3147_v3 = vsel %vm2534_vm1, %v6737_v59, 0.0  ;;  %v11383_v47 = vadd.s32 512, %v6309_v1 }
 0x263   : > { %v3756_v22 = vsel %vm1922_vm14, %v6740_v54, %v3143_v7  ;;  %v3760_v27 = vsel %vm1926_vm15, %v6740_v54, %v3147_v3  ;;  %v11386_v17 = vadd.s32 520, %v6309_v1  ;;  %5678 = vmatprep.mubr.bf16.mxu0 %v5311_v55  ;;  %v5310_v23 = vpack.c.bf16 %v207_v4, %v207_v4  ;;  %5883 = vmatprep.mubr.bf16.mxu1 %v5311_v55 }
 0x264   : > { %5677 = vmatpush1.bf16.msra.mxu0 %v5441_v21  ;;  %v4369_v50 = vsel %vm1314_vm11, %v6743_v53, %v3756_v22  ;;  %v4373_v26 = vsel %vm1318_vm13, %v6743_v53, %v3760_v27  ;;  %v11397_v31 = vadd.s32 528, %v6309_v1  ;;  %vm713_vm3 = vcmp.eq.s32.totalorder %v11383_v47, %v6439_v12 }
 0x265   : > { %v4982_v18 = vsel %vm706_vm12, %v6748_v14, %v4369_v50  ;;  %v4986_v49 = vsel %vm710_vm10, %v6748_v14, %v4373_v26  ;;  %vm717_vm2 = vcmp.eq.s32.totalorder %v11386_v17, %v6439_v12  ;;  %vm1321_vm4 = vcmp.eq.s32.totalorder %v11383_v47, %v6465_v8 }
 0x266   : > { %v5443_v15 = vpack.c.bf16 %v4986_v49, %v4982_v18  ;;  %vm1325_vm5 = vcmp.eq.s32.totalorder %v11386_v17, %v6465_v8  ;;  %vm1929_vm6 = vcmp.eq.s32.totalorder %v11383_v47, %v6487_v38  ;;  %vm1933_vm7 = vcmp.eq.s32.totalorder %v11386_v17, %v6487_v38 }
 0x267   : > { %vm2537_vm8 = vcmp.eq.s32.totalorder %v11383_v47, %v6508_v6  ;;  %vm2541_vm9 = vcmp.eq.s32.totalorder %v11386_v17, %v6508_v6  ;;  %vm715_vm12 = vcmp.eq.s32.totalorder %v11383_v47, %v6480_v36  ;;  %5679 = vmatmul.mubr.bf16.vlgmr.msra.gmra.mrb[0].mxu0 %v5310_v23  ;;  %vm719_vm10 = vcmp.eq.s32.totalorder %v11386_v17, %v6480_v36 }
 0x268   : > { %5882 = vmatpush1.bf16.msra.mxu1 %v5443_v15  ;;  %v3150_v13 = vsel %vm2537_vm8, %v6492_v40, 0.0  ;;  %v3154_v32 = vsel %vm2541_vm9, %v6492_v40, 0.0  ;;  %vm1323_vm11 = vcmp.eq.s32.totalorder %v11383_v47, %v6499_v41  ;;  %vm1327_vm13 = vcmp.eq.s32.totalorder %v11386_v17, %v6499_v41 }
 0x269   : > { %v3763_v16 = vsel %vm1929_vm6, %v6455_v28, %v3150_v13  ;;  %v3767_v48 = vsel %vm1933_vm7, %v6455_v28, %v3154_v32  ;;  %vm1931_vm14 = vcmp.eq.s32.totalorder %v11383_v47, %v6521_v44  ;;  %vm1935_vm15 = vcmp.eq.s32.totalorder %v11386_v17, %v6521_v44 }
 0x26a   : > { %v4376_v11 = vsel %vm1321_vm4, %v6470_v33, %v3763_v16  ;;  %v4380_v24 = vsel %vm1325_vm5, %v6470_v33, %v3767_v48  ;;  %vm2539_vm0 = vcmp.eq.s32.totalorder %v11383_v47, %v6530_v9  ;;  %vm2543_vm1 = vcmp.eq.s32.totalorder %v11386_v17, %v6530_v9 }
 0x26b   : > { %v4989_v45 = vsel %vm713_vm3, %v6473_v34, %v4376_v11  ;;  %v4993_v46 = vsel %vm717_vm2, %v6473_v34, %v4380_v24  ;;  %v3152_v51 = vsel %vm2539_vm0, %v6561_v57, 0.0  ;;  %5884 = vmatmul.mubr.bf16.vlgmr.msra.gmra.mrb[0].mxu1 %v5310_v23  ;;  %v3156_v19 = vsel %vm2543_vm1, %v6561_v57, 0.0 }
 0x26c   : > { %v5446_v25 = vpack.c.bf16 %v4993_v46, %v4989_v45  ;;  %v3765_v42 = vsel %vm1931_vm14, %v6564_v58, %v3152_v51  ;;  %vm712_vm4 = vcmp.eq.s32.totalorder %v11383_v47, %v6597_v39  ;;  %v3769_v5 = vsel %vm1935_vm15, %v6564_v58, %v3156_v19 }
 0x26d   : > { %v4378_v43 = vsel %vm1323_vm11, %v6591_v10, %v3765_v42  ;;  %vm716_vm3 = vcmp.eq.s32.totalorder %v11386_v17, %v6597_v39  ;;  %vm1320_vm2 = vcmp.eq.s32.totalorder %v11383_v47, %v6630_v60  ;;  %v4382_v4 = vsel %vm1327_vm13, %v6591_v10, %v3769_v5 }
 0x26e   : > { %5687 = vmatprep.subr.bf16.mxu0 %v5446_v25  ;;  %v4991_v21 = vsel %vm715_vm12, %v6594_v37, %v4378_v43  ;;  %vm1324_vm5 = vcmp.eq.s32.totalorder %v11386_v17, %v6630_v60  ;;  %vm1928_vm6 = vcmp.eq.s32.totalorder %v11383_v47, %v6633_v61  ;;  %v4995_v7 = vsel %vm719_vm10, %v6594_v37, %v4382_v4 }
 0x26f   : > { %vm1932_vm7 = vcmp.eq.s32.totalorder %v11386_v17, %v6633_v61  ;;  %vm2536_vm8 = vcmp.eq.s32.totalorder %v11383_v47, %v6636_v62  ;;  %vm2540_vm9 = vcmp.eq.s32.totalorder %v11386_v17, %v6636_v62  ;;  %v5448_v3 = vpack.c.bf16 %v4995_v7, %v4991_v21 }
 0x270   : > { %v3149_v55 = vsel %vm2536_vm8, %v6639_v0, 0.0  ;;  %v3153_v22 = vsel %vm2540_vm9, %v6639_v0, 0.0  ;;  %vm714_vm12 = vcmp.eq.s32.totalorder %v11383_v47, %v6687_v63  ;;  %vm718_vm10 = vcmp.eq.s32.totalorder %v11386_v17, %v6687_v63 }
 0x271   : > { %v3762_v27 = vsel %vm1928_vm6, %v6642_v2, %v3149_v55  ;;  %v3766_v50 = vsel %vm1932_vm7, %v6642_v2, %v3153_v22  ;;  %vm1322_vm11 = vcmp.eq.s32.totalorder %v11383_v47, %v6690_v52  ;;  %5892 = vmatprep.subr.bf16.mxu1 %v5448_v3  ;;  %vm1326_vm13 = vcmp.eq.s32.totalorder %v11386_v17, %v6690_v52 }
 0x272   : > { %v4375_v26 = vsel %vm1320_vm2, %v6661_v20, %v3762_v27  ;;  %v4379_v23 = vsel %vm1324_vm5, %v6661_v20, %v3766_v50  ;;  %vm1930_vm14 = vcmp.eq.s32.totalorder %v11383_v47, %v6701_v35  ;;  %vm1934_vm15 = vcmp.eq.s32.totalorder %v11386_v17, %v6701_v35 }
 0x273   : > { %v4988_v18 = vsel %vm712_vm4, %v6664_v29, %v4375_v26  ;;  %v4992_v49 = vsel %vm716_vm3, %v6664_v29, %v4379_v23  ;;  %vm2538_vm0 = vcmp.eq.s32.totalorder %v11383_v47, %v6704_v56  ;;  %vm2542_vm1 = vcmp.eq.s32.totalorder %v11386_v17, %v6704_v56 }
 0x274   : > { %v5445_v15 = vpack.c.bf16 %v4992_v49, %v4988_v18  ;;  %v3151_v13 = vsel %vm2538_vm0, %v6737_v59, 0.0  ;;  %v11533_v32 = vadd.s32 536, %v6309_v1  ;;  %v3155_v16 = vsel %vm2542_vm1, %v6737_v59, 0.0 }
 0x275   : > { %v3764_v48 = vsel %vm1930_vm14, %v6740_v54, %v3151_v13  ;;  %vm721_vm4 = vcmp.eq.s32.totalorder %v11397_v31, %v6439_v12  ;;  %vm1329_vm3 = vcmp.eq.s32.totalorder %v11397_v31, %v6465_v8  ;;  %v3768_v11 = vsel %vm1934_vm15, %v6740_v54, %v3155_v16 }
 0x276   : > { %5688 = vmatpush1.bf16.msra.mxu0 %v5445_v15  ;;  %v4377_v24 = vsel %vm1322_vm11, %v6743_v53, %v3764_v48  ;;  %vm725_vm2 = vcmp.eq.s32.totalorder %v11533_v32, %v6439_v12  ;;  %vm1333_vm5 = vcmp.eq.s32.totalorder %v11533_v32, %v6465_v8  ;;  %v4381_v45 = vsel %vm1326_vm13, %v6743_v53, %v3768_v11 }
 0x277   : > { %v4990_v46 = vsel %vm714_vm12, %v6748_v14, %v4377_v24  ;;  %vm1937_vm6 = vcmp.eq.s32.totalorder %v11397_v31, %v6487_v38  ;;  %vm1941_vm7 = vcmp.eq.s32.totalorder %v11533_v32, %v6487_v38  ;;  %v4994_v51 = vsel %vm718_vm10, %v6748_v14, %v4381_v45 }
 0x278   : > { %vm2545_vm8 = vcmp.eq.s32.totalorder %v11397_v31, %v6508_v6  ;;  %vm2549_vm9 = vcmp.eq.s32.totalorder %v11533_v32, %v6508_v6  ;;  %vm723_vm12 = vcmp.eq.s32.totalorder %v11397_v31, %v6480_v36  ;;  %v5447_v47 = vpack.c.bf16 %v4994_v51, %v4990_v46 }
 0x279   : > { %v3158_v25 = vsel %vm2545_vm8, %v6492_v40, 0.0  ;;  %v3162_v19 = vsel %vm2549_vm9, %v6492_v40, 0.0  ;;  %vm727_vm11 = vcmp.eq.s32.totalorder %v11533_v32, %v6480_v36  ;;  %vm1331_vm10 = vcmp.eq.s32.totalorder %v11397_v31, %v6499_v41 }
 0x27a   : > { %v3771_v17 = vsel %vm1937_vm6, %v6455_v28, %v3158_v25  ;;  %v3775_v42 = vsel %vm1941_vm7, %v6455_v28, %v3162_v19  ;;  %vm1335_vm13 = vcmp.eq.s32.totalorder %v11533_v32, %v6499_v41  ;;  %5893 = vmatpush1.bf16.msra.mxu1 %v5447_v47  ;;  %vm1939_vm14 = vcmp.eq.s32.totalorder %v11397_v31, %v6521_v44 }
 0x27b   : > { %v4384_v5 = vsel %vm1329_vm3, %v6470_v33, %v3771_v17  ;;  %v4388_v43 = vsel %vm1333_vm5, %v6470_v33, %v3775_v42  ;;  %vm1943_vm15 = vcmp.eq.s32.totalorder %v11533_v32, %v6521_v44  ;;  %vm2547_vm0 = vcmp.eq.s32.totalorder %v11397_v31, %v6530_v9 }
 0x27c   : > { %v4997_v4 = vsel %vm721_vm4, %v6473_v34, %v4384_v5  ;;  %v5001_v21 = vsel %vm725_vm2, %v6473_v34, %v4388_v43  ;;  %vm2551_vm1 = vcmp.eq.s32.totalorder %v11533_v32, %v6530_v9  ;;  %v3160_v3 = vsel %vm2547_vm0, %v6561_v57, 0.0 }
 0x27d   : > { %v5450_v7 = vpack.c.bf16 %v5001_v21, %v4997_v4  ;;  %v3164_v55 = vsel %vm2551_vm1, %v6561_v57, 0.0  ;;  %vm720_vm3 = vcmp.eq.s32.totalorder %v11397_v31, %v6597_v39  ;;  %v3773_v22 = vsel %vm1939_vm14, %v6564_v58, %v3160_v3 }
 0x27e   : > { %v3777_v27 = vsel %vm1943_vm15, %v6564_v58, %v3164_v55  ;;  %vm724_vm4 = vcmp.eq.s32.totalorder %v11533_v32, %v6597_v39  ;;  %vm1328_vm2 = vcmp.eq.s32.totalorder %v11397_v31, %v6630_v60  ;;  %v4386_v50 = vsel %vm1331_vm10, %v6591_v10, %v3773_v22 }
 0x27f   : > { %5689 = vmatprep.subr.bf16.mxu0 %v5450_v7  ;;  %v4390_v26 = vsel %vm1335_vm13, %v6591_v10, %v3777_v27  ;;  %vm1332_vm5 = vcmp.eq.s32.totalorder %v11533_v32, %v6630_v60  ;;  %vm1936_vm6 = vcmp.eq.s32.totalorder %v11397_v31, %v6633_v61  ;;  %v4999_v23 = vsel %vm723_vm12, %v6594_v37, %v4386_v50 }
 0x280   : > { %v5003_v18 = vsel %vm727_vm11, %v6594_v37, %v4390_v26  ;;  %vm1940_vm7 = vcmp.eq.s32.totalorder %v11533_v32, %v6633_v61  ;;  %vm2544_vm8 = vcmp.eq.s32.totalorder %v11397_v31, %v6636_v62  ;;  %vm2548_vm9 = vcmp.eq.s32.totalorder %v11533_v32, %v6636_v62 }
 0x281   : > { %v5452_v49 = vpack.c.bf16 %v5003_v18, %v4999_v23  ;;  %v3157_v15 = vsel %vm2544_vm8, %v6639_v0, 0.0  ;;  %vm722_vm12 = vcmp.eq.s32.totalorder %v11397_v31, %v6687_v63  ;;  %v3161_v13 = vsel %vm2548_vm9, %v6639_v0, 0.0 }
 0x282   : > { %v3770_v16 = vsel %vm1936_vm6, %v6642_v2, %v3157_v15  ;;  %vm726_vm11 = vcmp.eq.s32.totalorder %v11533_v32, %v6687_v63  ;;  %vm1330_vm10 = vcmp.eq.s32.totalorder %v11397_v31, %v6690_v52  ;;  %v3774_v48 = vsel %vm1940_vm7, %v6642_v2, %v3161_v13 }
 0x283   : > { %5894 = vmatprep.subr.bf16.mxu1 %v5452_v49  ;;  %v4383_v11 = vsel %vm1328_vm2, %v6661_v20, %v3770_v16  ;;  %vm1334_vm13 = vcmp.eq.s32.totalorder %v11533_v32, %v6690_v52  ;;  %vm1938_vm14 = vcmp.eq.s32.totalorder %v11397_v31, %v6701_v35  ;;  %v4387_v24 = vsel %vm1332_vm5, %v6661_v20, %v3774_v48 }
 0x284   : > { %v4996_v45 = vsel %vm720_vm3, %v6664_v29, %v4383_v11  ;;  %vm1942_vm15 = vcmp.eq.s32.totalorder %v11533_v32, %v6701_v35  ;;  %vm2546_vm0 = vcmp.eq.s32.totalorder %v11397_v31, %v6704_v56  ;;  %v5000_v46 = vsel %vm724_vm4, %v6664_v29, %v4387_v24 }
 0x285   : > { %vm2550_vm1 = vcmp.eq.s32.totalorder %v11533_v32, %v6704_v56  ;;  %v3159_v51 = vsel %vm2546_vm0, %v6737_v59, 0.0  ;;  %v11680_v47 = vadd.s32 544, %v6309_v1  ;;  %v5449_v25 = vpack.c.bf16 %v5000_v46, %v4996_v45 }
 0x286   : > { %v3163_v19 = vsel %vm2550_vm1, %v6737_v59, 0.0  ;;  %v3772_v17 = vsel %vm1938_vm14, %v6740_v54, %v3159_v51  ;;  %v11685_v42 = vadd.s32 552, %v6309_v1 }
 0x287   : > { %v3776_v5 = vsel %vm1942_vm15, %v6740_v54, %v3163_v19  ;;  %v4385_v43 = vsel %vm1330_vm10, %v6743_v53, %v3772_v17  ;;  %vm729_vm3 = vcmp.eq.s32.totalorder %v11680_v47, %v6439_v12  ;;  %vm1337_vm4 = vcmp.eq.s32.totalorder %v11680_v47, %v6465_v8  ;;  %5690 = vmatpush1.bf16.msra.mxu0 %v5449_v25 }
 0x288   : > { %v4389_v4 = vsel %vm1334_vm13, %v6743_v53, %v3776_v5  ;;  %v4998_v21 = vsel %vm722_vm12, %v6748_v14, %v4385_v43  ;;  %vm733_vm2 = vcmp.eq.s32.totalorder %v11685_v42, %v6439_v12  ;;  %vm1341_vm5 = vcmp.eq.s32.totalorder %v11685_v42, %v6465_v8 }
 0x289   : > { %v5002_v7 = vsel %vm726_vm11, %v6748_v14, %v4389_v4  ;;  %vm1945_vm6 = vcmp.eq.s32.totalorder %v11680_v47, %v6487_v38  ;;  %vm1949_vm7 = vcmp.eq.s32.totalorder %v11685_v42, %v6487_v38  ;;  %vm2553_vm8 = vcmp.eq.s32.totalorder %v11680_v47, %v6508_v6 }
 0x28a   : > { %v5451_v31 = vpack.c.bf16 %v5002_v7, %v4998_v21  ;;  %vm2557_vm9 = vcmp.eq.s32.totalorder %v11685_v42, %v6508_v6  ;;  %v3166_v3 = vsel %vm2553_vm8, %v6492_v40, 0.0  ;;  %vm731_vm12 = vcmp.eq.s32.totalorder %v11680_v47, %v6480_v36 }
 0x28b   : > { %v3170_v32 = vsel %vm2557_vm9, %v6492_v40, 0.0  ;;  %v3779_v55 = vsel %vm1945_vm6, %v6455_v28, %v3166_v3  ;;  %vm735_vm11 = vcmp.eq.s32.totalorder %v11685_v42, %v6480_v36  ;;  %vm1339_vm10 = vcmp.eq.s32.totalorder %v11680_v47, %v6499_v41 }
 0x28c   : > { %5895 = vmatpush1.bf16.msra.mxu1 %v5451_v31  ;;  %v3783_v22 = vsel %vm1949_vm7, %v6455_v28, %v3170_v32  ;;  %v4392_v27 = vsel %vm1337_vm4, %v6470_v33, %v3779_v55  ;;  %vm1343_vm13 = vcmp.eq.s32.totalorder %v11685_v42, %v6499_v41  ;;  %vm1947_vm14 = vcmp.eq.s32.totalorder %v11680_v47, %v6521_v44 }
 0x28d   : > { %v4396_v50 = vsel %vm1341_vm5, %v6470_v33, %v3783_v22  ;;  %v5005_v26 = vsel %vm729_vm3, %v6473_v34, %v4392_v27  ;;  %vm1951_vm15 = vcmp.eq.s32.totalorder %v11685_v42, %v6521_v44  ;;  %vm2555_vm0 = vcmp.eq.s32.totalorder %v11680_v47, %v6530_v9 }
 0x28e   : > { %v5009_v23 = vsel %vm733_vm2, %v6473_v34, %v4396_v50  ;;  %vm2559_vm1 = vcmp.eq.s32.totalorder %v11685_v42, %v6530_v9  ;;  %v3168_v18 = vsel %vm2555_vm0, %v6561_v57, 0.0  ;;  %vm728_vm4 = vcmp.eq.s32.totalorder %v11680_v47, %v6597_v39 }
 0x28f   : > { %v5454_v49 = vpack.c.bf16 %v5009_v23, %v5005_v26  ;;  %v3172_v15 = vsel %vm2559_vm1, %v6561_v57, 0.0  ;;  %v3781_v13 = vsel %vm1947_vm14, %v6564_v58, %v3168_v18  ;;  %vm732_vm3 = vcmp.eq.s32.totalorder %v11685_v42, %v6597_v39 }
 0x290   : > { %v3785_v16 = vsel %vm1951_vm15, %v6564_v58, %v3172_v15  ;;  %v4394_v48 = vsel %vm1339_vm10, %v6591_v10, %v3781_v13  ;;  %vm1336_vm2 = vcmp.eq.s32.totalorder %v11680_v47, %v6630_v60  ;;  %vm1340_vm5 = vcmp.eq.s32.totalorder %v11685_v42, %v6630_v60 }
 0x291   : > { %5691 = vmatprep.subr.bf16.mxu0 %v5454_v49  ;;  %v4398_v11 = vsel %vm1343_vm13, %v6591_v10, %v3785_v16  ;;  %v5007_v24 = vsel %vm731_vm12, %v6594_v37, %v4394_v48  ;;  %vm1944_vm6 = vcmp.eq.s32.totalorder %v11680_v47, %v6633_v61  ;;  %vm1948_vm7 = vcmp.eq.s32.totalorder %v11685_v42, %v6633_v61 }
 0x292   : > { %v5011_v45 = vsel %vm735_vm11, %v6594_v37, %v4398_v11  ;;  %vm2552_vm8 = vcmp.eq.s32.totalorder %v11680_v47, %v6636_v62  ;;  %vm2556_vm9 = vcmp.eq.s32.totalorder %v11685_v42, %v6636_v62  ;;  %vm730_vm12 = vcmp.eq.s32.totalorder %v11680_v47, %v6687_v63 }
 0x293   : > { %v5456_v46 = vpack.c.bf16 %v5011_v45, %v5007_v24  ;;  %v3165_v51 = vsel %vm2552_vm8, %v6639_v0, 0.0  ;;  %v3169_v25 = vsel %vm2556_vm9, %v6639_v0, 0.0  ;;  %vm734_vm10 = vcmp.eq.s32.totalorder %v11685_v42, %v6687_v63 }
 0x294   : > { %v3778_v19 = vsel %vm1944_vm6, %v6642_v2, %v3165_v51  ;;  %v3782_v17 = vsel %vm1948_vm7, %v6642_v2, %v3169_v25  ;;  %vm1338_vm11 = vcmp.eq.s32.totalorder %v11680_v47, %v6690_v52  ;;  %vm1342_vm13 = vcmp.eq.s32.totalorder %v11685_v42, %v6690_v52 }
 0x295   : > { %5896 = vmatprep.subr.bf16.mxu1 %v5456_v46  ;;  %v4391_v5 = vsel %vm1336_vm2, %v6661_v20, %v3778_v19  ;;  %v4395_v43 = vsel %vm1340_vm5, %v6661_v20, %v3782_v17  ;;  %vm1946_vm14 = vcmp.eq.s32.totalorder %v11680_v47, %v6701_v35  ;;  %vm1950_vm15 = vcmp.eq.s32.totalorder %v11685_v42, %v6701_v35 }
 0x296   : > { %v5004_v4 = vsel %vm728_vm4, %v6664_v29, %v4391_v5  ;;  %v5008_v21 = vsel %vm732_vm3, %v6664_v29, %v4395_v43  ;;  %vm2554_vm0 = vcmp.eq.s32.totalorder %v11680_v47, %v6704_v56  ;;  %vm2558_vm1 = vcmp.eq.s32.totalorder %v11685_v42, %v6704_v56 }
 0x297   : > { %v5453_v7 = vpack.c.bf16 %v5008_v21, %v5004_v4  ;;  %v3167_v31 = vsel %vm2554_vm0, %v6737_v59, 0.0  ;;  %v3171_v3 = vsel %vm2558_vm1, %v6737_v59, 0.0  ;;  %v11831_v32 = vadd.s32 560, %v6309_v1 }
 0x298   : > { %v3780_v55 = vsel %vm1946_vm14, %v6740_v54, %v3167_v31  ;;  %v3784_v22 = vsel %vm1950_vm15, %v6740_v54, %v3171_v3  ;;  %v11836_v27 = vadd.s32 568, %v6309_v1  ;;  %v11839_v50 = vadd.s32 576, %v6309_v1 }
 0x299   : > { %5692 = vmatpush1.bf16.msra.mxu0 %v5453_v7  ;;  %v4393_v26 = vsel %vm1338_vm11, %v6743_v53, %v3780_v55  ;;  %v4397_v23 = vsel %vm1342_vm13, %v6743_v53, %v3784_v22  ;;  %vm737_vm4 = vcmp.eq.s32.totalorder %v11831_v32, %v6439_v12  ;;  %vm1345_vm3 = vcmp.eq.s32.totalorder %v11831_v32, %v6465_v8 }
 0x29a   : > { %v5006_v18 = vsel %vm730_vm12, %v6748_v14, %v4393_v26  ;;  %v5010_v49 = vsel %vm734_vm10, %v6748_v14, %v4397_v23  ;;  %vm741_vm2 = vcmp.eq.s32.totalorder %v11836_v27, %v6439_v12  ;;  %vm1349_vm5 = vcmp.eq.s32.totalorder %v11836_v27, %v6465_v8 }
 0x29b   : > { %v5455_v15 = vpack.c.bf16 %v5010_v49, %v5006_v18  ;;  %vm1953_vm6 = vcmp.eq.s32.totalorder %v11831_v32, %v6487_v38  ;;  %vm1957_vm7 = vcmp.eq.s32.totalorder %v11836_v27, %v6487_v38  ;;  %vm2561_vm8 = vcmp.eq.s32.totalorder %v11831_v32, %v6508_v6 }
 0x29c   : > { %vm2565_vm9 = vcmp.eq.s32.totalorder %v11836_v27, %v6508_v6  ;;  %v3174_v47 = vsel %vm2561_vm8, %v6492_v40, 0.0  ;;  %vm739_vm12 = vcmp.eq.s32.totalorder %v11831_v32, %v6480_v36  ;;  %vm743_vm10 = vcmp.eq.s32.totalorder %v11836_v27, %v6480_v36 }
 0x29d   : > { %5897 = vmatpush1.bf16.msra.mxu1 %v5455_v15  ;;  %v3178_v42 = vsel %vm2565_vm9, %v6492_v40, 0.0  ;;  %v3787_v13 = vsel %vm1953_vm6, %v6455_v28, %v3174_v47  ;;  %vm1347_vm11 = vcmp.eq.s32.totalorder %v11831_v32, %v6499_v41  ;;  %vm1351_vm13 = vcmp.eq.s32.totalorder %v11836_v27, %v6499_v41 }
 0x29e   : > { %v3791_v16 = vsel %vm1957_vm7, %v6455_v28, %v3178_v42  ;;  %v4400_v48 = vsel %vm1345_vm3, %v6470_v33, %v3787_v13  ;;  %vm1955_vm14 = vcmp.eq.s32.totalorder %v11831_v32, %v6521_v44  ;;  %vm1959_vm15 = vcmp.eq.s32.totalorder %v11836_v27, %v6521_v44 }
 0x29f   : > { %v4404_v11 = vsel %vm1349_vm5, %v6470_v33, %v3791_v16  ;;  %v5013_v24 = vsel %vm737_vm4, %v6473_v34, %v4400_v48  ;;  %vm2563_vm0 = vcmp.eq.s32.totalorder %v11831_v32, %v6530_v9  ;;  %vm2567_vm1 = vcmp.eq.s32.totalorder %v11836_v27, %v6530_v9 }
 0x2a0   : > { %v5017_v45 = vsel %vm741_vm2, %v6473_v34, %v4404_v11  ;;  %v3176_v46 = vsel %vm2563_vm0, %v6561_v57, 0.0  ;;  %v3180_v51 = vsel %vm2567_vm1, %v6561_v57, 0.0  ;;  %vm736_vm3 = vcmp.eq.s32.totalorder %v11831_v32, %v6597_v39 }
 0x2a1   : > { %v5458_v25 = vpack.c.bf16 %v5017_v45, %v5013_v24  ;;  %v3789_v19 = vsel %vm1955_vm14, %v6564_v58, %v3176_v46  ;;  %v3793_v17 = vsel %vm1959_vm15, %v6564_v58, %v3180_v51  ;;  %vm740_vm4 = vcmp.eq.s32.totalorder %v11836_v27, %v6597_v39 }
 0x2a2   : > { %v4402_v5 = vsel %vm1347_vm11, %v6591_v10, %v3789_v19  ;;  %v4406_v43 = vsel %vm1351_vm13, %v6591_v10, %v3793_v17  ;;  %vm1344_vm2 = vcmp.eq.s32.totalorder %v11831_v32, %v6630_v60  ;;  %vm1348_vm5 = vcmp.eq.s32.totalorder %v11836_v27, %v6630_v60 }
 0x2a3   : > { %5693 = vmatprep.subr.bf16.mxu0 %v5458_v25  ;;  %v5015_v4 = vsel %vm739_vm12, %v6594_v37, %v4402_v5  ;;  %v5019_v21 = vsel %vm743_vm10, %v6594_v37, %v4406_v43  ;;  %vm1952_vm6 = vcmp.eq.s32.totalorder %v11831_v32, %v6633_v61  ;;  %vm1956_vm7 = vcmp.eq.s32.totalorder %v11836_v27, %v6633_v61 }
 0x2a4   : > { %v5460_v7 = vpack.c.bf16 %v5019_v21, %v5015_v4  ;;  %vm2560_vm8 = vcmp.eq.s32.totalorder %v11831_v32, %v6636_v62  ;;  %vm2564_vm9 = vcmp.eq.s32.totalorder %v11836_v27, %v6636_v62  ;;  %vm738_vm12 = vcmp.eq.s32.totalorder %v11831_v32, %v6687_v63 }
 0x2a5   : > { %v3173_v31 = vsel %vm2560_vm8, %v6639_v0, 0.0  ;;  %v3177_v3 = vsel %vm2564_vm9, %v6639_v0, 0.0  ;;  %vm742_vm10 = vcmp.eq.s32.totalorder %v11836_v27, %v6687_v63  ;;  %vm1346_vm11 = vcmp.eq.s32.totalorder %v11831_v32, %v6690_v52 }
 0x2a6   : > { %5898 = vmatprep.subr.bf16.mxu1 %v5460_v7  ;;  %v3786_v55 = vsel %vm1952_vm6, %v6642_v2, %v3173_v31  ;;  %v3790_v22 = vsel %vm1956_vm7, %v6642_v2, %v3177_v3  ;;  %vm1350_vm13 = vcmp.eq.s32.totalorder %v11836_v27, %v6690_v52  ;;  %vm1954_vm14 = vcmp.eq.s32.totalorder %v11831_v32, %v6701_v35 }
 0x2a7   : > { %v4399_v26 = vsel %vm1344_vm2, %v6661_v20, %v3786_v55  ;;  %v4403_v23 = vsel %vm1348_vm5, %v6661_v20, %v3790_v22  ;;  %vm1958_vm15 = vcmp.eq.s32.totalorder %v11836_v27, %v6701_v35  ;;  %vm2562_vm0 = vcmp.eq.s32.totalorder %v11831_v32, %v6704_v56 }
 0x2a8   : > { %v5012_v18 = vsel %vm736_vm3, %v6664_v29, %v4399_v26  ;;  %v5016_v49 = vsel %vm740_vm4, %v6664_v29, %v4403_v23  ;;  %vm2566_vm1 = vcmp.eq.s32.totalorder %v11836_v27, %v6704_v56  ;;  %v3175_v15 = vsel %vm2562_vm0, %v6737_v59, 0.0 }
 0x2a9   : > { %v5457_v47 = vpack.c.bf16 %v5016_v49, %v5012_v18  ;;  %v3179_v42 = vsel %vm2566_vm1, %v6737_v59, 0.0  ;;  %v3788_v13 = vsel %vm1954_vm14, %v6740_v54, %v3175_v15  ;;  %v11985_v16 = vadd.s32 584, %v6309_v1 }
 0x2aa   : > { %v3792_v48 = vsel %vm1958_vm15, %v6740_v54, %v3179_v42  ;;  %v4401_v11 = vsel %vm1346_vm11, %v6743_v53, %v3788_v13  ;;  %vm745_vm3 = vcmp.eq.s32.totalorder %v11839_v50, %v6439_v12  ;;  %vm1353_vm4 = vcmp.eq.s32.totalorder %v11839_v50, %v6465_v8 }
 0x2ab   : > { %5694 = vmatpush1.bf16.msra.mxu0 %v5457_v47  ;;  %v4405_v24 = vsel %vm1350_vm13, %v6743_v53, %v3792_v48  ;;  %v5014_v45 = vsel %vm738_vm12, %v6748_v14, %v4401_v11  ;;  %vm749_vm2 = vcmp.eq.s32.totalorder %v11985_v16, %v6439_v12  ;;  %vm1357_vm5 = vcmp.eq.s32.totalorder %v11985_v16, %v6465_v8 }
 0x2ac   : > { %v5018_v46 = vsel %vm742_vm10, %v6748_v14, %v4405_v24  ;;  %vm1961_vm6 = vcmp.eq.s32.totalorder %v11839_v50, %v6487_v38  ;;  %vm1965_vm7 = vcmp.eq.s32.totalorder %v11985_v16, %v6487_v38  ;;  %vm2569_vm8 = vcmp.eq.s32.totalorder %v11839_v50, %v6508_v6 }
 0x2ad   : > { %v5459_v32 = vpack.c.bf16 %v5018_v46, %v5014_v45  ;;  %vm2573_vm9 = vcmp.eq.s32.totalorder %v11985_v16, %v6508_v6  ;;  %v3182_v51 = vsel %vm2569_vm8, %v6492_v40, 0.0  ;;  %vm747_vm12 = vcmp.eq.s32.totalorder %v11839_v50, %v6480_v36 }
 0x2ae   : > { %v3186_v27 = vsel %vm2573_vm9, %v6492_v40, 0.0  ;;  %v3795_v25 = vsel %vm1961_vm6, %v6455_v28, %v3182_v51  ;;  %vm751_vm10 = vcmp.eq.s32.totalorder %v11985_v16, %v6480_v36  ;;  %vm1355_vm11 = vcmp.eq.s32.totalorder %v11839_v50, %v6499_v41 }
 0x2af   : > { %5899 = vmatpush1.bf16.msra.mxu1 %v5459_v32  ;;  %v3799_v19 = vsel %vm1965_vm7, %v6455_v28, %v3186_v27  ;;  %v4408_v17 = vsel %vm1353_vm4, %v6470_v33, %v3795_v25  ;;  %vm1359_vm13 = vcmp.eq.s32.totalorder %v11985_v16, %v6499_v41  ;;  %vm1963_vm14 = vcmp.eq.s32.totalorder %v11839_v50, %v6521_v44 }
 0x2b0   : > { %v4412_v5 = vsel %vm1357_vm5, %v6470_v33, %v3799_v19  ;;  %v5021_v43 = vsel %vm745_vm3, %v6473_v34, %v4408_v17  ;;  %vm1967_vm15 = vcmp.eq.s32.totalorder %v11985_v16, %v6521_v44  ;;  %vm2571_vm0 = vcmp.eq.s32.totalorder %v11839_v50, %v6530_v9 }
 0x2b1   : > { %v5025_v4 = vsel %vm749_vm2, %v6473_v34, %v4412_v5  ;;  %vm2575_vm1 = vcmp.eq.s32.totalorder %v11985_v16, %v6530_v9  ;;  %v3184_v21 = vsel %vm2571_vm0, %v6561_v57, 0.0  ;;  %vm744_vm4 = vcmp.eq.s32.totalorder %v11839_v50, %v6597_v39 }
 0x2b2   : > { %v5462_v7 = vpack.c.bf16 %v5025_v4, %v5021_v43  ;;  %v3188_v31 = vsel %vm2575_vm1, %v6561_v57, 0.0  ;;  %v3797_v3 = vsel %vm1963_vm14, %v6564_v58, %v3184_v21  ;;  %vm748_vm3 = vcmp.eq.s32.totalorder %v11985_v16, %v6597_v39 }
 0x2b3   : > { %v3801_v55 = vsel %vm1967_vm15, %v6564_v58, %v3188_v31  ;;  %v4410_v22 = vsel %vm1355_vm11, %v6591_v10, %v3797_v3  ;;  %vm1352_vm2 = vcmp.eq.s32.totalorder %v11839_v50, %v6630_v60  ;;  %vm1356_vm5 = vcmp.eq.s32.totalorder %v11985_v16, %v6630_v60 }
 0x2b4   : > { %5695 = vmatprep.subr.bf16.mxu0 %v5462_v7  ;;  %v4414_v26 = vsel %vm1359_vm13, %v6591_v10, %v3801_v55  ;;  %v5023_v23 = vsel %vm747_vm12, %v6594_v37, %v4410_v22  ;;  %vm1960_vm6 = vcmp.eq.s32.totalorder %v11839_v50, %v6633_v61  ;;  %vm1964_vm7 = vcmp.eq.s32.totalorder %v11985_v16, %v6633_v61 }
 0x2b5   : > { %v5027_v18 = vsel %vm751_vm10, %v6594_v37, %v4414_v26  ;;  %vm2568_vm8 = vcmp.eq.s32.totalorder %v11839_v50, %v6636_v62  ;;  %vm2572_vm9 = vcmp.eq.s32.totalorder %v11985_v16, %v6636_v62  ;;  %vm746_vm12 = vcmp.eq.s32.totalorder %v11839_v50, %v6687_v63 }
 0x2b6   : > { %v5464_v49 = vpack.c.bf16 %v5027_v18, %v5023_v23  ;;  %v3181_v15 = vsel %vm2568_vm8, %v6639_v0, 0.0  ;;  %v3185_v47 = vsel %vm2572_vm9, %v6639_v0, 0.0  ;;  %vm750_vm11 = vcmp.eq.s32.totalorder %v11985_v16, %v6687_v63 }
 0x2b7   : > { %v3794_v42 = vsel %vm1960_vm6, %v6642_v2, %v3181_v15  ;;  %v3798_v13 = vsel %vm1964_vm7, %v6642_v2, %v3185_v47  ;;  %vm1354_vm10 = vcmp.eq.s32.totalorder %v11839_v50, %v6690_v52  ;;  %vm1358_vm13 = vcmp.eq.s32.totalorder %v11985_v16, %v6690_v52 }
 0x2b8   : > { %5900 = vmatprep.subr.bf16.mxu1 %v5464_v49  ;;  %v4407_v48 = vsel %vm1352_vm2, %v6661_v20, %v3794_v42  ;;  %v4411_v11 = vsel %vm1356_vm5, %v6661_v20, %v3798_v13  ;;  %vm1962_vm14 = vcmp.eq.s32.totalorder %v11839_v50, %v6701_v35  ;;  %vm1966_vm15 = vcmp.eq.s32.totalorder %v11985_v16, %v6701_v35 }
 0x2b9   : > { %v5020_v24 = vsel %vm744_vm4, %v6664_v29, %v4407_v48  ;;  %v5024_v45 = vsel %vm748_vm3, %v6664_v29, %v4411_v11  ;;  %vm2570_vm0 = vcmp.eq.s32.totalorder %v11839_v50, %v6704_v56  ;;  %vm2574_vm1 = vcmp.eq.s32.totalorder %v11985_v16, %v6704_v56 }
 0x2ba   : > { %v5461_v46 = vpack.c.bf16 %v5024_v45, %v5020_v24  ;;  %v3183_v32 = vsel %vm2570_vm0, %v6737_v59, 0.0  ;;  %v3187_v51 = vsel %vm2574_vm1, %v6737_v59, 0.0  ;;  %v12131_v27 = vadd.s32 592, %v6309_v1 }
 0x2bb   : > { %v3796_v25 = vsel %vm1962_vm14, %v6740_v54, %v3183_v32  ;;  %v3800_v19 = vsel %vm1966_vm15, %v6740_v54, %v3187_v51  ;;  %v12136_v17 = vadd.s32 600, %v6309_v1  ;;  %v12139_v5 = vadd.s32 608, %v6309_v1 }
 0x2bc   : > { %5696 = vmatpush1.bf16.msra.mxu0 %v5461_v46  ;;  %v4409_v43 = vsel %vm1354_vm10, %v6743_v53, %v3796_v25  ;;  %v4413_v4 = vsel %vm1358_vm13, %v6743_v53, %v3800_v19  ;;  %vm753_vm4 = vcmp.eq.s32.totalorder %v12131_v27, %v6439_v12  ;;  %vm1361_vm3 = vcmp.eq.s32.totalorder %v12131_v27, %v6465_v8 }
 0x2bd   : > { %v5022_v21 = vsel %vm746_vm12, %v6748_v14, %v4409_v43  ;;  %v5026_v7 = vsel %vm750_vm11, %v6748_v14, %v4413_v4  ;;  %vm757_vm2 = vcmp.eq.s32.totalorder %v12136_v17, %v6439_v12  ;;  %vm1365_vm5 = vcmp.eq.s32.totalorder %v12136_v17, %v6465_v8 }
 0x2be   : > { %v5463_v31 = vpack.c.bf16 %v5026_v7, %v5022_v21  ;;  %vm1969_vm6 = vcmp.eq.s32.totalorder %v12131_v27, %v6487_v38  ;;  %vm1973_vm7 = vcmp.eq.s32.totalorder %v12136_v17, %v6487_v38  ;;  %vm2577_vm8 = vcmp.eq.s32.totalorder %v12131_v27, %v6508_v6 }
 0x2bf   : > { %vm2581_vm9 = vcmp.eq.s32.totalorder %v12136_v17, %v6508_v6  ;;  %v3190_v50 = vsel %vm2577_vm8, %v6492_v40, 0.0  ;;  %vm755_vm12 = vcmp.eq.s32.totalorder %v12131_v27, %v6480_v36  ;;  %vm759_vm11 = vcmp.eq.s32.totalorder %v12136_v17, %v6480_v36 }
 0x2c0   : > { %5901 = vmatpush1.bf16.msra.mxu1 %v5463_v31  ;;  %v3194_v16 = vsel %vm2581_vm9, %v6492_v40, 0.0  ;;  %v3803_v3 = vsel %vm1969_vm6, %v6455_v28, %v3190_v50  ;;  %vm1363_vm10 = vcmp.eq.s32.totalorder %v12131_v27, %v6499_v41  ;;  %vm1367_vm13 = vcmp.eq.s32.totalorder %v12136_v17, %v6499_v41 }
 0x2c1   : > { %v3807_v55 = vsel %vm1973_vm7, %v6455_v28, %v3194_v16  ;;  %v4416_v22 = vsel %vm1361_vm3, %v6470_v33, %v3803_v3  ;;  %vm1971_vm14 = vcmp.eq.s32.totalorder %v12131_v27, %v6521_v44  ;;  %vm1975_vm15 = vcmp.eq.s32.totalorder %v12136_v17, %v6521_v44 }
 0x2c2   : > { %v4420_v26 = vsel %vm1365_vm5, %v6470_v33, %v3807_v55  ;;  %v5029_v23 = vsel %vm753_vm4, %v6473_v34, %v4416_v22  ;;  %vm2579_vm0 = vcmp.eq.s32.totalorder %v12131_v27, %v6530_v9  ;;  %vm2583_vm1 = vcmp.eq.s32.totalorder %v12136_v17, %v6530_v9 }
 0x2c3   : > { %v5033_v18 = vsel %vm757_vm2, %v6473_v34, %v4420_v26  ;;  %v3192_v49 = vsel %vm2579_vm0, %v6561_v57, 0.0  ;;  %v3196_v15 = vsel %vm2583_vm1, %v6561_v57, 0.0  ;;  %vm752_vm3 = vcmp.eq.s32.totalorder %v12131_v27, %v6597_v39 }
 0x2c4   : > { %v5466_v47 = vpack.c.bf16 %v5033_v18, %v5029_v23  ;;  %v3805_v42 = vsel %vm1971_vm14, %v6564_v58, %v3192_v49  ;;  %v3809_v13 = vsel %vm1975_vm15, %v6564_v58, %v3196_v15  ;;  %vm756_vm4 = vcmp.eq.s32.totalorder %v12136_v17, %v6597_v39 }
 0x2c5   : > { %v4418_v48 = vsel %vm1363_vm10, %v6591_v10, %v3805_v42  ;;  %v4422_v11 = vsel %vm1367_vm13, %v6591_v10, %v3809_v13  ;;  %vm1360_vm2 = vcmp.eq.s32.totalorder %v12131_v27, %v6630_v60  ;;  %vm1364_vm5 = vcmp.eq.s32.totalorder %v12136_v17, %v6630_v60 }
 0x2c6   : > { %5697 = vmatprep.subr.bf16.mxu0 %v5466_v47  ;;  %v5031_v24 = vsel %vm755_vm12, %v6594_v37, %v4418_v48  ;;  %v5035_v45 = vsel %vm759_vm11, %v6594_v37, %v4422_v11  ;;  %vm1968_vm6 = vcmp.eq.s32.totalorder %v12131_v27, %v6633_v61  ;;  %vm1972_vm7 = vcmp.eq.s32.totalorder %v12136_v17, %v6633_v61 }
 0x2c7   : > { %v5468_v46 = vpack.c.bf16 %v5035_v45, %v5031_v24  ;;  %vm2576_vm8 = vcmp.eq.s32.totalorder %v12131_v27, %v6636_v62  ;;  %vm2580_vm9 = vcmp.eq.s32.totalorder %v12136_v17, %v6636_v62  ;;  %vm754_vm12 = vcmp.eq.s32.totalorder %v12131_v27, %v6687_v63 }
 0x2c8   : > { %v3189_v32 = vsel %vm2576_vm8, %v6639_v0, 0.0  ;;  %v3193_v51 = vsel %vm2580_vm9, %v6639_v0, 0.0  ;;  %vm758_vm11 = vcmp.eq.s32.totalorder %v12136_v17, %v6687_v63  ;;  %vm1362_vm10 = vcmp.eq.s32.totalorder %v12131_v27, %v6690_v52 }
 0x2c9   : > { %5902 = vmatprep.subr.bf16.mxu1 %v5468_v46  ;;  %v3802_v25 = vsel %vm1968_vm6, %v6642_v2, %v3189_v32  ;;  %v3806_v19 = vsel %vm1972_vm7, %v6642_v2, %v3193_v51  ;;  %vm1366_vm13 = vcmp.eq.s32.totalorder %v12136_v17, %v6690_v52  ;;  %vm1970_vm14 = vcmp.eq.s32.totalorder %v12131_v27, %v6701_v35 }
 0x2ca   : > { %v4415_v43 = vsel %vm1360_vm2, %v6661_v20, %v3802_v25  ;;  %v4419_v4 = vsel %vm1364_vm5, %v6661_v20, %v3806_v19  ;;  %vm1974_vm15 = vcmp.eq.s32.totalorder %v12136_v17, %v6701_v35  ;;  %vm2578_vm0 = vcmp.eq.s32.totalorder %v12131_v27, %v6704_v56 }
 0x2cb   : > { %v5028_v21 = vsel %vm752_vm3, %v6664_v29, %v4415_v43  ;;  %v5032_v7 = vsel %vm756_vm4, %v6664_v29, %v4419_v4  ;;  %vm2582_vm1 = vcmp.eq.s32.totalorder %v12136_v17, %v6704_v56  ;;  %v3191_v31 = vsel %vm2578_vm0, %v6737_v59, 0.0 }
 0x2cc   : > { %v5465_v50 = vpack.c.bf16 %v5032_v7, %v5028_v21  ;;  %v3195_v16 = vsel %vm2582_vm1, %v6737_v59, 0.0  ;;  %v3804_v3 = vsel %vm1970_vm14, %v6740_v54, %v3191_v31  ;;  %v12285_v55 = vadd.s32 616, %v6309_v1 }
 0x2cd   : > { %v3808_v22 = vsel %vm1974_vm15, %v6740_v54, %v3195_v16  ;;  %v4417_v26 = vsel %vm1362_vm10, %v6743_v53, %v3804_v3  ;;  %vm761_vm3 = vcmp.eq.s32.totalorder %v12139_v5, %v6439_v12  ;;  %vm1369_vm4 = vcmp.eq.s32.totalorder %v12139_v5, %v6465_v8 }
 0x2ce   : > { %5698 = vmatpush1.bf16.msra.mxu0 %v5465_v50  ;;  %v4421_v23 = vsel %vm1366_vm13, %v6743_v53, %v3808_v22  ;;  %v5030_v18 = vsel %vm754_vm12, %v6748_v14, %v4417_v26  ;;  %vm765_vm2 = vcmp.eq.s32.totalorder %v12285_v55, %v6439_v12  ;;  %vm1373_vm5 = vcmp.eq.s32.totalorder %v12285_v55, %v6465_v8 }
 0x2cf   : > { %v5034_v49 = vsel %vm758_vm11, %v6748_v14, %v4421_v23  ;;  %vm1977_vm6 = vcmp.eq.s32.totalorder %v12139_v5, %v6487_v38  ;;  %vm1981_vm7 = vcmp.eq.s32.totalorder %v12285_v55, %v6487_v38  ;;  %vm2585_vm8 = vcmp.eq.s32.totalorder %v12139_v5, %v6508_v6 }
 0x2d0   : > { %v5467_v27 = vpack.c.bf16 %v5034_v49, %v5030_v18  ;;  %vm2589_vm9 = vcmp.eq.s32.totalorder %v12285_v55, %v6508_v6  ;;  %v3198_v15 = vsel %vm2585_vm8, %v6492_v40, 0.0  ;;  %vm763_vm12 = vcmp.eq.s32.totalorder %v12139_v5, %v6480_v36 }
 0x2d1   : > { %v3202_v17 = vsel %vm2589_vm9, %v6492_v40, 0.0  ;;  %v3811_v47 = vsel %vm1977_vm6, %v6455_v28, %v3198_v15  ;;  %vm767_vm11 = vcmp.eq.s32.totalorder %v12285_v55, %v6480_v36  ;;  %vm1371_vm10 = vcmp.eq.s32.totalorder %v12139_v5, %v6499_v41 }
 0x2d2   : > { %5903 = vmatpush1.bf16.msra.mxu1 %v5467_v27  ;;  %v3815_v42 = vsel %vm1981_vm7, %v6455_v28, %v3202_v17  ;;  %v4424_v13 = vsel %vm1369_vm4, %v6470_v33, %v3811_v47  ;;  %vm1375_vm13 = vcmp.eq.s32.totalorder %v12285_v55, %v6499_v41  ;;  %vm1979_vm14 = vcmp.eq.s32.totalorder %v12139_v5, %v6521_v44 }
 0x2d3   : > { %v4428_v48 = vsel %vm1373_vm5, %v6470_v33, %v3815_v42  ;;  %v5037_v11 = vsel %vm761_vm3, %v6473_v34, %v4424_v13  ;;  %vm1983_vm15 = vcmp.eq.s32.totalorder %v12285_v55, %v6521_v44  ;;  %vm2587_vm0 = vcmp.eq.s32.totalorder %v12139_v5, %v6530_v9 }
 0x2d4   : > { %v5041_v24 = vsel %vm765_vm2, %v6473_v34, %v4428_v48  ;;  %vm2591_vm1 = vcmp.eq.s32.totalorder %v12285_v55, %v6530_v9  ;;  %v3200_v45 = vsel %vm2587_vm0, %v6561_v57, 0.0  ;;  %vm760_vm4 = vcmp.eq.s32.totalorder %v12139_v5, %v6597_v39 }
 0x2d5   : > { %v5470_v46 = vpack.c.bf16 %v5041_v24, %v5037_v11  ;;  %v3204_v32 = vsel %vm2591_vm1, %v6561_v57, 0.0  ;;  %v3813_v51 = vsel %vm1979_vm14, %v6564_v58, %v3200_v45  ;;  %vm764_vm3 = vcmp.eq.s32.totalorder %v12285_v55, %v6597_v39 }
 0x2d6   : > { %v3817_v25 = vsel %vm1983_vm15, %v6564_v58, %v3204_v32  ;;  %v4426_v19 = vsel %vm1371_vm10, %v6591_v10, %v3813_v51  ;;  %vm1368_vm2 = vcmp.eq.s32.totalorder %v12139_v5, %v6630_v60  ;;  %vm1372_vm5 = vcmp.eq.s32.totalorder %v12285_v55, %v6630_v60 }
 0x2d7   : > { %5699 = vmatprep.subr.bf16.mxu0 %v5470_v46  ;;  %v4430_v43 = vsel %vm1375_vm13, %v6591_v10, %v3817_v25  ;;  %v5039_v4 = vsel %vm763_vm12, %v6594_v37, %v4426_v19  ;;  %vm1976_vm6 = vcmp.eq.s32.totalorder %v12139_v5, %v6633_v61  ;;  %vm1980_vm7 = vcmp.eq.s32.totalorder %v12285_v55, %v6633_v61 }
 0x2d8   : > { %v5043_v21 = vsel %vm767_vm11, %v6594_v37, %v4430_v43  ;;  %vm2584_vm8 = vcmp.eq.s32.totalorder %v12139_v5, %v6636_v62  ;;  %vm2588_vm9 = vcmp.eq.s32.totalorder %v12285_v55, %v6636_v62  ;;  %vm762_vm12 = vcmp.eq.s32.totalorder %v12139_v5, %v6687_v63 }
 0x2d9   : > { %v5472_v7 = vpack.c.bf16 %v5043_v21, %v5039_v4  ;;  %v3197_v31 = vsel %vm2584_vm8, %v6639_v0, 0.0  ;;  %v3201_v50 = vsel %vm2588_vm9, %v6639_v0, 0.0  ;;  %vm766_vm10 = vcmp.eq.s32.totalorder %v12285_v55, %v6687_v63 }
 0x2da   : > { %v3810_v16 = vsel %vm1976_vm6, %v6642_v2, %v3197_v31  ;;  %v3814_v3 = vsel %vm1980_vm7, %v6642_v2, %v3201_v50  ;;  %vm1370_vm11 = vcmp.eq.s32.totalorder %v12139_v5, %v6690_v52  ;;  %vm1374_vm13 = vcmp.eq.s32.totalorder %v12285_v55, %v6690_v52 }
 0x2db   : > { %5904 = vmatprep.subr.bf16.mxu1 %v5472_v7  ;;  %v4423_v22 = vsel %vm1368_vm2, %v6661_v20, %v3810_v16  ;;  %v4427_v26 = vsel %vm1372_vm5, %v6661_v20, %v3814_v3  ;;  %vm1978_vm14 = vcmp.eq.s32.totalorder %v12139_v5, %v6701_v35  ;;  %vm1982_vm15 = vcmp.eq.s32.totalorder %v12285_v55, %v6701_v35 }
 0x2dc   : > { %v5036_v23 = vsel %vm760_vm4, %v6664_v29, %v4423_v22  ;;  %v5040_v18 = vsel %vm764_vm3, %v6664_v29, %v4427_v26  ;;  %vm2586_vm0 = vcmp.eq.s32.totalorder %v12139_v5, %v6704_v56  ;;  %vm2590_vm1 = vcmp.eq.s32.totalorder %v12285_v55, %v6704_v56 }
 0x2dd   : > { %v5469_v49 = vpack.c.bf16 %v5040_v18, %v5036_v23  ;;  %v3199_v27 = vsel %vm2586_vm0, %v6737_v59, 0.0  ;;  %v3203_v15 = vsel %vm2590_vm1, %v6737_v59, 0.0  ;;  %v12431_v17 = vadd.s32 624, %v6309_v1 }
 0x2de   : > { %v3812_v47 = vsel %vm1978_vm14, %v6740_v54, %v3199_v27  ;;  %v3816_v42 = vsel %vm1982_vm15, %v6740_v54, %v3203_v15  ;;  %v12436_v13 = vadd.s32 632, %v6309_v1  ;;  %v12439_v48 = vadd.s32 640, %v6309_v1 }
 0x2df   : > { %5700 = vmatpush1.bf16.msra.mxu0 %v5469_v49  ;;  %v4425_v11 = vsel %vm1370_vm11, %v6743_v53, %v3812_v47  ;;  %v4429_v24 = vsel %vm1374_vm13, %v6743_v53, %v3816_v42  ;;  %vm769_vm4 = vcmp.eq.s32.totalorder %v12431_v17, %v6439_v12  ;;  %vm1377_vm3 = vcmp.eq.s32.totalorder %v12431_v17, %v6465_v8 }
 0x2e0   : > { %v5038_v45 = vsel %vm762_vm12, %v6748_v14, %v4425_v11  ;;  %v5042_v46 = vsel %vm766_vm10, %v6748_v14, %v4429_v24  ;;  %vm773_vm2 = vcmp.eq.s32.totalorder %v12436_v13, %v6439_v12  ;;  %vm1381_vm5 = vcmp.eq.s32.totalorder %v12436_v13, %v6465_v8 }
 0x2e1   : > { %v5471_v32 = vpack.c.bf16 %v5042_v46, %v5038_v45  ;;  %vm1985_vm6 = vcmp.eq.s32.totalorder %v12431_v17, %v6487_v38  ;;  %vm1989_vm7 = vcmp.eq.s32.totalorder %v12436_v13, %v6487_v38  ;;  %vm2593_vm8 = vcmp.eq.s32.totalorder %v12431_v17, %v6508_v6 }
 0x2e2   : > { %vm2597_vm9 = vcmp.eq.s32.totalorder %v12436_v13, %v6508_v6  ;;  %v3206_v5 = vsel %vm2593_vm8, %v6492_v40, 0.0  ;;  %vm771_vm12 = vcmp.eq.s32.totalorder %v12431_v17, %v6480_v36  ;;  %vm775_vm10 = vcmp.eq.s32.totalorder %v12436_v13, %v6480_v36 }
 0x2e3   : > { %5905 = vmatpush1.bf16.msra.mxu1 %v5471_v32  ;;  %v3210_v55 = vsel %vm2597_vm9, %v6492_v40, 0.0  ;;  %v3819_v51 = vsel %vm1985_vm6, %v6455_v28, %v3206_v5  ;;  %vm1379_vm11 = vcmp.eq.s32.totalorder %v12431_v17, %v6499_v41  ;;  %vm1383_vm13 = vcmp.eq.s32.totalorder %v12436_v13, %v6499_v41 }
 0x2e4   : > { %v3823_v25 = vsel %vm1989_vm7, %v6455_v28, %v3210_v55  ;;  %v4432_v19 = vsel %vm1377_vm3, %v6470_v33, %v3819_v51  ;;  %vm1987_vm14 = vcmp.eq.s32.totalorder %v12431_v17, %v6521_v44  ;;  %vm1991_vm15 = vcmp.eq.s32.totalorder %v12436_v13, %v6521_v44 }
 0x2e5   : > { %v4436_v43 = vsel %vm1381_vm5, %v6470_v33, %v3823_v25  ;;  %v5045_v4 = vsel %vm769_vm4, %v6473_v34, %v4432_v19  ;;  %vm2595_vm0 = vcmp.eq.s32.totalorder %v12431_v17, %v6530_v9  ;;  %vm2599_vm1 = vcmp.eq.s32.totalorder %v12436_v13, %v6530_v9 }
 0x2e6   : > { %v5049_v21 = vsel %vm773_vm2, %v6473_v34, %v4436_v43  ;;  %v3208_v7 = vsel %vm2595_vm0, %v6561_v57, 0.0  ;;  %v3212_v31 = vsel %vm2599_vm1, %v6561_v57, 0.0  ;;  %vm768_vm3 = vcmp.eq.s32.totalorder %v12431_v17, %v6597_v39 }
 0x2e7   : > { %v5474_v50 = vpack.c.bf16 %v5049_v21, %v5045_v4  ;;  %v3821_v16 = vsel %vm1987_vm14, %v6564_v58, %v3208_v7  ;;  %v3825_v3 = vsel %vm1991_vm15, %v6564_v58, %v3212_v31  ;;  %vm772_vm4 = vcmp.eq.s32.totalorder %v12436_v13, %v6597_v39 }
 0x2e8   : > { %v4434_v22 = vsel %vm1379_vm11, %v6591_v10, %v3821_v16  ;;  %v4438_v26 = vsel %vm1383_vm13, %v6591_v10, %v3825_v3  ;;  %vm1376_vm2 = vcmp.eq.s32.totalorder %v12431_v17, %v6630_v60  ;;  %vm1380_vm5 = vcmp.eq.s32.totalorder %v12436_v13, %v6630_v60 }
 0x2e9   : > { %5701 = vmatprep.subr.bf16.mxu0 %v5474_v50  ;;  %v5047_v23 = vsel %vm771_vm12, %v6594_v37, %v4434_v22  ;;  %v5051_v18 = vsel %vm775_vm10, %v6594_v37, %v4438_v26  ;;  %vm1984_vm6 = vcmp.eq.s32.totalorder %v12431_v17, %v6633_v61  ;;  %vm1988_vm7 = vcmp.eq.s32.totalorder %v12436_v13, %v6633_v61 }
 0x2ea   : > { %v5476_v49 = vpack.c.bf16 %v5051_v18, %v5047_v23  ;;  %vm2592_vm8 = vcmp.eq.s32.totalorder %v12431_v17, %v6636_v62  ;;  %vm2596_vm9 = vcmp.eq.s32.totalorder %v12436_v13, %v6636_v62  ;;  %vm770_vm12 = vcmp.eq.s32.totalorder %v12431_v17, %v6687_v63 }
 0x2eb   : > { %v3205_v27 = vsel %vm2592_vm8, %v6639_v0, 0.0  ;;  %v3209_v15 = vsel %vm2596_vm9, %v6639_v0, 0.0  ;;  %vm774_vm10 = vcmp.eq.s32.totalorder %v12436_v13, %v6687_v63  ;;  %vm1378_vm11 = vcmp.eq.s32.totalorder %v12431_v17, %v6690_v52 }
 0x2ec   : > { %5906 = vmatprep.subr.bf16.mxu1 %v5476_v49  ;;  %v3818_v47 = vsel %vm1984_vm6, %v6642_v2, %v3205_v27  ;;  %v3822_v42 = vsel %vm1988_vm7, %v6642_v2, %v3209_v15  ;;  %vm1382_vm13 = vcmp.eq.s32.totalorder %v12436_v13, %v6690_v52  ;;  %vm1986_vm14 = vcmp.eq.s32.totalorder %v12431_v17, %v6701_v35 }
 0x2ed   : > { %v4431_v11 = vsel %vm1376_vm2, %v6661_v20, %v3818_v47  ;;  %v4435_v24 = vsel %vm1380_vm5, %v6661_v20, %v3822_v42  ;;  %vm1990_vm15 = vcmp.eq.s32.totalorder %v12436_v13, %v6701_v35  ;;  %vm2594_vm0 = vcmp.eq.s32.totalorder %v12431_v17, %v6704_v56 }
 0x2ee   : > { %v5044_v45 = vsel %vm768_vm3, %v6664_v29, %v4431_v11  ;;  %v5048_v46 = vsel %vm772_vm4, %v6664_v29, %v4435_v24  ;;  %vm2598_vm1 = vcmp.eq.s32.totalorder %v12436_v13, %v6704_v56  ;;  %v3207_v32 = vsel %vm2594_vm0, %v6737_v59, 0.0 }
 0x2ef   : > { %v5473_v5 = vpack.c.bf16 %v5048_v46, %v5044_v45  ;;  %v3211_v55 = vsel %vm2598_vm1, %v6737_v59, 0.0  ;;  %v3820_v51 = vsel %vm1986_vm14, %v6740_v54, %v3207_v32  ;;  %v12585_v25 = vadd.s32 648, %v6309_v1 }
 0x2f0   : > { %v3824_v19 = vsel %vm1990_vm15, %v6740_v54, %v3211_v55  ;;  %v4433_v43 = vsel %vm1378_vm11, %v6743_v53, %v3820_v51  ;;  %vm777_vm3 = vcmp.eq.s32.totalorder %v12439_v48, %v6439_v12  ;;  %vm1385_vm4 = vcmp.eq.s32.totalorder %v12439_v48, %v6465_v8 }
 0x2f1   : > { %5702 = vmatpush1.bf16.msra.mxu0 %v5473_v5  ;;  %v4437_v4 = vsel %vm1382_vm13, %v6743_v53, %v3824_v19  ;;  %v5046_v21 = vsel %vm770_vm12, %v6748_v14, %v4433_v43  ;;  %vm781_vm2 = vcmp.eq.s32.totalorder %v12585_v25, %v6439_v12  ;;  %vm1389_vm5 = vcmp.eq.s32.totalorder %v12585_v25, %v6465_v8 }
 0x2f2   : > { %v5050_v7 = vsel %vm774_vm10, %v6748_v14, %v4437_v4  ;;  %vm1993_vm6 = vcmp.eq.s32.totalorder %v12439_v48, %v6487_v38  ;;  %vm1997_vm7 = vcmp.eq.s32.totalorder %v12585_v25, %v6487_v38  ;;  %vm2601_vm8 = vcmp.eq.s32.totalorder %v12439_v48, %v6508_v6 }
 0x2f3   : > { %v5475_v17 = vpack.c.bf16 %v5050_v7, %v5046_v21  ;;  %vm2605_vm9 = vcmp.eq.s32.totalorder %v12585_v25, %v6508_v6  ;;  %v3214_v31 = vsel %vm2601_vm8, %v6492_v40, 0.0  ;;  %vm779_vm12 = vcmp.eq.s32.totalorder %v12439_v48, %v6480_v36 }
 0x2f4   : > { %v3218_v13 = vsel %vm2605_vm9, %v6492_v40, 0.0  ;;  %v3827_v50 = vsel %vm1993_vm6, %v6455_v28, %v3214_v31  ;;  %vm783_vm10 = vcmp.eq.s32.totalorder %v12585_v25, %v6480_v36  ;;  %vm1387_vm11 = vcmp.eq.s32.totalorder %v12439_v48, %v6499_v41 }
 0x2f5   : > { %5907 = vmatpush1.bf16.msra.mxu1 %v5475_v17  ;;  %v3831_v16 = vsel %vm1997_vm7, %v6455_v28, %v3218_v13  ;;  %v4440_v3 = vsel %vm1385_vm4, %v6470_v33, %v3827_v50  ;;  %vm1391_vm13 = vcmp.eq.s32.totalorder %v12585_v25, %v6499_v41  ;;  %vm1995_vm14 = vcmp.eq.s32.totalorder %v12439_v48, %v6521_v44 }
 0x2f6   : > { %v4444_v22 = vsel %vm1389_vm5, %v6470_v33, %v3831_v16  ;;  %v5053_v26 = vsel %vm777_vm3, %v6473_v34, %v4440_v3  ;;  %vm1999_vm15 = vcmp.eq.s32.totalorder %v12585_v25, %v6521_v44  ;;  %vm2603_vm0 = vcmp.eq.s32.totalorder %v12439_v48, %v6530_v9 }
 0x2f7   : > { %v5057_v23 = vsel %vm781_vm2, %v6473_v34, %v4444_v22  ;;  %vm2607_vm1 = vcmp.eq.s32.totalorder %v12585_v25, %v6530_v9  ;;  %v3216_v18 = vsel %vm2603_vm0, %v6561_v57, 0.0  ;;  %vm776_vm4 = vcmp.eq.s32.totalorder %v12439_v48, %v6597_v39 }
 0x2f8   : > { %v5478_v49 = vpack.c.bf16 %v5057_v23, %v5053_v26  ;;  %v3220_v27 = vsel %vm2607_vm1, %v6561_v57, 0.0  ;;  %v3829_v15 = vsel %vm1995_vm14, %v6564_v58, %v3216_v18  ;;  %vm780_vm3 = vcmp.eq.s32.totalorder %v12585_v25, %v6597_v39 }
 0x2f9   : > { %v3833_v47 = vsel %vm1999_vm15, %v6564_v58, %v3220_v27  ;;  %v4442_v42 = vsel %vm1387_vm11, %v6591_v10, %v3829_v15  ;;  %vm1384_vm2 = vcmp.eq.s32.totalorder %v12439_v48, %v6630_v60  ;;  %vm1388_vm5 = vcmp.eq.s32.totalorder %v12585_v25, %v6630_v60 }
 0x2fa   : > { %5703 = vmatprep.subr.bf16.mxu0 %v5478_v49  ;;  %v4446_v11 = vsel %vm1391_vm13, %v6591_v10, %v3833_v47  ;;  %v5055_v24 = vsel %vm779_vm12, %v6594_v37, %v4442_v42  ;;  %vm1992_vm6 = vcmp.eq.s32.totalorder %v12439_v48, %v6633_v61  ;;  %vm1996_vm7 = vcmp.eq.s32.totalorder %v12585_v25, %v6633_v61 }
 0x2fb   : > { %v5059_v45 = vsel %vm783_vm10, %v6594_v37, %v4446_v11  ;;  %vm2600_vm8 = vcmp.eq.s32.totalorder %v12439_v48, %v6636_v62  ;;  %vm2604_vm9 = vcmp.eq.s32.totalorder %v12585_v25, %v6636_v62  ;;  %vm778_vm12 = vcmp.eq.s32.totalorder %v12439_v48, %v6687_v63 }
 0x2fc   : > { %v5480_v46 = vpack.c.bf16 %v5059_v45, %v5055_v24  ;;  %v3213_v32 = vsel %vm2600_vm8, %v6639_v0, 0.0  ;;  %v3217_v5 = vsel %vm2604_vm9, %v6639_v0, 0.0  ;;  %vm782_vm11 = vcmp.eq.s32.totalorder %v12585_v25, %v6687_v63 }
 0x2fd   : > { %v3826_v55 = vsel %vm1992_vm6, %v6642_v2, %v3213_v32  ;;  %v3830_v51 = vsel %vm1996_vm7, %v6642_v2, %v3217_v5  ;;  %vm1386_vm10 = vcmp.eq.s32.totalorder %v12439_v48, %v6690_v52  ;;  %vm1390_vm13 = vcmp.eq.s32.totalorder %v12585_v25, %v6690_v52 }
 0x2fe   : > { %5908 = vmatprep.subr.bf16.mxu1 %v5480_v46  ;;  %v4439_v19 = vsel %vm1384_vm2, %v6661_v20, %v3826_v55  ;;  %v4443_v43 = vsel %vm1388_vm5, %v6661_v20, %v3830_v51  ;;  %vm1994_vm14 = vcmp.eq.s32.totalorder %v12439_v48, %v6701_v35  ;;  %vm1998_vm15 = vcmp.eq.s32.totalorder %v12585_v25, %v6701_v35 }
 0x2ff   : > { %v5052_v4 = vsel %vm776_vm4, %v6664_v29, %v4439_v19  ;;  %v5056_v21 = vsel %vm780_vm3, %v6664_v29, %v4443_v43  ;;  %vm2602_vm0 = vcmp.eq.s32.totalorder %v12439_v48, %v6704_v56  ;;  %vm2606_vm1 = vcmp.eq.s32.totalorder %v12585_v25, %v6704_v56 }
 0x300   : > { %v5477_v7 = vpack.c.bf16 %v5056_v21, %v5052_v4  ;;  %v3215_v17 = vsel %vm2602_vm0, %v6737_v59, 0.0  ;;  %v3219_v31 = vsel %vm2606_vm1, %v6737_v59, 0.0  ;;  %v12731_v13 = vadd.s32 656, %v6309_v1 }
 0x301   : > { %v3828_v50 = vsel %vm1994_vm14, %v6740_v54, %v3215_v17  ;;  %v3832_v16 = vsel %vm1998_vm15, %v6740_v54, %v3219_v31  ;;  %v12736_v3 = vadd.s32 664, %v6309_v1  ;;  %v12739_v22 = vadd.s32 672, %v6309_v1 }
 0x302   : > { %5704 = vmatpush1.bf16.msra.mxu0 %v5477_v7  ;;  %v4441_v26 = vsel %vm1386_vm10, %v6743_v53, %v3828_v50  ;;  %v4445_v23 = vsel %vm1390_vm13, %v6743_v53, %v3832_v16  ;;  %vm785_vm4 = vcmp.eq.s32.totalorder %v12731_v13, %v6439_v12  ;;  %vm1393_vm3 = vcmp.eq.s32.totalorder %v12731_v13, %v6465_v8 }
 0x303   : > { %v5054_v18 = vsel %vm778_vm12, %v6748_v14, %v4441_v26  ;;  %v5058_v49 = vsel %vm782_vm11, %v6748_v14, %v4445_v23  ;;  %vm789_vm2 = vcmp.eq.s32.totalorder %v12736_v3, %v6439_v12  ;;  %vm1397_vm5 = vcmp.eq.s32.totalorder %v12736_v3, %v6465_v8 }
 0x304   : > { %v5479_v27 = vpack.c.bf16 %v5058_v49, %v5054_v18  ;;  %vm2001_vm6 = vcmp.eq.s32.totalorder %v12731_v13, %v6487_v38  ;;  %vm2005_vm7 = vcmp.eq.s32.totalorder %v12736_v3, %v6487_v38  ;;  %vm2609_vm8 = vcmp.eq.s32.totalorder %v12731_v13, %v6508_v6 }
 0x305   : > { %vm2613_vm9 = vcmp.eq.s32.totalorder %v12736_v3, %v6508_v6  ;;  %v3222_v48 = vsel %vm2609_vm8, %v6492_v40, 0.0  ;;  %vm787_vm12 = vcmp.eq.s32.totalorder %v12731_v13, %v6480_v36  ;;  %vm791_vm11 = vcmp.eq.s32.totalorder %v12736_v3, %v6480_v36 }
 0x306   : > { %5909 = vmatpush1.bf16.msra.mxu1 %v5479_v27  ;;  %v3226_v25 = vsel %vm2613_vm9, %v6492_v40, 0.0  ;;  %v3835_v15 = vsel %vm2001_vm6, %v6455_v28, %v3222_v48  ;;  %vm1395_vm10 = vcmp.eq.s32.totalorder %v12731_v13, %v6499_v41  ;;  %vm1399_vm13 = vcmp.eq.s32.totalorder %v12736_v3, %v6499_v41 }
 0x307   : > { %v3839_v47 = vsel %vm2005_vm7, %v6455_v28, %v3226_v25  ;;  %v4448_v42 = vsel %vm1393_vm3, %v6470_v33, %v3835_v15  ;;  %vm2003_vm14 = vcmp.eq.s32.totalorder %v12731_v13, %v6521_v44  ;;  %vm2007_vm15 = vcmp.eq.s32.totalorder %v12736_v3, %v6521_v44 }
 0x308   : > { %v4452_v11 = vsel %vm1397_vm5, %v6470_v33, %v3839_v47  ;;  %v5061_v24 = vsel %vm785_vm4, %v6473_v34, %v4448_v42  ;;  %vm2611_vm0 = vcmp.eq.s32.totalorder %v12731_v13, %v6530_v9  ;;  %vm2615_vm1 = vcmp.eq.s32.totalorder %v12736_v3, %v6530_v9 }
 0x309   : > { %v5065_v45 = vsel %vm789_vm2, %v6473_v34, %v4452_v11  ;;  %v3224_v46 = vsel %vm2611_vm0, %v6561_v57, 0.0  ;;  %v3228_v32 = vsel %vm2615_vm1, %v6561_v57, 0.0  ;;  %vm784_vm3 = vcmp.eq.s32.totalorder %v12731_v13, %v6597_v39 }
 0x30a   : > { %v5482_v5 = vpack.c.bf16 %v5065_v45, %v5061_v24  ;;  %v3837_v55 = vsel %vm2003_vm14, %v6564_v58, %v3224_v46  ;;  %v3841_v51 = vsel %vm2007_vm15, %v6564_v58, %v3228_v32  ;;  %vm788_vm4 = vcmp.eq.s32.totalorder %v12736_v3, %v6597_v39 }
 0x30b   : > { %v4450_v19 = vsel %vm1395_vm10, %v6591_v10, %v3837_v55  ;;  %v4454_v43 = vsel %vm1399_vm13, %v6591_v10, %v3841_v51  ;;  %vm1392_vm2 = vcmp.eq.s32.totalorder %v12731_v13, %v6630_v60  ;;  %vm1396_vm5 = vcmp.eq.s32.totalorder %v12736_v3, %v6630_v60 }
 0x30c   : > { %5705 = vmatprep.subr.bf16.mxu0 %v5482_v5  ;;  %v5063_v4 = vsel %vm787_vm12, %v6594_v37, %v4450_v19  ;;  %v5067_v21 = vsel %vm791_vm11, %v6594_v37, %v4454_v43  ;;  %vm2000_vm6 = vcmp.eq.s32.totalorder %v12731_v13, %v6633_v61  ;;  %vm2004_vm7 = vcmp.eq.s32.totalorder %v12736_v3, %v6633_v61 }
 0x30d   : > { %v5484_v7 = vpack.c.bf16 %v5067_v21, %v5063_v4  ;;  %vm2608_vm8 = vcmp.eq.s32.totalorder %v12731_v13, %v6636_v62  ;;  %vm2612_vm9 = vcmp.eq.s32.totalorder %v12736_v3, %v6636_v62  ;;  %vm786_vm12 = vcmp.eq.s32.totalorder %v12731_v13, %v6687_v63 }
 0x30e   : > { %v3221_v17 = vsel %vm2608_vm8, %v6639_v0, 0.0  ;;  %v3225_v31 = vsel %vm2612_vm9, %v6639_v0, 0.0  ;;  %vm790_vm11 = vcmp.eq.s32.totalorder %v12736_v3, %v6687_v63  ;;  %vm1394_vm10 = vcmp.eq.s32.totalorder %v12731_v13, %v6690_v52 }
 0x30f   : > { %5910 = vmatprep.subr.bf16.mxu1 %v5484_v7  ;;  %v3834_v50 = vsel %vm2000_vm6, %v6642_v2, %v3221_v17  ;;  %v3838_v16 = vsel %vm2004_vm7, %v6642_v2, %v3225_v31  ;;  %vm1398_vm13 = vcmp.eq.s32.totalorder %v12736_v3, %v6690_v52  ;;  %vm2002_vm14 = vcmp.eq.s32.totalorder %v12731_v13, %v6701_v35 }
 0x310   : > { %v4447_v26 = vsel %vm1392_vm2, %v6661_v20, %v3834_v50  ;;  %v4451_v23 = vsel %vm1396_vm5, %v6661_v20, %v3838_v16  ;;  %vm2006_vm15 = vcmp.eq.s32.totalorder %v12736_v3, %v6701_v35  ;;  %vm2610_vm0 = vcmp.eq.s32.totalorder %v12731_v13, %v6704_v56 }
 0x311   : > { %v5060_v18 = vsel %vm784_vm3, %v6664_v29, %v4447_v26  ;;  %v5064_v49 = vsel %vm788_vm4, %v6664_v29, %v4451_v23  ;;  %vm2614_vm1 = vcmp.eq.s32.totalorder %v12736_v3, %v6704_v56  ;;  %v3223_v27 = vsel %vm2610_vm0, %v6737_v59, 0.0 }
 0x312   : > { %v5481_v48 = vpack.c.bf16 %v5064_v49, %v5060_v18  ;;  %v3227_v25 = vsel %vm2614_vm1, %v6737_v59, 0.0  ;;  %v3836_v15 = vsel %vm2002_vm14, %v6740_v54, %v3223_v27  ;;  %v12885_v47 = vadd.s32 680, %v6309_v1 }
 0x313   : > { %v3840_v42 = vsel %vm2006_vm15, %v6740_v54, %v3227_v25  ;;  %v4449_v11 = vsel %vm1394_vm10, %v6743_v53, %v3836_v15  ;;  %vm793_vm3 = vcmp.eq.s32.totalorder %v12739_v22, %v6439_v12  ;;  %vm1401_vm4 = vcmp.eq.s32.totalorder %v12739_v22, %v6465_v8 }
 0x314   : > { %5706 = vmatpush1.bf16.msra.mxu0 %v5481_v48  ;;  %v4453_v24 = vsel %vm1398_vm13, %v6743_v53, %v3840_v42  ;;  %v5062_v45 = vsel %vm786_vm12, %v6748_v14, %v4449_v11  ;;  %vm797_vm2 = vcmp.eq.s32.totalorder %v12885_v47, %v6439_v12  ;;  %vm1405_vm5 = vcmp.eq.s32.totalorder %v12885_v47, %v6465_v8 }
 0x315   : > { %v5066_v46 = vsel %vm790_vm11, %v6748_v14, %v4453_v24  ;;  %vm2009_vm6 = vcmp.eq.s32.totalorder %v12739_v22, %v6487_v38  ;;  %vm2013_vm7 = vcmp.eq.s32.totalorder %v12885_v47, %v6487_v38  ;;  %vm2617_vm8 = vcmp.eq.s32.totalorder %v12739_v22, %v6508_v6 }
 0x316   : > { %v5483_v13 = vpack.c.bf16 %v5066_v46, %v5062_v45  ;;  %vm2621_vm9 = vcmp.eq.s32.totalorder %v12885_v47, %v6508_v6  ;;  %v3230_v32 = vsel %vm2617_vm8, %v6492_v40, 0.0  ;;  %vm795_vm12 = vcmp.eq.s32.totalorder %v12739_v22, %v6480_v36 }
 0x317   : > { %v3234_v3 = vsel %vm2621_vm9, %v6492_v40, 0.0  ;;  %v3843_v5 = vsel %vm2009_vm6, %v6455_v28, %v3230_v32  ;;  %vm799_vm11 = vcmp.eq.s32.totalorder %v12885_v47, %v6480_v36  ;;  %vm1403_vm10 = vcmp.eq.s32.totalorder %v12739_v22, %v6499_v41 }
 0x318   : > { %5911 = vmatpush1.bf16.msra.mxu1 %v5483_v13  ;;  %v3847_v55 = vsel %vm2013_vm7, %v6455_v28, %v3234_v3  ;;  %v4456_v51 = vsel %vm1401_vm4, %v6470_v33, %v3843_v5  ;;  %vm1407_vm13 = vcmp.eq.s32.totalorder %v12885_v47, %v6499_v41  ;;  %vm2011_vm14 = vcmp.eq.s32.totalorder %v12739_v22, %v6521_v44 }
 0x319   : > { %v4460_v19 = vsel %vm1405_vm5, %v6470_v33, %v3847_v55  ;;  %v5069_v43 = vsel %vm793_vm3, %v6473_v34, %v4456_v51  ;;  %vm2015_vm15 = vcmp.eq.s32.totalorder %v12885_v47, %v6521_v44  ;;  %vm2619_vm0 = vcmp.eq.s32.totalorder %v12739_v22, %v6530_v9 }
 0x31a   : > { %v5073_v4 = vsel %vm797_vm2, %v6473_v34, %v4460_v19  ;;  %vm2623_vm1 = vcmp.eq.s32.totalorder %v12885_v47, %v6530_v9  ;;  %v3232_v21 = vsel %vm2619_vm0, %v6561_v57, 0.0  ;;  %vm792_vm4 = vcmp.eq.s32.totalorder %v12739_v22, %v6597_v39 }
 0x31b   : > { %v5486_v7 = vpack.c.bf16 %v5073_v4, %v5069_v43  ;;  %v3236_v17 = vsel %vm2623_vm1, %v6561_v57, 0.0  ;;  %v3845_v31 = vsel %vm2011_vm14, %v6564_v58, %v3232_v21  ;;  %vm796_vm3 = vcmp.eq.s32.totalorder %v12885_v47, %v6597_v39 }
 0x31c   : > { %v3849_v50 = vsel %vm2015_vm15, %v6564_v58, %v3236_v17  ;;  %v4458_v16 = vsel %vm1403_vm10, %v6591_v10, %v3845_v31  ;;  %vm1400_vm2 = vcmp.eq.s32.totalorder %v12739_v22, %v6630_v60  ;;  %vm1404_vm5 = vcmp.eq.s32.totalorder %v12885_v47, %v6630_v60 }
 0x31d   : > { %5707 = vmatprep.subr.bf16.mxu0 %v5486_v7  ;;  %v4462_v26 = vsel %vm1407_vm13, %v6591_v10, %v3849_v50  ;;  %v5071_v23 = vsel %vm795_vm12, %v6594_v37, %v4458_v16  ;;  %vm2008_vm6 = vcmp.eq.s32.totalorder %v12739_v22, %v6633_v61  ;;  %vm2012_vm7 = vcmp.eq.s32.totalorder %v12885_v47, %v6633_v61 }
 0x31e   : > { %v5075_v18 = vsel %vm799_vm11, %v6594_v37, %v4462_v26  ;;  %vm2616_vm8 = vcmp.eq.s32.totalorder %v12739_v22, %v6636_v62  ;;  %vm2620_vm9 = vcmp.eq.s32.totalorder %v12885_v47, %v6636_v62  ;;  %vm794_vm12 = vcmp.eq.s32.totalorder %v12739_v22, %v6687_v63 }
 0x31f   : > { %v5488_v49 = vpack.c.bf16 %v5075_v18, %v5071_v23  ;;  %v3229_v27 = vsel %vm2616_vm8, %v6639_v0, 0.0  ;;  %v3233_v48 = vsel %vm2620_vm9, %v6639_v0, 0.0  ;;  %vm798_vm10 = vcmp.eq.s32.totalorder %v12885_v47, %v6687_v63 }
 0x320   : > { %v3842_v25 = vsel %vm2008_vm6, %v6642_v2, %v3229_v27  ;;  %v3846_v15 = vsel %vm2012_vm7, %v6642_v2, %v3233_v48  ;;  %vm1402_vm11 = vcmp.eq.s32.totalorder %v12739_v22, %v6690_v52  ;;  %vm1406_vm13 = vcmp.eq.s32.totalorder %v12885_v47, %v6690_v52 }
 0x321   : > { %5912 = vmatprep.subr.bf16.mxu1 %v5488_v49  ;;  %v4455_v42 = vsel %vm1400_vm2, %v6661_v20, %v3842_v25  ;;  %v4459_v11 = vsel %vm1404_vm5, %v6661_v20, %v3846_v15  ;;  %vm2010_vm14 = vcmp.eq.s32.totalorder %v12739_v22, %v6701_v35  ;;  %vm2014_vm15 = vcmp.eq.s32.totalorder %v12885_v47, %v6701_v35 }
 0x322   : > { %v5068_v24 = vsel %vm792_vm4, %v6664_v29, %v4455_v42  ;;  %v5072_v45 = vsel %vm796_vm3, %v6664_v29, %v4459_v11  ;;  %vm2618_vm0 = vcmp.eq.s32.totalorder %v12739_v22, %v6704_v56  ;;  %vm2622_vm1 = vcmp.eq.s32.totalorder %v12885_v47, %v6704_v56 }
 0x323   : > { %v5485_v46 = vpack.c.bf16 %v5072_v45, %v5068_v24  ;;  %v3231_v13 = vsel %vm2618_vm0, %v6737_v59, 0.0  ;;  %v3235_v32 = vsel %vm2622_vm1, %v6737_v59, 0.0  ;;  %v13031_v3 = vadd.s32 688, %v6309_v1 }
 0x324   : > { %v3844_v5 = vsel %vm2010_vm14, %v6740_v54, %v3231_v13  ;;  %v3848_v55 = vsel %vm2014_vm15, %v6740_v54, %v3235_v32  ;;  %v13036_v51 = vadd.s32 696, %v6309_v1  ;;  %v13039_v19 = vadd.s32 704, %v6309_v1 }
 0x325   : > { %5708 = vmatpush1.bf16.msra.mxu0 %v5485_v46  ;;  %v4457_v43 = vsel %vm1402_vm11, %v6743_v53, %v3844_v5  ;;  %v4461_v4 = vsel %vm1406_vm13, %v6743_v53, %v3848_v55  ;;  %vm801_vm4 = vcmp.eq.s32.totalorder %v13031_v3, %v6439_v12  ;;  %vm1409_vm3 = vcmp.eq.s32.totalorder %v13031_v3, %v6465_v8 }
 0x326   : > { %v5070_v21 = vsel %vm794_vm12, %v6748_v14, %v4457_v43  ;;  %v5074_v7 = vsel %vm798_vm10, %v6748_v14, %v4461_v4  ;;  %vm805_vm2 = vcmp.eq.s32.totalorder %v13036_v51, %v6439_v12  ;;  %vm1413_vm5 = vcmp.eq.s32.totalorder %v13036_v51, %v6465_v8 }
 0x327   : > { %v5487_v17 = vpack.c.bf16 %v5074_v7, %v5070_v21  ;;  %vm2017_vm6 = vcmp.eq.s32.totalorder %v13031_v3, %v6487_v38  ;;  %vm2021_vm7 = vcmp.eq.s32.totalorder %v13036_v51, %v6487_v38  ;;  %vm2625_vm8 = vcmp.eq.s32.totalorder %v13031_v3, %v6508_v6 }
 0x328   : > { %vm2629_vm9 = vcmp.eq.s32.totalorder %v13036_v51, %v6508_v6  ;;  %v3238_v22 = vsel %vm2625_vm8, %v6492_v40, 0.0  ;;  %vm803_vm12 = vcmp.eq.s32.totalorder %v13031_v3, %v6480_v36  ;;  %vm807_vm10 = vcmp.eq.s32.totalorder %v13036_v51, %v6480_v36 }
 0x329   : > { %5913 = vmatpush1.bf16.msra.mxu1 %v5487_v17  ;;  %v3242_v47 = vsel %vm2629_vm9, %v6492_v40, 0.0  ;;  %v3851_v31 = vsel %vm2017_vm6, %v6455_v28, %v3238_v22  ;;  %vm1411_vm11 = vcmp.eq.s32.totalorder %v13031_v3, %v6499_v41  ;;  %vm1415_vm13 = vcmp.eq.s32.totalorder %v13036_v51, %v6499_v41 }
 0x32a   : > { %v3855_v50 = vsel %vm2021_vm7, %v6455_v28, %v3242_v47  ;;  %v4464_v16 = vsel %vm1409_vm3, %v6470_v33, %v3851_v31  ;;  %vm2019_vm14 = vcmp.eq.s32.totalorder %v13031_v3, %v6521_v44  ;;  %vm2023_vm15 = vcmp.eq.s32.totalorder %v13036_v51, %v6521_v44 }
 0x32b   : > { %v4468_v26 = vsel %vm1413_vm5, %v6470_v33, %v3855_v50  ;;  %v5077_v23 = vsel %vm801_vm4, %v6473_v34, %v4464_v16  ;;  %vm2627_vm0 = vcmp.eq.s32.totalorder %v13031_v3, %v6530_v9  ;;  %vm2631_vm1 = vcmp.eq.s32.totalorder %v13036_v51, %v6530_v9 }
 0x32c   : > { %v5081_v18 = vsel %vm805_vm2, %v6473_v34, %v4468_v26  ;;  %v3240_v49 = vsel %vm2627_vm0, %v6561_v57, 0.0  ;;  %v3244_v27 = vsel %vm2631_vm1, %v6561_v57, 0.0  ;;  %vm800_vm3 = vcmp.eq.s32.totalorder %v13031_v3, %v6597_v39 }
 0x32d   : > { %v5490_v48 = vpack.c.bf16 %v5081_v18, %v5077_v23  ;;  %v3853_v25 = vsel %vm2019_vm14, %v6564_v58, %v3240_v49  ;;  %v3857_v15 = vsel %vm2023_vm15, %v6564_v58, %v3244_v27  ;;  %vm804_vm4 = vcmp.eq.s32.totalorder %v13036_v51, %v6597_v39 }
 0x32e   : > { %v4466_v42 = vsel %vm1411_vm11, %v6591_v10, %v3853_v25  ;;  %v4470_v11 = vsel %vm1415_vm13, %v6591_v10, %v3857_v15  ;;  %vm1408_vm2 = vcmp.eq.s32.totalorder %v13031_v3, %v6630_v60  ;;  %vm1412_vm5 = vcmp.eq.s32.totalorder %v13036_v51, %v6630_v60 }
 0x32f   : > { %5709 = vmatprep.subr.bf16.mxu0 %v5490_v48  ;;  %v5079_v24 = vsel %vm803_vm12, %v6594_v37, %v4466_v42  ;;  %v5083_v45 = vsel %vm807_vm10, %v6594_v37, %v4470_v11  ;;  %vm2016_vm6 = vcmp.eq.s32.totalorder %v13031_v3, %v6633_v61  ;;  %vm2020_vm7 = vcmp.eq.s32.totalorder %v13036_v51, %v6633_v61 }
 0x330   : > { %v5492_v46 = vpack.c.bf16 %v5083_v45, %v5079_v24  ;;  %vm2624_vm8 = vcmp.eq.s32.totalorder %v13031_v3, %v6636_v62  ;;  %vm2628_vm9 = vcmp.eq.s32.totalorder %v13036_v51, %v6636_v62  ;;  %vm802_vm12 = vcmp.eq.s32.totalorder %v13031_v3, %v6687_v63 }
 0x331   : > { %v3237_v13 = vsel %vm2624_vm8, %v6639_v0, 0.0  ;;  %v3241_v32 = vsel %vm2628_vm9, %v6639_v0, 0.0  ;;  %vm806_vm10 = vcmp.eq.s32.totalorder %v13036_v51, %v6687_v63  ;;  %vm1410_vm11 = vcmp.eq.s32.totalorder %v13031_v3, %v6690_v52 }
 0x332   : > { %5914 = vmatprep.subr.bf16.mxu1 %v5492_v46  ;;  %v3850_v5 = vsel %vm2016_vm6, %v6642_v2, %v3237_v13  ;;  %v3854_v55 = vsel %vm2020_vm7, %v6642_v2, %v3241_v32  ;;  %vm1414_vm13 = vcmp.eq.s32.totalorder %v13036_v51, %v6690_v52  ;;  %vm2018_vm14 = vcmp.eq.s32.totalorder %v13031_v3, %v6701_v35 }
 0x333   : > { %v4463_v43 = vsel %vm1408_vm2, %v6661_v20, %v3850_v5  ;;  %v4467_v4 = vsel %vm1412_vm5, %v6661_v20, %v3854_v55  ;;  %vm2022_vm15 = vcmp.eq.s32.totalorder %v13036_v51, %v6701_v35  ;;  %vm2626_vm0 = vcmp.eq.s32.totalorder %v13031_v3, %v6704_v56 }
 0x334   : > { %v5076_v21 = vsel %vm800_vm3, %v6664_v29, %v4463_v43  ;;  %v5080_v7 = vsel %vm804_vm4, %v6664_v29, %v4467_v4  ;;  %vm2630_vm1 = vcmp.eq.s32.totalorder %v13036_v51, %v6704_v56  ;;  %v3239_v17 = vsel %vm2626_vm0, %v6737_v59, 0.0 }
 0x335   : > { %v5489_v22 = vpack.c.bf16 %v5080_v7, %v5076_v21  ;;  %v3243_v47 = vsel %vm2630_vm1, %v6737_v59, 0.0  ;;  %v3852_v31 = vsel %vm2018_vm14, %v6740_v54, %v3239_v17  ;;  %v13185_v50 = vadd.s32 712, %v6309_v1 }
 0x336   : > { %v3856_v16 = vsel %vm2022_vm15, %v6740_v54, %v3243_v47  ;;  %v4465_v26 = vsel %vm1410_vm11, %v6743_v53, %v3852_v31  ;;  %vm809_vm3 = vcmp.eq.s32.totalorder %v13039_v19, %v6439_v12  ;;  %vm1417_vm4 = vcmp.eq.s32.totalorder %v13039_v19, %v6465_v8 }
 0x337   : > { %5710 = vmatpush1.bf16.msra.mxu0 %v5489_v22  ;;  %v4469_v23 = vsel %vm1414_vm13, %v6743_v53, %v3856_v16  ;;  %v5078_v18 = vsel %vm802_vm12, %v6748_v14, %v4465_v26  ;;  %vm813_vm2 = vcmp.eq.s32.totalorder %v13185_v50, %v6439_v12  ;;  %vm1421_vm5 = vcmp.eq.s32.totalorder %v13185_v50, %v6465_v8 }
 0x338   : > { %v5082_v49 = vsel %vm806_vm10, %v6748_v14, %v4469_v23  ;;  %vm2025_vm6 = vcmp.eq.s32.totalorder %v13039_v19, %v6487_v38  ;;  %vm2029_vm7 = vcmp.eq.s32.totalorder %v13185_v50, %v6487_v38  ;;  %vm2633_vm8 = vcmp.eq.s32.totalorder %v13039_v19, %v6508_v6 }
 0x339   : > { %v5491_v3 = vpack.c.bf16 %v5082_v49, %v5078_v18  ;;  %vm2637_vm9 = vcmp.eq.s32.totalorder %v13185_v50, %v6508_v6  ;;  %v3246_v27 = vsel %vm2633_vm8, %v6492_v40, 0.0  ;;  %vm811_vm12 = vcmp.eq.s32.totalorder %v13039_v19, %v6480_v36 }
 0x33a   : > { %v3250_v51 = vsel %vm2637_vm9, %v6492_v40, 0.0  ;;  %v3859_v48 = vsel %vm2025_vm6, %v6455_v28, %v3246_v27  ;;  %vm815_vm10 = vcmp.eq.s32.totalorder %v13185_v50, %v6480_v36  ;;  %vm1419_vm11 = vcmp.eq.s32.totalorder %v13039_v19, %v6499_v41 }
 0x33b   : > { %5915 = vmatpush1.bf16.msra.mxu1 %v5491_v3  ;;  %v3863_v25 = vsel %vm2029_vm7, %v6455_v28, %v3250_v51  ;;  %v4472_v15 = vsel %vm1417_vm4, %v6470_v33, %v3859_v48  ;;  %vm1423_vm13 = vcmp.eq.s32.totalorder %v13185_v50, %v6499_v41  ;;  %vm2027_vm14 = vcmp.eq.s32.totalorder %v13039_v19, %v6521_v44 }
 0x33c   : > { %v4476_v42 = vsel %vm1421_vm5, %v6470_v33, %v3863_v25  ;;  %v5085_v11 = vsel %vm809_vm3, %v6473_v34, %v4472_v15  ;;  %vm2031_vm15 = vcmp.eq.s32.totalorder %v13185_v50, %v6521_v44  ;;  %vm2635_vm0 = vcmp.eq.s32.totalorder %v13039_v19, %v6530_v9 }
 0x33d   : > { %v5089_v24 = vsel %vm813_vm2, %v6473_v34, %v4476_v42  ;;  %vm2639_vm1 = vcmp.eq.s32.totalorder %v13185_v50, %v6530_v9  ;;  %v3248_v45 = vsel %vm2635_vm0, %v6561_v57, 0.0  ;;  %vm808_vm4 = vcmp.eq.s32.totalorder %v13039_v19, %v6597_v39 }
 0x33e   : > { %v5494_v46 = vpack.c.bf16 %v5089_v24, %v5085_v11  ;;  %v3252_v13 = vsel %vm2639_vm1, %v6561_v57, 0.0  ;;  %v3861_v32 = vsel %vm2027_vm14, %v6564_v58, %v3248_v45  ;;  %vm812_vm3 = vcmp.eq.s32.totalorder %v13185_v50, %v6597_v39 }
 0x33f   : > { %v3865_v5 = vsel %vm2031_vm15, %v6564_v58, %v3252_v13  ;;  %v4474_v55 = vsel %vm1419_vm11, %v6591_v10, %v3861_v32  ;;  %vm1416_vm2 = vcmp.eq.s32.totalorder %v13039_v19, %v6630_v60  ;;  %vm1420_vm5 = vcmp.eq.s32.totalorder %v13185_v50, %v6630_v60 }
 0x340   : > { %5711 = vmatprep.subr.bf16.mxu0 %v5494_v46  ;;  %v4478_v43 = vsel %vm1423_vm13, %v6591_v10, %v3865_v5  ;;  %v5087_v4 = vsel %vm811_vm12, %v6594_v37, %v4474_v55  ;;  %vm2024_vm6 = vcmp.eq.s32.totalorder %v13039_v19, %v6633_v61  ;;  %vm2028_vm7 = vcmp.eq.s32.totalorder %v13185_v50, %v6633_v61 }
 0x341   : > { %v5091_v21 = vsel %vm815_vm10, %v6594_v37, %v4478_v43  ;;  %vm2632_vm8 = vcmp.eq.s32.totalorder %v13039_v19, %v6636_v62  ;;  %vm2636_vm9 = vcmp.eq.s32.totalorder %v13185_v50, %v6636_v62  ;;  %vm810_vm12 = vcmp.eq.s32.totalorder %v13039_v19, %v6687_v63 }
 0x342   : > { %v5496_v7 = vpack.c.bf16 %v5091_v21, %v5087_v4  ;;  %v3245_v17 = vsel %vm2632_vm8, %v6639_v0, 0.0  ;;  %v3249_v22 = vsel %vm2636_vm9, %v6639_v0, 0.0  ;;  %vm814_vm11 = vcmp.eq.s32.totalorder %v13185_v50, %v6687_v63 }
 0x343   : > { %v3858_v47 = vsel %vm2024_vm6, %v6642_v2, %v3245_v17  ;;  %v3862_v31 = vsel %vm2028_vm7, %v6642_v2, %v3249_v22  ;;  %vm1418_vm10 = vcmp.eq.s32.totalorder %v13039_v19, %v6690_v52  ;;  %vm1422_vm13 = vcmp.eq.s32.totalorder %v13185_v50, %v6690_v52 }
 0x344   : > { %5916 = vmatprep.subr.bf16.mxu1 %v5496_v7  ;;  %v4471_v16 = vsel %vm1416_vm2, %v6661_v20, %v3858_v47  ;;  %v4475_v26 = vsel %vm1420_vm5, %v6661_v20, %v3862_v31  ;;  %vm2026_vm14 = vcmp.eq.s32.totalorder %v13039_v19, %v6701_v35  ;;  %vm2030_vm15 = vcmp.eq.s32.totalorder %v13185_v50, %v6701_v35 }
 0x345   : > { %v5084_v23 = vsel %vm808_vm4, %v6664_v29, %v4471_v16  ;;  %v5088_v18 = vsel %vm812_vm3, %v6664_v29, %v4475_v26  ;;  %vm2634_vm0 = vcmp.eq.s32.totalorder %v13039_v19, %v6704_v56  ;;  %vm2638_vm1 = vcmp.eq.s32.totalorder %v13185_v50, %v6704_v56 }
 0x346   : > { %v5493_v49 = vpack.c.bf16 %v5088_v18, %v5084_v23  ;;  %v3247_v3 = vsel %vm2634_vm0, %v6737_v59, 0.0  ;;  %v3251_v27 = vsel %vm2638_vm1, %v6737_v59, 0.0  ;;  %v13331_v51 = vadd.s32 720, %v6309_v1 }
 0x347   : > { %v3860_v48 = vsel %vm2026_vm14, %v6740_v54, %v3247_v3  ;;  %v3864_v25 = vsel %vm2030_vm15, %v6740_v54, %v3251_v27  ;;  %v13336_v15 = vadd.s32 728, %v6309_v1  ;;  %v13339_v42 = vadd.s32 736, %v6309_v1 }
 0x348   : > { %5712 = vmatpush1.bf16.msra.mxu0 %v5493_v49  ;;  %v4473_v11 = vsel %vm1418_vm10, %v6743_v53, %v3860_v48  ;;  %v4477_v24 = vsel %vm1422_vm13, %v6743_v53, %v3864_v25  ;;  %vm817_vm4 = vcmp.eq.s32.totalorder %v13331_v51, %v6439_v12  ;;  %vm1425_vm3 = vcmp.eq.s32.totalorder %v13331_v51, %v6465_v8 }
 0x349   : > { %v5086_v45 = vsel %vm810_vm12, %v6748_v14, %v4473_v11  ;;  %v5090_v46 = vsel %vm814_vm11, %v6748_v14, %v4477_v24  ;;  %vm821_vm2 = vcmp.eq.s32.totalorder %v13336_v15, %v6439_v12  ;;  %vm1429_vm5 = vcmp.eq.s32.totalorder %v13336_v15, %v6465_v8 }
 0x34a   : > { %v5495_v13 = vpack.c.bf16 %v5090_v46, %v5086_v45  ;;  %vm2033_vm6 = vcmp.eq.s32.totalorder %v13331_v51, %v6487_v38  ;;  %vm2037_vm7 = vcmp.eq.s32.totalorder %v13336_v15, %v6487_v38  ;;  %vm2641_vm8 = vcmp.eq.s32.totalorder %v13331_v51, %v6508_v6 }
 0x34b   : > { %vm2645_vm9 = vcmp.eq.s32.totalorder %v13336_v15, %v6508_v6  ;;  %v3254_v19 = vsel %vm2641_vm8, %v6492_v40, 0.0  ;;  %vm819_vm12 = vcmp.eq.s32.totalorder %v13331_v51, %v6480_v36  ;;  %vm823_vm11 = vcmp.eq.s32.totalorder %v13336_v15, %v6480_v36 }
 0x34c   : > { %5917 = vmatpush1.bf16.msra.mxu1 %v5495_v13  ;;  %v3258_v50 = vsel %vm2645_vm9, %v6492_v40, 0.0  ;;  %v3867_v32 = vsel %vm2033_vm6, %v6455_v28, %v3254_v19  ;;  %vm1427_vm10 = vcmp.eq.s32.totalorder %v13331_v51, %v6499_v41  ;;  %vm1431_vm13 = vcmp.eq.s32.totalorder %v13336_v15, %v6499_v41 }
 0x34d   : > { %v3871_v5 = vsel %vm2037_vm7, %v6455_v28, %v3258_v50  ;;  %v4480_v55 = vsel %vm1425_vm3, %v6470_v33, %v3867_v32  ;;  %vm2035_vm14 = vcmp.eq.s32.totalorder %v13331_v51, %v6521_v44  ;;  %vm2039_vm15 = vcmp.eq.s32.totalorder %v13336_v15, %v6521_v44 }
 0x34e   : > { %v4484_v43 = vsel %vm1429_vm5, %v6470_v33, %v3871_v5  ;;  %v5093_v4 = vsel %vm817_vm4, %v6473_v34, %v4480_v55  ;;  %vm2643_vm0 = vcmp.eq.s32.totalorder %v13331_v51, %v6530_v9  ;;  %vm2647_vm1 = vcmp.eq.s32.totalorder %v13336_v15, %v6530_v9 }
 0x34f   : > { %v5097_v21 = vsel %vm821_vm2, %v6473_v34, %v4484_v43  ;;  %v3256_v7 = vsel %vm2643_vm0, %v6561_v57, 0.0  ;;  %v3260_v17 = vsel %vm2647_vm1, %v6561_v57, 0.0  ;;  %vm816_vm3 = vcmp.eq.s32.totalorder %v13331_v51, %v6597_v39 }
 0x350   : > { %v5498_v22 = vpack.c.bf16 %v5097_v21, %v5093_v4  ;;  %v3869_v47 = vsel %vm2035_vm14, %v6564_v58, %v3256_v7  ;;  %v3873_v31 = vsel %vm2039_vm15, %v6564_v58, %v3260_v17  ;;  %vm820_vm4 = vcmp.eq.s32.totalorder %v13336_v15, %v6597_v39 }
 0x351   : > { %v4482_v16 = vsel %vm1427_vm10, %v6591_v10, %v3869_v47  ;;  %v4486_v26 = vsel %vm1431_vm13, %v6591_v10, %v3873_v31  ;;  %vm1424_vm2 = vcmp.eq.s32.totalorder %v13331_v51, %v6630_v60  ;;  %vm1428_vm5 = vcmp.eq.s32.totalorder %v13336_v15, %v6630_v60 }
 0x352   : > { %5713 = vmatprep.subr.bf16.mxu0 %v5498_v22  ;;  %v5095_v23 = vsel %vm819_vm12, %v6594_v37, %v4482_v16  ;;  %v5099_v18 = vsel %vm823_vm11, %v6594_v37, %v4486_v26  ;;  %vm2032_vm6 = vcmp.eq.s32.totalorder %v13331_v51, %v6633_v61  ;;  %vm2036_vm7 = vcmp.eq.s32.totalorder %v13336_v15, %v6633_v61 }
 0x353   : > { %v5500_v49 = vpack.c.bf16 %v5099_v18, %v5095_v23  ;;  %vm2640_vm8 = vcmp.eq.s32.totalorder %v13331_v51, %v6636_v62  ;;  %vm2644_vm9 = vcmp.eq.s32.totalorder %v13336_v15, %v6636_v62  ;;  %vm818_vm12 = vcmp.eq.s32.totalorder %v13331_v51, %v6687_v63 }
 0x354   : > { %v3253_v3 = vsel %vm2640_vm8, %v6639_v0, 0.0  ;;  %v3257_v27 = vsel %vm2644_vm9, %v6639_v0, 0.0  ;;  %vm822_vm11 = vcmp.eq.s32.totalorder %v13336_v15, %v6687_v63  ;;  %vm1426_vm10 = vcmp.eq.s32.totalorder %v13331_v51, %v6690_v52 }
 0x355   : > { %5918 = vmatprep.subr.bf16.mxu1 %v5500_v49  ;;  %v3866_v48 = vsel %vm2032_vm6, %v6642_v2, %v3253_v3  ;;  %v3870_v25 = vsel %vm2036_vm7, %v6642_v2, %v3257_v27  ;;  %vm1430_vm13 = vcmp.eq.s32.totalorder %v13336_v15, %v6690_v52  ;;  %vm2034_vm14 = vcmp.eq.s32.totalorder %v13331_v51, %v6701_v35 }
 0x356   : > { %v4479_v11 = vsel %vm1424_vm2, %v6661_v20, %v3866_v48  ;;  %v4483_v24 = vsel %vm1428_vm5, %v6661_v20, %v3870_v25  ;;  %vm2038_vm15 = vcmp.eq.s32.totalorder %v13336_v15, %v6701_v35  ;;  %vm2642_vm0 = vcmp.eq.s32.totalorder %v13331_v51, %v6704_v56 }
 0x357   : > { %v5092_v45 = vsel %vm816_vm3, %v6664_v29, %v4479_v11  ;;  %v5096_v46 = vsel %vm820_vm4, %v6664_v29, %v4483_v24  ;;  %vm2646_vm1 = vcmp.eq.s32.totalorder %v13336_v15, %v6704_v56  ;;  %v3255_v13 = vsel %vm2642_vm0, %v6737_v59, 0.0 }
 0x358   : > { %v5497_v19 = vpack.c.bf16 %v5096_v46, %v5092_v45  ;;  %v3259_v50 = vsel %vm2646_vm1, %v6737_v59, 0.0  ;;  %v3868_v32 = vsel %vm2034_vm14, %v6740_v54, %v3255_v13  ;;  %v13485_v5 = vadd.s32 744, %v6309_v1 }
 0x359   : > { %v3872_v55 = vsel %vm2038_vm15, %v6740_v54, %v3259_v50  ;;  %v4481_v43 = vsel %vm1426_vm10, %v6743_v53, %v3868_v32  ;;  %vm825_vm3 = vcmp.eq.s32.totalorder %v13339_v42, %v6439_v12  ;;  %vm1433_vm4 = vcmp.eq.s32.totalorder %v13339_v42, %v6465_v8 }
 0x35a   : > { %5714 = vmatpush1.bf16.msra.mxu0 %v5497_v19  ;;  %v4485_v4 = vsel %vm1430_vm13, %v6743_v53, %v3872_v55  ;;  %v5094_v21 = vsel %vm818_vm12, %v6748_v14, %v4481_v43  ;;  %vm829_vm2 = vcmp.eq.s32.totalorder %v13485_v5, %v6439_v12  ;;  %vm1437_vm5 = vcmp.eq.s32.totalorder %v13485_v5, %v6465_v8 }
 0x35b   : > { %v5098_v7 = vsel %vm822_vm11, %v6748_v14, %v4485_v4  ;;  %vm2041_vm6 = vcmp.eq.s32.totalorder %v13339_v42, %v6487_v38  ;;  %vm2045_vm7 = vcmp.eq.s32.totalorder %v13485_v5, %v6487_v38  ;;  %vm2649_vm8 = vcmp.eq.s32.totalorder %v13339_v42, %v6508_v6  ;;  %v210_v4 = vld [vmem:[%s8788_s26 + $0x28] sm:$0xff] }
 0x35c   : > { %v5499_v51 = vpack.c.bf16 %v5098_v7, %v5094_v21  ;;  %vm2653_vm9 = vcmp.eq.s32.totalorder %v13485_v5, %v6508_v6  ;;  %v3262_v17 = vsel %vm2649_vm8, %v6492_v40, 0.0  ;;  %vm827_vm12 = vcmp.eq.s32.totalorder %v13339_v42, %v6480_v36 }
 0x35d   : > { %v3266_v15 = vsel %vm2653_vm9, %v6492_v40, 0.0  ;;  %v3875_v22 = vsel %vm2041_vm6, %v6455_v28, %v3262_v17  ;;  %vm831_vm11 = vcmp.eq.s32.totalorder %v13485_v5, %v6480_v36  ;;  %vm1435_vm10 = vcmp.eq.s32.totalorder %v13339_v42, %v6499_v41 }
 0x35e   : > { %5919 = vmatpush1.bf16.msra.mxu1 %v5499_v51  ;;  %v3879_v47 = vsel %vm2045_vm7, %v6455_v28, %v3266_v15  ;;  %v4488_v31 = vsel %vm1433_vm4, %v6470_v33, %v3875_v22  ;;  %vm1439_vm13 = vcmp.eq.s32.totalorder %v13485_v5, %v6499_v41  ;;  %vm2043_vm14 = vcmp.eq.s32.totalorder %v13339_v42, %v6521_v44 }
 0x35f   : > { %v4492_v16 = vsel %vm1437_vm5, %v6470_v33, %v3879_v47  ;;  %v5101_v26 = vsel %vm825_vm3, %v6473_v34, %v4488_v31  ;;  %vm2047_vm15 = vcmp.eq.s32.totalorder %v13485_v5, %v6521_v44  ;;  %vm2651_vm0 = vcmp.eq.s32.totalorder %v13339_v42, %v6530_v9 }
 0x360   : > { %v5105_v23 = vsel %vm829_vm2, %v6473_v34, %v4492_v16  ;;  %vm2655_vm1 = vcmp.eq.s32.totalorder %v13485_v5, %v6530_v9  ;;  %v3264_v18 = vsel %vm2651_vm0, %v6561_v57, 0.0  ;;  %vm824_vm4 = vcmp.eq.s32.totalorder %v13339_v42, %v6597_v39 }
 0x361   : > { %v5502_v49 = vpack.c.bf16 %v5105_v23, %v5101_v26  ;;  %v3268_v3 = vsel %vm2655_vm1, %v6561_v57, 0.0  ;;  %v3877_v27 = vsel %vm2043_vm14, %v6564_v58, %v3264_v18  ;;  %vm828_vm3 = vcmp.eq.s32.totalorder %v13485_v5, %v6597_v39 }
 0x362   : > { %v3881_v48 = vsel %vm2047_vm15, %v6564_v58, %v3268_v3  ;;  %v4490_v25 = vsel %vm1435_vm10, %v6591_v10, %v3877_v27  ;;  %vm1432_vm2 = vcmp.eq.s32.totalorder %v13339_v42, %v6630_v60  ;;  %vm1436_vm5 = vcmp.eq.s32.totalorder %v13485_v5, %v6630_v60 }
 0x363   : > { %5715 = vmatprep.subr.bf16.mxu0 %v5502_v49  ;;  %v4494_v11 = vsel %vm1439_vm13, %v6591_v10, %v3881_v48  ;;  %v5103_v24 = vsel %vm827_vm12, %v6594_v37, %v4490_v25  ;;  %vm2040_vm6 = vcmp.eq.s32.totalorder %v13339_v42, %v6633_v61  ;;  %vm2044_vm7 = vcmp.eq.s32.totalorder %v13485_v5, %v6633_v61 }
 0x364   : > { %v5107_v45 = vsel %vm831_vm11, %v6594_v37, %v4494_v11  ;;  %vm2648_vm8 = vcmp.eq.s32.totalorder %v13339_v42, %v6636_v62  ;;  %vm2652_vm9 = vcmp.eq.s32.totalorder %v13485_v5, %v6636_v62  ;;  %vm826_vm12 = vcmp.eq.s32.totalorder %v13339_v42, %v6687_v63 }
 0x365   : > { %v5504_v46 = vpack.c.bf16 %v5107_v45, %v5103_v24  ;;  %v3261_v13 = vsel %vm2648_vm8, %v6639_v0, 0.0  ;;  %v3265_v19 = vsel %vm2652_vm9, %v6639_v0, 0.0  ;;  %vm830_vm10 = vcmp.eq.s32.totalorder %v13485_v5, %v6687_v63 }
 0x366   : > { %v3874_v50 = vsel %vm2040_vm6, %v6642_v2, %v3261_v13  ;;  %v3878_v32 = vsel %vm2044_vm7, %v6642_v2, %v3265_v19  ;;  %vm1434_vm11 = vcmp.eq.s32.totalorder %v13339_v42, %v6690_v52  ;;  %vm1438_vm13 = vcmp.eq.s32.totalorder %v13485_v5, %v6690_v52 }
 0x367   : > { %5920 = vmatprep.subr.bf16.mxu1 %v5504_v46  ;;  %v4487_v55 = vsel %vm1432_vm2, %v6661_v20, %v3874_v50  ;;  %v4491_v43 = vsel %vm1436_vm5, %v6661_v20, %v3878_v32  ;;  %vm2042_vm14 = vcmp.eq.s32.totalorder %v13339_v42, %v6701_v35  ;;  %vm2046_vm15 = vcmp.eq.s32.totalorder %v13485_v5, %v6701_v35 }
 0x368   : > { %v5100_v21 = vsel %vm824_vm4, %v6664_v29, %v4487_v55  ;;  %v5104_v7 = vsel %vm828_vm3, %v6664_v29, %v4491_v43  ;;  %vm2650_vm0 = vcmp.eq.s32.totalorder %v13339_v42, %v6704_v56  ;;  %vm2654_vm1 = vcmp.eq.s32.totalorder %v13485_v5, %v6704_v56 }
 0x369   : > { %v5501_v51 = vpack.c.bf16 %v5104_v7, %v5100_v21  ;;  %v3263_v17 = vsel %vm2650_vm0, %v6737_v59, 0.0  ;;  %v3267_v15 = vsel %vm2654_vm1, %v6737_v59, 0.0  ;;  %v13632_v22 = vadd.s32 752, %v6309_v1 }
 0x36a   : > { %v3876_v47 = vsel %vm2042_vm14, %v6740_v54, %v3263_v17  ;;  %v3880_v31 = vsel %vm2046_vm15, %v6740_v54, %v3267_v15  ;;  %v13637_v16 = vadd.s32 760, %v6309_v1  ;;  %v5313_v26 = vpack.c.bf16 %v210_v4, %v210_v4 }
 0x36b   : > { %5716 = vmatpush1.bf16.msra.mxu0 %v5501_v51  ;;  %v4489_v23 = vsel %vm1434_vm11, %v6743_v53, %v3876_v47  ;;  %v4493_v18 = vsel %vm1438_vm13, %v6743_v53, %v3880_v31  ;;  %vm833_vm4 = vcmp.eq.s32.totalorder %v13632_v22, %v6439_v12  ;;  %vm1441_vm3 = vcmp.eq.s32.totalorder %v13632_v22, %v6465_v8 }
 0x36c   : > { %v5102_v49 = vsel %vm826_vm12, %v6748_v14, %v4489_v23  ;;  %v5106_v3 = vsel %vm830_vm10, %v6748_v14, %v4493_v18  ;;  %vm837_vm2 = vcmp.eq.s32.totalorder %v13637_v16, %v6439_v12  ;;  %vm1445_vm5 = vcmp.eq.s32.totalorder %v13637_v16, %v6465_v8  ;;  %5719 = vmatprep.mubr.bf16.mxu0 %v5313_v26  ;;  %v209_v18 = vld [vmem:[%s8788_s26 + $0x20] sm:$0xff] }
 0x36d   : > { %v5503_v27 = vpack.c.bf16 %v5106_v3, %v5102_v49  ;;  %vm2049_vm6 = vcmp.eq.s32.totalorder %v13632_v22, %v6487_v38  ;;  %vm2053_vm7 = vcmp.eq.s32.totalorder %v13637_v16, %v6487_v38  ;;  %vm2657_vm8 = vcmp.eq.s32.totalorder %v13632_v22, %v6508_v6  ;;  %5924 = vmatprep.mubr.bf16.mxu1 %v5313_v26 }
 0x36e   : > { %vm2661_vm9 = vcmp.eq.s32.totalorder %v13637_v16, %v6508_v6  ;;  %v3270_v42 = vsel %vm2657_vm8, %v6492_v40, 0.0  ;;  %vm835_vm12 = vcmp.eq.s32.totalorder %v13632_v22, %v6480_v36  ;;  %vm839_vm10 = vcmp.eq.s32.totalorder %v13637_v16, %v6480_v36 }
 0x36f   : > { %5921 = vmatpush1.bf16.msra.mxu1 %v5503_v27  ;;  %v3274_v5 = vsel %vm2661_vm9, %v6492_v40, 0.0  ;;  %v3883_v48 = vsel %vm2049_vm6, %v6455_v28, %v3270_v42  ;;  %vm1443_vm11 = vcmp.eq.s32.totalorder %v13632_v22, %v6499_v41  ;;  %vm1447_vm13 = vcmp.eq.s32.totalorder %v13637_v16, %v6499_v41 }
 0x370   : > { %v3887_v25 = vsel %vm2053_vm7, %v6455_v28, %v3274_v5  ;;  %v4496_v11 = vsel %vm1441_vm3, %v6470_v33, %v3883_v48  ;;  %vm2051_vm14 = vcmp.eq.s32.totalorder %v13632_v22, %v6521_v44  ;;  %vm2055_vm15 = vcmp.eq.s32.totalorder %v13637_v16, %v6521_v44 }
 0x371   : > { %v4500_v24 = vsel %vm1445_vm5, %v6470_v33, %v3887_v25  ;;  %v5109_v45 = vsel %vm833_vm4, %v6473_v34, %v4496_v11  ;;  %vm2659_vm0 = vcmp.eq.s32.totalorder %v13632_v22, %v6530_v9  ;;  %vm2663_vm1 = vcmp.eq.s32.totalorder %v13637_v16, %v6530_v9 }
 0x372   : > { %v5113_v46 = vsel %vm837_vm2, %v6473_v34, %v4500_v24  ;;  %v3272_v13 = vsel %vm2659_vm0, %v6561_v57, 0.0  ;;  %v3276_v19 = vsel %vm2663_vm1, %v6561_v57, 0.0  ;;  %vm832_vm3 = vcmp.eq.s32.totalorder %v13632_v22, %v6597_v39 }
 0x373   : > { %v5506_v50 = vpack.c.bf16 %v5113_v46, %v5109_v45  ;;  %v3885_v32 = vsel %vm2051_vm14, %v6564_v58, %v3272_v13  ;;  %v3889_v55 = vsel %vm2055_vm15, %v6564_v58, %v3276_v19  ;;  %vm836_vm4 = vcmp.eq.s32.totalorder %v13637_v16, %v6597_v39 }
 0x374   : > { %v4498_v43 = vsel %vm1443_vm11, %v6591_v10, %v3885_v32  ;;  %v4502_v4 = vsel %vm1447_vm13, %v6591_v10, %v3889_v55  ;;  %vm1440_vm2 = vcmp.eq.s32.totalorder %v13632_v22, %v6630_v60  ;;  %vm1444_vm5 = vcmp.eq.s32.totalorder %v13637_v16, %v6630_v60 }
 0x375   : > { %5717 = vmatprep.subr.bf16.mxu0 %v5506_v50  ;;  %v5111_v21 = vsel %vm835_vm12, %v6594_v37, %v4498_v43  ;;  %v5115_v7 = vsel %vm839_vm10, %v6594_v37, %v4502_v4  ;;  %vm2048_vm6 = vcmp.eq.s32.totalorder %v13632_v22, %v6633_v61  ;;  %vm2052_vm7 = vcmp.eq.s32.totalorder %v13637_v16, %v6633_v61 }
 0x376   : > { %v5508_v51 = vpack.c.bf16 %v5115_v7, %v5111_v21  ;;  %vm2656_vm8 = vcmp.eq.s32.totalorder %v13632_v22, %v6636_v62  ;;  %vm2660_vm9 = vcmp.eq.s32.totalorder %v13637_v16, %v6636_v62  ;;  %vm834_vm12 = vcmp.eq.s32.totalorder %v13632_v22, %v6687_v63 }
 0x377   : > { %v3269_v17 = vsel %vm2656_vm8, %v6639_v0, 0.0  ;;  %v3273_v15 = vsel %vm2660_vm9, %v6639_v0, 0.0  ;;  %vm838_vm10 = vcmp.eq.s32.totalorder %v13637_v16, %v6687_v63  ;;  %vm1442_vm11 = vcmp.eq.s32.totalorder %v13632_v22, %v6690_v52 }
 0x378   : > { %5922 = vmatprep.subr.bf16.mxu1 %v5508_v51  ;;  %v3882_v47 = vsel %vm2048_vm6, %v6642_v2, %v3269_v17  ;;  %v3886_v31 = vsel %vm2052_vm7, %v6642_v2, %v3273_v15  ;;  %vm1446_vm13 = vcmp.eq.s32.totalorder %v13637_v16, %v6690_v52  ;;  %vm2050_vm14 = vcmp.eq.s32.totalorder %v13632_v22, %v6701_v35 }
 0x379   : > { %v4495_v26 = vsel %vm1440_vm2, %v6661_v20, %v3882_v47  ;;  %v4499_v23 = vsel %vm1444_vm5, %v6661_v20, %v3886_v31  ;;  %vm2054_vm15 = vcmp.eq.s32.totalorder %v13637_v16, %v6701_v35  ;;  %vm2658_vm0 = vcmp.eq.s32.totalorder %v13632_v22, %v6704_v56 }
 0x37a   : > { %v5108_v49 = vsel %vm832_vm3, %v6664_v29, %v4495_v26  ;;  %v5112_v3 = vsel %vm836_vm4, %v6664_v29, %v4499_v23  ;;  %vm2662_vm1 = vcmp.eq.s32.totalorder %v13637_v16, %v6704_v56  ;;  %v3271_v27 = vsel %vm2658_vm0, %v6737_v59, 0.0 }
 0x37b   : > { %v5505_v42 = vpack.c.bf16 %v5112_v3, %v5108_v49  ;;  %v3275_v5 = vsel %vm2662_vm1, %v6737_v59, 0.0  ;;  %v3884_v48 = vsel %vm2050_vm14, %v6740_v54, %v3271_v27  ;;  %v13784_v25 = vadd.s32 768, %v6309_v1 }
 0x37c   : > { %v3888_v11 = vsel %vm2054_vm15, %v6740_v54, %v3275_v5  ;;  %v4497_v24 = vsel %vm1442_vm11, %v6743_v53, %v3884_v48  ;;  %v13792_v45 = vadd.s32 776, %v6309_v1  ;;  %v5312_v46 = vpack.c.bf16 %v209_v18, %v209_v18 }
 0x37d   : > { %5718 = vmatpush1.bf16.msra.mxu0 %v5505_v42  ;;  %v4501_v13 = vsel %vm1446_vm13, %v6743_v53, %v3888_v11  ;;  %v5110_v19 = vsel %vm834_vm12, %v6748_v14, %v4497_v24  ;;  %vm841_vm3 = vcmp.eq.s32.totalorder %v13784_v25, %v6439_v12  ;;  %vm1449_vm4 = vcmp.eq.s32.totalorder %v13784_v25, %v6465_v8 }
 0x37e   : > { %v5114_v50 = vsel %vm838_vm10, %v6748_v14, %v4501_v13  ;;  %vm845_vm2 = vcmp.eq.s32.totalorder %v13792_v45, %v6439_v12  ;;  %vm1453_vm5 = vcmp.eq.s32.totalorder %v13792_v45, %v6465_v8  ;;  %vm2057_vm6 = vcmp.eq.s32.totalorder %v13784_v25, %v6487_v38 }
 0x37f   : > { %v5507_v22 = vpack.c.bf16 %v5114_v50, %v5110_v19  ;;  %vm2061_vm7 = vcmp.eq.s32.totalorder %v13792_v45, %v6487_v38  ;;  %vm2665_vm8 = vcmp.eq.s32.totalorder %v13784_v25, %v6508_v6  ;;  %vm2669_vm9 = vcmp.eq.s32.totalorder %v13792_v45, %v6508_v6 }
 0x380   : > { %v3278_v16 = vsel %vm2665_vm8, %v6492_v40, 0.0  ;;  %v3282_v32 = vsel %vm2669_vm9, %v6492_v40, 0.0  ;;  %vm843_vm12 = vcmp.eq.s32.totalorder %v13784_v25, %v6480_v36  ;;  %vm847_vm10 = vcmp.eq.s32.totalorder %v13792_v45, %v6480_v36  ;;  %5720 = vmatmul.mubr.bf16.vlgmr.msra.gmra.mrb[0].mxu0 %v5312_v46 }
 0x381   : > { %5923 = vmatpush1.bf16.msra.mxu1 %v5507_v22  ;;  %v3891_v55 = vsel %vm2057_vm6, %v6455_v28, %v3278_v16  ;;  %v3895_v43 = vsel %vm2061_vm7, %v6455_v28, %v3282_v32  ;;  %vm1451_vm11 = vcmp.eq.s32.totalorder %v13784_v25, %v6499_v41  ;;  %vm1455_vm13 = vcmp.eq.s32.totalorder %v13792_v45, %v6499_v41 }
 0x382   : > { %v4504_v4 = vsel %vm1449_vm4, %v6470_v33, %v3891_v55  ;;  %v4508_v21 = vsel %vm1453_vm5, %v6470_v33, %v3895_v43  ;;  %vm2059_vm14 = vcmp.eq.s32.totalorder %v13784_v25, %v6521_v44  ;;  %vm2063_vm15 = vcmp.eq.s32.totalorder %v13792_v45, %v6521_v44 }
 0x383   : > { %v5117_v7 = vsel %vm841_vm3, %v6473_v34, %v4504_v4  ;;  %v5121_v51 = vsel %vm845_vm2, %v6473_v34, %v4508_v21  ;;  %vm2667_vm0 = vcmp.eq.s32.totalorder %v13784_v25, %v6530_v9  ;;  %vm2671_vm1 = vcmp.eq.s32.totalorder %v13792_v45, %v6530_v9 }
 0x384   : > { %v5510_v17 = vpack.c.bf16 %v5121_v51, %v5117_v7  ;;  %v3280_v15 = vsel %vm2667_vm0, %v6561_v57, 0.0  ;;  %v3284_v47 = vsel %vm2671_vm1, %v6561_v57, 0.0  ;;  %vm840_vm4 = vcmp.eq.s32.totalorder %v13784_v25, %v6597_v39  ;;  %5925 = vmatmul.mubr.bf16.vlgmr.msra.gmra.mrb[0].mxu1 %v5312_v46 }
 0x385   : > { %v3893_v31 = vsel %vm2059_vm14, %v6564_v58, %v3280_v15  ;;  %v3897_v26 = vsel %vm2063_vm15, %v6564_v58, %v3284_v47  ;;  %vm844_vm3 = vcmp.eq.s32.totalorder %v13792_v45, %v6597_v39  ;;  %vm1448_vm2 = vcmp.eq.s32.totalorder %v13784_v25, %v6630_v60 }
 0x386   : > { %5728 = vmatprep.subr.bf16.mxu0 %v5510_v17  ;;  %v4506_v23 = vsel %vm1451_vm11, %v6591_v10, %v3893_v31  ;;  %v4510_v18 = vsel %vm1455_vm13, %v6591_v10, %v3897_v26  ;;  %vm1452_vm5 = vcmp.eq.s32.totalorder %v13792_v45, %v6630_v60  ;;  %vm2056_vm6 = vcmp.eq.s32.totalorder %v13784_v25, %v6633_v61 }
 0x387   : > { %v5119_v49 = vsel %vm843_vm12, %v6594_v37, %v4506_v23  ;;  %v5123_v3 = vsel %vm847_vm10, %v6594_v37, %v4510_v18  ;;  %vm2060_vm7 = vcmp.eq.s32.totalorder %v13792_v45, %v6633_v61  ;;  %vm2664_vm8 = vcmp.eq.s32.totalorder %v13784_v25, %v6636_v62 }
 0x388   : > { %v5512_v27 = vpack.c.bf16 %v5123_v3, %v5119_v49  ;;  %vm2668_vm9 = vcmp.eq.s32.totalorder %v13792_v45, %v6636_v62  ;;  %v3277_v42 = vsel %vm2664_vm8, %v6639_v0, 0.0  ;;  %vm842_vm12 = vcmp.eq.s32.totalorder %v13784_v25, %v6687_v63 }
 0x389   : > { %v3281_v5 = vsel %vm2668_vm9, %v6639_v0, 0.0  ;;  %v3890_v48 = vsel %vm2056_vm6, %v6642_v2, %v3277_v42  ;;  %vm846_vm10 = vcmp.eq.s32.totalorder %v13792_v45, %v6687_v63  ;;  %vm1450_vm11 = vcmp.eq.s32.totalorder %v13784_v25, %v6690_v52 }
 0x38a   : > { %5933 = vmatprep.subr.bf16.mxu1 %v5512_v27  ;;  %v3894_v11 = vsel %vm2060_vm7, %v6642_v2, %v3281_v5  ;;  %v4503_v24 = vsel %vm1448_vm2, %v6661_v20, %v3890_v48  ;;  %vm1454_vm13 = vcmp.eq.s32.totalorder %v13792_v45, %v6690_v52  ;;  %vm2058_vm14 = vcmp.eq.s32.totalorder %v13784_v25, %v6701_v35 }
 0x38b   : > { %v4507_v46 = vsel %vm1452_vm5, %v6661_v20, %v3894_v11  ;;  %v5116_v13 = vsel %vm840_vm4, %v6664_v29, %v4503_v24  ;;  %vm2062_vm15 = vcmp.eq.s32.totalorder %v13792_v45, %v6701_v35  ;;  %vm2666_vm0 = vcmp.eq.s32.totalorder %v13784_v25, %v6704_v56 }
 0x38c   : > { %v5120_v19 = vsel %vm844_vm3, %v6664_v29, %v4507_v46  ;;  %vm2670_vm1 = vcmp.eq.s32.totalorder %v13792_v45, %v6704_v56  ;;  %v3279_v50 = vsel %vm2666_vm0, %v6737_v59, 0.0  ;;  %v13932_v22 = vadd.s32 784, %v6309_v1 }
 0x38d   : > { %v5509_v16 = vpack.c.bf16 %v5120_v19, %v5116_v13  ;;  %v3283_v32 = vsel %vm2670_vm1, %v6737_v59, 0.0  ;;  %v3892_v55 = vsel %vm2058_vm14, %v6740_v54, %v3279_v50  ;;  %v13937_v43 = vadd.s32 792, %v6309_v1 }
 0x38e   : > { %v3896_v4 = vsel %vm2062_vm15, %v6740_v54, %v3283_v32  ;;  %v4505_v21 = vsel %vm1450_vm11, %v6743_v53, %v3892_v55  ;;  %vm849_vm4 = vcmp.eq.s32.totalorder %v13932_v22, %v6439_v12  ;;  %vm1457_vm3 = vcmp.eq.s32.totalorder %v13932_v22, %v6465_v8 }
 0x38f   : > { %5729 = vmatpush1.bf16.msra.mxu0 %v5509_v16  ;;  %v4509_v7 = vsel %vm1454_vm13, %v6743_v53, %v3896_v4  ;;  %v5118_v51 = vsel %vm842_vm12, %v6748_v14, %v4505_v21  ;;  %vm853_vm2 = vcmp.eq.s32.totalorder %v13937_v43, %v6439_v12  ;;  %vm1461_vm5 = vcmp.eq.s32.totalorder %v13937_v43, %v6465_v8 }
 0x390   : > { %v5122_v17 = vsel %vm846_vm10, %v6748_v14, %v4509_v7  ;;  %vm2065_vm6 = vcmp.eq.s32.totalorder %v13932_v22, %v6487_v38  ;;  %vm2069_vm7 = vcmp.eq.s32.totalorder %v13937_v43, %v6487_v38  ;;  %vm2673_vm8 = vcmp.eq.s32.totalorder %v13932_v22, %v6508_v6 }
 0x391   : > { %v5511_v25 = vpack.c.bf16 %v5122_v17, %v5118_v51  ;;  %vm2677_vm9 = vcmp.eq.s32.totalorder %v13937_v43, %v6508_v6  ;;  %v3286_v15 = vsel %vm2673_vm8, %v6492_v40, 0.0  ;;  %vm851_vm12 = vcmp.eq.s32.totalorder %v13932_v22, %v6480_v36 }
 0x392   : > { %v3290_v45 = vsel %vm2677_vm9, %v6492_v40, 0.0  ;;  %v3899_v47 = vsel %vm2065_vm6, %v6455_v28, %v3286_v15  ;;  %vm855_vm10 = vcmp.eq.s32.totalorder %v13937_v43, %v6480_v36  ;;  %vm1459_vm11 = vcmp.eq.s32.totalorder %v13932_v22, %v6499_v41 }
 0x393   : > { %5934 = vmatpush1.bf16.msra.mxu1 %v5511_v25  ;;  %v3903_v31 = vsel %vm2069_vm7, %v6455_v28, %v3290_v45  ;;  %v4512_v26 = vsel %vm1457_vm3, %v6470_v33, %v3899_v47  ;;  %vm1463_vm13 = vcmp.eq.s32.totalorder %v13937_v43, %v6499_v41  ;;  %vm2067_vm14 = vcmp.eq.s32.totalorder %v13932_v22, %v6521_v44 }
 0x394   : > { %v4516_v23 = vsel %vm1461_vm5, %v6470_v33, %v3903_v31  ;;  %v5125_v18 = vsel %vm849_vm4, %v6473_v34, %v4512_v26  ;;  %vm2071_vm15 = vcmp.eq.s32.totalorder %v13937_v43, %v6521_v44  ;;  %vm2675_vm0 = vcmp.eq.s32.totalorder %v13932_v22, %v6530_v9 }
 0x395   : > { %v5129_v49 = vsel %vm853_vm2, %v6473_v34, %v4516_v23  ;;  %vm2679_vm1 = vcmp.eq.s32.totalorder %v13937_v43, %v6530_v9  ;;  %v3288_v3 = vsel %vm2675_vm0, %v6561_v57, 0.0  ;;  %vm848_vm3 = vcmp.eq.s32.totalorder %v13932_v22, %v6597_v39 }
 0x396   : > { %v5514_v27 = vpack.c.bf16 %v5129_v49, %v5125_v18  ;;  %v3292_v42 = vsel %vm2679_vm1, %v6561_v57, 0.0  ;;  %v3901_v5 = vsel %vm2067_vm14, %v6564_v58, %v3288_v3  ;;  %vm852_vm4 = vcmp.eq.s32.totalorder %v13937_v43, %v6597_v39 }
 0x397   : > { %v3905_v48 = vsel %vm2071_vm15, %v6564_v58, %v3292_v42  ;;  %v4514_v11 = vsel %vm1459_vm11, %v6591_v10, %v3901_v5  ;;  %vm1456_vm2 = vcmp.eq.s32.totalorder %v13932_v22, %v6630_v60  ;;  %vm1460_vm5 = vcmp.eq.s32.totalorder %v13937_v43, %v6630_v60 }
 0x398   : > { %5730 = vmatprep.subr.bf16.mxu0 %v5514_v27  ;;  %v4518_v24 = vsel %vm1463_vm13, %v6591_v10, %v3905_v48  ;;  %v5127_v46 = vsel %vm851_vm12, %v6594_v37, %v4514_v11  ;;  %vm2064_vm6 = vcmp.eq.s32.totalorder %v13932_v22, %v6633_v61  ;;  %vm2068_vm7 = vcmp.eq.s32.totalorder %v13937_v43, %v6633_v61 }
 0x399   : > { %v5131_v13 = vsel %vm855_vm10, %v6594_v37, %v4518_v24  ;;  %vm2672_vm8 = vcmp.eq.s32.totalorder %v13932_v22, %v6636_v62  ;;  %vm2676_vm9 = vcmp.eq.s32.totalorder %v13937_v43, %v6636_v62  ;;  %vm850_vm12 = vcmp.eq.s32.totalorder %v13932_v22, %v6687_v63 }
 0x39a   : > { %v5516_v19 = vpack.c.bf16 %v5131_v13, %v5127_v46  ;;  %v3285_v50 = vsel %vm2672_vm8, %v6639_v0, 0.0  ;;  %v3289_v16 = vsel %vm2676_vm9, %v6639_v0, 0.0  ;;  %vm854_vm11 = vcmp.eq.s32.totalorder %v13937_v43, %v6687_v63 }
 0x39b   : > { %v3898_v32 = vsel %vm2064_vm6, %v6642_v2, %v3285_v50  ;;  %v3902_v55 = vsel %vm2068_vm7, %v6642_v2, %v3289_v16  ;;  %vm1458_vm10 = vcmp.eq.s32.totalorder %v13932_v22, %v6690_v52  ;;  %vm1462_vm13 = vcmp.eq.s32.totalorder %v13937_v43, %v6690_v52 }
 0x39c   : > { %5935 = vmatprep.subr.bf16.mxu1 %v5516_v19  ;;  %v4511_v4 = vsel %vm1456_vm2, %v6661_v20, %v3898_v32  ;;  %v4515_v21 = vsel %vm1460_vm5, %v6661_v20, %v3902_v55  ;;  %vm2066_vm14 = vcmp.eq.s32.totalorder %v13932_v22, %v6701_v35  ;;  %vm2070_vm15 = vcmp.eq.s32.totalorder %v13937_v43, %v6701_v35 }
 0x39d   : > { %v5124_v7 = vsel %vm848_vm3, %v6664_v29, %v4511_v4  ;;  %v5128_v51 = vsel %vm852_vm4, %v6664_v29, %v4515_v21  ;;  %vm2674_vm0 = vcmp.eq.s32.totalorder %v13932_v22, %v6704_v56  ;;  %vm2678_vm1 = vcmp.eq.s32.totalorder %v13937_v43, %v6704_v56 }
 0x39e   : > { %v5513_v17 = vpack.c.bf16 %v5128_v51, %v5124_v7  ;;  %v3287_v25 = vsel %vm2674_vm0, %v6737_v59, 0.0  ;;  %v3291_v15 = vsel %vm2678_vm1, %v6737_v59, 0.0  ;;  %v14083_v45 = vadd.s32 800, %v6309_v1 }
 0x39f   : > { %v3900_v47 = vsel %vm2066_vm14, %v6740_v54, %v3287_v25  ;;  %v3904_v31 = vsel %vm2070_vm15, %v6740_v54, %v3291_v15  ;;  %v14088_v26 = vadd.s32 808, %v6309_v1  ;;  %v14091_v23 = vadd.s32 816, %v6309_v1 }
 0x3a0   : > { %5731 = vmatpush1.bf16.msra.mxu0 %v5513_v17  ;;  %v4513_v18 = vsel %vm1458_vm10, %v6743_v53, %v3900_v47  ;;  %v4517_v49 = vsel %vm1462_vm13, %v6743_v53, %v3904_v31  ;;  %vm857_vm3 = vcmp.eq.s32.totalorder %v14083_v45, %v6439_v12  ;;  %vm1465_vm4 = vcmp.eq.s32.totalorder %v14083_v45, %v6465_v8 }
 0x3a1   : > { %v5126_v3 = vsel %vm850_vm12, %v6748_v14, %v4513_v18  ;;  %v5130_v27 = vsel %vm854_vm11, %v6748_v14, %v4517_v49  ;;  %vm861_vm2 = vcmp.eq.s32.totalorder %v14088_v26, %v6439_v12  ;;  %vm1469_vm5 = vcmp.eq.s32.totalorder %v14088_v26, %v6465_v8 }
 0x3a2   : > { %v5515_v42 = vpack.c.bf16 %v5130_v27, %v5126_v3  ;;  %vm2073_vm6 = vcmp.eq.s32.totalorder %v14083_v45, %v6487_v38  ;;  %vm2077_vm7 = vcmp.eq.s32.totalorder %v14088_v26, %v6487_v38  ;;  %vm2681_vm8 = vcmp.eq.s32.totalorder %v14083_v45, %v6508_v6 }
 0x3a3   : > { %vm2685_vm9 = vcmp.eq.s32.totalorder %v14088_v26, %v6508_v6  ;;  %v3294_v22 = vsel %vm2681_vm8, %v6492_v40, 0.0  ;;  %vm859_vm12 = vcmp.eq.s32.totalorder %v14083_v45, %v6480_v36  ;;  %vm863_vm11 = vcmp.eq.s32.totalorder %v14088_v26, %v6480_v36 }
 0x3a4   : > { %5936 = vmatpush1.bf16.msra.mxu1 %v5515_v42  ;;  %v3298_v43 = vsel %vm2685_vm9, %v6492_v40, 0.0  ;;  %v3907_v5 = vsel %vm2073_vm6, %v6455_v28, %v3294_v22  ;;  %vm1467_vm10 = vcmp.eq.s32.totalorder %v14083_v45, %v6499_v41  ;;  %vm1471_vm13 = vcmp.eq.s32.totalorder %v14088_v26, %v6499_v41 }
 0x3a5   : > { %v3911_v48 = vsel %vm2077_vm7, %v6455_v28, %v3298_v43  ;;  %v4520_v11 = vsel %vm1465_vm4, %v6470_v33, %v3907_v5  ;;  %vm2075_vm14 = vcmp.eq.s32.totalorder %v14083_v45, %v6521_v44  ;;  %vm2079_vm15 = vcmp.eq.s32.totalorder %v14088_v26, %v6521_v44 }
 0x3a6   : > { %v4524_v24 = vsel %vm1469_vm5, %v6470_v33, %v3911_v48  ;;  %v5133_v46 = vsel %vm857_vm3, %v6473_v34, %v4520_v11  ;;  %vm2683_vm0 = vcmp.eq.s32.totalorder %v14083_v45, %v6530_v9  ;;  %vm2687_vm1 = vcmp.eq.s32.totalorder %v14088_v26, %v6530_v9 }
 0x3a7   : > { %v5137_v13 = vsel %vm861_vm2, %v6473_v34, %v4524_v24  ;;  %v3296_v19 = vsel %vm2683_vm0, %v6561_v57, 0.0  ;;  %v3300_v50 = vsel %vm2687_vm1, %v6561_v57, 0.0  ;;  %vm856_vm4 = vcmp.eq.s32.totalorder %v14083_v45, %v6597_v39 }
 0x3a8   : > { %v5518_v16 = vpack.c.bf16 %v5137_v13, %v5133_v46  ;;  %v3909_v32 = vsel %vm2075_vm14, %v6564_v58, %v3296_v19  ;;  %v3913_v55 = vsel %vm2079_vm15, %v6564_v58, %v3300_v50  ;;  %vm860_vm3 = vcmp.eq.s32.totalorder %v14088_v26, %v6597_v39 }
 0x3a9   : > { %v4522_v4 = vsel %vm1467_vm10, %v6591_v10, %v3909_v32  ;;  %v4526_v21 = vsel %vm1471_vm13, %v6591_v10, %v3913_v55  ;;  %vm1464_vm2 = vcmp.eq.s32.totalorder %v14083_v45, %v6630_v60  ;;  %vm1468_vm5 = vcmp.eq.s32.totalorder %v14088_v26, %v6630_v60 }
 0x3aa   : > { %5732 = vmatprep.subr.bf16.mxu0 %v5518_v16  ;;  %v5135_v7 = vsel %vm859_vm12, %v6594_v37, %v4522_v4  ;;  %v5139_v51 = vsel %vm863_vm11, %v6594_v37, %v4526_v21  ;;  %vm2072_vm6 = vcmp.eq.s32.totalorder %v14083_v45, %v6633_v61  ;;  %vm2076_vm7 = vcmp.eq.s32.totalorder %v14088_v26, %v6633_v61 }
 0x3ab   : > { %v5520_v17 = vpack.c.bf16 %v5139_v51, %v5135_v7  ;;  %vm2680_vm8 = vcmp.eq.s32.totalorder %v14083_v45, %v6636_v62  ;;  %vm2684_vm9 = vcmp.eq.s32.totalorder %v14088_v26, %v6636_v62  ;;  %vm858_vm12 = vcmp.eq.s32.totalorder %v14083_v45, %v6687_v63 }
 0x3ac   : > { %v3293_v25 = vsel %vm2680_vm8, %v6639_v0, 0.0  ;;  %v3297_v15 = vsel %vm2684_vm9, %v6639_v0, 0.0  ;;  %vm862_vm11 = vcmp.eq.s32.totalorder %v14088_v26, %v6687_v63  ;;  %vm1466_vm10 = vcmp.eq.s32.totalorder %v14083_v45, %v6690_v52 }
 0x3ad   : > { %5937 = vmatprep.subr.bf16.mxu1 %v5520_v17  ;;  %v3906_v47 = vsel %vm2072_vm6, %v6642_v2, %v3293_v25  ;;  %v3910_v31 = vsel %vm2076_vm7, %v6642_v2, %v3297_v15  ;;  %vm1470_vm13 = vcmp.eq.s32.totalorder %v14088_v26, %v6690_v52  ;;  %vm2074_vm14 = vcmp.eq.s32.totalorder %v14083_v45, %v6701_v35 }
 0x3ae   : > { %v4519_v18 = vsel %vm1464_vm2, %v6661_v20, %v3906_v47  ;;  %v4523_v49 = vsel %vm1468_vm5, %v6661_v20, %v3910_v31  ;;  %vm2078_vm15 = vcmp.eq.s32.totalorder %v14088_v26, %v6701_v35  ;;  %vm2682_vm0 = vcmp.eq.s32.totalorder %v14083_v45, %v6704_v56 }
 0x3af   : > { %v5132_v3 = vsel %vm856_vm4, %v6664_v29, %v4519_v18  ;;  %v5136_v27 = vsel %vm860_vm3, %v6664_v29, %v4523_v49  ;;  %vm2686_vm1 = vcmp.eq.s32.totalorder %v14088_v26, %v6704_v56  ;;  %v3295_v42 = vsel %vm2682_vm0, %v6737_v59, 0.0 }
 0x3b0   : > { %v5517_v22 = vpack.c.bf16 %v5136_v27, %v5132_v3  ;;  %v3299_v43 = vsel %vm2686_vm1, %v6737_v59, 0.0  ;;  %v3908_v5 = vsel %vm2074_vm14, %v6740_v54, %v3295_v42  ;;  %v14237_v48 = vadd.s32 824, %v6309_v1 }
 0x3b1   : > { %v3912_v11 = vsel %vm2078_vm15, %v6740_v54, %v3299_v43  ;;  %v4521_v24 = vsel %vm1466_vm10, %v6743_v53, %v3908_v5  ;;  %vm865_vm4 = vcmp.eq.s32.totalorder %v14091_v23, %v6439_v12  ;;  %vm1473_vm3 = vcmp.eq.s32.totalorder %v14091_v23, %v6465_v8 }
 0x3b2   : > { %5733 = vmatpush1.bf16.msra.mxu0 %v5517_v22  ;;  %v4525_v46 = vsel %vm1470_vm13, %v6743_v53, %v3912_v11  ;;  %v5134_v13 = vsel %vm858_vm12, %v6748_v14, %v4521_v24  ;;  %vm869_vm2 = vcmp.eq.s32.totalorder %v14237_v48, %v6439_v12  ;;  %vm1477_vm5 = vcmp.eq.s32.totalorder %v14237_v48, %v6465_v8 }
 0x3b3   : > { %v5138_v19 = vsel %vm862_vm11, %v6748_v14, %v4525_v46  ;;  %vm2081_vm6 = vcmp.eq.s32.totalorder %v14091_v23, %v6487_v38  ;;  %vm2085_vm7 = vcmp.eq.s32.totalorder %v14237_v48, %v6487_v38  ;;  %vm2689_vm8 = vcmp.eq.s32.totalorder %v14091_v23, %v6508_v6 }
 0x3b4   : > { %v5519_v45 = vpack.c.bf16 %v5138_v19, %v5134_v13  ;;  %vm2693_vm9 = vcmp.eq.s32.totalorder %v14237_v48, %v6508_v6  ;;  %v3302_v50 = vsel %vm2689_vm8, %v6492_v40, 0.0  ;;  %vm867_vm12 = vcmp.eq.s32.totalorder %v14091_v23, %v6480_v36 }
 0x3b5   : > { %v3306_v26 = vsel %vm2693_vm9, %v6492_v40, 0.0  ;;  %v3915_v16 = vsel %vm2081_vm6, %v6455_v28, %v3302_v50  ;;  %vm871_vm11 = vcmp.eq.s32.totalorder %v14237_v48, %v6480_v36  ;;  %vm1475_vm10 = vcmp.eq.s32.totalorder %v14091_v23, %v6499_v41 }
 0x3b6   : > { %5938 = vmatpush1.bf16.msra.mxu1 %v5519_v45  ;;  %v3919_v32 = vsel %vm2085_vm7, %v6455_v28, %v3306_v26  ;;  %v4528_v55 = vsel %vm1473_vm3, %v6470_v33, %v3915_v16  ;;  %vm1479_vm13 = vcmp.eq.s32.totalorder %v14237_v48, %v6499_v41  ;;  %vm2083_vm14 = vcmp.eq.s32.totalorder %v14091_v23, %v6521_v44 }
 0x3b7   : > { %v4532_v4 = vsel %vm1477_vm5, %v6470_v33, %v3919_v32  ;;  %v5141_v21 = vsel %vm865_vm4, %v6473_v34, %v4528_v55  ;;  %vm2087_vm15 = vcmp.eq.s32.totalorder %v14237_v48, %v6521_v44  ;;  %vm2691_vm0 = vcmp.eq.s32.totalorder %v14091_v23, %v6530_v9 }
 0x3b8   : > { %v5145_v7 = vsel %vm869_vm2, %v6473_v34, %v4532_v4  ;;  %vm2695_vm1 = vcmp.eq.s32.totalorder %v14237_v48, %v6530_v9  ;;  %v3304_v51 = vsel %vm2691_vm0, %v6561_v57, 0.0  ;;  %vm864_vm3 = vcmp.eq.s32.totalorder %v14091_v23, %v6597_v39 }
 0x3b9   : > { %v5522_v17 = vpack.c.bf16 %v5145_v7, %v5141_v21  ;;  %v3308_v25 = vsel %vm2695_vm1, %v6561_v57, 0.0  ;;  %v3917_v15 = vsel %vm2083_vm14, %v6564_v58, %v3304_v51  ;;  %vm868_vm4 = vcmp.eq.s32.totalorder %v14237_v48, %v6597_v39 }
 0x3ba   : > { %v3921_v47 = vsel %vm2087_vm15, %v6564_v58, %v3308_v25  ;;  %v4530_v31 = vsel %vm1475_vm10, %v6591_v10, %v3917_v15  ;;  %vm1472_vm2 = vcmp.eq.s32.totalorder %v14091_v23, %v6630_v60  ;;  %vm1476_vm5 = vcmp.eq.s32.totalorder %v14237_v48, %v6630_v60 }
 0x3bb   : > { %5734 = vmatprep.subr.bf16.mxu0 %v5522_v17  ;;  %v4534_v18 = vsel %vm1479_vm13, %v6591_v10, %v3921_v47  ;;  %v5143_v49 = vsel %vm867_vm12, %v6594_v37, %v4530_v31  ;;  %vm2080_vm6 = vcmp.eq.s32.totalorder %v14091_v23, %v6633_v61  ;;  %vm2084_vm7 = vcmp.eq.s32.totalorder %v14237_v48, %v6633_v61 }
 0x3bc   : > { %v5147_v3 = vsel %vm871_vm11, %v6594_v37, %v4534_v18  ;;  %vm2688_vm8 = vcmp.eq.s32.totalorder %v14091_v23, %v6636_v62  ;;  %vm2692_vm9 = vcmp.eq.s32.totalorder %v14237_v48, %v6636_v62  ;;  %vm866_vm12 = vcmp.eq.s32.totalorder %v14091_v23, %v6687_v63 }
 0x3bd   : > { %v5524_v27 = vpack.c.bf16 %v5147_v3, %v5143_v49  ;;  %v3301_v42 = vsel %vm2688_vm8, %v6639_v0, 0.0  ;;  %v3305_v22 = vsel %vm2692_vm9, %v6639_v0, 0.0  ;;  %vm870_vm10 = vcmp.eq.s32.totalorder %v14237_v48, %v6687_v63 }
 0x3be   : > { %v3914_v43 = vsel %vm2080_vm6, %v6642_v2, %v3301_v42  ;;  %v3918_v5 = vsel %vm2084_vm7, %v6642_v2, %v3305_v22  ;;  %vm1474_vm11 = vcmp.eq.s32.totalorder %v14091_v23, %v6690_v52  ;;  %vm1478_vm13 = vcmp.eq.s32.totalorder %v14237_v48, %v6690_v52 }
 0x3bf   : > { %5939 = vmatprep.subr.bf16.mxu1 %v5524_v27  ;;  %v4527_v11 = vsel %vm1472_vm2, %v6661_v20, %v3914_v43  ;;  %v4531_v24 = vsel %vm1476_vm5, %v6661_v20, %v3918_v5  ;;  %vm2082_vm14 = vcmp.eq.s32.totalorder %v14091_v23, %v6701_v35  ;;  %vm2086_vm15 = vcmp.eq.s32.totalorder %v14237_v48, %v6701_v35 }
 0x3c0   : > { %v5140_v46 = vsel %vm864_vm3, %v6664_v29, %v4527_v11  ;;  %v5144_v13 = vsel %vm868_vm4, %v6664_v29, %v4531_v24  ;;  %vm2690_vm0 = vcmp.eq.s32.totalorder %v14091_v23, %v6704_v56  ;;  %vm2694_vm1 = vcmp.eq.s32.totalorder %v14237_v48, %v6704_v56 }
 0x3c1   : > { %v5521_v19 = vpack.c.bf16 %v5144_v13, %v5140_v46  ;;  %v3303_v45 = vsel %vm2690_vm0, %v6737_v59, 0.0  ;;  %v3307_v50 = vsel %vm2694_vm1, %v6737_v59, 0.0  ;;  %v14383_v26 = vadd.s32 832, %v6309_v1 }
 0x3c2   : > { %v3916_v16 = vsel %vm2082_vm14, %v6740_v54, %v3303_v45  ;;  %v3920_v32 = vsel %vm2086_vm15, %v6740_v54, %v3307_v50  ;;  %v14388_v55 = vadd.s32 840, %v6309_v1  ;;  %v14391_v4 = vadd.s32 848, %v6309_v1 }
 0x3c3   : > { %5735 = vmatpush1.bf16.msra.mxu0 %v5521_v19  ;;  %v4529_v21 = vsel %vm1474_vm11, %v6743_v53, %v3916_v16  ;;  %v4533_v7 = vsel %vm1478_vm13, %v6743_v53, %v3920_v32  ;;  %vm873_vm3 = vcmp.eq.s32.totalorder %v14383_v26, %v6439_v12  ;;  %vm1481_vm4 = vcmp.eq.s32.totalorder %v14383_v26, %v6465_v8 }
 0x3c4   : > { %v5142_v51 = vsel %vm866_vm12, %v6748_v14, %v4529_v21  ;;  %v5146_v17 = vsel %vm870_vm10, %v6748_v14, %v4533_v7  ;;  %vm877_vm2 = vcmp.eq.s32.totalorder %v14388_v55, %v6439_v12  ;;  %vm1485_vm5 = vcmp.eq.s32.totalorder %v14388_v55, %v6465_v8 }
 0x3c5   : > { %v5523_v25 = vpack.c.bf16 %v5146_v17, %v5142_v51  ;;  %vm2089_vm6 = vcmp.eq.s32.totalorder %v14383_v26, %v6487_v38  ;;  %vm2093_vm7 = vcmp.eq.s32.totalorder %v14388_v55, %v6487_v38  ;;  %vm2697_vm8 = vcmp.eq.s32.totalorder %v14383_v26, %v6508_v6 }
 0x3c6   : > { %vm2701_vm9 = vcmp.eq.s32.totalorder %v14388_v55, %v6508_v6  ;;  %v3310_v23 = vsel %vm2697_vm8, %v6492_v40, 0.0  ;;  %vm875_vm12 = vcmp.eq.s32.totalorder %v14383_v26, %v6480_v36  ;;  %vm879_vm10 = vcmp.eq.s32.totalorder %v14388_v55, %v6480_v36 }
 0x3c7   : > { %5940 = vmatpush1.bf16.msra.mxu1 %v5523_v25  ;;  %v3314_v48 = vsel %vm2701_vm9, %v6492_v40, 0.0  ;;  %v3923_v15 = vsel %vm2089_vm6, %v6455_v28, %v3310_v23  ;;  %vm1483_vm11 = vcmp.eq.s32.totalorder %v14383_v26, %v6499_v41  ;;  %vm1487_vm13 = vcmp.eq.s32.totalorder %v14388_v55, %v6499_v41 }
 0x3c8   : > { %v3927_v47 = vsel %vm2093_vm7, %v6455_v28, %v3314_v48  ;;  %v4536_v31 = vsel %vm1481_vm4, %v6470_v33, %v3923_v15  ;;  %vm2091_vm14 = vcmp.eq.s32.totalorder %v14383_v26, %v6521_v44  ;;  %vm2095_vm15 = vcmp.eq.s32.totalorder %v14388_v55, %v6521_v44 }
 0x3c9   : > { %v4540_v18 = vsel %vm1485_vm5, %v6470_v33, %v3927_v47  ;;  %v5149_v49 = vsel %vm873_vm3, %v6473_v34, %v4536_v31  ;;  %vm2699_vm0 = vcmp.eq.s32.totalorder %v14383_v26, %v6530_v9  ;;  %vm2703_vm1 = vcmp.eq.s32.totalorder %v14388_v55, %v6530_v9 }
 0x3ca   : > { %v5153_v3 = vsel %vm877_vm2, %v6473_v34, %v4540_v18  ;;  %v3312_v27 = vsel %vm2699_vm0, %v6561_v57, 0.0  ;;  %v3316_v42 = vsel %vm2703_vm1, %v6561_v57, 0.0  ;;  %vm872_vm4 = vcmp.eq.s32.totalorder %v14383_v26, %v6597_v39 }
 0x3cb   : > { %v5526_v22 = vpack.c.bf16 %v5153_v3, %v5149_v49  ;;  %v3925_v43 = vsel %vm2091_vm14, %v6564_v58, %v3312_v27  ;;  %v3929_v5 = vsel %vm2095_vm15, %v6564_v58, %v3316_v42  ;;  %vm876_vm3 = vcmp.eq.s32.totalorder %v14388_v55, %v6597_v39 }
 0x3cc   : > { %v4538_v11 = vsel %vm1483_vm11, %v6591_v10, %v3925_v43  ;;  %v4542_v24 = vsel %vm1487_vm13, %v6591_v10, %v3929_v5  ;;  %vm1480_vm2 = vcmp.eq.s32.totalorder %v14383_v26, %v6630_v60  ;;  %vm1484_vm5 = vcmp.eq.s32.totalorder %v14388_v55, %v6630_v60 }
 0x3cd   : > { %5736 = vmatprep.subr.bf16.mxu0 %v5526_v22  ;;  %v5151_v46 = vsel %vm875_vm12, %v6594_v37, %v4538_v11  ;;  %v5155_v13 = vsel %vm879_vm10, %v6594_v37, %v4542_v24  ;;  %vm2088_vm6 = vcmp.eq.s32.totalorder %v14383_v26, %v6633_v61  ;;  %vm2092_vm7 = vcmp.eq.s32.totalorder %v14388_v55, %v6633_v61 }
 0x3ce   : > { %v5528_v19 = vpack.c.bf16 %v5155_v13, %v5151_v46  ;;  %vm2696_vm8 = vcmp.eq.s32.totalorder %v14383_v26, %v6636_v62  ;;  %vm2700_vm9 = vcmp.eq.s32.totalorder %v14388_v55, %v6636_v62  ;;  %vm874_vm12 = vcmp.eq.s32.totalorder %v14383_v26, %v6687_v63 }
 0x3cf   : > { %v3309_v45 = vsel %vm2696_vm8, %v6639_v0, 0.0  ;;  %v3313_v50 = vsel %vm2700_vm9, %v6639_v0, 0.0  ;;  %vm878_vm10 = vcmp.eq.s32.totalorder %v14388_v55, %v6687_v63  ;;  %vm1482_vm11 = vcmp.eq.s32.totalorder %v14383_v26, %v6690_v52 }
 0x3d0   : > { %5941 = vmatprep.subr.bf16.mxu1 %v5528_v19  ;;  %v3922_v16 = vsel %vm2088_vm6, %v6642_v2, %v3309_v45  ;;  %v3926_v32 = vsel %vm2092_vm7, %v6642_v2, %v3313_v50  ;;  %vm1486_vm13 = vcmp.eq.s32.totalorder %v14388_v55, %v6690_v52  ;;  %vm2090_vm14 = vcmp.eq.s32.totalorder %v14383_v26, %v6701_v35 }
 0x3d1   : > { %v4535_v21 = vsel %vm1480_vm2, %v6661_v20, %v3922_v16  ;;  %v4539_v7 = vsel %vm1484_vm5, %v6661_v20, %v3926_v32  ;;  %vm2094_vm15 = vcmp.eq.s32.totalorder %v14388_v55, %v6701_v35  ;;  %vm2698_vm0 = vcmp.eq.s32.totalorder %v14383_v26, %v6704_v56 }
 0x3d2   : > { %v5148_v51 = vsel %vm872_vm4, %v6664_v29, %v4535_v21  ;;  %v5152_v17 = vsel %vm876_vm3, %v6664_v29, %v4539_v7  ;;  %vm2702_vm1 = vcmp.eq.s32.totalorder %v14388_v55, %v6704_v56  ;;  %v3311_v25 = vsel %vm2698_vm0, %v6737_v59, 0.0 }
 0x3d3   : > { %v5525_v23 = vpack.c.bf16 %v5152_v17, %v5148_v51  ;;  %v3315_v48 = vsel %vm2702_vm1, %v6737_v59, 0.0  ;;  %v3924_v15 = vsel %vm2090_vm14, %v6740_v54, %v3311_v25  ;;  %v14537_v47 = vadd.s32 856, %v6309_v1 }
 0x3d4   : > { %v3928_v31 = vsel %vm2094_vm15, %v6740_v54, %v3315_v48  ;;  %v4537_v18 = vsel %vm1482_vm11, %v6743_v53, %v3924_v15  ;;  %vm881_vm4 = vcmp.eq.s32.totalorder %v14391_v4, %v6439_v12  ;;  %vm1489_vm3 = vcmp.eq.s32.totalorder %v14391_v4, %v6465_v8 }
 0x3d5   : > { %5737 = vmatpush1.bf16.msra.mxu0 %v5525_v23  ;;  %v4541_v49 = vsel %vm1486_vm13, %v6743_v53, %v3928_v31  ;;  %v5150_v3 = vsel %vm874_vm12, %v6748_v14, %v4537_v18  ;;  %vm885_vm2 = vcmp.eq.s32.totalorder %v14537_v47, %v6439_v12  ;;  %vm1493_vm5 = vcmp.eq.s32.totalorder %v14537_v47, %v6465_v8 }
 0x3d6   : > { %v5154_v27 = vsel %vm878_vm10, %v6748_v14, %v4541_v49  ;;  %vm2097_vm6 = vcmp.eq.s32.totalorder %v14391_v4, %v6487_v38  ;;  %vm2101_vm7 = vcmp.eq.s32.totalorder %v14537_v47, %v6487_v38  ;;  %vm2705_vm8 = vcmp.eq.s32.totalorder %v14391_v4, %v6508_v6 }
 0x3d7   : > { %v5527_v26 = vpack.c.bf16 %v5154_v27, %v5150_v3  ;;  %vm2709_vm9 = vcmp.eq.s32.totalorder %v14537_v47, %v6508_v6  ;;  %v3318_v42 = vsel %vm2705_vm8, %v6492_v40, 0.0  ;;  %vm883_vm12 = vcmp.eq.s32.totalorder %v14391_v4, %v6480_v36 }
 0x3d8   : > { %v3322_v55 = vsel %vm2709_vm9, %v6492_v40, 0.0  ;;  %v3931_v22 = vsel %vm2097_vm6, %v6455_v28, %v3318_v42  ;;  %vm887_vm10 = vcmp.eq.s32.totalorder %v14537_v47, %v6480_v36  ;;  %vm1491_vm11 = vcmp.eq.s32.totalorder %v14391_v4, %v6499_v41 }
 0x3d9   : > { %5942 = vmatpush1.bf16.msra.mxu1 %v5527_v26  ;;  %v3935_v43 = vsel %vm2101_vm7, %v6455_v28, %v3322_v55  ;;  %v4544_v5 = vsel %vm1489_vm3, %v6470_v33, %v3931_v22  ;;  %vm1495_vm13 = vcmp.eq.s32.totalorder %v14537_v47, %v6499_v41  ;;  %vm2099_vm14 = vcmp.eq.s32.totalorder %v14391_v4, %v6521_v44 }
 0x3da   : > { %v4548_v11 = vsel %vm1493_vm5, %v6470_v33, %v3935_v43  ;;  %v5157_v24 = vsel %vm881_vm4, %v6473_v34, %v4544_v5  ;;  %vm2103_vm15 = vcmp.eq.s32.totalorder %v14537_v47, %v6521_v44  ;;  %vm2707_vm0 = vcmp.eq.s32.totalorder %v14391_v4, %v6530_v9 }
 0x3db   : > { %v5161_v46 = vsel %vm885_vm2, %v6473_v34, %v4548_v11  ;;  %vm2711_vm1 = vcmp.eq.s32.totalorder %v14537_v47, %v6530_v9  ;;  %v3320_v13 = vsel %vm2707_vm0, %v6561_v57, 0.0  ;;  %vm880_vm3 = vcmp.eq.s32.totalorder %v14391_v4, %v6597_v39 }
 0x3dc   : > { %v5530_v19 = vpack.c.bf16 %v5161_v46, %v5157_v24  ;;  %v3324_v45 = vsel %vm2711_vm1, %v6561_v57, 0.0  ;;  %v3933_v50 = vsel %vm2099_vm14, %v6564_v58, %v3320_v13  ;;  %vm884_vm4 = vcmp.eq.s32.totalorder %v14537_v47, %v6597_v39 }
 0x3dd   : > { %v3937_v16 = vsel %vm2103_vm15, %v6564_v58, %v3324_v45  ;;  %v4546_v32 = vsel %vm1491_vm11, %v6591_v10, %v3933_v50  ;;  %vm1488_vm2 = vcmp.eq.s32.totalorder %v14391_v4, %v6630_v60  ;;  %vm1492_vm5 = vcmp.eq.s32.totalorder %v14537_v47, %v6630_v60 }
 0x3de   : > { %5738 = vmatprep.subr.bf16.mxu0 %v5530_v19  ;;  %v4550_v21 = vsel %vm1495_vm13, %v6591_v10, %v3937_v16  ;;  %v5159_v7 = vsel %vm883_vm12, %v6594_v37, %v4546_v32  ;;  %vm2096_vm6 = vcmp.eq.s32.totalorder %v14391_v4, %v6633_v61  ;;  %vm2100_vm7 = vcmp.eq.s32.totalorder %v14537_v47, %v6633_v61 }
 0x3df   : > { %v5163_v51 = vsel %vm887_vm10, %v6594_v37, %v4550_v21  ;;  %vm2704_vm8 = vcmp.eq.s32.totalorder %v14391_v4, %v6636_v62  ;;  %vm2708_vm9 = vcmp.eq.s32.totalorder %v14537_v47, %v6636_v62  ;;  %vm882_vm12 = vcmp.eq.s32.totalorder %v14391_v4, %v6687_v63 }
 0x3e0   : > { %v5532_v17 = vpack.c.bf16 %v5163_v51, %v5159_v7  ;;  %v3317_v25 = vsel %vm2704_vm8, %v6639_v0, 0.0  ;;  %v3321_v23 = vsel %vm2708_vm9, %v6639_v0, 0.0  ;;  %vm886_vm11 = vcmp.eq.s32.totalorder %v14537_v47, %v6687_v63 }
 0x3e1   : > { %v3930_v48 = vsel %vm2096_vm6, %v6642_v2, %v3317_v25  ;;  %v3934_v15 = vsel %vm2100_vm7, %v6642_v2, %v3321_v23  ;;  %vm1490_vm10 = vcmp.eq.s32.totalorder %v14391_v4, %v6690_v52  ;;  %vm1494_vm13 = vcmp.eq.s32.totalorder %v14537_v47, %v6690_v52 }
 0x3e2   : > { %5943 = vmatprep.subr.bf16.mxu1 %v5532_v17  ;;  %v4543_v31 = vsel %vm1488_vm2, %v6661_v20, %v3930_v48  ;;  %v4547_v18 = vsel %vm1492_vm5, %v6661_v20, %v3934_v15  ;;  %vm2098_vm14 = vcmp.eq.s32.totalorder %v14391_v4, %v6701_v35  ;;  %vm2102_vm15 = vcmp.eq.s32.totalorder %v14537_v47, %v6701_v35 }
 0x3e3   : > { %v5156_v49 = vsel %vm880_vm3, %v6664_v29, %v4543_v31  ;;  %v5160_v3 = vsel %vm884_vm4, %v6664_v29, %v4547_v18  ;;  %vm2706_vm0 = vcmp.eq.s32.totalorder %v14391_v4, %v6704_v56  ;;  %vm2710_vm1 = vcmp.eq.s32.totalorder %v14537_v47, %v6704_v56 }
 0x3e4   : > { %v5529_v27 = vpack.c.bf16 %v5160_v3, %v5156_v49  ;;  %v3319_v26 = vsel %vm2706_vm0, %v6737_v59, 0.0  ;;  %v3323_v42 = vsel %vm2710_vm1, %v6737_v59, 0.0  ;;  %v14683_v55 = vadd.s32 864, %v6309_v1 }
 0x3e5   : > { %v3932_v22 = vsel %vm2098_vm14, %v6740_v54, %v3319_v26  ;;  %v3936_v43 = vsel %vm2102_vm15, %v6740_v54, %v3323_v42  ;;  %v14688_v5 = vadd.s32 872, %v6309_v1  ;;  %v14691_v11 = vadd.s32 880, %v6309_v1 }
 0x3e6   : > { %5739 = vmatpush1.bf16.msra.mxu0 %v5529_v27  ;;  %v4545_v24 = vsel %vm1490_vm10, %v6743_v53, %v3932_v22  ;;  %v4549_v46 = vsel %vm1494_vm13, %v6743_v53, %v3936_v43  ;;  %vm889_vm3 = vcmp.eq.s32.totalorder %v14683_v55, %v6439_v12  ;;  %vm1497_vm4 = vcmp.eq.s32.totalorder %v14683_v55, %v6465_v8 }
 0x3e7   : > { %v5158_v13 = vsel %vm882_vm12, %v6748_v14, %v4545_v24  ;;  %v5162_v19 = vsel %vm886_vm11, %v6748_v14, %v4549_v46  ;;  %vm893_vm2 = vcmp.eq.s32.totalorder %v14688_v5, %v6439_v12  ;;  %vm1501_vm5 = vcmp.eq.s32.totalorder %v14688_v5, %v6465_v8 }
 0x3e8   : > { %v5531_v45 = vpack.c.bf16 %v5162_v19, %v5158_v13  ;;  %vm2105_vm6 = vcmp.eq.s32.totalorder %v14683_v55, %v6487_v38  ;;  %vm2109_vm7 = vcmp.eq.s32.totalorder %v14688_v5, %v6487_v38  ;;  %vm2713_vm8 = vcmp.eq.s32.totalorder %v14683_v55, %v6508_v6 }
 0x3e9   : > { %vm2717_vm9 = vcmp.eq.s32.totalorder %v14688_v5, %v6508_v6  ;;  %v3326_v4 = vsel %vm2713_vm8, %v6492_v40, 0.0  ;;  %vm891_vm12 = vcmp.eq.s32.totalorder %v14683_v55, %v6480_v36  ;;  %vm895_vm11 = vcmp.eq.s32.totalorder %v14688_v5, %v6480_v36 }
 0x3ea   : > { %5944 = vmatpush1.bf16.msra.mxu1 %v5531_v45  ;;  %v3330_v47 = vsel %vm2717_vm9, %v6492_v40, 0.0  ;;  %v3939_v50 = vsel %vm2105_vm6, %v6455_v28, %v3326_v4  ;;  %vm1499_vm10 = vcmp.eq.s32.totalorder %v14683_v55, %v6499_v41  ;;  %vm1503_vm13 = vcmp.eq.s32.totalorder %v14688_v5, %v6499_v41 }
 0x3eb   : > { %v3943_v16 = vsel %vm2109_vm7, %v6455_v28, %v3330_v47  ;;  %v4552_v32 = vsel %vm1497_vm4, %v6470_v33, %v3939_v50  ;;  %vm2107_vm14 = vcmp.eq.s32.totalorder %v14683_v55, %v6521_v44  ;;  %vm2111_vm15 = vcmp.eq.s32.totalorder %v14688_v5, %v6521_v44 }
 0x3ec   : > { %v4556_v21 = vsel %vm1501_vm5, %v6470_v33, %v3943_v16  ;;  %v5165_v7 = vsel %vm889_vm3, %v6473_v34, %v4552_v32  ;;  %vm2715_vm0 = vcmp.eq.s32.totalorder %v14683_v55, %v6530_v9  ;;  %vm2719_vm1 = vcmp.eq.s32.totalorder %v14688_v5, %v6530_v9 }
 0x3ed   : > { %v5169_v51 = vsel %vm893_vm2, %v6473_v34, %v4556_v21  ;;  %v3328_v17 = vsel %vm2715_vm0, %v6561_v57, 0.0  ;;  %v3332_v25 = vsel %vm2719_vm1, %v6561_v57, 0.0  ;;  %vm888_vm4 = vcmp.eq.s32.totalorder %v14683_v55, %v6597_v39 }
 0x3ee   : > { %v5534_v23 = vpack.c.bf16 %v5169_v51, %v5165_v7  ;;  %v3941_v48 = vsel %vm2107_vm14, %v6564_v58, %v3328_v17  ;;  %v3945_v15 = vsel %vm2111_vm15, %v6564_v58, %v3332_v25  ;;  %vm892_vm3 = vcmp.eq.s32.totalorder %v14688_v5, %v6597_v39 }
 0x3ef   : > { %v4554_v31 = vsel %vm1499_vm10, %v6591_v10, %v3941_v48  ;;  %v4558_v18 = vsel %vm1503_vm13, %v6591_v10, %v3945_v15  ;;  %vm1496_vm2 = vcmp.eq.s32.totalorder %v14683_v55, %v6630_v60  ;;  %vm1500_vm5 = vcmp.eq.s32.totalorder %v14688_v5, %v6630_v60 }
 0x3f0   : > { %5740 = vmatprep.subr.bf16.mxu0 %v5534_v23  ;;  %v5167_v49 = vsel %vm891_vm12, %v6594_v37, %v4554_v31  ;;  %v5171_v3 = vsel %vm895_vm11, %v6594_v37, %v4558_v18  ;;  %vm2104_vm6 = vcmp.eq.s32.totalorder %v14683_v55, %v6633_v61  ;;  %vm2108_vm7 = vcmp.eq.s32.totalorder %v14688_v5, %v6633_v61 }
 0x3f1   : > { %v5536_v27 = vpack.c.bf16 %v5171_v3, %v5167_v49  ;;  %vm2712_vm8 = vcmp.eq.s32.totalorder %v14683_v55, %v6636_v62  ;;  %vm2716_vm9 = vcmp.eq.s32.totalorder %v14688_v5, %v6636_v62  ;;  %vm890_vm12 = vcmp.eq.s32.totalorder %v14683_v55, %v6687_v63 }
 0x3f2   : > { %v3325_v26 = vsel %vm2712_vm8, %v6639_v0, 0.0  ;;  %v3329_v42 = vsel %vm2716_vm9, %v6639_v0, 0.0  ;;  %vm894_vm11 = vcmp.eq.s32.totalorder %v14688_v5, %v6687_v63  ;;  %vm1498_vm10 = vcmp.eq.s32.totalorder %v14683_v55, %v6690_v52 }
 0x3f3   : > { %5945 = vmatprep.subr.bf16.mxu1 %v5536_v27  ;;  %v3938_v22 = vsel %vm2104_vm6, %v6642_v2, %v3325_v26  ;;  %v3942_v43 = vsel %vm2108_vm7, %v6642_v2, %v3329_v42  ;;  %vm1502_vm13 = vcmp.eq.s32.totalorder %v14688_v5, %v6690_v52  ;;  %vm2106_vm14 = vcmp.eq.s32.totalorder %v14683_v55, %v6701_v35 }
 0x3f4   : > { %v4551_v24 = vsel %vm1496_vm2, %v6661_v20, %v3938_v22  ;;  %v4555_v46 = vsel %vm1500_vm5, %v6661_v20, %v3942_v43  ;;  %vm2110_vm15 = vcmp.eq.s32.totalorder %v14688_v5, %v6701_v35  ;;  %vm2714_vm0 = vcmp.eq.s32.totalorder %v14683_v55, %v6704_v56 }
 0x3f5   : > { %v5164_v13 = vsel %vm888_vm4, %v6664_v29, %v4551_v24  ;;  %v5168_v19 = vsel %vm892_vm3, %v6664_v29, %v4555_v46  ;;  %vm2718_vm1 = vcmp.eq.s32.totalorder %v14688_v5, %v6704_v56  ;;  %v3327_v45 = vsel %vm2714_vm0, %v6737_v59, 0.0 }
 0x3f6   : > { %v5533_v4 = vpack.c.bf16 %v5168_v19, %v5164_v13  ;;  %v3331_v47 = vsel %vm2718_vm1, %v6737_v59, 0.0  ;;  %v3940_v50 = vsel %vm2106_vm14, %v6740_v54, %v3327_v45  ;;  %v14837_v16 = vadd.s32 888, %v6309_v1 }
 0x3f7   : > { %v3944_v32 = vsel %vm2110_vm15, %v6740_v54, %v3331_v47  ;;  %v4553_v21 = vsel %vm1498_vm10, %v6743_v53, %v3940_v50  ;;  %vm897_vm4 = vcmp.eq.s32.totalorder %v14691_v11, %v6439_v12  ;;  %vm1505_vm3 = vcmp.eq.s32.totalorder %v14691_v11, %v6465_v8 }
 0x3f8   : > { %5741 = vmatpush1.bf16.msra.mxu0 %v5533_v4  ;;  %v4557_v7 = vsel %vm1502_vm13, %v6743_v53, %v3944_v32  ;;  %v5166_v51 = vsel %vm890_vm12, %v6748_v14, %v4553_v21  ;;  %vm901_vm2 = vcmp.eq.s32.totalorder %v14837_v16, %v6439_v12  ;;  %vm1509_vm5 = vcmp.eq.s32.totalorder %v14837_v16, %v6465_v8 }
 0x3f9   : > { %v5170_v17 = vsel %vm894_vm11, %v6748_v14, %v4557_v7  ;;  %vm2113_vm6 = vcmp.eq.s32.totalorder %v14691_v11, %v6487_v38  ;;  %vm2117_vm7 = vcmp.eq.s32.totalorder %v14837_v16, %v6487_v38  ;;  %vm2721_vm8 = vcmp.eq.s32.totalorder %v14691_v11, %v6508_v6 }
 0x3fa   : > { %v5535_v55 = vpack.c.bf16 %v5170_v17, %v5166_v51  ;;  %vm2725_vm9 = vcmp.eq.s32.totalorder %v14837_v16, %v6508_v6  ;;  %v3334_v25 = vsel %vm2721_vm8, %v6492_v40, 0.0  ;;  %vm899_vm12 = vcmp.eq.s32.totalorder %v14691_v11, %v6480_v36 }
 0x3fb   : > { %v3338_v5 = vsel %vm2725_vm9, %v6492_v40, 0.0  ;;  %v3947_v23 = vsel %vm2113_vm6, %v6455_v28, %v3334_v25  ;;  %vm903_vm11 = vcmp.eq.s32.totalorder %v14837_v16, %v6480_v36  ;;  %vm1507_vm10 = vcmp.eq.s32.totalorder %v14691_v11, %v6499_v41 }
 0x3fc   : > { %5946 = vmatpush1.bf16.msra.mxu1 %v5535_v55  ;;  %v3951_v48 = vsel %vm2117_vm7, %v6455_v28, %v3338_v5  ;;  %v4560_v15 = vsel %vm1505_vm3, %v6470_v33, %v3947_v23  ;;  %vm1511_vm13 = vcmp.eq.s32.totalorder %v14837_v16, %v6499_v41  ;;  %vm2115_vm14 = vcmp.eq.s32.totalorder %v14691_v11, %v6521_v44 }
 0x3fd   : > { %v4564_v31 = vsel %vm1509_vm5, %v6470_v33, %v3951_v48  ;;  %v5173_v18 = vsel %vm897_vm4, %v6473_v34, %v4560_v15  ;;  %vm2119_vm15 = vcmp.eq.s32.totalorder %v14837_v16, %v6521_v44  ;;  %vm2723_vm0 = vcmp.eq.s32.totalorder %v14691_v11, %v6530_v9 }
 0x3fe   : > { %v5177_v49 = vsel %vm901_vm2, %v6473_v34, %v4564_v31  ;;  %vm2727_vm1 = vcmp.eq.s32.totalorder %v14837_v16, %v6530_v9  ;;  %v3336_v3 = vsel %vm2723_vm0, %v6561_v57, 0.0  ;;  %vm896_vm3 = vcmp.eq.s32.totalorder %v14691_v11, %v6597_v39 }
 0x3ff   : > { %v5538_v27 = vpack.c.bf16 %v5177_v49, %v5173_v18  ;;  %v3340_v26 = vsel %vm2727_vm1, %v6561_v57, 0.0  ;;  %v3949_v42 = vsel %vm2115_vm14, %v6564_v58, %v3336_v3  ;;  %vm900_vm4 = vcmp.eq.s32.totalorder %v14837_v16, %v6597_v39 }
 0x400   : > { %v3953_v22 = vsel %vm2119_vm15, %v6564_v58, %v3340_v26  ;;  %v4562_v43 = vsel %vm1507_vm10, %v6591_v10, %v3949_v42  ;;  %vm1504_vm2 = vcmp.eq.s32.totalorder %v14691_v11, %v6630_v60  ;;  %vm1508_vm5 = vcmp.eq.s32.totalorder %v14837_v16, %v6630_v60 }
 0x401   : > { %5742 = vmatprep.subr.bf16.mxu0 %v5538_v27  ;;  %v4566_v24 = vsel %vm1511_vm13, %v6591_v10, %v3953_v22  ;;  %v5175_v46 = vsel %vm899_vm12, %v6594_v37, %v4562_v43  ;;  %vm2112_vm6 = vcmp.eq.s32.totalorder %v14691_v11, %v6633_v61  ;;  %vm2116_vm7 = vcmp.eq.s32.totalorder %v14837_v16, %v6633_v61 }
 0x402   : > { %v5179_v13 = vsel %vm903_vm11, %v6594_v37, %v4566_v24  ;;  %vm2720_vm8 = vcmp.eq.s32.totalorder %v14691_v11, %v6636_v62  ;;  %vm2724_vm9 = vcmp.eq.s32.totalorder %v14837_v16, %v6636_v62  ;;  %vm898_vm12 = vcmp.eq.s32.totalorder %v14691_v11, %v6687_v63 }
 0x403   : > { %v5540_v19 = vpack.c.bf16 %v5179_v13, %v5175_v46  ;;  %v3333_v45 = vsel %vm2720_vm8, %v6639_v0, 0.0  ;;  %v3337_v4 = vsel %vm2724_vm9, %v6639_v0, 0.0  ;;  %vm902_vm10 = vcmp.eq.s32.totalorder %v14837_v16, %v6687_v63 }
 0x404   : > { %v3946_v47 = vsel %vm2112_vm6, %v6642_v2, %v3333_v45  ;;  %v3950_v50 = vsel %vm2116_vm7, %v6642_v2, %v3337_v4  ;;  %vm1506_vm11 = vcmp.eq.s32.totalorder %v14691_v11, %v6690_v52  ;;  %vm1510_vm13 = vcmp.eq.s32.totalorder %v14837_v16, %v6690_v52 }
 0x405   : > { %5947 = vmatprep.subr.bf16.mxu1 %v5540_v19  ;;  %v4559_v32 = vsel %vm1504_vm2, %v6661_v20, %v3946_v47  ;;  %v4563_v21 = vsel %vm1508_vm5, %v6661_v20, %v3950_v50  ;;  %vm2114_vm14 = vcmp.eq.s32.totalorder %v14691_v11, %v6701_v35  ;;  %vm2118_vm15 = vcmp.eq.s32.totalorder %v14837_v16, %v6701_v35 }
 0x406   : > { %v5172_v7 = vsel %vm896_vm3, %v6664_v29, %v4559_v32  ;;  %v5176_v51 = vsel %vm900_vm4, %v6664_v29, %v4563_v21  ;;  %vm2722_vm0 = vcmp.eq.s32.totalorder %v14691_v11, %v6704_v56  ;;  %vm2726_vm1 = vcmp.eq.s32.totalorder %v14837_v16, %v6704_v56 }
 0x407   : > { %v5537_v17 = vpack.c.bf16 %v5176_v51, %v5172_v7  ;;  %v3335_v55 = vsel %vm2722_vm0, %v6737_v59, 0.0  ;;  %v3339_v25 = vsel %vm2726_vm1, %v6737_v59, 0.0  ;;  %v14983_v5 = vadd.s32 896, %v6309_v1 }
 0x408   : > { %v3948_v23 = vsel %vm2114_vm14, %v6740_v54, %v3335_v55  ;;  %v3952_v48 = vsel %vm2118_vm15, %v6740_v54, %v3339_v25  ;;  %v14988_v15 = vadd.s32 904, %v6309_v1  ;;  %v14991_v31 = vadd.s32 912, %v6309_v1 }
 0x409   : > { %5743 = vmatpush1.bf16.msra.mxu0 %v5537_v17  ;;  %v4561_v18 = vsel %vm1506_vm11, %v6743_v53, %v3948_v23  ;;  %v4565_v49 = vsel %vm1510_vm13, %v6743_v53, %v3952_v48  ;;  %vm905_vm3 = vcmp.eq.s32.totalorder %v14983_v5, %v6439_v12  ;;  %vm1513_vm4 = vcmp.eq.s32.totalorder %v14983_v5, %v6465_v8 }
 0x40a   : > { %v5174_v3 = vsel %vm898_vm12, %v6748_v14, %v4561_v18  ;;  %v5178_v27 = vsel %vm902_vm10, %v6748_v14, %v4565_v49  ;;  %vm909_vm2 = vcmp.eq.s32.totalorder %v14988_v15, %v6439_v12  ;;  %vm1517_vm5 = vcmp.eq.s32.totalorder %v14988_v15, %v6465_v8 }
 0x40b   : > { %v5539_v26 = vpack.c.bf16 %v5178_v27, %v5174_v3  ;;  %vm2121_vm6 = vcmp.eq.s32.totalorder %v14983_v5, %v6487_v38  ;;  %vm2125_vm7 = vcmp.eq.s32.totalorder %v14988_v15, %v6487_v38  ;;  %vm2729_vm8 = vcmp.eq.s32.totalorder %v14983_v5, %v6508_v6 }
 0x40c   : > { %vm2733_vm9 = vcmp.eq.s32.totalorder %v14988_v15, %v6508_v6  ;;  %v3342_v11 = vsel %vm2729_vm8, %v6492_v40, 0.0  ;;  %vm907_vm12 = vcmp.eq.s32.totalorder %v14983_v5, %v6480_v36  ;;  %vm911_vm10 = vcmp.eq.s32.totalorder %v14988_v15, %v6480_v36 }
 0x40d   : > { %5948 = vmatpush1.bf16.msra.mxu1 %v5539_v26  ;;  %v3346_v16 = vsel %vm2733_vm9, %v6492_v40, 0.0  ;;  %v3955_v42 = vsel %vm2121_vm6, %v6455_v28, %v3342_v11  ;;  %vm1515_vm11 = vcmp.eq.s32.totalorder %v14983_v5, %v6499_v41  ;;  %vm1519_vm13 = vcmp.eq.s32.totalorder %v14988_v15, %v6499_v41 }
 0x40e   : > { %v3959_v22 = vsel %vm2125_vm7, %v6455_v28, %v3346_v16  ;;  %v4568_v43 = vsel %vm1513_vm4, %v6470_v33, %v3955_v42  ;;  %vm2123_vm14 = vcmp.eq.s32.totalorder %v14983_v5, %v6521_v44  ;;  %vm2127_vm15 = vcmp.eq.s32.totalorder %v14988_v15, %v6521_v44 }
 0x40f   : > { %v4572_v24 = vsel %vm1517_vm5, %v6470_v33, %v3959_v22  ;;  %v5181_v46 = vsel %vm905_vm3, %v6473_v34, %v4568_v43  ;;  %vm2731_vm0 = vcmp.eq.s32.totalorder %v14983_v5, %v6530_v9  ;;  %vm2735_vm1 = vcmp.eq.s32.totalorder %v14988_v15, %v6530_v9 }
 0x410   : > { %v5185_v13 = vsel %vm909_vm2, %v6473_v34, %v4572_v24  ;;  %v3344_v19 = vsel %vm2731_vm0, %v6561_v57, 0.0  ;;  %v3348_v45 = vsel %vm2735_vm1, %v6561_v57, 0.0  ;;  %vm904_vm4 = vcmp.eq.s32.totalorder %v14983_v5, %v6597_v39 }
 0x411   : > { %v5542_v4 = vpack.c.bf16 %v5185_v13, %v5181_v46  ;;  %v3957_v47 = vsel %vm2123_vm14, %v6564_v58, %v3344_v19  ;;  %v3961_v50 = vsel %vm2127_vm15, %v6564_v58, %v3348_v45  ;;  %vm908_vm3 = vcmp.eq.s32.totalorder %v14988_v15, %v6597_v39 }
 0x412   : > { %v4570_v32 = vsel %vm1515_vm11, %v6591_v10, %v3957_v47  ;;  %v4574_v21 = vsel %vm1519_vm13, %v6591_v10, %v3961_v50  ;;  %vm1512_vm2 = vcmp.eq.s32.totalorder %v14983_v5, %v6630_v60  ;;  %vm1516_vm5 = vcmp.eq.s32.totalorder %v14988_v15, %v6630_v60 }
 0x413   : > { %5744 = vmatprep.subr.bf16.mxu0 %v5542_v4  ;;  %v5183_v7 = vsel %vm907_vm12, %v6594_v37, %v4570_v32  ;;  %v5187_v51 = vsel %vm911_vm10, %v6594_v37, %v4574_v21  ;;  %vm2120_vm6 = vcmp.eq.s32.totalorder %v14983_v5, %v6633_v61  ;;  %vm2124_vm7 = vcmp.eq.s32.totalorder %v14988_v15, %v6633_v61 }
 0x414   : > { %v5544_v17 = vpack.c.bf16 %v5187_v51, %v5183_v7  ;;  %vm2728_vm8 = vcmp.eq.s32.totalorder %v14983_v5, %v6636_v62  ;;  %vm2732_vm9 = vcmp.eq.s32.totalorder %v14988_v15, %v6636_v62  ;;  %vm906_vm12 = vcmp.eq.s32.totalorder %v14983_v5, %v6687_v63 }
 0x415   : > { %v3341_v55 = vsel %vm2728_vm8, %v6639_v0, 0.0  ;;  %v3345_v25 = vsel %vm2732_vm9, %v6639_v0, 0.0  ;;  %vm910_vm10 = vcmp.eq.s32.totalorder %v14988_v15, %v6687_v63  ;;  %vm1514_vm11 = vcmp.eq.s32.totalorder %v14983_v5, %v6690_v52 }
 0x416   : > { %5949 = vmatprep.subr.bf16.mxu1 %v5544_v17  ;;  %v3954_v23 = vsel %vm2120_vm6, %v6642_v2, %v3341_v55  ;;  %v3958_v48 = vsel %vm2124_vm7, %v6642_v2, %v3345_v25  ;;  %vm1518_vm13 = vcmp.eq.s32.totalorder %v14988_v15, %v6690_v52  ;;  %vm2122_vm14 = vcmp.eq.s32.totalorder %v14983_v5, %v6701_v35 }
 0x417   : > { %v4567_v18 = vsel %vm1512_vm2, %v6661_v20, %v3954_v23  ;;  %v4571_v49 = vsel %vm1516_vm5, %v6661_v20, %v3958_v48  ;;  %vm2126_vm15 = vcmp.eq.s32.totalorder %v14988_v15, %v6701_v35  ;;  %vm2730_vm0 = vcmp.eq.s32.totalorder %v14983_v5, %v6704_v56 }
 0x418   : > { %v5180_v3 = vsel %vm904_vm4, %v6664_v29, %v4567_v18  ;;  %v5184_v27 = vsel %vm908_vm3, %v6664_v29, %v4571_v49  ;;  %vm2734_vm1 = vcmp.eq.s32.totalorder %v14988_v15, %v6704_v56  ;;  %v3343_v26 = vsel %vm2730_vm0, %v6737_v59, 0.0 }
 0x419   : > { %v5541_v11 = vpack.c.bf16 %v5184_v27, %v5180_v3  ;;  %v3347_v16 = vsel %vm2734_vm1, %v6737_v59, 0.0  ;;  %v3956_v42 = vsel %vm2122_vm14, %v6740_v54, %v3343_v26  ;;  %v15137_v22 = vadd.s32 920, %v6309_v1 }
 0x41a   : > { %v3960_v43 = vsel %vm2126_vm15, %v6740_v54, %v3347_v16  ;;  %v4569_v24 = vsel %vm1514_vm11, %v6743_v53, %v3956_v42  ;;  %vm913_vm4 = vcmp.eq.s32.totalorder %v14991_v31, %v6439_v12  ;;  %vm1521_vm3 = vcmp.eq.s32.totalorder %v14991_v31, %v6465_v8 }
 0x41b   : > { %5745 = vmatpush1.bf16.msra.mxu0 %v5541_v11  ;;  %v4573_v46 = vsel %vm1518_vm13, %v6743_v53, %v3960_v43  ;;  %v5182_v13 = vsel %vm906_vm12, %v6748_v14, %v4569_v24  ;;  %vm917_vm2 = vcmp.eq.s32.totalorder %v15137_v22, %v6439_v12  ;;  %vm1525_vm5 = vcmp.eq.s32.totalorder %v15137_v22, %v6465_v8 }
 0x41c   : > { %v5186_v19 = vsel %vm910_vm10, %v6748_v14, %v4573_v46  ;;  %vm2129_vm6 = vcmp.eq.s32.totalorder %v14991_v31, %v6487_v38  ;;  %vm2133_vm7 = vcmp.eq.s32.totalorder %v15137_v22, %v6487_v38  ;;  %vm2737_vm8 = vcmp.eq.s32.totalorder %v14991_v31, %v6508_v6 }
 0x41d   : > { %v5543_v5 = vpack.c.bf16 %v5186_v19, %v5182_v13  ;;  %vm2741_vm9 = vcmp.eq.s32.totalorder %v15137_v22, %v6508_v6  ;;  %v3350_v45 = vsel %vm2737_vm8, %v6492_v40, 0.0  ;;  %vm915_vm12 = vcmp.eq.s32.totalorder %v14991_v31, %v6480_v36 }
 0x41e   : > { %v3354_v15 = vsel %vm2741_vm9, %v6492_v40, 0.0  ;;  %v3963_v4 = vsel %vm2129_vm6, %v6455_v28, %v3350_v45  ;;  %vm919_vm10 = vcmp.eq.s32.totalorder %v15137_v22, %v6480_v36  ;;  %vm1523_vm11 = vcmp.eq.s32.totalorder %v14991_v31, %v6499_v41 }
 0x41f   : > { %5950 = vmatpush1.bf16.msra.mxu1 %v5543_v5  ;;  %v3967_v47 = vsel %vm2133_vm7, %v6455_v28, %v3354_v15  ;;  %v4576_v50 = vsel %vm1521_vm3, %v6470_v33, %v3963_v4  ;;  %vm1527_vm13 = vcmp.eq.s32.totalorder %v15137_v22, %v6499_v41  ;;  %vm2131_vm14 = vcmp.eq.s32.totalorder %v14991_v31, %v6521_v44 }
 0x420   : > { %v4580_v32 = vsel %vm1525_vm5, %v6470_v33, %v3967_v47  ;;  %v5189_v21 = vsel %vm913_vm4, %v6473_v34, %v4576_v50  ;;  %vm2135_vm15 = vcmp.eq.s32.totalorder %v15137_v22, %v6521_v44  ;;  %vm2739_vm0 = vcmp.eq.s32.totalorder %v14991_v31, %v6530_v9 }
 0x421   : > { %v5193_v7 = vsel %vm917_vm2, %v6473_v34, %v4580_v32  ;;  %vm2743_vm1 = vcmp.eq.s32.totalorder %v15137_v22, %v6530_v9  ;;  %v3352_v51 = vsel %vm2739_vm0, %v6561_v57, 0.0  ;;  %vm912_vm3 = vcmp.eq.s32.totalorder %v14991_v31, %v6597_v39 }
 0x422   : > { %v5546_v17 = vpack.c.bf16 %v5193_v7, %v5189_v21  ;;  %v3356_v55 = vsel %vm2743_vm1, %v6561_v57, 0.0  ;;  %v3965_v25 = vsel %vm2131_vm14, %v6564_v58, %v3352_v51  ;;  %vm916_vm4 = vcmp.eq.s32.totalorder %v15137_v22, %v6597_v39 }
 0x423   : > { %v3969_v23 = vsel %vm2135_vm15, %v6564_v58, %v3356_v55  ;;  %v4578_v48 = vsel %vm1523_vm11, %v6591_v10, %v3965_v25  ;;  %vm1520_vm2 = vcmp.eq.s32.totalorder %v14991_v31, %v6630_v60  ;;  %vm1524_vm5 = vcmp.eq.s32.totalorder %v15137_v22, %v6630_v60 }
 0x424   : > { %5746 = vmatprep.subr.bf16.mxu0 %v5546_v17  ;;  %v4582_v18 = vsel %vm1527_vm13, %v6591_v10, %v3969_v23  ;;  %v5191_v49 = vsel %vm915_vm12, %v6594_v37, %v4578_v48  ;;  %vm2128_vm6 = vcmp.eq.s32.totalorder %v14991_v31, %v6633_v61  ;;  %vm2132_vm7 = vcmp.eq.s32.totalorder %v15137_v22, %v6633_v61 }
 0x425   : > { %v5195_v3 = vsel %vm919_vm10, %v6594_v37, %v4582_v18  ;;  %vm2736_vm8 = vcmp.eq.s32.totalorder %v14991_v31, %v6636_v62  ;;  %vm2740_vm9 = vcmp.eq.s32.totalorder %v15137_v22, %v6636_v62  ;;  %vm914_vm12 = vcmp.eq.s32.totalorder %v14991_v31, %v6687_v63 }
 0x426   : > { %v5548_v27 = vpack.c.bf16 %v5195_v3, %v5191_v49  ;;  %v3349_v26 = vsel %vm2736_vm8, %v6639_v0, 0.0  ;;  %v3353_v11 = vsel %vm2740_vm9, %v6639_v0, 0.0  ;;  %vm918_vm11 = vcmp.eq.s32.totalorder %v15137_v22, %v6687_v63 }
 0x427   : > { %v3962_v16 = vsel %vm2128_vm6, %v6642_v2, %v3349_v26  ;;  %v3966_v42 = vsel %vm2132_vm7, %v6642_v2, %v3353_v11  ;;  %vm1522_vm10 = vcmp.eq.s32.totalorder %v14991_v31, %v6690_v52  ;;  %vm1526_vm13 = vcmp.eq.s32.totalorder %v15137_v22, %v6690_v52 }
 0x428   : > { %5951 = vmatprep.subr.bf16.mxu1 %v5548_v27  ;;  %v4575_v43 = vsel %vm1520_vm2, %v6661_v20, %v3962_v16  ;;  %v4579_v24 = vsel %vm1524_vm5, %v6661_v20, %v3966_v42  ;;  %vm2130_vm14 = vcmp.eq.s32.totalorder %v14991_v31, %v6701_v35  ;;  %vm2134_vm15 = vcmp.eq.s32.totalorder %v15137_v22, %v6701_v35 }
 0x429   : > { %v5188_v46 = vsel %vm912_vm3, %v6664_v29, %v4575_v43  ;;  %v5192_v13 = vsel %vm916_vm4, %v6664_v29, %v4579_v24  ;;  %vm2738_vm0 = vcmp.eq.s32.totalorder %v14991_v31, %v6704_v56  ;;  %vm2742_vm1 = vcmp.eq.s32.totalorder %v15137_v22, %v6704_v56 }
 0x42a   : > { %v5545_v19 = vpack.c.bf16 %v5192_v13, %v5188_v46  ;;  %v3351_v5 = vsel %vm2738_vm0, %v6737_v59, 0.0  ;;  %v3355_v45 = vsel %vm2742_vm1, %v6737_v59, 0.0  ;;  %v15283_v15 = vadd.s32 928, %v6309_v1 }
 0x42b   : > { %v3964_v4 = vsel %vm2130_vm14, %v6740_v54, %v3351_v5  ;;  %v3968_v47 = vsel %vm2134_vm15, %v6740_v54, %v3355_v45  ;;  %v15288_v50 = vadd.s32 936, %v6309_v1  ;;  %v15291_v32 = vadd.s32 944, %v6309_v1 }
 0x42c   : > { %5747 = vmatpush1.bf16.msra.mxu0 %v5545_v19  ;;  %v4577_v21 = vsel %vm1522_vm10, %v6743_v53, %v3964_v4  ;;  %v4581_v7 = vsel %vm1526_vm13, %v6743_v53, %v3968_v47  ;;  %vm921_vm3 = vcmp.eq.s32.totalorder %v15283_v15, %v6439_v12  ;;  %vm1529_vm4 = vcmp.eq.s32.totalorder %v15283_v15, %v6465_v8 }
 0x42d   : > { %v5190_v51 = vsel %vm914_vm12, %v6748_v14, %v4577_v21  ;;  %v5194_v17 = vsel %vm918_vm11, %v6748_v14, %v4581_v7  ;;  %vm925_vm2 = vcmp.eq.s32.totalorder %v15288_v50, %v6439_v12  ;;  %vm1533_vm5 = vcmp.eq.s32.totalorder %v15288_v50, %v6465_v8 }
 0x42e   : > { %v5547_v55 = vpack.c.bf16 %v5194_v17, %v5190_v51  ;;  %vm2137_vm6 = vcmp.eq.s32.totalorder %v15283_v15, %v6487_v38  ;;  %vm2141_vm7 = vcmp.eq.s32.totalorder %v15288_v50, %v6487_v38  ;;  %vm2745_vm8 = vcmp.eq.s32.totalorder %v15283_v15, %v6508_v6 }
 0x42f   : > { %vm2749_vm9 = vcmp.eq.s32.totalorder %v15288_v50, %v6508_v6  ;;  %v3358_v31 = vsel %vm2745_vm8, %v6492_v40, 0.0  ;;  %vm923_vm12 = vcmp.eq.s32.totalorder %v15283_v15, %v6480_v36  ;;  %vm927_vm11 = vcmp.eq.s32.totalorder %v15288_v50, %v6480_v36 }
 0x430   : > { %5952 = vmatpush1.bf16.msra.mxu1 %v5547_v55  ;;  %v3362_v22 = vsel %vm2749_vm9, %v6492_v40, 0.0  ;;  %v3971_v25 = vsel %vm2137_vm6, %v6455_v28, %v3358_v31  ;;  %vm1531_vm10 = vcmp.eq.s32.totalorder %v15283_v15, %v6499_v41  ;;  %vm1535_vm13 = vcmp.eq.s32.totalorder %v15288_v50, %v6499_v41 }
 0x431   : > { %v3975_v23 = vsel %vm2141_vm7, %v6455_v28, %v3362_v22  ;;  %v4584_v48 = vsel %vm1529_vm4, %v6470_v33, %v3971_v25  ;;  %vm2139_vm14 = vcmp.eq.s32.totalorder %v15283_v15, %v6521_v44  ;;  %vm2143_vm15 = vcmp.eq.s32.totalorder %v15288_v50, %v6521_v44 }
 0x432   : > { %v4588_v18 = vsel %vm1533_vm5, %v6470_v33, %v3975_v23  ;;  %v5197_v49 = vsel %vm921_vm3, %v6473_v34, %v4584_v48  ;;  %vm2747_vm0 = vcmp.eq.s32.totalorder %v15283_v15, %v6530_v9  ;;  %vm2751_vm1 = vcmp.eq.s32.totalorder %v15288_v50, %v6530_v9 }
 0x433   : > { %v5201_v3 = vsel %vm925_vm2, %v6473_v34, %v4588_v18  ;;  %v3360_v27 = vsel %vm2747_vm0, %v6561_v57, 0.0  ;;  %v3364_v26 = vsel %vm2751_vm1, %v6561_v57, 0.0  ;;  %vm920_vm4 = vcmp.eq.s32.totalorder %v15283_v15, %v6597_v39 }
 0x434   : > { %v5550_v11 = vpack.c.bf16 %v5201_v3, %v5197_v49  ;;  %v3973_v16 = vsel %vm2139_vm14, %v6564_v58, %v3360_v27  ;;  %v3977_v42 = vsel %vm2143_vm15, %v6564_v58, %v3364_v26  ;;  %vm924_vm3 = vcmp.eq.s32.totalorder %v15288_v50, %v6597_v39 }
 0x435   : > { %v4586_v43 = vsel %vm1531_vm10, %v6591_v10, %v3973_v16  ;;  %v4590_v24 = vsel %vm1535_vm13, %v6591_v10, %v3977_v42  ;;  %vm1528_vm2 = vcmp.eq.s32.totalorder %v15283_v15, %v6630_v60  ;;  %vm1532_vm5 = vcmp.eq.s32.totalorder %v15288_v50, %v6630_v60 }
 0x436   : > { %5748 = vmatprep.subr.bf16.mxu0 %v5550_v11  ;;  %v5199_v46 = vsel %vm923_vm12, %v6594_v37, %v4586_v43  ;;  %v5203_v13 = vsel %vm927_vm11, %v6594_v37, %v4590_v24  ;;  %vm2136_vm6 = vcmp.eq.s32.totalorder %v15283_v15, %v6633_v61  ;;  %vm2140_vm7 = vcmp.eq.s32.totalorder %v15288_v50, %v6633_v61 }
 0x437   : > { %v5552_v19 = vpack.c.bf16 %v5203_v13, %v5199_v46  ;;  %vm2744_vm8 = vcmp.eq.s32.totalorder %v15283_v15, %v6636_v62  ;;  %vm2748_vm9 = vcmp.eq.s32.totalorder %v15288_v50, %v6636_v62  ;;  %vm922_vm12 = vcmp.eq.s32.totalorder %v15283_v15, %v6687_v63 }
 0x438   : > { %v3357_v5 = vsel %vm2744_vm8, %v6639_v0, 0.0  ;;  %v3361_v45 = vsel %vm2748_vm9, %v6639_v0, 0.0  ;;  %vm926_vm11 = vcmp.eq.s32.totalorder %v15288_v50, %v6687_v63  ;;  %vm1530_vm10 = vcmp.eq.s32.totalorder %v15283_v15, %v6690_v52 }
 0x439   : > { %5953 = vmatprep.subr.bf16.mxu1 %v5552_v19  ;;  %v3970_v4 = vsel %vm2136_vm6, %v6642_v2, %v3357_v5  ;;  %v3974_v47 = vsel %vm2140_vm7, %v6642_v2, %v3361_v45  ;;  %vm1534_vm13 = vcmp.eq.s32.totalorder %v15288_v50, %v6690_v52  ;;  %vm2138_vm14 = vcmp.eq.s32.totalorder %v15283_v15, %v6701_v35 }
 0x43a   : > { %v4583_v21 = vsel %vm1528_vm2, %v6661_v20, %v3970_v4  ;;  %v4587_v7 = vsel %vm1532_vm5, %v6661_v20, %v3974_v47  ;;  %vm2142_vm15 = vcmp.eq.s32.totalorder %v15288_v50, %v6701_v35  ;;  %vm2746_vm0 = vcmp.eq.s32.totalorder %v15283_v15, %v6704_v56 }
 0x43b   : > { %v5196_v51 = vsel %vm920_vm4, %v6664_v29, %v4583_v21  ;;  %v5200_v17 = vsel %vm924_vm3, %v6664_v29, %v4587_v7  ;;  %vm2750_vm1 = vcmp.eq.s32.totalorder %v15288_v50, %v6704_v56  ;;  %v3359_v55 = vsel %vm2746_vm0, %v6737_v59, 0.0 }
 0x43c   : > { %v5549_v31 = vpack.c.bf16 %v5200_v17, %v5196_v51  ;;  %v3363_v22 = vsel %vm2750_vm1, %v6737_v59, 0.0  ;;  %v3972_v25 = vsel %vm2138_vm14, %v6740_v54, %v3359_v55  ;;  %v15437_v23 = vadd.s32 952, %v6309_v1 }
 0x43d   : > { %v3976_v48 = vsel %vm2142_vm15, %v6740_v54, %v3363_v22  ;;  %v4585_v18 = vsel %vm1530_vm10, %v6743_v53, %v3972_v25  ;;  %vm929_vm4 = vcmp.eq.s32.totalorder %v15291_v32, %v6439_v12  ;;  %vm1537_vm3 = vcmp.eq.s32.totalorder %v15291_v32, %v6465_v8 }
 0x43e   : > { %5749 = vmatpush1.bf16.msra.mxu0 %v5549_v31  ;;  %v4589_v49 = vsel %vm1534_vm13, %v6743_v53, %v3976_v48  ;;  %v5198_v3 = vsel %vm922_vm12, %v6748_v14, %v4585_v18  ;;  %vm933_vm2 = vcmp.eq.s32.totalorder %v15437_v23, %v6439_v12  ;;  %vm1541_vm5 = vcmp.eq.s32.totalorder %v15437_v23, %v6465_v8 }
 0x43f   : > { %v5202_v27 = vsel %vm926_vm11, %v6748_v14, %v4589_v49  ;;  %vm2145_vm6 = vcmp.eq.s32.totalorder %v15291_v32, %v6487_v38  ;;  %vm2149_vm7 = vcmp.eq.s32.totalorder %v15437_v23, %v6487_v38  ;;  %vm2753_vm8 = vcmp.eq.s32.totalorder %v15291_v32, %v6508_v6 }
 0x440   : > { %v5551_v15 = vpack.c.bf16 %v5202_v27, %v5198_v3  ;;  %vm2757_vm9 = vcmp.eq.s32.totalorder %v15437_v23, %v6508_v6  ;;  %v3366_v26 = vsel %vm2753_vm8, %v6492_v40, 0.0  ;;  %vm931_vm12 = vcmp.eq.s32.totalorder %v15291_v32, %v6480_v36 }
 0x441   : > { %v3370_v50 = vsel %vm2757_vm9, %v6492_v40, 0.0  ;;  %v3979_v11 = vsel %vm2145_vm6, %v6455_v28, %v3366_v26  ;;  %vm935_vm11 = vcmp.eq.s32.totalorder %v15437_v23, %v6480_v36  ;;  %vm1539_vm10 = vcmp.eq.s32.totalorder %v15291_v32, %v6499_v41 }
 0x442   : > { %5954 = vmatpush1.bf16.msra.mxu1 %v5551_v15  ;;  %v3983_v16 = vsel %vm2149_vm7, %v6455_v28, %v3370_v50  ;;  %v4592_v42 = vsel %vm1537_vm3, %v6470_v33, %v3979_v11  ;;  %vm1543_vm13 = vcmp.eq.s32.totalorder %v15437_v23, %v6499_v41  ;;  %vm2147_vm14 = vcmp.eq.s32.totalorder %v15291_v32, %v6521_v44 }
 0x443   : > { %v4596_v43 = vsel %vm1541_vm5, %v6470_v33, %v3983_v16  ;;  %v5205_v24 = vsel %vm929_vm4, %v6473_v34, %v4592_v42  ;;  %vm2151_vm15 = vcmp.eq.s32.totalorder %v15437_v23, %v6521_v44  ;;  %vm2755_vm0 = vcmp.eq.s32.totalorder %v15291_v32, %v6530_v9 }
 0x444   : > { %v5209_v46 = vsel %vm933_vm2, %v6473_v34, %v4596_v43  ;;  %vm2759_vm1 = vcmp.eq.s32.totalorder %v15437_v23, %v6530_v9  ;;  %v3368_v13 = vsel %vm2755_vm0, %v6561_v57, 0.0  ;;  %vm928_vm3 = vcmp.eq.s32.totalorder %v15291_v32, %v6597_v39 }
 0x445   : > { %v5554_v19 = vpack.c.bf16 %v5209_v46, %v5205_v24  ;;  %v3372_v5 = vsel %vm2759_vm1, %v6561_v57, 0.0  ;;  %v3981_v45 = vsel %vm2147_vm14, %v6564_v58, %v3368_v13  ;;  %vm932_vm4 = vcmp.eq.s32.totalorder %v15437_v23, %v6597_v39 }
 0x446   : > { %v3985_v4 = vsel %vm2151_vm15, %v6564_v58, %v3372_v5  ;;  %v4594_v47 = vsel %vm1539_vm10, %v6591_v10, %v3981_v45  ;;  %vm1536_vm2 = vcmp.eq.s32.totalorder %v15291_v32, %v6630_v60  ;;  %vm1540_vm5 = vcmp.eq.s32.totalorder %v15437_v23, %v6630_v60 }
 0x447   : > { %5750 = vmatprep.subr.bf16.mxu0 %v5554_v19  ;;  %v4598_v21 = vsel %vm1543_vm13, %v6591_v10, %v3985_v4  ;;  %v5207_v7 = vsel %vm931_vm12, %v6594_v37, %v4594_v47  ;;  %vm2144_vm6 = vcmp.eq.s32.totalorder %v15291_v32, %v6633_v61  ;;  %vm2148_vm7 = vcmp.eq.s32.totalorder %v15437_v23, %v6633_v61 }
 0x448   : > { %v5211_v51 = vsel %vm935_vm11, %v6594_v37, %v4598_v21  ;;  %vm2752_vm8 = vcmp.eq.s32.totalorder %v15291_v32, %v6636_v62  ;;  %vm2756_vm9 = vcmp.eq.s32.totalorder %v15437_v23, %v6636_v62  ;;  %vm930_vm12 = vcmp.eq.s32.totalorder %v15291_v32, %v6687_v63 }
 0x449   : > { %v5556_v17 = vpack.c.bf16 %v5211_v51, %v5207_v7  ;;  %v3365_v55 = vsel %vm2752_vm8, %v6639_v0, 0.0  ;;  %v3369_v31 = vsel %vm2756_vm9, %v6639_v0, 0.0  ;;  %vm934_vm10 = vcmp.eq.s32.totalorder %v15437_v23, %v6687_v63 }
 0x44a   : > { %v3978_v22 = vsel %vm2144_vm6, %v6642_v2, %v3365_v55  ;;  %v3982_v25 = vsel %vm2148_vm7, %v6642_v2, %v3369_v31  ;;  %vm1538_vm11 = vcmp.eq.s32.totalorder %v15291_v32, %v6690_v52  ;;  %vm1542_vm13 = vcmp.eq.s32.totalorder %v15437_v23, %v6690_v52 }
 0x44b   : > { %5955 = vmatprep.subr.bf16.mxu1 %v5556_v17  ;;  %v4591_v48 = vsel %vm1536_vm2, %v6661_v20, %v3978_v22  ;;  %v4595_v18 = vsel %vm1540_vm5, %v6661_v20, %v3982_v25  ;;  %vm2146_vm14 = vcmp.eq.s32.totalorder %v15291_v32, %v6701_v35  ;;  %vm2150_vm15 = vcmp.eq.s32.totalorder %v15437_v23, %v6701_v35 }
 0x44c   : > { %v5204_v49 = vsel %vm928_vm3, %v6664_v29, %v4591_v48  ;;  %v5208_v3 = vsel %vm932_vm4, %v6664_v29, %v4595_v18  ;;  %vm2754_vm0 = vcmp.eq.s32.totalorder %v15291_v32, %v6704_v56  ;;  %vm2758_vm1 = vcmp.eq.s32.totalorder %v15437_v23, %v6704_v56 }
 0x44d   : > { %v5553_v27 = vpack.c.bf16 %v5208_v3, %v5204_v49  ;;  %v3367_v15 = vsel %vm2754_vm0, %v6737_v59, 0.0  ;;  %v3371_v26 = vsel %vm2758_vm1, %v6737_v59, 0.0  ;;  %v15583_v50 = vadd.s32 960, %v6309_v1 }
 0x44e   : > { %v3980_v11 = vsel %vm2146_vm14, %v6740_v54, %v3367_v15  ;;  %v3984_v16 = vsel %vm2150_vm15, %v6740_v54, %v3371_v26  ;;  %v15588_v42 = vadd.s32 968, %v6309_v1  ;;  %v15591_v43 = vadd.s32 976, %v6309_v1 }
 0x44f   : > { %5751 = vmatpush1.bf16.msra.mxu0 %v5553_v27  ;;  %v4593_v24 = vsel %vm1538_vm11, %v6743_v53, %v3980_v11  ;;  %v4597_v46 = vsel %vm1542_vm13, %v6743_v53, %v3984_v16  ;;  %vm937_vm3 = vcmp.eq.s32.totalorder %v15583_v50, %v6439_v12  ;;  %vm1545_vm4 = vcmp.eq.s32.totalorder %v15583_v50, %v6465_v8 }
 0x450   : > { %v5206_v13 = vsel %vm930_vm12, %v6748_v14, %v4593_v24  ;;  %v5210_v19 = vsel %vm934_vm10, %v6748_v14, %v4597_v46  ;;  %vm941_vm2 = vcmp.eq.s32.totalorder %v15588_v42, %v6439_v12  ;;  %vm1549_vm5 = vcmp.eq.s32.totalorder %v15588_v42, %v6465_v8 }
 0x451   : > { %v5555_v5 = vpack.c.bf16 %v5210_v19, %v5206_v13  ;;  %vm2153_vm6 = vcmp.eq.s32.totalorder %v15583_v50, %v6487_v38  ;;  %vm2157_vm7 = vcmp.eq.s32.totalorder %v15588_v42, %v6487_v38  ;;  %vm2761_vm8 = vcmp.eq.s32.totalorder %v15583_v50, %v6508_v6 }
 0x452   : > { %vm2765_vm9 = vcmp.eq.s32.totalorder %v15588_v42, %v6508_v6  ;;  %v3374_v32 = vsel %vm2761_vm8, %v6492_v40, 0.0  ;;  %vm939_vm12 = vcmp.eq.s32.totalorder %v15583_v50, %v6480_v36  ;;  %vm943_vm10 = vcmp.eq.s32.totalorder %v15588_v42, %v6480_v36 }
 0x453   : > { %5956 = vmatpush1.bf16.msra.mxu1 %v5555_v5  ;;  %v3378_v23 = vsel %vm2765_vm9, %v6492_v40, 0.0  ;;  %v3987_v45 = vsel %vm2153_vm6, %v6455_v28, %v3374_v32  ;;  %vm1547_vm11 = vcmp.eq.s32.totalorder %v15583_v50, %v6499_v41  ;;  %vm1551_vm13 = vcmp.eq.s32.totalorder %v15588_v42, %v6499_v41 }
 0x454   : > { %v3991_v4 = vsel %vm2157_vm7, %v6455_v28, %v3378_v23  ;;  %v4600_v47 = vsel %vm1545_vm4, %v6470_v33, %v3987_v45  ;;  %vm2155_vm14 = vcmp.eq.s32.totalorder %v15583_v50, %v6521_v44  ;;  %vm2159_vm15 = vcmp.eq.s32.totalorder %v15588_v42, %v6521_v44 }
 0x455   : > { %v4604_v21 = vsel %vm1549_vm5, %v6470_v33, %v3991_v4  ;;  %v5213_v7 = vsel %vm937_vm3, %v6473_v34, %v4600_v47  ;;  %vm2763_vm0 = vcmp.eq.s32.totalorder %v15583_v50, %v6530_v9  ;;  %vm2767_vm1 = vcmp.eq.s32.totalorder %v15588_v42, %v6530_v9 }
 0x456   : > { %v5217_v51 = vsel %vm941_vm2, %v6473_v34, %v4604_v21  ;;  %v3376_v17 = vsel %vm2763_vm0, %v6561_v57, 0.0  ;;  %v3380_v55 = vsel %vm2767_vm1, %v6561_v57, 0.0  ;;  %vm936_vm4 = vcmp.eq.s32.totalorder %v15583_v50, %v6597_v39 }
 0x457   : > { %v5558_v31 = vpack.c.bf16 %v5217_v51, %v5213_v7  ;;  %v3989_v22 = vsel %vm2155_vm14, %v6564_v58, %v3376_v17  ;;  %v3993_v25 = vsel %vm2159_vm15, %v6564_v58, %v3380_v55  ;;  %vm940_vm3 = vcmp.eq.s32.totalorder %v15588_v42, %v6597_v39 }
 0x458   : > { %v4602_v48 = vsel %vm1547_vm11, %v6591_v10, %v3989_v22  ;;  %v4606_v18 = vsel %vm1551_vm13, %v6591_v10, %v3993_v25  ;;  %vm1544_vm2 = vcmp.eq.s32.totalorder %v15583_v50, %v6630_v60  ;;  %vm1548_vm5 = vcmp.eq.s32.totalorder %v15588_v42, %v6630_v60 }
 0x459   : > { %5752 = vmatprep.subr.bf16.mxu0 %v5558_v31  ;;  %v5215_v49 = vsel %vm939_vm12, %v6594_v37, %v4602_v48  ;;  %v5219_v3 = vsel %vm943_vm10, %v6594_v37, %v4606_v18  ;;  %vm2152_vm6 = vcmp.eq.s32.totalorder %v15583_v50, %v6633_v61  ;;  %vm2156_vm7 = vcmp.eq.s32.totalorder %v15588_v42, %v6633_v61 }
 0x45a   : > { %v5560_v27 = vpack.c.bf16 %v5219_v3, %v5215_v49  ;;  %vm2760_vm8 = vcmp.eq.s32.totalorder %v15583_v50, %v6636_v62  ;;  %vm2764_vm9 = vcmp.eq.s32.totalorder %v15588_v42, %v6636_v62  ;;  %vm938_vm12 = vcmp.eq.s32.totalorder %v15583_v50, %v6687_v63 }
 0x45b   : > { %v3373_v15 = vsel %vm2760_vm8, %v6639_v0, 0.0  ;;  %v3377_v26 = vsel %vm2764_vm9, %v6639_v0, 0.0  ;;  %vm942_vm10 = vcmp.eq.s32.totalorder %v15588_v42, %v6687_v63  ;;  %vm1546_vm11 = vcmp.eq.s32.totalorder %v15583_v50, %v6690_v52 }
 0x45c   : > { %5957 = vmatprep.subr.bf16.mxu1 %v5560_v27  ;;  %v3986_v11 = vsel %vm2152_vm6, %v6642_v2, %v3373_v15  ;;  %v3990_v16 = vsel %vm2156_vm7, %v6642_v2, %v3377_v26  ;;  %vm1550_vm13 = vcmp.eq.s32.totalorder %v15588_v42, %v6690_v52  ;;  %vm2154_vm14 = vcmp.eq.s32.totalorder %v15583_v50, %v6701_v35 }
 0x45d   : > { %v4599_v24 = vsel %vm1544_vm2, %v6661_v20, %v3986_v11  ;;  %v4603_v46 = vsel %vm1548_vm5, %v6661_v20, %v3990_v16  ;;  %vm2158_vm15 = vcmp.eq.s32.totalorder %v15588_v42, %v6701_v35  ;;  %vm2762_vm0 = vcmp.eq.s32.totalorder %v15583_v50, %v6704_v56 }
 0x45e   : > { %v5212_v13 = vsel %vm936_vm4, %v6664_v29, %v4599_v24  ;;  %v5216_v19 = vsel %vm940_vm3, %v6664_v29, %v4603_v46  ;;  %vm2766_vm1 = vcmp.eq.s32.totalorder %v15588_v42, %v6704_v56  ;;  %v3375_v5 = vsel %vm2762_vm0, %v6737_v59, 0.0 }
 0x45f   : > { %v5557_v32 = vpack.c.bf16 %v5216_v19, %v5212_v13  ;;  %v3379_v23 = vsel %vm2766_vm1, %v6737_v59, 0.0  ;;  %v3988_v45 = vsel %vm2154_vm14, %v6740_v54, %v3375_v5  ;;  %v15737_v4 = vadd.s32 984, %v6309_v1 }
 0x460   : > { %v3992_v47 = vsel %vm2158_vm15, %v6740_v54, %v3379_v23  ;;  %v4601_v21 = vsel %vm1546_vm11, %v6743_v53, %v3988_v45  ;;  %vm945_vm4 = vcmp.eq.s32.totalorder %v15591_v43, %v6439_v12  ;;  %vm1553_vm3 = vcmp.eq.s32.totalorder %v15591_v43, %v6465_v8 }
 0x461   : > { %5753 = vmatpush1.bf16.msra.mxu0 %v5557_v32  ;;  %v4605_v7 = vsel %vm1550_vm13, %v6743_v53, %v3992_v47  ;;  %v5214_v51 = vsel %vm938_vm12, %v6748_v14, %v4601_v21  ;;  %vm949_vm2 = vcmp.eq.s32.totalorder %v15737_v4, %v6439_v12  ;;  %vm1557_vm5 = vcmp.eq.s32.totalorder %v15737_v4, %v6465_v8 }
 0x462   : > { %v5218_v17 = vsel %vm942_vm10, %v6748_v14, %v4605_v7  ;;  %vm2161_vm6 = vcmp.eq.s32.totalorder %v15591_v43, %v6487_v38  ;;  %vm2165_vm7 = vcmp.eq.s32.totalorder %v15737_v4, %v6487_v38  ;;  %vm2769_vm8 = vcmp.eq.s32.totalorder %v15591_v43, %v6508_v6 }
 0x463   : > { %v5559_v50 = vpack.c.bf16 %v5218_v17, %v5214_v51  ;;  %vm2773_vm9 = vcmp.eq.s32.totalorder %v15737_v4, %v6508_v6  ;;  %v3382_v55 = vsel %vm2769_vm8, %v6492_v40, 0.0  ;;  %vm947_vm12 = vcmp.eq.s32.totalorder %v15591_v43, %v6480_v36 }
 0x464   : > { %v3386_v42 = vsel %vm2773_vm9, %v6492_v40, 0.0  ;;  %v3995_v31 = vsel %vm2161_vm6, %v6455_v28, %v3382_v55  ;;  %vm951_vm10 = vcmp.eq.s32.totalorder %v15737_v4, %v6480_v36  ;;  %vm1555_vm11 = vcmp.eq.s32.totalorder %v15591_v43, %v6499_v41 }
 0x465   : > { %5958 = vmatpush1.bf16.msra.mxu1 %v5559_v50  ;;  %v3999_v22 = vsel %vm2165_vm7, %v6455_v28, %v3386_v42  ;;  %v4608_v25 = vsel %vm1553_vm3, %v6470_v33, %v3995_v31  ;;  %vm1559_vm13 = vcmp.eq.s32.totalorder %v15737_v4, %v6499_v41  ;;  %vm2163_vm14 = vcmp.eq.s32.totalorder %v15591_v43, %v6521_v44 }
 0x466   : > { %v4612_v48 = vsel %vm1557_vm5, %v6470_v33, %v3999_v22  ;;  %v5221_v18 = vsel %vm945_vm4, %v6473_v34, %v4608_v25  ;;  %vm2167_vm15 = vcmp.eq.s32.totalorder %v15737_v4, %v6521_v44  ;;  %vm2771_vm0 = vcmp.eq.s32.totalorder %v15591_v43, %v6530_v9 }
 0x467   : > { %v5225_v49 = vsel %vm949_vm2, %v6473_v34, %v4612_v48  ;;  %vm2775_vm1 = vcmp.eq.s32.totalorder %v15737_v4, %v6530_v9  ;;  %v3384_v3 = vsel %vm2771_vm0, %v6561_v57, 0.0  ;;  %vm944_vm3 = vcmp.eq.s32.totalorder %v15591_v43, %v6597_v39 }
 0x468   : > { %v5562_v27 = vpack.c.bf16 %v5225_v49, %v5221_v18  ;;  %v3388_v15 = vsel %vm2775_vm1, %v6561_v57, 0.0  ;;  %v3997_v26 = vsel %vm2163_vm14, %v6564_v58, %v3384_v3  ;;  %vm948_vm4 = vcmp.eq.s32.totalorder %v15737_v4, %v6597_v39 }
 0x469   : > { %v4001_v11 = vsel %vm2167_vm15, %v6564_v58, %v3388_v15  ;;  %v4610_v16 = vsel %vm1555_vm11, %v6591_v10, %v3997_v26  ;;  %vm1552_vm2 = vcmp.eq.s32.totalorder %v15591_v43, %v6630_v60  ;;  %vm1556_vm5 = vcmp.eq.s32.totalorder %v15737_v4, %v6630_v60 }
 0x46a   : > { %5754 = vmatprep.subr.bf16.mxu0 %v5562_v27  ;;  %v4614_v24 = vsel %vm1559_vm13, %v6591_v10, %v4001_v11  ;;  %v5223_v46 = vsel %vm947_vm12, %v6594_v37, %v4610_v16  ;;  %vm2160_vm6 = vcmp.eq.s32.totalorder %v15591_v43, %v6633_v61  ;;  %vm2164_vm7 = vcmp.eq.s32.totalorder %v15737_v4, %v6633_v61 }
 0x46b   : > { %v5227_v13 = vsel %vm951_vm10, %v6594_v37, %v4614_v24  ;;  %vm2768_vm8 = vcmp.eq.s32.totalorder %v15591_v43, %v6636_v62  ;;  %vm2772_vm9 = vcmp.eq.s32.totalorder %v15737_v4, %v6636_v62  ;;  %vm946_vm12 = vcmp.eq.s32.totalorder %v15591_v43, %v6687_v63 }
 0x46c   : > { %v5564_v19 = vpack.c.bf16 %v5227_v13, %v5223_v46  ;;  %v3381_v5 = vsel %vm2768_vm8, %v6639_v0, 0.0  ;;  %v3385_v32 = vsel %vm2772_vm9, %v6639_v0, 0.0  ;;  %vm950_vm11 = vcmp.eq.s32.totalorder %v15737_v4, %v6687_v63 }
 0x46d   : > { %v3994_v23 = vsel %vm2160_vm6, %v6642_v2, %v3381_v5  ;;  %v3998_v45 = vsel %vm2164_vm7, %v6642_v2, %v3385_v32  ;;  %vm1554_vm10 = vcmp.eq.s32.totalorder %v15591_v43, %v6690_v52  ;;  %vm1558_vm13 = vcmp.eq.s32.totalorder %v15737_v4, %v6690_v52 }
 0x46e   : > { %5959 = vmatprep.subr.bf16.mxu1 %v5564_v19  ;;  %v4607_v47 = vsel %vm1552_vm2, %v6661_v20, %v3994_v23  ;;  %v4611_v21 = vsel %vm1556_vm5, %v6661_v20, %v3998_v45  ;;  %vm2162_vm14 = vcmp.eq.s32.totalorder %v15591_v43, %v6701_v35  ;;  %vm2166_vm15 = vcmp.eq.s32.totalorder %v15737_v4, %v6701_v35 }
 0x46f   : > { %v5220_v7 = vsel %vm944_vm3, %v6664_v29, %v4607_v47  ;;  %v5224_v51 = vsel %vm948_vm4, %v6664_v29, %v4611_v21  ;;  %vm2770_vm0 = vcmp.eq.s32.totalorder %v15591_v43, %v6704_v56  ;;  %vm2774_vm1 = vcmp.eq.s32.totalorder %v15737_v4, %v6704_v56 }
 0x470   : > { %v5561_v17 = vpack.c.bf16 %v5224_v51, %v5220_v7  ;;  %v3383_v50 = vsel %vm2770_vm0, %v6737_v59, 0.0  ;;  %v3387_v55 = vsel %vm2774_vm1, %v6737_v59, 0.0  ;;  %v15883_v42 = vadd.s32 992, %v6309_v1 }
 0x471   : > { %v3996_v31 = vsel %vm2162_vm14, %v6740_v54, %v3383_v50  ;;  %v4000_v22 = vsel %vm2166_vm15, %v6740_v54, %v3387_v55  ;;  %v15888_v25 = vadd.s32 1000, %v6309_v1  ;;  %v15891_v48 = vadd.s32 1008, %v6309_v1 }
 0x472   : > { %5755 = vmatpush1.bf16.msra.mxu0 %v5561_v17  ;;  %v4609_v18 = vsel %vm1554_vm10, %v6743_v53, %v3996_v31  ;;  %v4613_v49 = vsel %vm1558_vm13, %v6743_v53, %v4000_v22  ;;  %vm953_vm3 = vcmp.eq.s32.totalorder %v15883_v42, %v6439_v12  ;;  %vm1561_vm4 = vcmp.eq.s32.totalorder %v15883_v42, %v6465_v8 }
 0x473   : > { %v5222_v3 = vsel %vm946_vm12, %v6748_v14, %v4609_v18  ;;  %v5226_v27 = vsel %vm950_vm11, %v6748_v14, %v4613_v49  ;;  %vm957_vm2 = vcmp.eq.s32.totalorder %v15888_v25, %v6439_v12  ;;  %vm1565_vm5 = vcmp.eq.s32.totalorder %v15888_v25, %v6465_v8 }
 0x474   : > { %v5563_v15 = vpack.c.bf16 %v5226_v27, %v5222_v3  ;;  %vm2169_vm6 = vcmp.eq.s32.totalorder %v15883_v42, %v6487_v38  ;;  %vm2173_vm7 = vcmp.eq.s32.totalorder %v15888_v25, %v6487_v38  ;;  %vm2777_vm8 = vcmp.eq.s32.totalorder %v15883_v42, %v6508_v6 }
 0x475   : > { %vm2781_vm9 = vcmp.eq.s32.totalorder %v15888_v25, %v6508_v6  ;;  %v3390_v43 = vsel %vm2777_vm8, %v6492_v40, 0.0  ;;  %vm955_vm12 = vcmp.eq.s32.totalorder %v15883_v42, %v6480_v36  ;;  %vm959_vm11 = vcmp.eq.s32.totalorder %v15888_v25, %v6480_v36 }
 0x476   : > { %5960 = vmatpush1.bf16.msra.mxu1 %v5563_v15  ;;  %v3394_v4 = vsel %vm2781_vm9, %v6492_v40, 0.0  ;;  %v4003_v26 = vsel %vm2169_vm6, %v6455_v28, %v3390_v43  ;;  %vm1563_vm10 = vcmp.eq.s32.totalorder %v15883_v42, %v6499_v41  ;;  %vm1567_vm13 = vcmp.eq.s32.totalorder %v15888_v25, %v6499_v41 }
 0x477   : > { %v4007_v11 = vsel %vm2173_vm7, %v6455_v28, %v3394_v4  ;;  %v4616_v16 = vsel %vm1561_vm4, %v6470_v33, %v4003_v26  ;;  %vm2171_vm14 = vcmp.eq.s32.totalorder %v15883_v42, %v6521_v44  ;;  %vm2175_vm15 = vcmp.eq.s32.totalorder %v15888_v25, %v6521_v44 }
 0x478   : > { %v4620_v24 = vsel %vm1565_vm5, %v6470_v33, %v4007_v11  ;;  %v5229_v46 = vsel %vm953_vm3, %v6473_v34, %v4616_v16  ;;  %vm2779_vm0 = vcmp.eq.s32.totalorder %v15883_v42, %v6530_v9  ;;  %vm2783_vm1 = vcmp.eq.s32.totalorder %v15888_v25, %v6530_v9 }
 0x479   : > { %v5233_v13 = vsel %vm957_vm2, %v6473_v34, %v4620_v24  ;;  %v3392_v19 = vsel %vm2779_vm0, %v6561_v57, 0.0  ;;  %v3396_v5 = vsel %vm2783_vm1, %v6561_v57, 0.0  ;;  %vm952_vm4 = vcmp.eq.s32.totalorder %v15883_v42, %v6597_v39 }
 0x47a   : > { %v5566_v32 = vpack.c.bf16 %v5233_v13, %v5229_v46  ;;  %v4005_v23 = vsel %vm2171_vm14, %v6564_v58, %v3392_v19  ;;  %v4009_v45 = vsel %vm2175_vm15, %v6564_v58, %v3396_v5  ;;  %vm956_vm3 = vcmp.eq.s32.totalorder %v15888_v25, %v6597_v39 }
 0x47b   : > { %v4618_v47 = vsel %vm1563_vm10, %v6591_v10, %v4005_v23  ;;  %v4622_v21 = vsel %vm1567_vm13, %v6591_v10, %v4009_v45  ;;  %vm1560_vm2 = vcmp.eq.s32.totalorder %v15883_v42, %v6630_v60  ;;  %vm1564_vm5 = vcmp.eq.s32.totalorder %v15888_v25, %v6630_v60 }
 0x47c   : > { %5756 = vmatprep.subr.bf16.mxu0 %v5566_v32  ;;  %v5231_v7 = vsel %vm955_vm12, %v6594_v37, %v4618_v47  ;;  %v5235_v51 = vsel %vm959_vm11, %v6594_v37, %v4622_v21  ;;  %vm2168_vm6 = vcmp.eq.s32.totalorder %v15883_v42, %v6633_v61  ;;  %vm2172_vm7 = vcmp.eq.s32.totalorder %v15888_v25, %v6633_v61 }
 0x47d   : > { %v5568_v17 = vpack.c.bf16 %v5235_v51, %v5231_v7  ;;  %vm2776_vm8 = vcmp.eq.s32.totalorder %v15883_v42, %v6636_v62  ;;  %vm2780_vm9 = vcmp.eq.s32.totalorder %v15888_v25, %v6636_v62  ;;  %vm954_vm12 = vcmp.eq.s32.totalorder %v15883_v42, %v6687_v63 }
 0x47e   : > { %v3389_v50 = vsel %vm2776_vm8, %v6639_v0, 0.0  ;;  %v3393_v55 = vsel %vm2780_vm9, %v6639_v0, 0.0  ;;  %vm958_vm11 = vcmp.eq.s32.totalorder %v15888_v25, %v6687_v63  ;;  %vm1562_vm10 = vcmp.eq.s32.totalorder %v15883_v42, %v6690_v52 }
 0x47f   : > { %5961 = vmatprep.subr.bf16.mxu1 %v5568_v17  ;;  %v4002_v31 = vsel %vm2168_vm6, %v6642_v2, %v3389_v50  ;;  %v4006_v22 = vsel %vm2172_vm7, %v6642_v2, %v3393_v55  ;;  %vm1566_vm13 = vcmp.eq.s32.totalorder %v15888_v25, %v6690_v52  ;;  %vm2170_vm14 = vcmp.eq.s32.totalorder %v15883_v42, %v6701_v35 }
 0x480   : > { %v4615_v18 = vsel %vm1560_vm2, %v6661_v20, %v4002_v31  ;;  %v4619_v49 = vsel %vm1564_vm5, %v6661_v20, %v4006_v22  ;;  %vm2174_vm15 = vcmp.eq.s32.totalorder %v15888_v25, %v6701_v35  ;;  %vm2778_vm0 = vcmp.eq.s32.totalorder %v15883_v42, %v6704_v56 }
 0x481   : > { %v5228_v3 = vsel %vm952_vm4, %v6664_v29, %v4615_v18  ;;  %v5232_v27 = vsel %vm956_vm3, %v6664_v29, %v4619_v49  ;;  %vm2782_vm1 = vcmp.eq.s32.totalorder %v15888_v25, %v6704_v56  ;;  %v3391_v15 = vsel %vm2778_vm0, %v6737_v59, 0.0 }
 0x482   : > { %v5565_v43 = vpack.c.bf16 %v5232_v27, %v5228_v3  ;;  %v3395_v4 = vsel %vm2782_vm1, %v6737_v59, 0.0  ;;  %v4004_v26 = vsel %vm2170_vm14, %v6740_v54, %v3391_v15  ;;  %v16037_v11 = vadd.s32 1016, %v6309_v1 }
 0x483   : > { %v4008_v16 = vsel %vm2174_vm15, %v6740_v54, %v3395_v4  ;;  %v4617_v24 = vsel %vm1562_vm10, %v6743_v53, %v4004_v26  ;;  %vm961_vm4 = vcmp.eq.s32.totalorder %v15891_v48, %v6439_v12  ;;  %vm1569_vm3 = vcmp.eq.s32.totalorder %v15891_v48, %v6465_v8 }
 0x484   : > { %5757 = vmatpush1.bf16.msra.mxu0 %v5565_v43  ;;  %v4621_v46 = vsel %vm1566_vm13, %v6743_v53, %v4008_v16  ;;  %v5230_v13 = vsel %vm954_vm12, %v6748_v14, %v4617_v24  ;;  %vm965_vm2 = vcmp.eq.s32.totalorder %v16037_v11, %v6439_v12  ;;  %vm1573_vm5 = vcmp.eq.s32.totalorder %v16037_v11, %v6465_v8  ;;  %v212_v16 = vld [vmem:[%s8788_s26 + $0x38] sm:$0xff] }
 0x485   : > { %v5234_v19 = vsel %vm958_vm11, %v6748_v14, %v4621_v46  ;;  %vm2177_vm6 = vcmp.eq.s32.totalorder %v15891_v48, %v6487_v38  ;;  %vm2181_vm7 = vcmp.eq.s32.totalorder %v16037_v11, %v6487_v38  ;;  %vm2785_vm8 = vcmp.eq.s32.totalorder %v15891_v48, %v6508_v6 }
 0x486   : > { %v5567_v42 = vpack.c.bf16 %v5234_v19, %v5230_v13  ;;  %vm2789_vm9 = vcmp.eq.s32.totalorder %v16037_v11, %v6508_v6  ;;  %v3398_v5 = vsel %vm2785_vm8, %v6492_v40, 0.0  ;;  %vm963_vm12 = vcmp.eq.s32.totalorder %v15891_v48, %v6480_v36 }
 0x487   : > { %v3402_v25 = vsel %vm2789_vm9, %v6492_v40, 0.0  ;;  %v4011_v32 = vsel %vm2177_vm6, %v6455_v28, %v3398_v5  ;;  %vm967_vm11 = vcmp.eq.s32.totalorder %v16037_v11, %v6480_v36  ;;  %vm1571_vm10 = vcmp.eq.s32.totalorder %v15891_v48, %v6499_v41 }
 0x488   : > { %5962 = vmatpush1.bf16.msra.mxu1 %v5567_v42  ;;  %v4015_v23 = vsel %vm2181_vm7, %v6455_v28, %v3402_v25  ;;  %v4624_v45 = vsel %vm1569_vm3, %v6470_v33, %v4011_v32  ;;  %vm1575_vm13 = vcmp.eq.s32.totalorder %v16037_v11, %v6499_v41  ;;  %vm2179_vm14 = vcmp.eq.s32.totalorder %v15891_v48, %v6521_v44  ;;  %v211_v42 = vld [vmem:[%s8788_s26 + $0x30] sm:$0xff] }
 0x489   : > { %v4628_v47 = vsel %vm1573_vm5, %v6470_v33, %v4015_v23  ;;  %v5237_v21 = vsel %vm961_vm4, %v6473_v34, %v4624_v45  ;;  %vm2183_vm15 = vcmp.eq.s32.totalorder %v16037_v11, %v6521_v44  ;;  %vm2787_vm0 = vcmp.eq.s32.totalorder %v15891_v48, %v6530_v9 }
 0x48a   : > { %v5241_v7 = vsel %vm965_vm2, %v6473_v34, %v4628_v47  ;;  %vm2791_vm1 = vcmp.eq.s32.totalorder %v16037_v11, %v6530_v9  ;;  %v3400_v51 = vsel %vm2787_vm0, %v6561_v57, 0.0  ;;  %vm960_vm3 = vcmp.eq.s32.totalorder %v15891_v48, %v6597_v39 }
 0x48b   : > { %v5570_v17 = vpack.c.bf16 %v5241_v7, %v5237_v21  ;;  %v3404_v50 = vsel %vm2791_vm1, %v6561_v57, 0.0  ;;  %v4013_v55 = vsel %vm2179_vm14, %v6564_v58, %v3400_v51  ;;  %vm964_vm4 = vcmp.eq.s32.totalorder %v16037_v11, %v6597_v39 }
 0x48c   : > { %v4017_v31 = vsel %vm2183_vm15, %v6564_v58, %v3404_v50  ;;  %v4626_v22 = vsel %vm1571_vm10, %v6591_v10, %v4013_v55  ;;  %vm1568_vm2 = vcmp.eq.s32.totalorder %v15891_v48, %v6630_v60  ;;  %vm1572_vm5 = vcmp.eq.s32.totalorder %v16037_v11, %v6630_v60 }
 0x48d   : > { %5758 = vmatprep.subr.bf16.mxu0 %v5570_v17  ;;  %v4630_v18 = vsel %vm1575_vm13, %v6591_v10, %v4017_v31  ;;  %v5239_v49 = vsel %vm963_vm12, %v6594_v37, %v4626_v22  ;;  %vm2176_vm6 = vcmp.eq.s32.totalorder %v15891_v48, %v6633_v61  ;;  %vm2180_vm7 = vcmp.eq.s32.totalorder %v16037_v11, %v6633_v61 }
 0x48e   : > { %v5243_v3 = vsel %vm967_vm11, %v6594_v37, %v4630_v18  ;;  %vm2784_vm8 = vcmp.eq.s32.totalorder %v15891_v48, %v6636_v62  ;;  %vm2788_vm9 = vcmp.eq.s32.totalorder %v16037_v11, %v6636_v62  ;;  %vm962_vm12 = vcmp.eq.s32.totalorder %v15891_v48, %v6687_v63 }
 0x48f   : > { %v5572_v27 = vpack.c.bf16 %v5243_v3, %v5239_v49  ;;  %v3397_v15 = vsel %vm2784_vm8, %v6639_v0, 0.0  ;;  %v3401_v43 = vsel %vm2788_vm9, %v6639_v0, 0.0  ;;  %vm966_vm10 = vcmp.eq.s32.totalorder %v16037_v11, %v6687_v63 }
 0x490   : > { %v4010_v4 = vsel %vm2176_vm6, %v6642_v2, %v3397_v15  ;;  %v4014_v26 = vsel %vm2180_vm7, %v6642_v2, %v3401_v43  ;;  %vm1570_vm11 = vcmp.eq.s32.totalorder %v15891_v48, %v6690_v52  ;;  %vm1574_vm13 = vcmp.eq.s32.totalorder %v16037_v11, %v6690_v52 }
 0x491   : > { %5963 = vmatprep.subr.bf16.mxu1 %v5572_v27  ;;  %v4623_v24 = vsel %vm1568_vm2, %v6661_v20, %v4010_v4  ;;  %v4627_v46 = vsel %vm1572_vm5, %v6661_v20, %v4014_v26  ;;  %vm2178_vm14 = vcmp.eq.s32.totalorder %v15891_v48, %v6701_v35  ;;  %vm2182_vm15 = vcmp.eq.s32.totalorder %v16037_v11, %v6701_v35 }
 0x492   : > { %v5236_v13 = vsel %vm960_vm3, %v6664_v29, %v4623_v24  ;;  %v5240_v19 = vsel %vm964_vm4, %v6664_v29, %v4627_v46  ;;  %vm2786_vm0 = vcmp.eq.s32.totalorder %v15891_v48, %v6704_v56  ;;  %vm2790_vm1 = vcmp.eq.s32.totalorder %v16037_v11, %v6704_v56 }
 0x493   : > { %v5569_v5 = vpack.c.bf16 %v5240_v19, %v5236_v13  ;;  %v3399_v25 = vsel %vm2786_vm0, %v6737_v59, 0.0  ;;  %v3403_v32 = vsel %vm2790_vm1, %v6737_v59, 0.0  ;;  %v5315_v23 = vpack.c.bf16 %v212_v16, %v212_v16 }
 0x494   : > { %v4012_v45 = vsel %vm2178_vm14, %v6740_v54, %v3399_v25  ;;  %v4016_v47 = vsel %vm2182_vm15, %v6740_v54, %v3403_v32  ;;  %v16187_v21 = vadd.s32 1024, %v6309_v1  ;;  %v16190_v7 = vadd.s32 1032, %v6309_v1 }
 0x495   : > { %5759 = vmatpush1.bf16.msra.mxu0 %v5569_v5  ;;  %v4625_v51 = vsel %vm1570_vm11, %v6743_v53, %v4012_v45  ;;  %v4629_v17 = vsel %vm1574_vm13, %v6743_v53, %v4016_v47  ;;  %5760 = vmatprep.mubr.bf16.mxu0 %v5315_v23  ;;  %v5314_v50 = vpack.c.bf16 %v211_v42, %v211_v42  ;;  %v16201_v55 = vadd.s32 1040, %v6309_v1 }
 0x496   : > { %v5238_v31 = vsel %vm962_vm12, %v6748_v14, %v4625_v51  ;;  %v5242_v22 = vsel %vm966_vm10, %v6748_v14, %v4629_v17  ;;  %vm969_vm3 = vcmp.eq.s32.totalorder %v16187_v21, %v6439_v12  ;;  %vm973_vm4 = vcmp.eq.s32.totalorder %v16190_v7, %v6439_v12  ;;  %5965 = vmatprep.mubr.bf16.mxu1 %v5315_v23 }
 0x497   : > { %v5571_v18 = vpack.c.bf16 %v5242_v22, %v5238_v31  ;;  %vm1577_vm2 = vcmp.eq.s32.totalorder %v16187_v21, %v6465_v8  ;;  %vm1581_vm5 = vcmp.eq.s32.totalorder %v16190_v7, %v6465_v8  ;;  %vm2185_vm6 = vcmp.eq.s32.totalorder %v16187_v21, %v6487_v38 }
 0x498   : > { %vm2189_vm7 = vcmp.eq.s32.totalorder %v16190_v7, %v6487_v38  ;;  %vm2793_vm8 = vcmp.eq.s32.totalorder %v16187_v21, %v6508_v6  ;;  %vm2797_vm9 = vcmp.eq.s32.totalorder %v16190_v7, %v6508_v6  ;;  %vm971_vm12 = vcmp.eq.s32.totalorder %v16187_v21, %v6480_v36  ;;  %5761 = vmatmul.mubr.bf16.vlgmr.msra.gmra.mrb[0].mxu0 %v5314_v50 }
 0x499   : > { %5964 = vmatpush1.bf16.msra.mxu1 %v5571_v18  ;;  %v3406_v48 = vsel %vm2793_vm8, %v6492_v40, 0.0  ;;  %v3410_v11 = vsel %vm2797_vm9, %v6492_v40, 0.0  ;;  %vm975_vm10 = vcmp.eq.s32.totalorder %v16190_v7, %v6480_v36  ;;  %vm1579_vm11 = vcmp.eq.s32.totalorder %v16187_v21, %v6499_v41  ;;  %5801 = vmatprep.mubr.bf16.mxu0 %v6258_v30 }
 0x49a   : > { %v4019_v49 = vsel %vm2185_vm6, %v6455_v28, %v3406_v48  ;;  %v4023_v3 = vsel %vm2189_vm7, %v6455_v28, %v3410_v11  ;;  %vm1583_vm13 = vcmp.eq.s32.totalorder %v16190_v7, %v6499_v41  ;;  %vm2187_vm14 = vcmp.eq.s32.totalorder %v16187_v21, %v6521_v44 }
 0x49b   : > { %v4632_v27 = vsel %vm1577_vm2, %v6470_v33, %v4019_v49  ;;  %v4636_v15 = vsel %vm1581_vm5, %v6470_v33, %v4023_v3  ;;  %vm2191_vm15 = vcmp.eq.s32.totalorder %v16190_v7, %v6521_v44  ;;  %vm2795_vm0 = vcmp.eq.s32.totalorder %v16187_v21, %v6530_v9 }
 0x49c   : > { %v5245_v43 = vsel %vm969_vm3, %v6473_v34, %v4632_v27  ;;  %v5249_v4 = vsel %vm973_vm4, %v6473_v34, %v4636_v15  ;;  %vm2799_vm1 = vcmp.eq.s32.totalorder %v16190_v7, %v6530_v9  ;;  %v3408_v26 = vsel %vm2795_vm0, %v6561_v57, 0.0  ;;  %5966 = vmatmul.mubr.bf16.vlgmr.msra.gmra.mrb[0].mxu1 %v5314_v50 }
 0x49d   : > { %v5574_v16 = vpack.c.bf16 %v5249_v4, %v5245_v43  ;;  %v3412_v24 = vsel %vm2799_vm1, %v6561_v57, 0.0  ;;  %v4021_v46 = vsel %vm2187_vm14, %v6564_v58, %v3408_v26  ;;  %vm968_vm2 = vcmp.eq.s32.totalorder %v16187_v21, %v6597_v39  ;;  %6006 = vmatprep.mubr.bf16.mxu1 %v6258_v30 }
 0x49e   : > { %v4025_v13 = vsel %vm2191_vm15, %v6564_v58, %v3412_v24  ;;  %v4634_v19 = vsel %vm1579_vm11, %v6591_v10, %v4021_v46  ;;  %vm972_vm3 = vcmp.eq.s32.totalorder %v16190_v7, %v6597_v39  ;;  %vm1576_vm4 = vcmp.eq.s32.totalorder %v16187_v21, %v6630_v60 }
 0x49f   : > { %5769 = vmatprep.subr.bf16.mxu0 %v5574_v16  ;;  %v4638_v42 = vsel %vm1583_vm13, %v6591_v10, %v4025_v13  ;;  %v5247_v30 = vsel %vm971_vm12, %v6594_v37, %v4634_v19  ;;  %vm1580_vm5 = vcmp.eq.s32.totalorder %v16190_v7, %v6630_v60  ;;  %vm2184_vm6 = vcmp.eq.s32.totalorder %v16187_v21, %v6633_v61 }
 0x4a0   : > { %v5251_v5 = vsel %vm975_vm10, %v6594_v37, %v4638_v42  ;;  %vm2188_vm7 = vcmp.eq.s32.totalorder %v16190_v7, %v6633_v61  ;;  %vm2792_vm8 = vcmp.eq.s32.totalorder %v16187_v21, %v6636_v62  ;;  %vm2796_vm9 = vcmp.eq.s32.totalorder %v16190_v7, %v6636_v62 }
 0x4a1   : > { %v5576_v25 = vpack.c.bf16 %v5251_v5, %v5247_v30  ;;  %v3405_v32 = vsel %vm2792_vm8, %v6639_v0, 0.0  ;;  %v3409_v23 = vsel %vm2796_vm9, %v6639_v0, 0.0  ;;  %vm970_vm12 = vcmp.eq.s32.totalorder %v16187_v21, %v6687_v63 }
 0x4a2   : > { %v4018_v45 = vsel %vm2184_vm6, %v6642_v2, %v3405_v32  ;;  %v4022_v47 = vsel %vm2188_vm7, %v6642_v2, %v3409_v23  ;;  %vm974_vm10 = vcmp.eq.s32.totalorder %v16190_v7, %v6687_v63  ;;  %vm1578_vm11 = vcmp.eq.s32.totalorder %v16187_v21, %v6690_v52 }
 0x4a3   : > { %5974 = vmatprep.subr.bf16.mxu1 %v5576_v25  ;;  %v4631_v51 = vsel %vm1576_vm4, %v6661_v20, %v4018_v45  ;;  %v4635_v17 = vsel %vm1580_vm5, %v6661_v20, %v4022_v47  ;;  %vm1582_vm13 = vcmp.eq.s32.totalorder %v16190_v7, %v6690_v52  ;;  %vm2186_vm14 = vcmp.eq.s32.totalorder %v16187_v21, %v6701_v35 }
 0x4a4   : > { %v5244_v50 = vsel %vm968_vm2, %v6664_v29, %v4631_v51  ;;  %v5248_v31 = vsel %vm972_vm3, %v6664_v29, %v4635_v17  ;;  %vm2190_vm15 = vcmp.eq.s32.totalorder %v16190_v7, %v6701_v35  ;;  %vm2794_vm0 = vcmp.eq.s32.totalorder %v16187_v21, %v6704_v56 }
 0x4a5   : > { %v5573_v22 = vpack.c.bf16 %v5248_v31, %v5244_v50  ;;  %vm2798_vm1 = vcmp.eq.s32.totalorder %v16190_v7, %v6704_v56  ;;  %v3407_v18 = vsel %vm2794_vm0, %v6737_v59, 0.0  ;;  %v16339_v48 = vadd.s32 1048, %v6309_v1 }
 0x4a6   : > { %v3411_v11 = vsel %vm2798_vm1, %v6737_v59, 0.0  ;;  %v4020_v49 = vsel %vm2186_vm14, %v6740_v54, %v3407_v18  ;;  %vm977_vm2 = vcmp.eq.s32.totalorder %v16201_v55, %v6439_v12  ;;  %vm1585_vm3 = vcmp.eq.s32.totalorder %v16201_v55, %v6465_v8 }
 0x4a7   : > { %5770 = vmatpush1.bf16.msra.mxu0 %v5573_v22  ;;  %v4024_v3 = vsel %vm2190_vm15, %v6740_v54, %v3411_v11  ;;  %v4633_v27 = vsel %vm1578_vm11, %v6743_v53, %v4020_v49  ;;  %vm981_vm4 = vcmp.eq.s32.totalorder %v16339_v48, %v6439_v12  ;;  %vm1589_vm5 = vcmp.eq.s32.totalorder %v16339_v48, %v6465_v8 }
 0x4a8   : > { %v4637_v15 = vsel %vm1582_vm13, %v6743_v53, %v4024_v3  ;;  %v5246_v43 = vsel %vm970_vm12, %v6748_v14, %v4633_v27  ;;  %vm2193_vm6 = vcmp.eq.s32.totalorder %v16201_v55, %v6487_v38  ;;  %vm2197_vm7 = vcmp.eq.s32.totalorder %v16339_v48, %v6487_v38 }
 0x4a9   : > { %v5250_v4 = vsel %vm974_vm10, %v6748_v14, %v4637_v15  ;;  %vm2801_vm8 = vcmp.eq.s32.totalorder %v16201_v55, %v6508_v6  ;;  %vm2805_vm9 = vcmp.eq.s32.totalorder %v16339_v48, %v6508_v6  ;;  %vm979_vm12 = vcmp.eq.s32.totalorder %v16201_v55, %v6480_v36 }
 0x4aa   : > { %v5575_v21 = vpack.c.bf16 %v5250_v4, %v5246_v43  ;;  %v3414_v26 = vsel %vm2801_vm8, %v6492_v40, 0.0  ;;  %v3418_v16 = vsel %vm2805_vm9, %v6492_v40, 0.0  ;;  %vm983_vm11 = vcmp.eq.s32.totalorder %v16339_v48, %v6480_v36 }
 0x4ab   : > { %v4027_v7 = vsel %vm2193_vm6, %v6455_v28, %v3414_v26  ;;  %v4031_v24 = vsel %vm2197_vm7, %v6455_v28, %v3418_v16  ;;  %vm1587_vm10 = vcmp.eq.s32.totalorder %v16201_v55, %v6499_v41  ;;  %vm1591_vm13 = vcmp.eq.s32.totalorder %v16339_v48, %v6499_v41 }
 0x4ac   : > { %5975 = vmatpush1.bf16.msra.mxu1 %v5575_v21  ;;  %v4640_v46 = vsel %vm1585_vm3, %v6470_v33, %v4027_v7  ;;  %v4644_v13 = vsel %vm1589_vm5, %v6470_v33, %v4031_v24  ;;  %vm2195_vm14 = vcmp.eq.s32.totalorder %v16201_v55, %v6521_v44  ;;  %vm2199_vm15 = vcmp.eq.s32.totalorder %v16339_v48, %v6521_v44 }
 0x4ad   : > { %v5253_v19 = vsel %vm977_vm2, %v6473_v34, %v4640_v46  ;;  %v5257_v42 = vsel %vm981_vm4, %v6473_v34, %v4644_v13  ;;  %vm2803_vm0 = vcmp.eq.s32.totalorder %v16201_v55, %v6530_v9  ;;  %vm2807_vm1 = vcmp.eq.s32.totalorder %v16339_v48, %v6530_v9 }
 0x4ae   : > { %v5578_v30 = vpack.c.bf16 %v5257_v42, %v5253_v19  ;;  %v3416_v5 = vsel %vm2803_vm0, %v6561_v57, 0.0  ;;  %v3420_v25 = vsel %vm2807_vm1, %v6561_v57, 0.0  ;;  %vm976_vm3 = vcmp.eq.s32.totalorder %v16201_v55, %v6597_v39 }
 0x4af   : > { %v4029_v32 = vsel %vm2195_vm14, %v6564_v58, %v3416_v5  ;;  %v4033_v23 = vsel %vm2199_vm15, %v6564_v58, %v3420_v25  ;;  %vm980_vm2 = vcmp.eq.s32.totalorder %v16339_v48, %v6597_v39  ;;  %vm1584_vm4 = vcmp.eq.s32.totalorder %v16201_v55, %v6630_v60 }
 0x4b0   : > { %5771 = vmatprep.subr.bf16.mxu0 %v5578_v30  ;;  %v4642_v45 = vsel %vm1587_vm10, %v6591_v10, %v4029_v32  ;;  %v4646_v47 = vsel %vm1591_vm13, %v6591_v10, %v4033_v23  ;;  %vm1588_vm5 = vcmp.eq.s32.totalorder %v16339_v48, %v6630_v60  ;;  %vm2192_vm6 = vcmp.eq.s32.totalorder %v16201_v55, %v6633_v61 }
 0x4b1   : > { %v5255_v51 = vsel %vm979_vm12, %v6594_v37, %v4642_v45  ;;  %v5259_v17 = vsel %vm983_vm11, %v6594_v37, %v4646_v47  ;;  %vm2196_vm7 = vcmp.eq.s32.totalorder %v16339_v48, %v6633_v61  ;;  %vm2800_vm8 = vcmp.eq.s32.totalorder %v16201_v55, %v6636_v62 }
 0x4b2   : > { %v5580_v50 = vpack.c.bf16 %v5259_v17, %v5255_v51  ;;  %vm2804_vm9 = vcmp.eq.s32.totalorder %v16339_v48, %v6636_v62  ;;  %v3413_v31 = vsel %vm2800_vm8, %v6639_v0, 0.0  ;;  %vm978_vm12 = vcmp.eq.s32.totalorder %v16201_v55, %v6687_v63 }
 0x4b3   : > { %v3417_v22 = vsel %vm2804_vm9, %v6639_v0, 0.0  ;;  %v4026_v18 = vsel %vm2192_vm6, %v6642_v2, %v3413_v31  ;;  %vm982_vm11 = vcmp.eq.s32.totalorder %v16339_v48, %v6687_v63  ;;  %vm1586_vm10 = vcmp.eq.s32.totalorder %v16201_v55, %v6690_v52 }
 0x4b4   : > { %5976 = vmatprep.subr.bf16.mxu1 %v5580_v50  ;;  %v4030_v11 = vsel %vm2196_vm7, %v6642_v2, %v3417_v22  ;;  %v4639_v49 = vsel %vm1584_vm4, %v6661_v20, %v4026_v18  ;;  %vm1590_vm13 = vcmp.eq.s32.totalorder %v16339_v48, %v6690_v52  ;;  %vm2194_vm14 = vcmp.eq.s32.totalorder %v16201_v55, %v6701_v35 }
 0x4b5   : > { %v4643_v3 = vsel %vm1588_vm5, %v6661_v20, %v4030_v11  ;;  %v5252_v27 = vsel %vm976_vm3, %v6664_v29, %v4639_v49  ;;  %vm2198_vm15 = vcmp.eq.s32.totalorder %v16339_v48, %v6701_v35  ;;  %vm2802_vm0 = vcmp.eq.s32.totalorder %v16201_v55, %v6704_v56 }
 0x4b6   : > { %v5256_v15 = vsel %vm980_vm2, %v6664_v29, %v4643_v3  ;;  %vm2806_vm1 = vcmp.eq.s32.totalorder %v16339_v48, %v6704_v56  ;;  %v3415_v43 = vsel %vm2802_vm0, %v6737_v59, 0.0  ;;  %v16486_v4 = vadd.s32 1056, %v6309_v1 }
 0x4b7   : > { %v5577_v21 = vpack.c.bf16 %v5256_v15, %v5252_v27  ;;  %v3419_v26 = vsel %vm2806_vm1, %v6737_v59, 0.0  ;;  %v4028_v16 = vsel %vm2194_vm14, %v6740_v54, %v3415_v43  ;;  %v16491_v7 = vadd.s32 1064, %v6309_v1 }
 0x4b8   : > { %v4032_v24 = vsel %vm2198_vm15, %v6740_v54, %v3419_v26  ;;  %v4641_v46 = vsel %vm1586_vm10, %v6743_v53, %v4028_v16  ;;  %vm985_vm3 = vcmp.eq.s32.totalorder %v16486_v4, %v6439_v12  ;;  %vm1593_vm2 = vcmp.eq.s32.totalorder %v16486_v4, %v6465_v8 }
 0x4b9   : > { %5772 = vmatpush1.bf16.msra.mxu0 %v5577_v21  ;;  %v4645_v13 = vsel %vm1590_vm13, %v6743_v53, %v4032_v24  ;;  %v5254_v19 = vsel %vm978_vm12, %v6748_v14, %v4641_v46  ;;  %vm989_vm4 = vcmp.eq.s32.totalorder %v16491_v7, %v6439_v12  ;;  %vm1597_vm5 = vcmp.eq.s32.totalorder %v16491_v7, %v6465_v8 }
 0x4ba   : > { %v5258_v42 = vsel %vm982_vm11, %v6748_v14, %v4645_v13  ;;  %vm2201_vm6 = vcmp.eq.s32.totalorder %v16486_v4, %v6487_v38  ;;  %vm2205_vm7 = vcmp.eq.s32.totalorder %v16491_v7, %v6487_v38  ;;  %vm2809_vm8 = vcmp.eq.s32.totalorder %v16486_v4, %v6508_v6 }
 0x4bb   : > { %v5579_v55 = vpack.c.bf16 %v5258_v42, %v5254_v19  ;;  %vm2813_vm9 = vcmp.eq.s32.totalorder %v16491_v7, %v6508_v6  ;;  %v3422_v30 = vsel %vm2809_vm8, %v6492_v40, 0.0  ;;  %vm987_vm12 = vcmp.eq.s32.totalorder %v16486_v4, %v6480_v36 }
 0x4bc   : > { %v3426_v48 = vsel %vm2813_vm9, %v6492_v40, 0.0  ;;  %v4035_v5 = vsel %vm2201_vm6, %v6455_v28, %v3422_v30  ;;  %vm991_vm11 = vcmp.eq.s32.totalorder %v16491_v7, %v6480_v36  ;;  %vm1595_vm10 = vcmp.eq.s32.totalorder %v16486_v4, %v6499_v41 }
 0x4bd   : > { %5977 = vmatpush1.bf16.msra.mxu1 %v5579_v55  ;;  %v4039_v25 = vsel %vm2205_vm7, %v6455_v28, %v3426_v48  ;;  %v4648_v32 = vsel %vm1593_vm2, %v6470_v33, %v4035_v5  ;;  %vm1599_vm13 = vcmp.eq.s32.totalorder %v16491_v7, %v6499_v41  ;;  %vm2203_vm14 = vcmp.eq.s32.totalorder %v16486_v4, %v6521_v44 }
 0x4be   : > { %v4652_v23 = vsel %vm1597_vm5, %v6470_v33, %v4039_v25  ;;  %v5261_v45 = vsel %vm985_vm3, %v6473_v34, %v4648_v32  ;;  %vm2207_vm15 = vcmp.eq.s32.totalorder %v16491_v7, %v6521_v44  ;;  %vm2811_vm0 = vcmp.eq.s32.totalorder %v16486_v4, %v6530_v9 }
 0x4bf   : > { %v5265_v47 = vsel %vm989_vm4, %v6473_v34, %v4652_v23  ;;  %vm2815_vm1 = vcmp.eq.s32.totalorder %v16491_v7, %v6530_v9  ;;  %v3424_v51 = vsel %vm2811_vm0, %v6561_v57, 0.0  ;;  %vm984_vm2 = vcmp.eq.s32.totalorder %v16486_v4, %v6597_v39 }
 0x4c0   : > { %v5582_v17 = vpack.c.bf16 %v5265_v47, %v5261_v45  ;;  %v3428_v50 = vsel %vm2815_vm1, %v6561_v57, 0.0  ;;  %v4037_v31 = vsel %vm2203_vm14, %v6564_v58, %v3424_v51  ;;  %vm988_vm3 = vcmp.eq.s32.totalorder %v16491_v7, %v6597_v39 }
 0x4c1   : > { %v4041_v22 = vsel %vm2207_vm15, %v6564_v58, %v3428_v50  ;;  %v4650_v18 = vsel %vm1595_vm10, %v6591_v10, %v4037_v31  ;;  %vm1592_vm4 = vcmp.eq.s32.totalorder %v16486_v4, %v6630_v60  ;;  %vm1596_vm5 = vcmp.eq.s32.totalorder %v16491_v7, %v6630_v60 }
 0x4c2   : > { %5773 = vmatprep.subr.bf16.mxu0 %v5582_v17  ;;  %v4654_v11 = vsel %vm1599_vm13, %v6591_v10, %v4041_v22  ;;  %v5263_v49 = vsel %vm987_vm12, %v6594_v37, %v4650_v18  ;;  %vm2200_vm6 = vcmp.eq.s32.totalorder %v16486_v4, %v6633_v61  ;;  %vm2204_vm7 = vcmp.eq.s32.totalorder %v16491_v7, %v6633_v61 }
 0x4c3   : > { %v5267_v3 = vsel %vm991_vm11, %v6594_v37, %v4654_v11  ;;  %vm2808_vm8 = vcmp.eq.s32.totalorder %v16486_v4, %v6636_v62  ;;  %vm2812_vm9 = vcmp.eq.s32.totalorder %v16491_v7, %v6636_v62  ;;  %vm986_vm12 = vcmp.eq.s32.totalorder %v16486_v4, %v6687_v63 }
 0x4c4   : > { %v5584_v27 = vpack.c.bf16 %v5267_v3, %v5263_v49  ;;  %v3421_v15 = vsel %vm2808_vm8, %v6639_v0, 0.0  ;;  %v3425_v43 = vsel %vm2812_vm9, %v6639_v0, 0.0  ;;  %vm990_vm10 = vcmp.eq.s32.totalorder %v16491_v7, %v6687_v63 }
 0x4c5   : > { %v4034_v21 = vsel %vm2200_vm6, %v6642_v2, %v3421_v15  ;;  %v4038_v26 = vsel %vm2204_vm7, %v6642_v2, %v3425_v43  ;;  %vm1594_vm11 = vcmp.eq.s32.totalorder %v16486_v4, %v6690_v52  ;;  %vm1598_vm13 = vcmp.eq.s32.totalorder %v16491_v7, %v6690_v52 }
 0x4c6   : > { %5978 = vmatprep.subr.bf16.mxu1 %v5584_v27  ;;  %v4647_v16 = vsel %vm1592_vm4, %v6661_v20, %v4034_v21  ;;  %v4651_v24 = vsel %vm1596_vm5, %v6661_v20, %v4038_v26  ;;  %vm2202_vm14 = vcmp.eq.s32.totalorder %v16486_v4, %v6701_v35  ;;  %vm2206_vm15 = vcmp.eq.s32.totalorder %v16491_v7, %v6701_v35 }
 0x4c7   : > { %v5260_v46 = vsel %vm984_vm2, %v6664_v29, %v4647_v16  ;;  %v5264_v13 = vsel %vm988_vm3, %v6664_v29, %v4651_v24  ;;  %vm2810_vm0 = vcmp.eq.s32.totalorder %v16486_v4, %v6704_v56  ;;  %vm2814_vm1 = vcmp.eq.s32.totalorder %v16491_v7, %v6704_v56 }
 0x4c8   : > { %v5581_v19 = vpack.c.bf16 %v5264_v13, %v5260_v46  ;;  %v3423_v42 = vsel %vm2810_vm0, %v6737_v59, 0.0  ;;  %v3427_v55 = vsel %vm2814_vm1, %v6737_v59, 0.0  ;;  %v16637_v30 = vadd.s32 1072, %v6309_v1 }
 0x4c9   : > { %v4036_v48 = vsel %vm2202_vm14, %v6740_v54, %v3423_v42  ;;  %v4040_v5 = vsel %vm2206_vm15, %v6740_v54, %v3427_v55  ;;  %v16642_v25 = vadd.s32 1080, %v6309_v1  ;;  %v16645_v32 = vadd.s32 1088, %v6309_v1 }
 0x4ca   : > { %5774 = vmatpush1.bf16.msra.mxu0 %v5581_v19  ;;  %v4649_v23 = vsel %vm1594_vm11, %v6743_v53, %v4036_v48  ;;  %v4653_v45 = vsel %vm1598_vm13, %v6743_v53, %v4040_v5  ;;  %vm993_vm2 = vcmp.eq.s32.totalorder %v16637_v30, %v6439_v12  ;;  %vm1601_vm3 = vcmp.eq.s32.totalorder %v16637_v30, %v6465_v8 }
 0x4cb   : > { %v5262_v47 = vsel %vm986_vm12, %v6748_v14, %v4649_v23  ;;  %v5266_v51 = vsel %vm990_vm10, %v6748_v14, %v4653_v45  ;;  %vm997_vm4 = vcmp.eq.s32.totalorder %v16642_v25, %v6439_v12  ;;  %vm1605_vm5 = vcmp.eq.s32.totalorder %v16642_v25, %v6465_v8 }
 0x4cc   : > { %v5583_v17 = vpack.c.bf16 %v5266_v51, %v5262_v47  ;;  %vm2209_vm6 = vcmp.eq.s32.totalorder %v16637_v30, %v6487_v38  ;;  %vm2213_vm7 = vcmp.eq.s32.totalorder %v16642_v25, %v6487_v38  ;;  %vm2817_vm8 = vcmp.eq.s32.totalorder %v16637_v30, %v6508_v6 }
 0x4cd   : > { %vm2821_vm9 = vcmp.eq.s32.totalorder %v16642_v25, %v6508_v6  ;;  %v3430_v4 = vsel %vm2817_vm8, %v6492_v40, 0.0  ;;  %vm995_vm12 = vcmp.eq.s32.totalorder %v16637_v30, %v6480_v36  ;;  %vm999_vm10 = vcmp.eq.s32.totalorder %v16642_v25, %v6480_v36 }
 0x4ce   : > { %5979 = vmatpush1.bf16.msra.mxu1 %v5583_v17  ;;  %v3434_v7 = vsel %vm2821_vm9, %v6492_v40, 0.0  ;;  %v4043_v50 = vsel %vm2209_vm6, %v6455_v28, %v3430_v4  ;;  %vm1603_vm11 = vcmp.eq.s32.totalorder %v16637_v30, %v6499_v41  ;;  %vm1607_vm13 = vcmp.eq.s32.totalorder %v16642_v25, %v6499_v41 }
 0x4cf   : > { %v4047_v31 = vsel %vm2213_vm7, %v6455_v28, %v3434_v7  ;;  %v4656_v22 = vsel %vm1601_vm3, %v6470_v33, %v4043_v50  ;;  %vm2211_vm14 = vcmp.eq.s32.totalorder %v16637_v30, %v6521_v44  ;;  %vm2215_vm15 = vcmp.eq.s32.totalorder %v16642_v25, %v6521_v44 }
 0x4d0   : > { %v4660_v18 = vsel %vm1605_vm5, %v6470_v33, %v4047_v31  ;;  %v5269_v11 = vsel %vm993_vm2, %v6473_v34, %v4656_v22  ;;  %vm2819_vm0 = vcmp.eq.s32.totalorder %v16637_v30, %v6530_v9  ;;  %vm2823_vm1 = vcmp.eq.s32.totalorder %v16642_v25, %v6530_v9 }
 0x4d1   : > { %v5273_v49 = vsel %vm997_vm4, %v6473_v34, %v4660_v18  ;;  %v3432_v3 = vsel %vm2819_vm0, %v6561_v57, 0.0  ;;  %v3436_v27 = vsel %vm2823_vm1, %v6561_v57, 0.0  ;;  %vm992_vm3 = vcmp.eq.s32.totalorder %v16637_v30, %v6597_v39 }
 0x4d2   : > { %v5586_v15 = vpack.c.bf16 %v5273_v49, %v5269_v11  ;;  %v4045_v43 = vsel %vm2211_vm14, %v6564_v58, %v3432_v3  ;;  %v4049_v21 = vsel %vm2215_vm15, %v6564_v58, %v3436_v27  ;;  %vm996_vm2 = vcmp.eq.s32.totalorder %v16642_v25, %v6597_v39 }
 0x4d3   : > { %v4658_v26 = vsel %vm1603_vm11, %v6591_v10, %v4045_v43  ;;  %v4662_v16 = vsel %vm1607_vm13, %v6591_v10, %v4049_v21  ;;  %vm1600_vm4 = vcmp.eq.s32.totalorder %v16637_v30, %v6630_v60  ;;  %vm1604_vm5 = vcmp.eq.s32.totalorder %v16642_v25, %v6630_v60 }
 0x4d4   : > { %5775 = vmatprep.subr.bf16.mxu0 %v5586_v15  ;;  %v5271_v24 = vsel %vm995_vm12, %v6594_v37, %v4658_v26  ;;  %v5275_v46 = vsel %vm999_vm10, %v6594_v37, %v4662_v16  ;;  %vm2208_vm6 = vcmp.eq.s32.totalorder %v16637_v30, %v6633_v61  ;;  %vm2212_vm7 = vcmp.eq.s32.totalorder %v16642_v25, %v6633_v61 }
 0x4d5   : > { %v5588_v13 = vpack.c.bf16 %v5275_v46, %v5271_v24  ;;  %vm2816_vm8 = vcmp.eq.s32.totalorder %v16637_v30, %v6636_v62  ;;  %vm2820_vm9 = vcmp.eq.s32.totalorder %v16642_v25, %v6636_v62  ;;  %vm994_vm12 = vcmp.eq.s32.totalorder %v16637_v30, %v6687_v63 }
 0x4d6   : > { %v3429_v19 = vsel %vm2816_vm8, %v6639_v0, 0.0  ;;  %v3433_v42 = vsel %vm2820_vm9, %v6639_v0, 0.0  ;;  %vm998_vm10 = vcmp.eq.s32.totalorder %v16642_v25, %v6687_v63  ;;  %vm1602_vm11 = vcmp.eq.s32.totalorder %v16637_v30, %v6690_v52 }
 0x4d7   : > { %5980 = vmatprep.subr.bf16.mxu1 %v5588_v13  ;;  %v4042_v55 = vsel %vm2208_vm6, %v6642_v2, %v3429_v19  ;;  %v4046_v48 = vsel %vm2212_vm7, %v6642_v2, %v3433_v42  ;;  %vm1606_vm13 = vcmp.eq.s32.totalorder %v16642_v25, %v6690_v52  ;;  %vm2210_vm14 = vcmp.eq.s32.totalorder %v16637_v30, %v6701_v35 }
 0x4d8   : > { %v4655_v5 = vsel %vm1600_vm4, %v6661_v20, %v4042_v55  ;;  %v4659_v23 = vsel %vm1604_vm5, %v6661_v20, %v4046_v48  ;;  %vm2214_vm15 = vcmp.eq.s32.totalorder %v16642_v25, %v6701_v35  ;;  %vm2818_vm0 = vcmp.eq.s32.totalorder %v16637_v30, %v6704_v56 }
 0x4d9   : > { %v5268_v45 = vsel %vm992_vm3, %v6664_v29, %v4655_v5  ;;  %v5272_v47 = vsel %vm996_vm2, %v6664_v29, %v4659_v23  ;;  %vm2822_vm1 = vcmp.eq.s32.totalorder %v16642_v25, %v6704_v56  ;;  %v3431_v51 = vsel %vm2818_vm0, %v6737_v59, 0.0 }
 0x4da   : > { %v5585_v17 = vpack.c.bf16 %v5272_v47, %v5268_v45  ;;  %v3435_v4 = vsel %vm2822_vm1, %v6737_v59, 0.0  ;;  %v4044_v7 = vsel %vm2210_vm14, %v6740_v54, %v3431_v51  ;;  %v16791_v50 = vadd.s32 1096, %v6309_v1 }
 0x4db   : > { %v4048_v31 = vsel %vm2214_vm15, %v6740_v54, %v3435_v4  ;;  %v4657_v22 = vsel %vm1602_vm11, %v6743_v53, %v4044_v7  ;;  %vm1001_vm3 = vcmp.eq.s32.totalorder %v16645_v32, %v6439_v12  ;;  %vm1609_vm2 = vcmp.eq.s32.totalorder %v16645_v32, %v6465_v8 }
 0x4dc   : > { %5776 = vmatpush1.bf16.msra.mxu0 %v5585_v17  ;;  %v4661_v18 = vsel %vm1606_vm13, %v6743_v53, %v4048_v31  ;;  %v5270_v11 = vsel %vm994_vm12, %v6748_v14, %v4657_v22  ;;  %vm1005_vm4 = vcmp.eq.s32.totalorder %v16791_v50, %v6439_v12  ;;  %vm1613_vm5 = vcmp.eq.s32.totalorder %v16791_v50, %v6465_v8 }
 0x4dd   : > { %v5274_v49 = vsel %vm998_vm10, %v6748_v14, %v4661_v18  ;;  %vm2217_vm6 = vcmp.eq.s32.totalorder %v16645_v32, %v6487_v38  ;;  %vm2221_vm7 = vcmp.eq.s32.totalorder %v16791_v50, %v6487_v38  ;;  %vm2825_vm8 = vcmp.eq.s32.totalorder %v16645_v32, %v6508_v6 }
 0x4de   : > { %v5587_v30 = vpack.c.bf16 %v5274_v49, %v5270_v11  ;;  %vm2829_vm9 = vcmp.eq.s32.totalorder %v16791_v50, %v6508_v6  ;;  %v3438_v3 = vsel %vm2825_vm8, %v6492_v40, 0.0  ;;  %vm1003_vm12 = vcmp.eq.s32.totalorder %v16645_v32, %v6480_v36 }
 0x4df   : > { %v3442_v25 = vsel %vm2829_vm9, %v6492_v40, 0.0  ;;  %v4051_v27 = vsel %vm2217_vm6, %v6455_v28, %v3438_v3  ;;  %vm1007_vm10 = vcmp.eq.s32.totalorder %v16791_v50, %v6480_v36  ;;  %vm1611_vm11 = vcmp.eq.s32.totalorder %v16645_v32, %v6499_v41 }
 0x4e0   : > { %5981 = vmatpush1.bf16.msra.mxu1 %v5587_v30  ;;  %v4055_v15 = vsel %vm2221_vm7, %v6455_v28, %v3442_v25  ;;  %v4664_v43 = vsel %vm1609_vm2, %v6470_v33, %v4051_v27  ;;  %vm1615_vm13 = vcmp.eq.s32.totalorder %v16791_v50, %v6499_v41  ;;  %vm2219_vm14 = vcmp.eq.s32.totalorder %v16645_v32, %v6521_v44 }
 0x4e1   : > { %v4668_v21 = vsel %vm1613_vm5, %v6470_v33, %v4055_v15  ;;  %v5277_v26 = vsel %vm1001_vm3, %v6473_v34, %v4664_v43  ;;  %vm2223_vm15 = vcmp.eq.s32.totalorder %v16791_v50, %v6521_v44  ;;  %vm2827_vm0 = vcmp.eq.s32.totalorder %v16645_v32, %v6530_v9 }
 0x4e2   : > { %v5281_v16 = vsel %vm1005_vm4, %v6473_v34, %v4668_v21  ;;  %vm2831_vm1 = vcmp.eq.s32.totalorder %v16791_v50, %v6530_v9  ;;  %v3440_v24 = vsel %vm2827_vm0, %v6561_v57, 0.0  ;;  %vm1000_vm2 = vcmp.eq.s32.totalorder %v16645_v32, %v6597_v39 }
 0x4e3   : > { %v5590_v46 = vpack.c.bf16 %v5281_v16, %v5277_v26  ;;  %v3444_v13 = vsel %vm2831_vm1, %v6561_v57, 0.0  ;;  %v4053_v19 = vsel %vm2219_vm14, %v6564_v58, %v3440_v24  ;;  %vm1004_vm3 = vcmp.eq.s32.totalorder %v16791_v50, %v6597_v39 }
 0x4e4   : > { %v4057_v42 = vsel %vm2223_vm15, %v6564_v58, %v3444_v13  ;;  %v4666_v55 = vsel %vm1611_vm11, %v6591_v10, %v4053_v19  ;;  %vm1608_vm4 = vcmp.eq.s32.totalorder %v16645_v32, %v6630_v60  ;;  %vm1612_vm5 = vcmp.eq.s32.totalorder %v16791_v50, %v6630_v60 }
 0x4e5   : > { %5777 = vmatprep.subr.bf16.mxu0 %v5590_v46  ;;  %v4670_v48 = vsel %vm1615_vm13, %v6591_v10, %v4057_v42  ;;  %v5279_v5 = vsel %vm1003_vm12, %v6594_v37, %v4666_v55  ;;  %vm2216_vm6 = vcmp.eq.s32.totalorder %v16645_v32, %v6633_v61  ;;  %vm2220_vm7 = vcmp.eq.s32.totalorder %v16791_v50, %v6633_v61 }
 0x4e6   : > { %v5283_v23 = vsel %vm1007_vm10, %v6594_v37, %v4670_v48  ;;  %vm2824_vm8 = vcmp.eq.s32.totalorder %v16645_v32, %v6636_v62  ;;  %vm2828_vm9 = vcmp.eq.s32.totalorder %v16791_v50, %v6636_v62  ;;  %vm1002_vm12 = vcmp.eq.s32.totalorder %v16645_v32, %v6687_v63 }
 0x4e7   : > { %v5592_v45 = vpack.c.bf16 %v5283_v23, %v5279_v5  ;;  %v3437_v47 = vsel %vm2824_vm8, %v6639_v0, 0.0  ;;  %v3441_v51 = vsel %vm2828_vm9, %v6639_v0, 0.0  ;;  %vm1006_vm11 = vcmp.eq.s32.totalorder %v16791_v50, %v6687_v63 }
 0x4e8   : > { %v4050_v17 = vsel %vm2216_vm6, %v6642_v2, %v3437_v47  ;;  %v4054_v4 = vsel %vm2220_vm7, %v6642_v2, %v3441_v51  ;;  %vm1610_vm10 = vcmp.eq.s32.totalorder %v16645_v32, %v6690_v52  ;;  %vm1614_vm13 = vcmp.eq.s32.totalorder %v16791_v50, %v6690_v52 }
 0x4e9   : > { %5982 = vmatprep.subr.bf16.mxu1 %v5592_v45  ;;  %v4663_v7 = vsel %vm1608_vm4, %v6661_v20, %v4050_v17  ;;  %v4667_v31 = vsel %vm1612_vm5, %v6661_v20, %v4054_v4  ;;  %vm2218_vm14 = vcmp.eq.s32.totalorder %v16645_v32, %v6701_v35  ;;  %vm2222_vm15 = vcmp.eq.s32.totalorder %v16791_v50, %v6701_v35 }
 0x4ea   : > { %v5276_v22 = vsel %vm1000_vm2, %v6664_v29, %v4663_v7  ;;  %v5280_v18 = vsel %vm1004_vm3, %v6664_v29, %v4667_v31  ;;  %vm2826_vm0 = vcmp.eq.s32.totalorder %v16645_v32, %v6704_v56  ;;  %vm2830_vm1 = vcmp.eq.s32.totalorder %v16791_v50, %v6704_v56 }
 0x4eb   : > { %v5589_v11 = vpack.c.bf16 %v5280_v18, %v5276_v22  ;;  %v3439_v49 = vsel %vm2826_vm0, %v6737_v59, 0.0  ;;  %v3443_v30 = vsel %vm2830_vm1, %v6737_v59, 0.0  ;;  %v16937_v3 = vadd.s32 1104, %v6309_v1 }
 0x4ec   : > { %v4052_v25 = vsel %vm2218_vm14, %v6740_v54, %v3439_v49  ;;  %v4056_v27 = vsel %vm2222_vm15, %v6740_v54, %v3443_v30  ;;  %v16942_v15 = vadd.s32 1112, %v6309_v1  ;;  %v16945_v43 = vadd.s32 1120, %v6309_v1 }
 0x4ed   : > { %5778 = vmatpush1.bf16.msra.mxu0 %v5589_v11  ;;  %v4665_v21 = vsel %vm1610_vm10, %v6743_v53, %v4052_v25  ;;  %v4669_v26 = vsel %vm1614_vm13, %v6743_v53, %v4056_v27  ;;  %vm1009_vm2 = vcmp.eq.s32.totalorder %v16937_v3, %v6439_v12  ;;  %vm1617_vm3 = vcmp.eq.s32.totalorder %v16937_v3, %v6465_v8 }
 0x4ee   : > { %v5278_v16 = vsel %vm1002_vm12, %v6748_v14, %v4665_v21  ;;  %v5282_v24 = vsel %vm1006_vm11, %v6748_v14, %v4669_v26  ;;  %vm1013_vm4 = vcmp.eq.s32.totalorder %v16942_v15, %v6439_v12  ;;  %vm1621_vm5 = vcmp.eq.s32.totalorder %v16942_v15, %v6465_v8 }
 0x4ef   : > { %v5591_v46 = vpack.c.bf16 %v5282_v24, %v5278_v16  ;;  %vm2225_vm6 = vcmp.eq.s32.totalorder %v16937_v3, %v6487_v38  ;;  %vm2229_vm7 = vcmp.eq.s32.totalorder %v16942_v15, %v6487_v38  ;;  %vm2833_vm8 = vcmp.eq.s32.totalorder %v16937_v3, %v6508_v6 }
 0x4f0   : > { %vm2837_vm9 = vcmp.eq.s32.totalorder %v16942_v15, %v6508_v6  ;;  %v3446_v32 = vsel %vm2833_vm8, %v6492_v40, 0.0  ;;  %vm1011_vm12 = vcmp.eq.s32.totalorder %v16937_v3, %v6480_v36  ;;  %vm1015_vm11 = vcmp.eq.s32.totalorder %v16942_v15, %v6480_v36 }
 0x4f1   : > { %5983 = vmatpush1.bf16.msra.mxu1 %v5591_v46  ;;  %v3450_v50 = vsel %vm2837_vm9, %v6492_v40, 0.0  ;;  %v4059_v13 = vsel %vm2225_vm6, %v6455_v28, %v3446_v32  ;;  %vm1619_vm10 = vcmp.eq.s32.totalorder %v16937_v3, %v6499_v41  ;;  %vm1623_vm13 = vcmp.eq.s32.totalorder %v16942_v15, %v6499_v41 }
 0x4f2   : > { %v4063_v19 = vsel %vm2229_vm7, %v6455_v28, %v3450_v50  ;;  %v4672_v42 = vsel %vm1617_vm3, %v6470_v33, %v4059_v13  ;;  %vm2227_vm14 = vcmp.eq.s32.totalorder %v16937_v3, %v6521_v44  ;;  %vm2231_vm15 = vcmp.eq.s32.totalorder %v16942_v15, %v6521_v44 }
 0x4f3   : > { %v4676_v55 = vsel %vm1621_vm5, %v6470_v33, %v4063_v19  ;;  %v5285_v48 = vsel %vm1009_vm2, %v6473_v34, %v4672_v42  ;;  %vm2835_vm0 = vcmp.eq.s32.totalorder %v16937_v3, %v6530_v9  ;;  %vm2839_vm1 = vcmp.eq.s32.totalorder %v16942_v15, %v6530_v9 }
 0x4f4   : > { %v5289_v5 = vsel %vm1013_vm4, %v6473_v34, %v4676_v55  ;;  %v3448_v23 = vsel %vm2835_vm0, %v6561_v57, 0.0  ;;  %v3452_v45 = vsel %vm2839_vm1, %v6561_v57, 0.0  ;;  %vm1008_vm3 = vcmp.eq.s32.totalorder %v16937_v3, %v6597_v39 }
 0x4f5   : > { %v5594_v47 = vpack.c.bf16 %v5289_v5, %v5285_v48  ;;  %v4061_v51 = vsel %vm2227_vm14, %v6564_v58, %v3448_v23  ;;  %v4065_v17 = vsel %vm2231_vm15, %v6564_v58, %v3452_v45  ;;  %vm1012_vm2 = vcmp.eq.s32.totalorder %v16942_v15, %v6597_v39 }
 0x4f6   : > { %v4674_v4 = vsel %vm1619_vm10, %v6591_v10, %v4061_v51  ;;  %v4678_v7 = vsel %vm1623_vm13, %v6591_v10, %v4065_v17  ;;  %vm1616_vm4 = vcmp.eq.s32.totalorder %v16937_v3, %v6630_v60  ;;  %vm1620_vm5 = vcmp.eq.s32.totalorder %v16942_v15, %v6630_v60 }
 0x4f7   : > { %5779 = vmatprep.subr.bf16.mxu0 %v5594_v47  ;;  %v5287_v31 = vsel %vm1011_vm12, %v6594_v37, %v4674_v4  ;;  %v5291_v22 = vsel %vm1015_vm11, %v6594_v37, %v4678_v7  ;;  %vm2224_vm6 = vcmp.eq.s32.totalorder %v16937_v3, %v6633_v61  ;;  %vm2228_vm7 = vcmp.eq.s32.totalorder %v16942_v15, %v6633_v61 }
 0x4f8   : > { %v5596_v18 = vpack.c.bf16 %v5291_v22, %v5287_v31  ;;  %vm2832_vm8 = vcmp.eq.s32.totalorder %v16937_v3, %v6636_v62  ;;  %vm2836_vm9 = vcmp.eq.s32.totalorder %v16942_v15, %v6636_v62  ;;  %vm1010_vm12 = vcmp.eq.s32.totalorder %v16937_v3, %v6687_v63 }
 0x4f9   : > { %v3445_v11 = vsel %vm2832_vm8, %v6639_v0, 0.0  ;;  %v3449_v49 = vsel %vm2836_vm9, %v6639_v0, 0.0  ;;  %vm1014_vm11 = vcmp.eq.s32.totalorder %v16942_v15, %v6687_v63  ;;  %vm1618_vm10 = vcmp.eq.s32.totalorder %v16937_v3, %v6690_v52 }
 0x4fa   : > { %5984 = vmatprep.subr.bf16.mxu1 %v5596_v18  ;;  %v4058_v30 = vsel %vm2224_vm6, %v6642_v2, %v3445_v11  ;;  %v4062_v25 = vsel %vm2228_vm7, %v6642_v2, %v3449_v49  ;;  %vm1622_vm13 = vcmp.eq.s32.totalorder %v16942_v15, %v6690_v52  ;;  %vm2226_vm14 = vcmp.eq.s32.totalorder %v16937_v3, %v6701_v35 }
 0x4fb   : > { %v4671_v27 = vsel %vm1616_vm4, %v6661_v20, %v4058_v30  ;;  %v4675_v21 = vsel %vm1620_vm5, %v6661_v20, %v4062_v25  ;;  %vm2230_vm15 = vcmp.eq.s32.totalorder %v16942_v15, %v6701_v35  ;;  %vm2834_vm0 = vcmp.eq.s32.totalorder %v16937_v3, %v6704_v56 }
 0x4fc   : > { %v5284_v26 = vsel %vm1008_vm3, %v6664_v29, %v4671_v27  ;;  %v5288_v16 = vsel %vm1012_vm2, %v6664_v29, %v4675_v21  ;;  %vm2838_vm1 = vcmp.eq.s32.totalorder %v16942_v15, %v6704_v56  ;;  %v3447_v24 = vsel %vm2834_vm0, %v6737_v59, 0.0 }
 0x4fd   : > { %v5593_v46 = vpack.c.bf16 %v5288_v16, %v5284_v26  ;;  %v3451_v32 = vsel %vm2838_vm1, %v6737_v59, 0.0  ;;  %v4060_v50 = vsel %vm2226_vm14, %v6740_v54, %v3447_v24  ;;  %v17091_v13 = vadd.s32 1128, %v6309_v1 }
 0x4fe   : > { %v4064_v19 = vsel %vm2230_vm15, %v6740_v54, %v3451_v32  ;;  %v4673_v42 = vsel %vm1618_vm10, %v6743_v53, %v4060_v50  ;;  %vm1017_vm3 = vcmp.eq.s32.totalorder %v16945_v43, %v6439_v12  ;;  %vm1625_vm2 = vcmp.eq.s32.totalorder %v16945_v43, %v6465_v8 }
 0x4ff   : > { %5780 = vmatpush1.bf16.msra.mxu0 %v5593_v46  ;;  %v4677_v55 = vsel %vm1622_vm13, %v6743_v53, %v4064_v19  ;;  %v5286_v48 = vsel %vm1010_vm12, %v6748_v14, %v4673_v42  ;;  %vm1021_vm4 = vcmp.eq.s32.totalorder %v17091_v13, %v6439_v12  ;;  %vm1629_vm5 = vcmp.eq.s32.totalorder %v17091_v13, %v6465_v8 }
 0x500   : > { %v5290_v5 = vsel %vm1014_vm11, %v6748_v14, %v4677_v55  ;;  %vm2233_vm6 = vcmp.eq.s32.totalorder %v16945_v43, %v6487_v38  ;;  %vm2237_vm7 = vcmp.eq.s32.totalorder %v17091_v13, %v6487_v38  ;;  %vm2841_vm8 = vcmp.eq.s32.totalorder %v16945_v43, %v6508_v6 }
 0x501   : > { %v5595_v3 = vpack.c.bf16 %v5290_v5, %v5286_v48  ;;  %vm2845_vm9 = vcmp.eq.s32.totalorder %v17091_v13, %v6508_v6  ;;  %v3454_v23 = vsel %vm2841_vm8, %v6492_v40, 0.0  ;;  %vm1019_vm12 = vcmp.eq.s32.totalorder %v16945_v43, %v6480_v36 }
 0x502   : > { %v3458_v15 = vsel %vm2845_vm9, %v6492_v40, 0.0  ;;  %v4067_v45 = vsel %vm2233_vm6, %v6455_v28, %v3454_v23  ;;  %vm1023_vm11 = vcmp.eq.s32.totalorder %v17091_v13, %v6480_v36  ;;  %vm1627_vm10 = vcmp.eq.s32.totalorder %v16945_v43, %v6499_v41 }
 0x503   : > { %5985 = vmatpush1.bf16.msra.mxu1 %v5595_v3  ;;  %v4071_v47 = vsel %vm2237_vm7, %v6455_v28, %v3458_v15  ;;  %v4680_v51 = vsel %vm1625_vm2, %v6470_v33, %v4067_v45  ;;  %vm1631_vm13 = vcmp.eq.s32.totalorder %v17091_v13, %v6499_v41  ;;  %vm2235_vm14 = vcmp.eq.s32.totalorder %v16945_v43, %v6521_v44 }
 0x504   : > { %v4684_v17 = vsel %vm1629_vm5, %v6470_v33, %v4071_v47  ;;  %v5293_v4 = vsel %vm1017_vm3, %v6473_v34, %v4680_v51  ;;  %vm2239_vm15 = vcmp.eq.s32.totalorder %v17091_v13, %v6521_v44  ;;  %vm2843_vm0 = vcmp.eq.s32.totalorder %v16945_v43, %v6530_v9 }
 0x505   : > { %v5297_v7 = vsel %vm1021_vm4, %v6473_v34, %v4684_v17  ;;  %vm2847_vm1 = vcmp.eq.s32.totalorder %v17091_v13, %v6530_v9  ;;  %v3456_v31 = vsel %vm2843_vm0, %v6561_v57, 0.0  ;;  %vm1016_vm2 = vcmp.eq.s32.totalorder %v16945_v43, %v6597_v39 }
 0x506   : > { %v5598_v22 = vpack.c.bf16 %v5297_v7, %v5293_v4  ;;  %v3460_v18 = vsel %vm2847_vm1, %v6561_v57, 0.0  ;;  %v4069_v11 = vsel %vm2235_vm14, %v6564_v58, %v3456_v31  ;;  %vm1020_vm3 = vcmp.eq.s32.totalorder %v17091_v13, %v6597_v39 }
 0x507   : > { %v4073_v49 = vsel %vm2239_vm15, %v6564_v58, %v3460_v18  ;;  %v4682_v30 = vsel %vm1627_vm10, %v6591_v10, %v4069_v11  ;;  %vm1624_vm4 = vcmp.eq.s32.totalorder %v16945_v43, %v6630_v60  ;;  %vm1628_vm5 = vcmp.eq.s32.totalorder %v17091_v13, %v6630_v60 }
 0x508   : > { %5781 = vmatprep.subr.bf16.mxu0 %v5598_v22  ;;  %v4686_v25 = vsel %vm1631_vm13, %v6591_v10, %v4073_v49  ;;  %v5295_v27 = vsel %vm1019_vm12, %v6594_v37, %v4682_v30  ;;  %vm2232_vm6 = vcmp.eq.s32.totalorder %v16945_v43, %v6633_v61  ;;  %vm2236_vm7 = vcmp.eq.s32.totalorder %v17091_v13, %v6633_v61 }
 0x509   : > { %v5299_v21 = vsel %vm1023_vm11, %v6594_v37, %v4686_v25  ;;  %vm2840_vm8 = vcmp.eq.s32.totalorder %v16945_v43, %v6636_v62  ;;  %vm2844_vm9 = vcmp.eq.s32.totalorder %v17091_v13, %v6636_v62  ;;  %vm1018_vm12 = vcmp.eq.s32.totalorder %v16945_v43, %v6687_v63 }
 0x50a   : > { %v5600_v26 = vpack.c.bf16 %v5299_v21, %v5295_v27  ;;  %v3453_v16 = vsel %vm2840_vm8, %v6639_v0, 0.0  ;;  %v3457_v24 = vsel %vm2844_vm9, %v6639_v0, 0.0  ;;  %vm1022_vm10 = vcmp.eq.s32.totalorder %v17091_v13, %v6687_v63 }
 0x50b   : > { %v4066_v46 = vsel %vm2232_vm6, %v6642_v2, %v3453_v16  ;;  %v4070_v32 = vsel %vm2236_vm7, %v6642_v2, %v3457_v24  ;;  %vm1626_vm11 = vcmp.eq.s32.totalorder %v16945_v43, %v6690_v52  ;;  %vm1630_vm13 = vcmp.eq.s32.totalorder %v17091_v13, %v6690_v52 }
 0x50c   : > { %5986 = vmatprep.subr.bf16.mxu1 %v5600_v26  ;;  %v4679_v50 = vsel %vm1624_vm4, %v6661_v20, %v4066_v46  ;;  %v4683_v19 = vsel %vm1628_vm5, %v6661_v20, %v4070_v32  ;;  %vm2234_vm14 = vcmp.eq.s32.totalorder %v16945_v43, %v6701_v35  ;;  %vm2238_vm15 = vcmp.eq.s32.totalorder %v17091_v13, %v6701_v35 }
 0x50d   : > { %v5292_v42 = vsel %vm1016_vm2, %v6664_v29, %v4679_v50  ;;  %v5296_v55 = vsel %vm1020_vm3, %v6664_v29, %v4683_v19  ;;  %vm2842_vm0 = vcmp.eq.s32.totalorder %v16945_v43, %v6704_v56  ;;  %vm2846_vm1 = vcmp.eq.s32.totalorder %v17091_v13, %v6704_v56 }
 0x50e   : > { %v5597_v48 = vpack.c.bf16 %v5296_v55, %v5292_v42  ;;  %v3455_v5 = vsel %vm2842_vm0, %v6737_v59, 0.0  ;;  %v3459_v3 = vsel %vm2846_vm1, %v6737_v59, 0.0  ;;  %v17237_v23 = vadd.s32 1136, %v6309_v1 }
 0x50f   : > { %v4068_v15 = vsel %vm2234_vm14, %v6740_v54, %v3455_v5  ;;  %v4072_v45 = vsel %vm2238_vm15, %v6740_v54, %v3459_v3  ;;  %v17242_v47 = vadd.s32 1144, %v6309_v1 }
 0x510   : > { %5782 = vmatpush1.bf16.msra.mxu0 %v5597_v48  ;;  %v4681_v51 = vsel %vm1626_vm11, %v6743_v53, %v4068_v15  ;;  %v4685_v17 = vsel %vm1630_vm13, %v6743_v53, %v4072_v45  ;;  %vm1025_vm2 = vcmp.eq.s32.totalorder %v17237_v23, %v6439_v12  ;;  %vm1633_vm4 = vcmp.eq.s32.totalorder %v17237_v23, %v6465_v8 }
 0x511   : > { %v5294_v1 = vsel %vm1018_vm12, %v6748_v14, %v4681_v51  ;;  %v5298_v4 = vsel %vm1022_vm10, %v6748_v14, %v4685_v17  ;;  %vm1029_vm3 = vcmp.eq.s32.totalorder %v17242_v47, %v6439_v12  ;;  %vm2241_vm5 = vcmp.eq.s32.totalorder %v17237_v23, %v6487_v38 }
 0x512   : > { %v5599_v7 = vpack.c.bf16 %v5298_v4, %v5294_v1  ;;  %vm2245_vm6 = vcmp.eq.s32.totalorder %v17242_v47, %v6487_v38  ;;  %vm2849_vm7 = vcmp.eq.s32.totalorder %v17237_v23, %v6508_v6  ;;  %vm1637_vm8 = vcmp.eq.s32.totalorder %v17242_v47, %v6465_v8 }
 0x513   : > { %vm2853_vm9 = vcmp.eq.s32.totalorder %v17242_v47, %v6508_v6  ;;  %v3462_v43 = vsel %vm2849_vm7, %v6492_v40, 0.0  ;;  %vm1027_vm12 = vcmp.eq.s32.totalorder %v17237_v23, %v6480_v36  ;;  %vm1635_vm10 = vcmp.eq.s32.totalorder %v17237_v23, %v6499_v41 }
 0x514   : > { %5987 = vmatpush1.bf16.msra.mxu1 %v5599_v7  ;;  %v3466_v13 = vsel %vm2853_vm9, %v6492_v40, 0.0  ;;  %v4075_v31 = vsel %vm2241_vm5, %v6455_v28, %v3462_v43  ;;  %vm1639_vm11 = vcmp.eq.s32.totalorder %v17242_v47, %v6499_v41  ;;  %vm2243_vm13 = vcmp.eq.s32.totalorder %v17237_v23, %v6521_v44 }
 0x515   : > { %v4079_v8 = vsel %vm2245_vm6, %v6455_v28, %v3466_v13  ;;  %v4688_v38 = vsel %vm1633_vm4, %v6470_v33, %v4075_v31  ;;  %vm2247_vm14 = vcmp.eq.s32.totalorder %v17242_v47, %v6521_v44  ;;  %vm2851_vm15 = vcmp.eq.s32.totalorder %v17237_v23, %v6530_v9 }
 0x516   : > { %v4692_v40 = vsel %vm1637_vm8, %v6470_v33, %v4079_v8  ;;  %v5301_v6 = vsel %vm1025_vm2, %v6473_v34, %v4688_v38  ;;  %vm2855_vm0 = vcmp.eq.s32.totalorder %v17242_v47, %v6530_v9  ;;  %vm1031_vm1 = vcmp.eq.s32.totalorder %v17242_v47, %v6480_v36 }
 0x517   : > { %v5305_v28 = vsel %vm1029_vm3, %v6473_v34, %v4692_v40  ;;  %v3464_v33 = vsel %vm2851_vm15, %v6561_v57, 0.0  ;;  %v3468_v44 = vsel %vm2855_vm0, %v6561_v57, 0.0  ;;  %vm1024_vm2 = vcmp.eq.s32.totalorder %v17237_v23, %v6597_v39 }
 0x518   : > { %v5602_v22 = vpack.c.bf16 %v5305_v28, %v5301_v6  ;;  %v4077_v18 = vsel %vm2243_vm13, %v6564_v58, %v3464_v33  ;;  %v4081_v11 = vsel %vm2247_vm14, %v6564_v58, %v3468_v44  ;;  %vm1028_vm3 = vcmp.eq.s32.totalorder %v17242_v47, %v6597_v39 }
 0x519   : > { %v4690_v12 = vsel %vm1635_vm10, %v6591_v10, %v4077_v18  ;;  %v4694_v34 = vsel %vm1639_vm11, %v6591_v10, %v4081_v11  ;;  %vm1632_vm4 = vcmp.eq.s32.totalorder %v17237_v23, %v6630_v60  ;;  %vm2240_vm5 = vcmp.eq.s32.totalorder %v17237_v23, %v6633_v61 }
 0x51a   : > { %5783 = vmatprep.subr.bf16.mxu0 %v5602_v22  ;;  %v5303_v9 = vsel %vm1027_vm12, %v6594_v37, %v4690_v12  ;;  %v5307_v57 = vsel %vm1031_vm1, %v6594_v37, %v4694_v34  ;;  %vm2244_vm6 = vcmp.eq.s32.totalorder %v17242_v47, %v6633_v61  ;;  %vm1636_vm7 = vcmp.eq.s32.totalorder %v17242_v47, %v6630_v60 }
 0x51b   : > { %v5604_v41 = vpack.c.bf16 %v5307_v57, %v5303_v9  ;;  %vm2848_vm8 = vcmp.eq.s32.totalorder %v17237_v23, %v6636_v62  ;;  %vm2852_vm9 = vcmp.eq.s32.totalorder %v17242_v47, %v6636_v62  ;;  %vm1026_vm12 = vcmp.eq.s32.totalorder %v17237_v23, %v6687_v63 }
 0x51c   : > { %v3461_v36 = vsel %vm2848_vm8, %v6639_v0, 0.0  ;;  %v3465_v58 = vsel %vm2852_vm9, %v6639_v0, 0.0  ;;  %vm1634_vm10 = vcmp.eq.s32.totalorder %v17237_v23, %v6690_v52  ;;  %vm1638_vm11 = vcmp.eq.s32.totalorder %v17242_v47, %v6690_v52  ;;  %v213_v0 = vld [vmem:[%s8788_s26 + $0x40] sm:$0xff] }
 0x51d   : > { %5988 = vmatprep.subr.bf16.mxu1 %v5604_v41  ;;  %v4074_v10 = vsel %vm2240_vm5, %v6642_v2, %v3461_v36  ;;  %v4078_v37 = vsel %vm2244_vm6, %v6642_v2, %v3465_v58  ;;  %vm2242_vm13 = vcmp.eq.s32.totalorder %v17237_v23, %v6701_v35  ;;  %vm2246_vm14 = vcmp.eq.s32.totalorder %v17242_v47, %v6701_v35 }
 0x51e   : > { %v4687_v61 = vsel %vm1632_vm4, %v6661_v20, %v4074_v10  ;;  %v4691_v62 = vsel %vm1636_vm7, %v6661_v20, %v4078_v37  ;;  %vm2850_vm15 = vcmp.eq.s32.totalorder %v17237_v23, %v6704_v56  ;;  %vm2854_vm0 = vcmp.eq.s32.totalorder %v17242_v47, %v6704_v56 }
 0x51f   : > { %v5300_v2 = vsel %vm1024_vm2, %v6664_v29, %v4687_v61  ;;  %v5304_v60 = vsel %vm1028_vm3, %v6664_v29, %v4691_v62  ;;  %v3463_v20 = vsel %vm2850_vm15, %v6737_v59, 0.0  ;;  %vm1030_vm1 = vcmp.eq.s32.totalorder %v17242_v47, %v6687_v63 }
 0x520   : > { %v5601_v35 = vpack.c.bf16 %v5304_v60, %v5300_v2  ;;  %v3467_v49 = vsel %vm2854_vm0, %v6737_v59, 0.0  ;;  %v4076_v30 = vsel %vm2242_vm13, %v6740_v54, %v3463_v20  ;;  %v5316_v29 = vpack.c.bf16 %v213_v0, %v213_v0 }
 0x521   : > { %v4080_v25 = vsel %vm2246_vm14, %v6740_v54, %v3467_v49  ;;  %v4689_v39 = vsel %vm1634_vm10, %v6743_v53, %v4076_v30 }
 0x522   : > { %5784 = vmatpush1.bf16.msra.mxu0 %v5601_v35  ;;  %v4693_v56 = vsel %vm1638_vm11, %v6743_v53, %v4080_v25  ;;  %v5302_v59 = vsel %vm1026_vm12, %v6748_v14, %v4689_v39 }
 0x523   : > { %v5306_v27 = vsel %vm1030_vm1, %v6748_v14, %v4693_v56 }
 0x524   : > { %v5603_v54 = vpack.c.bf16 %v5306_v27, %v5302_v59 }
 0x525   : > { %5802 = vmatmul.mubr.bf16.vlgmr.msra.gmra.mrb[0].mxu0 %v5316_v29 }
 0x526   : > { %5989 = vmatpush1.bf16.msra.mxu1 %v5603_v54 }
 0x529   : > { %6007 = vmatmul.mubr.bf16.vlgmr.msra.gmra.mrb[0].mxu1 %v5316_v29 }
 0x5f8   : > { %v5803_v21 = vpop.f32.mrb[0].mxu0 }
 0x5f9   : > { %6015 = vst [vmem:[%s201_s30] sm:$0xff] %v5803_v21  ;;  %v5805_v52 = vpop.f32.mrb[1].mxu0 }
 0x5fa   : > { %6016 = vst [vmem:[%s201_s30 + $0x8] sm:$0xff] %v5805_v52  ;;  %v5807_v53 = vpop.f32.mrb[2].mxu0 }
 0x5fb   : > { %v5808_v26 = vpop.f32.mrb[3].mxu0 }
 0x5fc   : > { %v6008_v16 = vpop.f32.mrb[0].mxu1 }
 0x5fd   : > { %6017 = vst [vmem:[%s201_s30 + $0x10] sm:$0xff] %v6008_v16  ;;  %v6010_v63 = vpop.f32.mrb[1].mxu1 }
 0x5fe   : > { %6018 = vst [vmem:[%s201_s30 + $0x18] sm:$0xff] %v6010_v63  ;;  %v6012_v14 = vpop.f32.mrb[2].mxu1 }
 0x5ff   : > { %v6013_v24 = vpop.f32.mrb[3].mxu1 }
 0x600 PF: > { %s12_s13 = sadd.s32 1, %s6256_s13   ;;  %s17424_s9 = smov %s6248_s11 }
 0x601   : > { %p9_p7 = scmp.ge.s32.totalorder %s12_s13, 8   ;;  %s17425_s10 = smov %s6252_s12 }
 0x602   : > { %s17426_s11 = smov %s17429_s14  ;;  %s17427_s12 = smov %s17433_s15 }
 0x603   :  { %11 = sbr.rel (!%p9_p7) target bundleno = 3 (0x3), region = 61 }

</bundles_post_ra>
